<compile_context>
chip_gen: v6e
topology: v6e:2x2x1
jax: 0.10.0
libtpu: 0.0.40
codegen_flags: <defaults>
</compile_context>

<pallas_src>
import functools

import jax
import jax.numpy as jnp
from jax.experimental import pallas as pl
from jax.experimental.pallas import tpu as pltpu

LRELU_SLOPE = 0.01        # nn.LeakyReLU() default
NODE_TILE = 512           # frontend row tile; node rows padded to a multiple of this
SPMM_TILE = 256           # dst-row tile for the tiled (large-graph) RGCN path
_FRONTEND_VMEM = 32 * 1024 * 1024


def _leaky_relu(x, slope=LRELU_SLOPE):
    return jnp.where(x > 0, x, slope * x)


def _bf16(x):
    return x.astype(jnp.bfloat16)


def _vmem_capacity_bytes():
    # v5e/v6e: 128 MiB physical VMEM, v7x: 64 MiB per TensorCore.
    try:
        return int(pltpu.get_tpu_info().vmem_capacity_bytes)
    except Exception:
        return 64 * 1024 * 1024   # conservative (v7x per-TC) fallback


def _head_vmem_limit():
    # ~85% of physical: ~108 MiB on v5e/v6e, ~54 MiB on v7x.
    cap = _vmem_capacity_bytes()
    return int(min(max(32 * 1024 * 1024, cap * 0.85), 110 * 1024 * 1024))


def _pad_cols(x, mult=8):
    pad = (-x.shape[1]) % mult
    return x if pad == 0 else jnp.pad(x, ((0, 0), (0, pad)))


def _pad_weight_rows(w, mult=8):
    pad = (-w.shape[0]) % mult
    return w if pad == 0 else jnp.pad(w, ((0, pad), (0, 0)))


# ----------------------- fused front-end: 4 projections + input linear -----------------------
def _frontend_kernel(des_ref, tw_ref, num_ref, cat_ref,
                     wd_ref, bd_ref, wt_ref, bt_ref,
                     wn_ref, bn_ref, wc_ref, bc_ref,
                     wi_ref, bi_ref, o_ref, *, qtr):
    def proj(x_ref, w_ref, b_ref):
        y = jnp.dot(x_ref[...], w_ref[...],
                    preferred_element_type=jnp.float32) + b_ref[...]
        return _bf16(_leaky_relu(y))

    d = proj(des_ref, wd_ref, bd_ref)   # (TN, qtr) bf16
    t = proj(tw_ref, wt_ref, bt_ref)
    n = proj(num_ref, wn_ref, bn_ref)
    c = proj(cat_ref, wc_ref, bc_ref)

    # x = concat([d,t,n,c]); x @ Wi  ==  d @ Wi[0:q] + t @ Wi[q:2q] + n @ Wi[2q:3q] + c @ Wi[3q:4q]
    # -> avoids materializing the concat and keeps every matmul output 128-lane dense.
    wi = wi_ref[...]
    y = (jnp.dot(d, wi[0 * qtr:1 * qtr, :], preferred_element_type=jnp.float32)
         + jnp.dot(t, wi[1 * qtr:2 * qtr, :], preferred_element_type=jnp.float32)
         + jnp.dot(n, wi[2 * qtr:3 * qtr, :], preferred_element_type=jnp.float32)
         + jnp.dot(c, wi[3 * qtr:4 * qtr, :], preferred_element_type=jnp.float32)
         + bi_ref[...])
    o_ref[...] = _bf16(_leaky_relu(y))


def frontend(des, tweet, num_prop, cat_prop, p, *, emb=128):
    n_pad = des.shape[0]
    assert n_pad % NODE_TILE == 0
    qtr = emb // 4
    tn = NODE_TILE
    grid = (n_pad // tn,)

    def row_spec(feat):
        return pl.BlockSpec((tn, feat), lambda i: (i, 0))

    def full_spec(shape):
        zeros = (0,) * len(shape)
        return pl.BlockSpec(shape, lambda i, _z=zeros: _z)

    kernel = functools.partial(_frontend_kernel, qtr=qtr)
    return pl.pallas_call(
        kernel,
        out_shape=jax.ShapeDtypeStruct((n_pad, emb), jnp.bfloat16),
        grid=grid,
        in_specs=[
            row_spec(des.shape[1]), row_spec(tweet.shape[1]),
            row_spec(num_prop.shape[1]), row_spec(cat_prop.shape[1]),
            full_spec(p["des_w"].shape), full_spec(p["des_b"].shape),
            full_spec(p["tweet_w"].shape), full_spec(p["tweet_b"].shape),
            full_spec(p["num_w"].shape), full_spec(p["num_b"].shape),
            full_spec(p["cat_w"].shape), full_spec(p["cat_b"].shape),
            full_spec(p["in_w"].shape), full_spec(p["in_b"].shape),
        ],
        out_specs=pl.BlockSpec((tn, emb), lambda i: (i, 0)),
        compiler_params=pltpu.CompilerParams(
            dimension_semantics=("parallel",),
            vmem_limit_bytes=_FRONTEND_VMEM),
    )(des, tweet, num_prop, cat_prop,
      p["des_w"], p["des_b"], p["tweet_w"], p["tweet_b"],
      p["num_w"], p["num_b"], p["cat_w"], p["cat_b"],
      p["in_w"], p["in_b"])


# ------------------- fused: RGCNConv x2 (shared weights) + output MLP -------------------
# PyG RGCNConv (defaults): out_i = x_i @ W_root + b + sum_r mean_{j in N_r(i)} x_j @ W_r
# Dense form with mean folded into adj: msg_r = adj_norm_r @ (x @ W_r).
def _rgcn_fused_kernel(x_ref, adj_ref, w_all_ref, b_ref,
                       w1_ref, b1_ref, w2_ref, b2_ref, o_ref,
                       *, num_relations, emb, num_layers):
    w_all = w_all_ref[...]          # (emb, (R+1)*emb) bf16: [W_r0 | W_r1 | W_root]
    bias = b_ref[...]

    h = x_ref[...]                  # (Np, emb) bf16
    for _ in range(num_layers):     # the same RGCNConv module is applied twice (shared weights)
        # one lane-dense 384-wide MXU matmul covers all relation + root projections
        hw = jnp.dot(h, w_all, preferred_element_type=jnp.float32)              # (Np, (R+1)*emb)
        out = hw[:, num_relations * emb:(num_relations + 1) * emb] + bias       # root + bias
        for r in range(num_relations):
            out = out + jnp.dot(adj_ref[r], _bf16(hw[:, r * emb:(r + 1) * emb]),
                                preferred_element_type=jnp.float32)             # pre-normalized adj
        # TODO(synk): F.dropout(p=0.4, training=self.training) between the two RGCN layers —
        # identity in eval mode; training-mode stochastic dropout not implemented.
        h = _bf16(out)

    # output head: Linear + LeakyReLU, then Linear (lane-dense padded; sliced to 2 outside)
    h1 = _leaky_relu(jnp.dot(h, w1_ref[...], preferred_element_type=jnp.float32) + b1_ref[...])
    o_ref[...] = jnp.dot(_bf16(h1), w2_ref[...],
                         preferred_element_type=jnp.float32) + b2_ref[...]


# --------------- tiled (large-graph) path: per-layer spmm over dst-row tiles ---------------
def _xw_kernel(x_ref, w_all_ref, o_ref):
    o_ref[...] = jnp.dot(x_ref[...], w_all_ref[...],
                         preferred_element_type=jnp.float32).astype(o_ref.dtype)


def _spmm_kernel(adj_ref, hw_ref, b_ref, o_ref, *, num_relations, emb, tm):
    i = pl.program_id(0)
    row0 = pl.multiple_of(i * tm, tm)
    blk = hw_ref[pl.ds(row0, tm), :]                                   # (tm, (R+1)*emb) bf16
    out = blk[:, num_relations * emb:].astype(jnp.float32) + b_ref[...]
    for r in range(num_relations):
        out = out + jnp.dot(adj_ref[r], hw_ref[:, r * emb:(r + 1) * emb],
                            preferred_element_type=jnp.float32)
    o_ref[...] = out.astype(o_ref.dtype)


def _head_kernel(x_ref, w1_ref, b1_ref, w2_ref, b2_ref, o_ref):
    h = _leaky_relu(jnp.dot(x_ref[...], w1_ref[...],
                            preferred_element_type=jnp.float32) + b1_ref[...])
    o_ref[...] = jnp.dot(_bf16(h), w2_ref[...],
                         preferred_element_type=jnp.float32) + b2_ref[...]


def _rgcn_head_tiled(x, adj, p, *, num_relations, emb, num_layers, tm, vmem_limit):
    n_pad = x.shape[0]
    wid = (num_relations + 1) * emb
    grid = (n_pad // tm,)
    row_par = pltpu.CompilerParams(dimension_semantics=("parallel",),
                                   vmem_limit_bytes=vmem_limit)

    xw_call = pl.pallas_call(
        _xw_kernel,
        out_shape=jax.ShapeDtypeStruct((n_pad, wid), jnp.bfloat16),
        grid=grid,
        in_specs=[pl.BlockSpec((tm, emb), lambda i: (i, 0)),
                  pl.BlockSpec(p["w_all"].shape, lambda i: (0, 0))],
        out_specs=pl.BlockSpec((tm, wid), lambda i: (i, 0)),
        compiler_params=row_par)

    spmm_call = pl.pallas_call(
        functools.partial(_spmm_kernel, num_relations=num_relations, emb=emb, tm=tm),
        out_shape=jax.ShapeDtypeStruct((n_pad, emb), jnp.bfloat16),
        grid=grid,
        in_specs=[pl.BlockSpec((num_relations, tm, n_pad), lambda i: (0, i, 0)),
                  pl.BlockSpec((n_pad, wid), lambda i: (0, 0)),     # hw stays resident in VMEM
                  pl.BlockSpec(p["rgcn_b"].shape, lambda i: (0, 0))],
        out_specs=pl.BlockSpec((tm, emb), lambda i: (i, 0)),
        compiler_params=row_par)

    h = x
    for _ in range(num_layers):
        hw = xw_call(h, p["w_all"])
        h = spmm_call(adj, hw, p["rgcn_b"])
        # TODO(synk): dropout(p=0.4) between the two RGCN layers is identity in eval mode.

    head_call = pl.pallas_call(
        _head_kernel,
        out_shape=jax.ShapeDtypeStruct((n_pad, p["out2_w"].shape[1]), jnp.float32),
        grid=grid,
        in_specs=[pl.BlockSpec((tm, emb), lambda i: (i, 0)),
                  pl.BlockSpec(p["out1_w"].shape, lambda i: (0, 0)),
                  pl.BlockSpec(p["out1_b"].shape, lambda i: (0, 0)),
                  pl.BlockSpec(p["out2_w"].shape, lambda i: (0, 0)),
                  pl.BlockSpec(p["out2_b"].shape, lambda i: (0, 0))],
        out_specs=pl.BlockSpec((tm, p["out2_w"].shape[1]), lambda i: (i, 0)),
        compiler_params=row_par)
    return head_call(h, p["out1_w"], p["out1_b"], p["out2_w"], p["out2_b"])


def rgcn_head(x, adj, p, *, num_relations=2, num_layers=2, force_tiled=False):
    n_pad, emb = x.shape
    vmem_limit = _head_vmem_limit()

    # Resident-adjacency fast path only if adj + working set fit comfortably under the limit.
    adj_bytes = num_relations * n_pad * n_pad * adj.dtype.itemsize
    work_bytes = n_pad * ((num_relations + 2) * emb * 4 + emb * 2) + (4 << 20)
    fused_ok = (adj_bytes + work_bytes) < vmem_limit

    if fused_ok and not force_tiled:
        kernel = functools.partial(_rgcn_fused_kernel, num_relations=num_relations,
                                   emb=emb, num_layers=num_layers)
        vmem = pl.BlockSpec(memory_space=pltpu.MemorySpace.VMEM)
        # Whole-array VMEM residency: adj is DMA'd from HBM exactly once and reused by BOTH layers.
        return pl.pallas_call(
            kernel,
            out_shape=jax.ShapeDtypeStruct((n_pad, p["out2_w"].shape[1]), jnp.float32),
            in_specs=[vmem] * 8,
            out_specs=vmem,
            compiler_params=pltpu.CompilerParams(vmem_limit_bytes=vmem_limit),
        )(x, adj, p["w_all"], p["rgcn_b"],
          p["out1_w"], p["out1_b"], p["out2_w"], p["out2_b"])

    # Large-graph path: dst-row-tiled spmm per layer, "parallel" grid (megacore-shardable on v7x).
    # TODO(synk): for graphs where even the full (Np, 3*emb) hw slab exceeds VMEM, switch to a
    # PrefetchScalarGridSpec edge/segment-list formulation with O(E) traffic.
    return _rgcn_head_tiled(x, adj, p, num_relations=num_relations, emb=emb,
                            num_layers=num_layers, tm=SPMM_TILE, vmem_limit=vmem_limit)


# --------------------------------- plain-JAX glue ---------------------------------
def build_adj(edge_index, edge_type, num_nodes, num_relations):
    src = edge_index[0]
    dst = edge_index[1]
    adj = jnp.zeros((num_relations, num_nodes, num_nodes), jnp.float32)
    # messages flow src -> dst; aggregation at dst (row index).
    # .add (not .set) so duplicate edges are counted, matching scatter-mean semantics.
    adj = adj.at[edge_type, dst, src].add(1.0)
    # Fold the mean normalization (1/deg) into the adjacency ONCE, so the kernel never does
    # the cross-lane degree reduction or the (N,1) broadcast multiply.
    deg = jnp.sum(adj, axis=2, keepdims=True)                 # (R, N, 1) in-degree per relation
    adj = adj * jnp.where(deg > 0.0, 1.0 / deg, 0.0)
    return adj.astype(jnp.bfloat16)


def prepare_params(params, *, num_relations=2, emb=128, out_pad=128):
    """Cast weights to bf16, pack RGCN weights, pad classifier to lane-dense width."""
    p = {}
    p["des_w"] = _bf16(params["des_w"])
    p["tweet_w"] = _bf16(params["tweet_w"])
    p["num_w"] = _bf16(_pad_weight_rows(params["num_w"]))     # input dims padded to mult of 8
    p["cat_w"] = _bf16(_pad_weight_rows(params["cat_w"]))
    p["in_w"] = _bf16(params["in_w"])
    p["out1_w"] = _bf16(params["out1_w"])
    for k in ("des_b", "tweet_b", "num_b", "cat_b", "in_b", "out1_b", "rgcn_b"):
        p[k] = params[k].astype(jnp.float32)
    # relation + root weights packed into one lane-dense (emb, (R+1)*emb) bf16 matrix
    p["w_all"] = _bf16(jnp.concatenate(
        [params["rgcn_w"][r] for r in range(num_relations)] + [params["rgcn_root_w"]],
        axis=1))
    # classifier padded to a lane-dense 128-wide output (sliced back outside the kernel)
    out_dim = params["out2_w"].shape[1]
    w2 = jnp.zeros((emb, out_pad), jnp.float32).at[:, :out_dim].set(params["out2_w"])
    b2 = jnp.zeros((1, out_pad), jnp.float32).at[:, :out_dim].set(params["out2_b"])
    p["out2_w"] = _bf16(w2)
    p["out2_b"] = b2
    p["out_dim"] = out_dim
    return p


def init_params(key, *, des_size=768, tweet_size=768, num_prop_size=5,
                cat_prop_size=3, emb=128, num_relations=2, output_size=2):
    qtr = emb // 4
    keys = jax.random.split(key, 10)

    def lin(k, fan_in, fan_out):
        k1, k2 = jax.random.split(k)
        lim = 1.0 / jnp.sqrt(fan_in)
        w = jax.random.uniform(k1, (fan_in, fan_out), jnp.float32, -lim, lim)
        b = jax.random.uniform(k2, (1, fan_out), jnp.float32, -lim, lim)
        return w, b

    p = {}
    p["des_w"], p["des_b"] = lin(keys[0], des_size, qtr)
    p["tweet_w"], p["tweet_b"] = lin(keys[1], tweet_size, qtr)
    p["num_w"], p["num_b"] = lin(keys[2], num_prop_size, qtr)
    p["cat_w"], p["cat_b"] = lin(keys[3], cat_prop_size, qtr)
    p["in_w"], p["in_b"] = lin(keys[4], emb, emb)

    lim = 1.0 / jnp.sqrt(emb)
    p["rgcn_w"] = jax.random.uniform(keys[5], (num_relations, emb, emb), jnp.float32, -lim, lim)
    p["rgcn_root_w"] = jax.random.uniform(keys[6], (emb, emb), jnp.float32, -lim, lim)
    p["rgcn_b"] = jax.random.uniform(keys[7], (1, emb), jnp.float32, -lim, lim)

    p["out1_w"], p["out1_b"] = lin(keys[8], emb, emb)
    p["out2_w"], p["out2_b"] = lin(keys[9], emb, output_size)
    return p


def botrgcn_forward(params, des, tweet, num_prop, cat_prop, edge_index, edge_type,
                    *, num_relations=2, emb=128, force_tiled=False):
    n_nodes = des.shape[0]
    n_pad = ((n_nodes + NODE_TILE - 1) // NODE_TILE) * NODE_TILE
    p = prepare_params(params, num_relations=num_relations, emb=emb)

    def prep(a):
        a = _pad_cols(_bf16(a))                               # bf16 in the wrapper (halve DMA bytes)
        return jnp.pad(a, ((0, n_pad - n_nodes), (0, 0)))     # pad node rows to the tile multiple

    x = frontend(prep(des), prep(tweet), prep(num_prop), prep(cat_prop), p, emb=emb)
    adj = build_adj(edge_index, edge_type, n_pad, num_relations)
    out = rgcn_head(x, adj, p, num_relations=num_relations, num_layers=2,
                    force_tiled=force_tiled)
    return out[:n_nodes, :p["out_dim"]]


if __name__ == "__main__":
    key = jax.random.PRNGKey(0)
    k_param, k_des, k_tw, k_np, k_cp, k_ei, k_et = jax.random.split(key, 7)

    NUM_NODES = 8
    NUM_EDGES = 16
    params = init_params(k_param)

    des = jax.random.normal(k_des, (NUM_NODES, 768), jnp.float32)
    tweet = jax.random.normal(k_tw, (NUM_NODES, 768), jnp.float32)
    num_prop = jax.random.normal(k_np, (NUM_NODES, 5), jnp.float32)
    cat_prop = jax.random.normal(k_cp, (NUM_NODES, 3), jnp.float32)
    edge_index = jax.random.randint(k_ei, (2, NUM_EDGES), 0, NUM_NODES, jnp.int32)
    edge_type = jax.random.randint(k_et, (NUM_EDGES,), 0, 2, jnp.int32)

    out = botrgcn_forward(params, des, tweet, num_prop, cat_prop, edge_index, edge_type)
    out = jax.block_until_ready(out)
    assert out.shape == (NUM_NODES, 2)
    assert bool(jnp.all(jnp.isfinite(out)))

    # Exercise the dst-row-tiled large-graph path at small size and cross-check vs fused path.
    out_tiled = jax.block_until_ready(
        botrgcn_forward(params, des, tweet, num_prop, cat_prop, edge_index, edge_type,
                        force_tiled=True))
    assert out_tiled.shape == (NUM_NODES, 2)
    assert bool(jnp.all(jnp.isfinite(out_tiled)))
    assert bool(jnp.allclose(out, out_tiled, atol=5e-2, rtol=5e-2))

    print("KERNEL_OK")
</pallas_src>

<mosaic_0001>
module attributes {stable_mosaic.version = 11 : i64} {
  func.func @_frontend_kernel(%arg0: i32, %arg1: memref<512x768xbf16, #tpu.memory_space<vmem>>, %arg2: memref<512x768xbf16, #tpu.memory_space<vmem>>, %arg3: memref<512x8xbf16, #tpu.memory_space<vmem>>, %arg4: memref<512x8xbf16, #tpu.memory_space<vmem>>, %arg5: memref<768x32xbf16, #tpu.memory_space<vmem>>, %arg6: memref<1x32xf32, #tpu.memory_space<vmem>>, %arg7: memref<768x32xbf16, #tpu.memory_space<vmem>>, %arg8: memref<1x32xf32, #tpu.memory_space<vmem>>, %arg9: memref<8x32xbf16, #tpu.memory_space<vmem>>, %arg10: memref<1x32xf32, #tpu.memory_space<vmem>>, %arg11: memref<8x32xbf16, #tpu.memory_space<vmem>>, %arg12: memref<1x32xf32, #tpu.memory_space<vmem>>, %arg13: memref<128x128xbf16, #tpu.memory_space<vmem>>, %arg14: memref<1x128xf32, #tpu.memory_space<vmem>>, %arg15: memref<512x128xbf16, #tpu.memory_space<vmem>>) attributes {dimension_semantics = [#tpu.dimension_semantics<parallel>], iteration_bounds = array<i64: 1>, scalar_prefetch = 0 : i64, scratch_operands = 0 : i64, tpu.core_type = #tpu.core_type<tc>, window_params = [{transform_indices = @transform_0, window_bounds = array<i64: 512, 768>}, {transform_indices = @transform_1, window_bounds = array<i64: 512, 768>}, {transform_indices = @transform_2, window_bounds = array<i64: 512, 8>}, {transform_indices = @transform_3, window_bounds = array<i64: 512, 8>}, {pipeline_mode = #tpu.pipeline_mode<synchronous>, transform_indices = @transform_4, window_bounds = array<i64: 768, 32>}, {pipeline_mode = #tpu.pipeline_mode<synchronous>, transform_indices = @transform_5, window_bounds = array<i64: 1, 32>}, {pipeline_mode = #tpu.pipeline_mode<synchronous>, transform_indices = @transform_6, window_bounds = array<i64: 768, 32>}, {pipeline_mode = #tpu.pipeline_mode<synchronous>, transform_indices = @transform_7, window_bounds = array<i64: 1, 32>}, {pipeline_mode = #tpu.pipeline_mode<synchronous>, transform_indices = @transform_8, window_bounds = array<i64: 8, 32>}, {pipeline_mode = #tpu.pipeline_mode<synchronous>, transform_indices = @transform_9, window_bounds = array<i64: 1, 32>}, {pipeline_mode = #tpu.pipeline_mode<synchronous>, transform_indices = @transform_10, window_bounds = array<i64: 8, 32>}, {pipeline_mode = #tpu.pipeline_mode<synchronous>, transform_indices = @transform_11, window_bounds = array<i64: 1, 32>}, {pipeline_mode = #tpu.pipeline_mode<synchronous>, transform_indices = @transform_12, window_bounds = array<i64: 128, 128>}, {pipeline_mode = #tpu.pipeline_mode<synchronous>, transform_indices = @transform_13, window_bounds = array<i64: 1, 128>}, {transform_indices = @transform_14, window_bounds = array<i64: 512, 128>}]} {
    %c0 = arith.constant 0 : index
    %c0_0 = arith.constant 0 : index
    %0 = vector.load %arg1[%c0, %c0_0] : memref<512x768xbf16, #tpu.memory_space<vmem>>, vector<512x768xbf16>
    %c0_1 = arith.constant 0 : index
    %c0_2 = arith.constant 0 : index
    %1 = vector.load %arg5[%c0_1, %c0_2] : memref<768x32xbf16, #tpu.memory_space<vmem>>, vector<768x32xbf16>
    %cst = arith.constant dense<0.000000e+00> : vector<512x32xf32>
    %2 = tpu.matmul %0, %1, %cst {dimension_numbers = #tpu.dot_dimension_numbers<[1], [0], [0], [1], [0, 0, 1, 1], [], []>} : vector<512x768xbf16>, vector<768x32xbf16>, vector<512x32xf32> -> vector<512x32xf32>
    %c0_3 = arith.constant 0 : index
    %c0_4 = arith.constant 0 : index
    %3 = vector.load %arg6[%c0_3, %c0_4] : memref<1x32xf32, #tpu.memory_space<vmem>>, vector<1x32xf32>
    %4 = vector.broadcast %3 : vector<1x32xf32> to vector<512x32xf32>
    %5 = arith.addf %2, %4 : vector<512x32xf32>
    %cst_5 = arith.constant 0.000000e+00 : f32
    %6 = vector.broadcast %cst_5 : f32 to vector<512x32xf32>
    %7 = arith.cmpf ogt, %5, %6 : vector<512x32xf32>
    %cst_6 = arith.constant 0.00999999977 : f32
    %8 = vector.broadcast %cst_6 : f32 to vector<512x32xf32>
    %9 = arith.mulf %8, %5 : vector<512x32xf32>
    %10 = arith.select %7, %5, %9 : vector<512x32xi1>, vector<512x32xf32>
    %11 = arith.truncf %10 : vector<512x32xf32> to vector<512x32xbf16>
    %c0_7 = arith.constant 0 : index
    %c0_8 = arith.constant 0 : index
    %12 = vector.load %arg2[%c0_7, %c0_8] : memref<512x768xbf16, #tpu.memory_space<vmem>>, vector<512x768xbf16>
    %c0_9 = arith.constant 0 : index
    %c0_10 = arith.constant 0 : index
    %13 = vector.load %arg7[%c0_9, %c0_10] : memref<768x32xbf16, #tpu.memory_space<vmem>>, vector<768x32xbf16>
    %cst_11 = arith.constant dense<0.000000e+00> : vector<512x32xf32>
    %14 = tpu.matmul %12, %13, %cst_11 {dimension_numbers = #tpu.dot_dimension_numbers<[1], [0], [0], [1], [0, 0, 1, 1], [], []>} : vector<512x768xbf16>, vector<768x32xbf16>, vector<512x32xf32> -> vector<512x32xf32>
    %c0_12 = arith.constant 0 : index
    %c0_13 = arith.constant 0 : index
    %15 = vector.load %arg8[%c0_12, %c0_13] : memref<1x32xf32, #tpu.memory_space<vmem>>, vector<1x32xf32>
    %16 = vector.broadcast %15 : vector<1x32xf32> to vector<512x32xf32>
    %17 = arith.addf %14, %16 : vector<512x32xf32>
    %cst_14 = arith.constant 0.000000e+00 : f32
    %18 = vector.broadcast %cst_14 : f32 to vector<512x32xf32>
    %19 = arith.cmpf ogt, %17, %18 : vector<512x32xf32>
    %cst_15 = arith.constant 0.00999999977 : f32
    %20 = vector.broadcast %cst_15 : f32 to vector<512x32xf32>
    %21 = arith.mulf %20, %17 : vector<512x32xf32>
    %22 = arith.select %19, %17, %21 : vector<512x32xi1>, vector<512x32xf32>
    %23 = arith.truncf %22 : vector<512x32xf32> to vector<512x32xbf16>
    %c0_16 = arith.constant 0 : index
    %c0_17 = arith.constant 0 : index
    %24 = vector.load %arg3[%c0_16, %c0_17] : memref<512x8xbf16, #tpu.memory_space<vmem>>, vector<512x8xbf16>
    %c0_18 = arith.constant 0 : index
    %c0_19 = arith.constant 0 : index
    %25 = vector.load %arg9[%c0_18, %c0_19] : memref<8x32xbf16, #tpu.memory_space<vmem>>, vector<8x32xbf16>
    %cst_20 = arith.constant dense<0.000000e+00> : vector<512x32xf32>
    %26 = tpu.matmul %24, %25, %cst_20 {dimension_numbers = #tpu.dot_dimension_numbers<[1], [0], [0], [1], [0, 0, 1, 1], [], []>} : vector<512x8xbf16>, vector<8x32xbf16>, vector<512x32xf32> -> vector<512x32xf32>
    %c0_21 = arith.constant 0 : index
    %c0_22 = arith.constant 0 : index
    %27 = vector.load %arg10[%c0_21, %c0_22] : memref<1x32xf32, #tpu.memory_space<vmem>>, vector<1x32xf32>
    %28 = vector.broadcast %27 : vector<1x32xf32> to vector<512x32xf32>
    %29 = arith.addf %26, %28 : vector<512x32xf32>
    %cst_23 = arith.constant 0.000000e+00 : f32
    %30 = vector.broadcast %cst_23 : f32 to vector<512x32xf32>
    %31 = arith.cmpf ogt, %29, %30 : vector<512x32xf32>
    %cst_24 = arith.constant 0.00999999977 : f32
    %32 = vector.broadcast %cst_24 : f32 to vector<512x32xf32>
    %33 = arith.mulf %32, %29 : vector<512x32xf32>
    %34 = arith.select %31, %29, %33 : vector<512x32xi1>, vector<512x32xf32>
    %35 = arith.truncf %34 : vector<512x32xf32> to vector<512x32xbf16>
    %c0_25 = arith.constant 0 : index
    %c0_26 = arith.constant 0 : index
    %36 = vector.load %arg4[%c0_25, %c0_26] : memref<512x8xbf16, #tpu.memory_space<vmem>>, vector<512x8xbf16>
    %c0_27 = arith.constant 0 : index
    %c0_28 = arith.constant 0 : index
    %37 = vector.load %arg11[%c0_27, %c0_28] : memref<8x32xbf16, #tpu.memory_space<vmem>>, vector<8x32xbf16>
    %cst_29 = arith.constant dense<0.000000e+00> : vector<512x32xf32>
    %38 = tpu.matmul %36, %37, %cst_29 {dimension_numbers = #tpu.dot_dimension_numbers<[1], [0], [0], [1], [0, 0, 1, 1], [], []>} : vector<512x8xbf16>, vector<8x32xbf16>, vector<512x32xf32> -> vector<512x32xf32>
    %c0_30 = arith.constant 0 : index
    %c0_31 = arith.constant 0 : index
    %39 = vector.load %arg12[%c0_30, %c0_31] : memref<1x32xf32, #tpu.memory_space<vmem>>, vector<1x32xf32>
    %40 = vector.broadcast %39 : vector<1x32xf32> to vector<512x32xf32>
    %41 = arith.addf %38, %40 : vector<512x32xf32>
    %cst_32 = arith.constant 0.000000e+00 : f32
    %42 = vector.broadcast %cst_32 : f32 to vector<512x32xf32>
    %43 = arith.cmpf ogt, %41, %42 : vector<512x32xf32>
    %cst_33 = arith.constant 0.00999999977 : f32
    %44 = vector.broadcast %cst_33 : f32 to vector<512x32xf32>
    %45 = arith.mulf %44, %41 : vector<512x32xf32>
    %46 = arith.select %43, %41, %45 : vector<512x32xi1>, vector<512x32xf32>
    %47 = arith.truncf %46 : vector<512x32xf32> to vector<512x32xbf16>
    %c0_34 = arith.constant 0 : index
    %c0_35 = arith.constant 0 : index
    %48 = vector.load %arg13[%c0_34, %c0_35] : memref<128x128xbf16, #tpu.memory_space<vmem>>, vector<128x128xbf16>
    %49 = vector.extract_strided_slice %48 {offsets = [0, 0], sizes = [32, 128], strides = [1, 1]} : vector<128x128xbf16> to vector<32x128xbf16>
    %cst_36 = arith.constant dense<0.000000e+00> : vector<512x128xf32>
    %50 = tpu.matmul %11, %49, %cst_36 {dimension_numbers = #tpu.dot_dimension_numbers<[1], [0], [0], [1], [0, 0, 1, 1], [], []>} : vector<512x32xbf16>, vector<32x128xbf16>, vector<512x128xf32> -> vector<512x128xf32>
    %51 = vector.extract_strided_slice %48 {offsets = [32, 0], sizes = [32, 128], strides = [1, 1]} : vector<128x128xbf16> to vector<32x128xbf16>
    %cst_37 = arith.constant dense<0.000000e+00> : vector<512x128xf32>
    %52 = tpu.matmul %23, %51, %cst_37 {dimension_numbers = #tpu.dot_dimension_numbers<[1], [0], [0], [1], [0, 0, 1, 1], [], []>} : vector<512x32xbf16>, vector<32x128xbf16>, vector<512x128xf32> -> vector<512x128xf32>
    %53 = arith.addf %50, %52 : vector<512x128xf32>
    %54 = vector.extract_strided_slice %48 {offsets = [64, 0], sizes = [32, 128], strides = [1, 1]} : vector<128x128xbf16> to vector<32x128xbf16>
    %cst_38 = arith.constant dense<0.000000e+00> : vector<512x128xf32>
    %55 = tpu.matmul %35, %54, %cst_38 {dimension_numbers = #tpu.dot_dimension_numbers<[1], [0], [0], [1], [0, 0, 1, 1], [], []>} : vector<512x32xbf16>, vector<32x128xbf16>, vector<512x128xf32> -> vector<512x128xf32>
    %56 = arith.addf %53, %55 : vector<512x128xf32>
    %57 = vector.extract_strided_slice %48 {offsets = [96, 0], sizes = [32, 128], strides = [1, 1]} : vector<128x128xbf16> to vector<32x128xbf16>
    %cst_39 = arith.constant dense<0.000000e+00> : vector<512x128xf32>
    %58 = tpu.matmul %47, %57, %cst_39 {dimension_numbers = #tpu.dot_dimension_numbers<[1], [0], [0], [1], [0, 0, 1, 1], [], []>} : vector<512x32xbf16>, vector<32x128xbf16>, vector<512x128xf32> -> vector<512x128xf32>
    %59 = arith.addf %56, %58 : vector<512x128xf32>
    %c0_40 = arith.constant 0 : index
    %c0_41 = arith.constant 0 : index
    %60 = vector.load %arg14[%c0_40, %c0_41] : memref<1x128xf32, #tpu.memory_space<vmem>>, vector<1x128xf32>
    %61 = vector.broadcast %60 : vector<1x128xf32> to vector<512x128xf32>
    %62 = arith.addf %59, %61 : vector<512x128xf32>
    %cst_42 = arith.constant 0.000000e+00 : f32
    %63 = vector.broadcast %cst_42 : f32 to vector<512x128xf32>
    %64 = arith.cmpf ogt, %62, %63 : vector<512x128xf32>
    %cst_43 = arith.constant 0.00999999977 : f32
    %65 = vector.broadcast %cst_43 : f32 to vector<512x128xf32>
    %66 = arith.mulf %65, %62 : vector<512x128xf32>
    %67 = arith.select %64, %62, %66 : vector<512x128xi1>, vector<512x128xf32>
    %68 = arith.truncf %67 : vector<512x128xf32> to vector<512x128xbf16>
    %c0_44 = arith.constant 0 : index
    %c0_45 = arith.constant 0 : index
    %69 = vector.load %arg15[%c0_44, %c0_45] : memref<512x128xbf16, #tpu.memory_space<vmem>>, vector<512x128xbf16>
    tpu.vector_store %arg15[%c0_44, %c0_45], %68 {strides = array<i32>} : memref<512x128xbf16, #tpu.memory_space<vmem>>, vector<512x128xbf16>,
    return
  }
  func.func @transform_0(%arg0: i32) -> (i32, i32) {
    %c0_i32 = arith.constant 0 : i32
    %c0_i32_0 = arith.constant 0 : i32
    return %arg0, %c0_i32 : i32, i32
  }
  func.func @transform_1(%arg0: i32) -> (i32, i32) {
    %c0_i32 = arith.constant 0 : i32
    %c0_i32_0 = arith.constant 0 : i32
    return %arg0, %c0_i32 : i32, i32
  }
  func.func @transform_2(%arg0: i32) -> (i32, i32) {
    %c0_i32 = arith.constant 0 : i32
    %c0_i32_0 = arith.constant 0 : i32
    return %arg0, %c0_i32 : i32, i32
  }
  func.func @transform_3(%arg0: i32) -> (i32, i32) {
    %c0_i32 = arith.constant 0 : i32
    %c0_i32_0 = arith.constant 0 : i32
    return %arg0, %c0_i32 : i32, i32
  }
  func.func @transform_4(%arg0: i32) -> (i32, i32) {
    %c0_i32 = arith.constant 0 : i32
    %c0_i32_0 = arith.constant 0 : i32
    %c0_i32_1 = arith.constant 0 : i32
    return %c0_i32, %c0_i32_0 : i32, i32
  }
  func.func @transform_5(%arg0: i32) -> (i32, i32) {
    %c0_i32 = arith.constant 0 : i32
    %c0_i32_0 = arith.constant 0 : i32
    %c0_i32_1 = arith.constant 0 : i32
    return %c0_i32, %c0_i32_0 : i32, i32
  }
  func.func @transform_6(%arg0: i32) -> (i32, i32) {
    %c0_i32 = arith.constant 0 : i32
    %c0_i32_0 = arith.constant 0 : i32
    %c0_i32_1 = arith.constant 0 : i32
    return %c0_i32, %c0_i32_0 : i32, i32
  }
  func.func @transform_7(%arg0: i32) -> (i32, i32) {
    %c0_i32 = arith.constant 0 : i32
    %c0_i32_0 = arith.constant 0 : i32
    %c0_i32_1 = arith.constant 0 : i32
    return %c0_i32, %c0_i32_0 : i32, i32
  }
  func.func @transform_8(%arg0: i32) -> (i32, i32) {
    %c0_i32 = arith.constant 0 : i32
    %c0_i32_0 = arith.constant 0 : i32
    %c0_i32_1 = arith.constant 0 : i32
    return %c0_i32, %c0_i32_0 : i32, i32
  }
  func.func @transform_9(%arg0: i32) -> (i32, i32) {
    %c0_i32 = arith.constant 0 : i32
    %c0_i32_0 = arith.constant 0 : i32
    %c0_i32_1 = arith.constant 0 : i32
    return %c0_i32, %c0_i32_0 : i32, i32
  }
  func.func @transform_10(%arg0: i32) -> (i32, i32) {
    %c0_i32 = arith.constant 0 : i32
    %c0_i32_0 = arith.constant 0 : i32
    %c0_i32_1 = arith.constant 0 : i32
    return %c0_i32, %c0_i32_0 : i32, i32
  }
  func.func @transform_11(%arg0: i32) -> (i32, i32) {
    %c0_i32 = arith.constant 0 : i32
    %c0_i32_0 = arith.constant 0 : i32
    %c0_i32_1 = arith.constant 0 : i32
    return %c0_i32, %c0_i32_0 : i32, i32
  }
  func.func @transform_12(%arg0: i32) -> (i32, i32) {
    %c0_i32 = arith.constant 0 : i32
    %c0_i32_0 = arith.constant 0 : i32
    %c0_i32_1 = arith.constant 0 : i32
    return %c0_i32, %c0_i32_0 : i32, i32
  }
  func.func @transform_13(%arg0: i32) -> (i32, i32) {
    %c0_i32 = arith.constant 0 : i32
    %c0_i32_0 = arith.constant 0 : i32
    %c0_i32_1 = arith.constant 0 : i32
    return %c0_i32, %c0_i32_0 : i32, i32
  }
  func.func @transform_14(%arg0: i32) -> (i32, i32) {
    %c0_i32 = arith.constant 0 : i32
    %c0_i32_0 = arith.constant 0 : i32
    return %arg0, %c0_i32 : i32, i32
  }
}

</mosaic_0001>

<bundles_post_ra>
// kernel: tpu_custom_call.1
= control target key start
LH: loop header
LB: loop body
LE: loop exit
PB: predicated region body
PF: predicated region fallthrough
CT: control target
= control target key end

     0   :  { %19 = vsyncpa [#allocation3], 0  ;;  %s15189_s0 = inlined_call_operand.hbm [shape: bf16[512,768], index: 0, kind: input, shape index: {}]   ;;  %s15190_s1 = inlined_call_operand.hbm [shape: bf16[512,768], index: 1, kind: input, shape index: {}]   ;;  %s15191_s2 = inlined_call_operand.vmem [shape: bf16[512,8], index: 2, kind: input, shape index: {}]   ;;  %s15192_s3 = inlined_call_operand.vmem [shape: bf16[512,8], index: 3, kind: input, shape index: {}]   ;;  %s15193_s4 = inlined_call_operand.vmem [shape: bf16[768,32], index: 4, kind: input, shape index: {}]   ;;  %s15194_s5 = inlined_call_operand.vmem [shape: f32[1,32], index: 5, kind: input, shape index: {}]   ;;  %s15195_s6 = inlined_call_operand.vmem [shape: bf16[768,32], index: 6, kind: input, shape index: {}]   ;;  %s15196_s7 = inlined_call_operand.vmem [shape: f32[1,32], index: 7, kind: input, shape index: {}]   ;;  %s15197_s8 = inlined_call_operand.vmem [shape: bf16[8,32], index: 8, kind: input, shape index: {}]   ;;  %s15198_s9 = inlined_call_operand.vmem [shape: f32[1,32], index: 9, kind: input, shape index: {}]   ;;  %s15199_s10 = inlined_call_operand.vmem [shape: bf16[8,32], index: 10, kind: input, shape index: {}]   ;;  %s15200_s11 = inlined_call_operand.vmem [shape: f32[1,32], index: 11, kind: input, shape index: {}]   ;;  %s15201_s12 = inlined_call_operand.vmem [shape: bf16[128,128], index: 12, kind: input, shape index: {}]   ;;  %s15202_s13 = inlined_call_operand.vmem [shape: f32[1,128], index: 13, kind: input, shape index: {}]   ;;  %s15203_s14 = inlined_call_operand.hbm [shape: bf16[512,128], index: 14, kind: output, shape index: {}]  }
   0x1   :  { %20 = vsyncpa [#allocation6], 0 }
   0x2   :  { %21 = vsyncpa [#allocation4], 0  ;;  %s11868_s29 = smov [#allocation2]  }
   0x3   :  { %s27_s30 = sshll.u32 %s11868_s29, 4  ;;  %s28_s30 = int_to_ptr.vmem [resolvable:$true] %s27_s30 }
   0x4   :  { %s11810_s15 = scalar_lea.vmem %s28_s30, 24576  ;;  %p11815_p1 = scmp.lt.s32.totalorder %s28_s30, %s28_s30 }
   0x5   :  { %p11811_p0 = scmp.ne.s32.totalorder %s28_s30, %s11810_s15  ;;  %p11816_p2 = scmp.lt.s32.totalorder %s11810_s15, %s11810_s15 }
   0x7   :  { %p11817_p3 = por %p11816_p2, %p11815_p1 }
   0x9   :  { %p11818_p4 = pnand %p11817_p3, %p11811_p0 }
   0xb   :  { %11821 = shalt.err (!%p11818_p4)
}
   0xc   :  { %s11869_s16 = smov 384   ;;  %s11870_s17 = smov 24  }
   0xd   :  { %33 = dma.hbm_to_vmem [thread:$0]  %s15189_s0, 24576, %s28_s30, [#allocation3], %s11869_s16, %s11869_s16, %s11870_s17  }
   0xe   :  { %s11871_s20 = smov [#allocation5]  }
   0xf   :  { %s39_s21 = sshll.u32 %s11871_s20, 4  ;;  %s40_s21 = int_to_ptr.vmem [resolvable:$true] %s39_s21 }
  0x10   :  { %s11830_s22 = scalar_lea.vmem %s40_s21, 24576  ;;  %p11835_p6 = scmp.lt.s32.totalorder %s40_s21, %s40_s21 }
  0x11   :  { %p11831_p5 = scmp.ne.s32.totalorder %s40_s21, %s11830_s22  ;;  %p11836_p7 = scmp.lt.s32.totalorder %s11830_s22, %s11830_s22 }
  0x13   :  { %p11837_p8 = por %p11836_p7, %p11835_p6 }
  0x15   :  { %p11838_p9 = pnand %p11837_p8, %p11831_p5 }
  0x17   :  { %11841 = shalt.err (!%p11838_p9)
}
  0x18   :  { %45 = dma.hbm_to_vmem [thread:$0]  %s15190_s1, 24576, %s40_s21, [#allocation6], %s11869_s16, %s11869_s16, %s11870_s17  }
  0x19   :  { %11862 = dma.done.wait [#allocation3], 24576  }
  0x1a   :  { %11863 = vsyncadd [#allocation3], 4294942720 }
  0x1b   :  { %11864 = dma.done.wait [#allocation6], 24576  }
  0x1c   :  { %11865 = vsyncadd [#allocation6], 4294942720  ;;  %v11872_v0 = vmov 0   ;;  %v11053_v1 = vld [vmem:[%s15193_s4 + $0x38] sm:$0xff]   ;;  %v11055_v3 = vld [vmem:[%s15193_s4 + $0x30] sm:$0xff]   ;;  %vm5674_vm0 = vcmask 1043456  }
  0x1d   :  { %1620 = vmatprep.subr.bf16.mxu0 %v11872_v0  ;;  %1909 = vmatprep.subr.bf16.mxu1 %v11872_v0  ;;  %v11054_v2 = vld [vmem:[%s15193_s4 + $0xb8] sm:$0xff]   ;;  %v11056_v4 = vld [vmem:[%s15193_s4 + $0xb0] sm:$0xff]   ;;  %v11057_v5 = vld [vmem:[%s15193_s4 + $0x28] sm:$0xff]  }
  0x1e   :  { %1621 = vmatpush1.bf16.msra.mxu0 %v11053_v1  ;;  %1910 = vmatpush1.bf16.msra.mxu1 %v11054_v2  ;;  %v11058_v6 = vld [vmem:[%s15193_s4 + $0xa8] sm:$0xff]   ;;  %v11059_v7 = vld [vmem:[%s15193_s4 + $0x20] sm:$0xff]   ;;  %v11061_v9 = vld [vmem:[%s15193_s4 + $0x18] sm:$0xff]  }
  0x1f   :  { %1622 = vmatprep.subr.bf16.mxu0 %v11872_v0  ;;  %1911 = vmatprep.subr.bf16.mxu1 %v11872_v0  ;;  %v11060_v8 = vld [vmem:[%s15193_s4 + $0xa0] sm:$0xff]   ;;  %v11062_v10 = vld [vmem:[%s15193_s4 + $0x98] sm:$0xff]   ;;  %v11063_v11 = vld [vmem:[%s15193_s4 + $0x10] sm:$0xff]  }
  0x20   :  { %v11064_v12 = vld [vmem:[%s15193_s4 + $0x90] sm:$0xff]   ;;  %v11065_v13 = vld [vmem:[%s15193_s4 + $0x8] sm:$0xff]   ;;  %v11067_v15 = vld [vmem:[%s15193_s4] sm:$0xff]  }
  0x21   :  { %v11066_v14 = vld [vmem:[%s15193_s4 + $0x88] sm:$0xff]   ;;  %v11068_v16 = vld [vmem:[%s15193_s4 + $0x80] sm:$0xff]   ;;  %v11069_v17 = vld [vmem:[%s15193_s4 + $0x78] sm:$0xff]  }
  0x22   :  { %1623 = vmatpush1.bf16.msra.mxu0 %v11055_v3  ;;  %1912 = vmatpush1.bf16.msra.mxu1 %v11056_v4  ;;  %v11070_v18 = vld [vmem:[%s15193_s4 + $0xf8] sm:$0xff]   ;;  %v11071_v20 = vld [vmem:[%s15193_s4 + $0x70] sm:$0xff]   ;;  %v11090_v21 = vld [vmem:[#allocation2 + $0xc] ss:$24 sps:$4 sm:$0xff]  }
  0x23   :  { %1624 = vmatprep.subr.bf16.mxu0 %v11872_v0  ;;  %1913 = vmatprep.subr.bf16.mxu1 %v11872_v0  ;;  %v11087_v19 = vld [vmem:[#allocation2 + $0x4] ss:$24 sps:$4 sm:$0xff]   ;;  %v11072_v22 = vld [vmem:[%s15193_s4 + $0xf0] sm:$0xff]   ;;  %v11073_v23 = vld [vmem:[%s15193_s4 + $0x68] sm:$0xff]  }
  0x24   :  { %1652 = vmatprep.mubr.bf16.mxu0 %v11087_v19  ;;  %1941 = vmatprep.mubr.bf16.mxu1 %v11090_v21  ;;  %v11074_v24 = vld [vmem:[%s15193_s4 + $0xe8] sm:$0xff]   ;;  %v11075_v25 = vld [vmem:[%s15193_s4 + $0x60] sm:$0xff]   ;;  %v11077_v27 = vld [vmem:[%s15193_s4 + $0x58] sm:$0xff]  }
  0x25   :  { %v11076_v26 = vld [vmem:[%s15193_s4 + $0xe0] sm:$0xff]   ;;  %v11078_v28 = vld [vmem:[%s15193_s4 + $0xd8] sm:$0xff]   ;;  %v11079_v29 = vld [vmem:[%s15193_s4 + $0x50] sm:$0xff]  }
  0x26   :  { %1625 = vmatpush1.bf16.msra.mxu0 %v11057_v5  ;;  %1914 = vmatpush1.bf16.msra.mxu1 %v11058_v6  ;;  %v11080_v30 = vld [vmem:[%s15193_s4 + $0xd0] sm:$0xff]   ;;  %v11081_v31 = vld [vmem:[%s15193_s4 + $0x48] sm:$0xff]   ;;  %v11083_v33 = vld [vmem:[%s15193_s4 + $0x40] sm:$0xff]  }
  0x27   :  { %1626 = vmatprep.subr.bf16.mxu0 %v11872_v0  ;;  %1915 = vmatprep.subr.bf16.mxu1 %v11872_v0  ;;  %v11082_v32 = vld [vmem:[%s15193_s4 + $0xc8] sm:$0xff]   ;;  %v11084_v34 = vld [vmem:[%s15193_s4 + $0xc0] sm:$0xff]   ;;  %v11091_v37 = vld [vmem:[%s15193_s4 + $0x138] sm:$0xff]  }
  0x28   :  { %v11085_v35 = vld [vmem:[#allocation2] ss:$24 sps:$4 sm:$0xff]   ;;  %v11093_v39 = vld [vmem:[#allocation2 + $0x34] ss:$24 sps:$4 sm:$0xff]   ;;  %v11097_v43 = vld [vmem:[#allocation2 + $0x30] ss:$24 sps:$4 sm:$0xff]  }
  0x29   :  { %v11088_v36 = vld [vmem:[#allocation2 + $0x8] ss:$24 sps:$4 sm:$0xff]   ;;  %v11092_v38 = vld [vmem:[%s15195_s6 + $0x38] sm:$0xff]   ;;  %v11105_v41 = vld [vmem:[%s15193_s4 + $0x130] sm:$0xff]  }
  0x2a   :  { %1627 = vmatpush1.bf16.msra.mxu0 %v11059_v7  ;;  %1916 = vmatpush1.bf16.msra.mxu1 %v11060_v8  ;;  %v11095_v40 = vld [vmem:[#allocation2 + $0x3c] ss:$24 sps:$4 sm:$0xff]   ;;  %v11098_v44 = vld [vmem:[#allocation2 + $0x38] ss:$24 sps:$4 sm:$0xff]   ;;  %v11101_v46 = vld [vmem:[#allocation2 + $0x6c] ss:$24 sps:$4 sm:$0xff]  }
  0x2b   :  { %1628 = vmatprep.subr.bf16.mxu0 %v11872_v0  ;;  %1917 = vmatprep.subr.bf16.mxu1 %v11872_v0  ;;  %v11106_v42 = vld [vmem:[%s15195_s6 + $0x30] sm:$0xff]   ;;  %v11099_v45 = vld [vmem:[#allocation2 + $0x64] ss:$24 sps:$4 sm:$0xff]   ;;  %v11119_v47 = vld [vmem:[%s15193_s4 + $0x128] sm:$0xff]  }
  0x2c   :  { %v11120_v48 = vld [vmem:[%s15195_s6 + $0x28] sm:$0xff]   ;;  %v11103_v49 = vld [vmem:[#allocation2 + $0x60] ss:$24 sps:$4 sm:$0xff]   ;;  %v11109_v54 = vld [vmem:[#allocation2 + $0x9c] ss:$24 sps:$4 sm:$0xff]  }
  0x2d   :  { %v11133_v50 = vld [vmem:[%s15193_s4 + $0x120] sm:$0xff]   ;;  %v11107_v53 = vld [vmem:[#allocation2 + $0x94] ss:$24 sps:$4 sm:$0xff]   ;;  %v11147_v55 = vld [vmem:[%s15193_s4 + $0x118] sm:$0xff]  }
  0x2e   :  { %1629 = vmatpush1.bf16.msra.mxu0 %v11061_v9  ;;  %1918 = vmatpush1.bf16.msra.mxu1 %v11062_v10  ;;  %v11134_v51 = vld [vmem:[%s15195_s6 + $0x20] sm:$0xff]   ;;  %v11148_v56 = vld [vmem:[%s15195_s6 + $0x18] sm:$0xff]   ;;  %v11161_v57 = vld [vmem:[%s15193_s4 + $0x110] sm:$0xff]  }
  0x2f   :  { %1630 = vmatprep.subr.bf16.mxu0 %v11872_v0  ;;  %1919 = vmatprep.subr.bf16.mxu1 %v11872_v0  ;;  %v11104_v52 = vld [vmem:[#allocation2 + $0x68] ss:$24 sps:$4 sm:$0xff]   ;;  %v11162_v58 = vld [vmem:[%s15195_s6 + $0x10] sm:$0xff]   ;;  %v11113_v61 = vld [vmem:[#allocation2 + $0xc4] ss:$24 sps:$4 sm:$0xff]  }
  0x30   :  { %v11111_v59 = vld [vmem:[#allocation2 + $0x90] ss:$24 sps:$4 sm:$0xff]   ;;  %v11115_v62 = vld [vmem:[#allocation2 + $0xcc] ss:$24 sps:$4 sm:$0xff]   ;;  %v11117_v2 = vld [vmem:[#allocation2 + $0xc0] ss:$24 sps:$4 sm:$0xff]  }
  0x31   :  { %v11112_v60 = vld [vmem:[#allocation2 + $0x98] ss:$24 sps:$4 sm:$0xff]   ;;  %v11175_v63 = vld [vmem:[%s15193_s4 + $0x108] sm:$0xff]   ;;  %v11189_v3 = vld [vmem:[%s15193_s4 + $0x100] sm:$0xff]  }
  0x32   :  { %1631 = vmatpush1.bf16.msra.mxu0 %v11063_v11  ;;  %1920 = vmatpush1.bf16.msra.mxu1 %v11064_v12  ;;  %v11176_v1 = vld [vmem:[%s15195_s6 + $0x8] sm:$0xff]   ;;  %v11190_v5 = vld [vmem:[%s15195_s6] sm:$0xff]   ;;  %v11123_v7 = vld [vmem:[#allocation2 + $0xfc] ss:$24 sps:$4 sm:$0xff]  }
  0x33   :  { %1632 = vmatprep.subr.bf16.mxu0 %v11872_v0  ;;  %1921 = vmatprep.subr.bf16.mxu1 %v11872_v0  ;;  %v11118_v4 = vld [vmem:[#allocation2 + $0xc8] ss:$24 sps:$4 sm:$0xff]   ;;  %v11121_v6 = vld [vmem:[#allocation2 + $0xf4] ss:$24 sps:$4 sm:$0xff]   ;;  %v11203_v8 = vld [vmem:[%s15193_s4 + $0x178] sm:$0xff]  }
  0x34   :  { %v11204_v9 = vld [vmem:[%s15195_s6 + $0x78] sm:$0xff]   ;;  %v11125_v10 = vld [vmem:[#allocation2 + $0xf0] ss:$24 sps:$4 sm:$0xff]  }
  0x35   :  { %v11126_v11 = vld [vmem:[#allocation2 + $0xf8] ss:$24 sps:$4 sm:$0xff]   ;;  %v11127_v12 = vld [vmem:[#allocation2 + $0x124] ss:$24 sps:$4 sm:$0xff]   ;;  %v11232_v19 = vld [vmem:[%s15195_s6 + $0x68] sm:$0xff]  }
  0x36   :  { %1633 = vmatpush1.bf16.msra.mxu0 %v11065_v13  ;;  %1922 = vmatpush1.bf16.msra.mxu1 %v11066_v14  ;;  %v11217_v13 = vld [vmem:[%s15193_s4 + $0x170] sm:$0xff]  }
  0x37   :  { %1634 = vmatprep.subr.bf16.mxu0 %v11872_v0  ;;  %1923 = vmatprep.subr.bf16.mxu1 %v11872_v0  ;;  %v11218_v14 = vld [vmem:[%s15195_s6 + $0x70] sm:$0xff]  }
  0x38   :  { %v11137_v21 = vld [vmem:[#allocation2 + $0x15c] ss:$24 sps:$4 sm:$0xff]  }
  0x3a   :  { %1635 = vmatpush1.bf16.msra.mxu0 %v11067_v15  ;;  %1924 = vmatpush1.bf16.msra.mxu1 %v11068_v16  ;;  %v11129_v15 = vld [vmem:[#allocation2 + $0x12c] ss:$24 sps:$4 sm:$0xff]   ;;  %v11131_v16 = vld [vmem:[#allocation2 + $0x120] ss:$24 sps:$4 sm:$0xff]  }
  0x3b   :  { %1636 = vmatprep.subr.bf16.mxu0 %v11872_v0  ;;  %1925 = vmatprep.subr.bf16.mxu1 %v11872_v0 }
  0x3e   :  { %1637 = vmatpush2.bf16.msra.mxu0 %v11069_v17  ;;  %1926 = vmatpush2.bf16.msra.mxu1 %v11070_v18  ;;  %v11132_v17 = vld [vmem:[#allocation2 + $0x128] ss:$24 sps:$4 sm:$0xff]  }
  0x3f   :  { %1638 = vmatprep.subr.bf16.mxu0 %v11872_v0  ;;  %1927 = vmatprep.subr.bf16.mxu1 %v11872_v0  ;;  %v11231_v18 = vld [vmem:[%s15193_s4 + $0x168] sm:$0xff]  }
  0x42   :  { %1639 = vmatpush2.bf16.msra.mxu0 %v11071_v20  ;;  %1928 = vmatpush2.bf16.msra.mxu1 %v11072_v22  ;;  %v11135_v20 = vld [vmem:[#allocation2 + $0x154] ss:$24 sps:$4 sm:$0xff]   ;;  %v11139_v22 = vld [vmem:[#allocation2 + $0x150] ss:$24 sps:$4 sm:$0xff]  }
  0x43   :  { %1640 = vmatprep.subr.bf16.mxu0 %v11872_v0  ;;  %1929 = vmatprep.subr.bf16.mxu1 %v11872_v0 }
  0x46   :  { %1641 = vmatpush2.bf16.msra.mxu0 %v11073_v23  ;;  %1930 = vmatpush2.bf16.msra.mxu1 %v11074_v24  ;;  %v11140_v23 = vld [vmem:[#allocation2 + $0x158] ss:$24 sps:$4 sm:$0xff]   ;;  %v11245_v24 = vld [vmem:[%s15193_s4 + $0x160] sm:$0xff]  }
  0x47   :  { %1642 = vmatprep.subr.bf16.mxu0 %v11872_v0  ;;  %1931 = vmatprep.subr.bf16.mxu1 %v11872_v0 }
  0x4a   :  { %1643 = vmatpush2.bf16.msra.mxu0 %v11075_v25  ;;  %1932 = vmatpush2.bf16.msra.mxu1 %v11076_v26  ;;  %v11246_v25 = vld [vmem:[%s15195_s6 + $0x60] sm:$0xff]  }
  0x4b   :  { %1644 = vmatprep.subr.bf16.mxu0 %v11872_v0  ;;  %1933 = vmatprep.subr.bf16.mxu1 %v11872_v0  ;;  %v11141_v26 = vld [vmem:[#allocation2 + $0x184] ss:$24 sps:$4 sm:$0xff]  }
  0x4e   :  { %1645 = vmatpush2.bf16.msra.mxu0 %v11077_v27  ;;  %1934 = vmatpush2.bf16.msra.mxu1 %v11078_v28  ;;  %v11143_v27 = vld [vmem:[#allocation2 + $0x18c] ss:$24 sps:$4 sm:$0xff]   ;;  %v11145_v28 = vld [vmem:[#allocation2 + $0x180] ss:$24 sps:$4 sm:$0xff]  }
  0x4f   :  { %1646 = vmatprep.subr.bf16.mxu0 %v11872_v0  ;;  %1935 = vmatprep.subr.bf16.mxu1 %v11872_v0 }
  0x52   :  { %1647 = vmatpush2.bf16.msra.mxu0 %v11079_v29  ;;  %1936 = vmatpush2.bf16.msra.mxu1 %v11080_v30  ;;  %v11146_v29 = vld [vmem:[#allocation2 + $0x188] ss:$24 sps:$4 sm:$0xff]   ;;  %v11149_v30 = vld [vmem:[#allocation2 + $0x1b4] ss:$24 sps:$4 sm:$0xff]  }
  0x53   :  { %1648 = vmatprep.subr.bf16.mxu0 %v11872_v0  ;;  %1937 = vmatprep.subr.bf16.mxu1 %v11872_v0 }
  0x56   :  { %1649 = vmatpush2.bf16.msra.mxu0 %v11081_v31  ;;  %1938 = vmatpush2.bf16.msra.mxu1 %v11082_v32  ;;  %v11151_v31 = vld [vmem:[#allocation2 + $0x1bc] ss:$24 sps:$4 sm:$0xff]   ;;  %v11153_v32 = vld [vmem:[#allocation2 + $0x1b0] ss:$24 sps:$4 sm:$0xff]  }
  0x57   :  { %1650 = vmatprep.subr.bf16.mxu0 %v11872_v0  ;;  %1939 = vmatprep.subr.bf16.mxu1 %v11872_v0 }
  0x5a   :  { %1651 = vmatpush2.bf16.msra.mxu0 %v11083_v33  ;;  %1940 = vmatpush2.bf16.msra.mxu1 %v11084_v34  ;;  %v11154_v33 = vld [vmem:[#allocation2 + $0x1b8] ss:$24 sps:$4 sm:$0xff]   ;;  %v11155_v34 = vld [vmem:[#allocation2 + $0x1e4] ss:$24 sps:$4 sm:$0xff]  }
  0x5b   :  { %2198 = vmatprep.subr.bf16.mxu0 %v11872_v0  ;;  %4254 = vmatprep.subr.bf16.mxu1 %v11872_v0 }
  0x5d   :  { %1653 = vmatmul.mubr.bf16.vlgmr.msra.gmra.mxu0 %v11085_v35  ;;  %1942 = vmatmul.mubr.bf16.vlgmr.msra.gmra.mxu1 %v11088_v36  ;;  %v11259_v35 = vld [vmem:[%s15193_s4 + $0x158] sm:$0xff]  }
  0x5e   :  { %2199 = vmatpush1.bf16.msra.mxu0 %v11091_v37  ;;  %4255 = vmatpush1.bf16.msra.mxu1 %v11092_v38  ;;  %v11260_v36 = vld [vmem:[%s15195_s6 + $0x58] sm:$0xff]   ;;  %v11157_v37 = vld [vmem:[#allocation2 + $0x1ec] ss:$24 sps:$4 sm:$0xff]  }
  0x5f   :  { %1660 = vmatprep.mubr.bf16.mxu0 %v11093_v39  ;;  %1949 = vmatprep.mubr.bf16.mxu1 %v11095_v40  ;;  %v11159_v38 = vld [vmem:[#allocation2 + $0x1e0] ss:$24 sps:$4 sm:$0xff]   ;;  %v11163_v40 = vld [vmem:[#allocation2 + $0x214] ss:$24 sps:$4 sm:$0xff]  }
  0x60   :  { %2200 = vmatprep.subr.bf16.mxu0 %v11872_v0  ;;  %4256 = vmatprep.subr.bf16.mxu1 %v11872_v0  ;;  %v11160_v39 = vld [vmem:[#allocation2 + $0x1e8] ss:$24 sps:$4 sm:$0xff]  }
  0x62   :  { %2201 = vmatpush1.bf16.msra.mxu0 %v11105_v41  ;;  %4257 = vmatpush1.bf16.msra.mxu1 %v11106_v42  ;;  %v11165_v41 = vld [vmem:[#allocation2 + $0x21c] ss:$24 sps:$4 sm:$0xff]   ;;  %v11167_v42 = vld [vmem:[#allocation2 + $0x210] ss:$24 sps:$4 sm:$0xff]  }
  0x63   :  { %2202 = vmatprep.subr.bf16.mxu0 %v11872_v0  ;;  %4258 = vmatprep.subr.bf16.mxu1 %v11872_v0 }
  0x65   :  { %1661 = vmatmul.mubr.bf16.gmra.mxu0 %v11097_v43  ;;  %1950 = vmatmul.mubr.bf16.gmra.mxu1 %v11098_v44  ;;  %v11168_v43 = vld [vmem:[#allocation2 + $0x218] ss:$24 sps:$4 sm:$0xff]   ;;  %v11169_v44 = vld [vmem:[#allocation2 + $0x244] ss:$24 sps:$4 sm:$0xff]  }
  0x66   :  { %1668 = vmatprep.mubr.bf16.mxu0 %v11099_v45  ;;  %1957 = vmatprep.mubr.bf16.mxu1 %v11101_v46  ;;  %v11273_v45 = vld [vmem:[%s15193_s4 + $0x150] sm:$0xff]  }
  0x67   :  { %2203 = vmatpush1.bf16.msra.mxu0 %v11119_v47  ;;  %4259 = vmatpush1.bf16.msra.mxu1 %v11120_v48  ;;  %v11274_v46 = vld [vmem:[%s15195_s6 + $0x50] sm:$0xff]   ;;  %v11171_v47 = vld [vmem:[#allocation2 + $0x24c] ss:$24 sps:$4 sm:$0xff]   ;;  %v11173_v48 = vld [vmem:[#allocation2 + $0x240] ss:$24 sps:$4 sm:$0xff]  }
  0x68   :  { %2204 = vmatprep.subr.bf16.mxu0 %v11872_v0  ;;  %4260 = vmatprep.subr.bf16.mxu1 %v11872_v0 }
  0x6b   :  { %2205 = vmatpush1.bf16.msra.mxu0 %v11133_v50  ;;  %4261 = vmatpush1.bf16.msra.mxu1 %v11134_v51  ;;  %v11177_v50 = vld [vmem:[#allocation2 + $0x274] ss:$24 sps:$4 sm:$0xff]  }
  0x6c   :  { %2206 = vmatprep.subr.bf16.mxu0 %v11872_v0  ;;  %4262 = vmatprep.subr.bf16.mxu1 %v11872_v0  ;;  %v11179_v51 = vld [vmem:[#allocation2 + $0x27c] ss:$24 sps:$4 sm:$0xff]  }
  0x6d   :  { %1669 = vmatmul.mubr.bf16.gmra.mxu0 %v11103_v49  ;;  %1958 = vmatmul.mubr.bf16.gmra.mxu1 %v11104_v52  ;;  %v11174_v49 = vld [vmem:[#allocation2 + $0x248] ss:$24 sps:$4 sm:$0xff]  }
  0x6e   :  { %1676 = vmatprep.mubr.bf16.mxu0 %v11107_v53  ;;  %1965 = vmatprep.mubr.bf16.mxu1 %v11109_v54  ;;  %v11181_v52 = vld [vmem:[#allocation2 + $0x270] ss:$24 sps:$4 sm:$0xff]   ;;  %v11183_v54 = vld [vmem:[#allocation2 + $0x2a4] ss:$24 sps:$4 sm:$0xff]  }
  0x6f   :  { %2207 = vmatpush1.bf16.msra.mxu0 %v11147_v55  ;;  %4263 = vmatpush1.bf16.msra.mxu1 %v11148_v56  ;;  %v11182_v53 = vld [vmem:[#allocation2 + $0x278] ss:$24 sps:$4 sm:$0xff]   ;;  %v11287_v55 = vld [vmem:[%s15193_s4 + $0x148] sm:$0xff]  }
  0x70   :  { %2208 = vmatprep.subr.bf16.mxu0 %v11872_v0  ;;  %4264 = vmatprep.subr.bf16.mxu1 %v11872_v0  ;;  %v11288_v56 = vld [vmem:[%s15195_s6 + $0x48] sm:$0xff]  }
  0x73   :  { %2209 = vmatpush1.bf16.msra.mxu0 %v11161_v57  ;;  %4265 = vmatpush1.bf16.msra.mxu1 %v11162_v58  ;;  %v11185_v57 = vld [vmem:[#allocation2 + $0x2ac] ss:$24 sps:$4 sm:$0xff]   ;;  %v11187_v58 = vld [vmem:[#allocation2 + $0x2a0] ss:$24 sps:$4 sm:$0xff]  }
  0x74   :  { %2210 = vmatprep.subr.bf16.mxu0 %v11872_v0  ;;  %4266 = vmatprep.subr.bf16.mxu1 %v11872_v0 }
  0x75   :  { %1677 = vmatmul.mubr.bf16.gmra.mxu0 %v11111_v59  ;;  %1966 = vmatmul.mubr.bf16.gmra.mxu1 %v11112_v60  ;;  %v11188_v59 = vld [vmem:[#allocation2 + $0x2a8] ss:$24 sps:$4 sm:$0xff]   ;;  %v11191_v60 = vld [vmem:[#allocation2 + $0x2d4] ss:$24 sps:$4 sm:$0xff]  }
  0x76   :  { %1684 = vmatprep.mubr.bf16.mxu0 %v11113_v61  ;;  %1973 = vmatprep.mubr.bf16.mxu1 %v11115_v62  ;;  %v11193_v61 = vld [vmem:[#allocation2 + $0x2dc] ss:$24 sps:$4 sm:$0xff]   ;;  %v11195_v62 = vld [vmem:[#allocation2 + $0x2d0] ss:$24 sps:$4 sm:$0xff]  }
  0x77   :  { %2211 = vmatpush1.bf16.msra.mxu0 %v11175_v63  ;;  %4267 = vmatpush1.bf16.msra.mxu1 %v11176_v1  ;;  %v11196_v63 = vld [vmem:[#allocation2 + $0x2d8] ss:$24 sps:$4 sm:$0xff]   ;;  %v11197_v1 = vld [vmem:[#allocation2 + $0x304] ss:$24 sps:$4 sm:$0xff]  }
  0x78   :  { %2212 = vmatprep.subr.bf16.mxu0 %v11872_v0  ;;  %4268 = vmatprep.subr.bf16.mxu1 %v11872_v0 }
  0x7b   :  { %2213 = vmatpush1.bf16.msra.mxu0 %v11189_v3  ;;  %4269 = vmatpush1.bf16.msra.mxu1 %v11190_v5  ;;  %v11302_v3 = vld [vmem:[%s15195_s6 + $0x40] sm:$0xff]  }
  0x7c   :  { %2214 = vmatprep.subr.bf16.mxu0 %v11872_v0  ;;  %4270 = vmatprep.subr.bf16.mxu1 %v11872_v0  ;;  %v11201_v5 = vld [vmem:[#allocation2 + $0x300] ss:$24 sps:$4 sm:$0xff]  }
  0x7d   :  { %1685 = vmatmul.mubr.bf16.gmra.mxu0 %v11117_v2  ;;  %1974 = vmatmul.mubr.bf16.gmra.mxu1 %v11118_v4  ;;  %v11301_v2 = vld [vmem:[%s15193_s4 + $0x140] sm:$0xff]  }
  0x7e   :  { %1692 = vmatprep.mubr.bf16.mxu0 %v11121_v6  ;;  %1981 = vmatprep.mubr.bf16.mxu1 %v11123_v7  ;;  %v11199_v4 = vld [vmem:[#allocation2 + $0x30c] ss:$24 sps:$4 sm:$0xff]   ;;  %v11202_v6 = vld [vmem:[#allocation2 + $0x308] ss:$24 sps:$4 sm:$0xff]  }
  0x7f   :  { %2215 = vmatpush2.bf16.msra.mxu0 %v11203_v8  ;;  %4271 = vmatpush2.bf16.msra.mxu1 %v11204_v9  ;;  %v11205_v7 = vld [vmem:[#allocation2 + $0x334] ss:$24 sps:$4 sm:$0xff]   ;;  %v11209_v9 = vld [vmem:[#allocation2 + $0x330] ss:$24 sps:$4 sm:$0xff]  }
  0x80   :  { %2216 = vmatprep.subr.bf16.mxu0 %v11872_v0  ;;  %4272 = vmatprep.subr.bf16.mxu1 %v11872_v0  ;;  %v11207_v8 = vld [vmem:[#allocation2 + $0x33c] ss:$24 sps:$4 sm:$0xff]  }
  0x83   :  { %2217 = vmatpush2.bf16.msra.mxu0 %v11217_v13  ;;  %4273 = vmatpush2.bf16.msra.mxu1 %v11218_v14  ;;  %v11215_v13 = vld [vmem:[#allocation2 + $0x360] ss:$24 sps:$4 sm:$0xff]  }
  0x84   :  { %2218 = vmatprep.subr.bf16.mxu0 %v11872_v0  ;;  %4274 = vmatprep.subr.bf16.mxu1 %v11872_v0  ;;  %v11216_v14 = vld [vmem:[#allocation2 + $0x368] ss:$24 sps:$4 sm:$0xff]  }
  0x85   :  { %1693 = vmatmul.mubr.bf16.gmra.mxu0 %v11125_v10  ;;  %1982 = vmatmul.mubr.bf16.gmra.mxu1 %v11126_v11  ;;  %v11210_v10 = vld [vmem:[#allocation2 + $0x338] ss:$24 sps:$4 sm:$0xff]   ;;  %v11211_v11 = vld [vmem:[#allocation2 + $0x364] ss:$24 sps:$4 sm:$0xff]  }
  0x86   :  { %1700 = vmatprep.mubr.bf16.mxu0 %v11127_v12  ;;  %1989 = vmatprep.mubr.bf16.mxu1 %v11129_v15  ;;  %v11213_v12 = vld [vmem:[#allocation2 + $0x36c] ss:$24 sps:$4 sm:$0xff]  }
  0x87   :  { %2219 = vmatpush2.bf16.msra.mxu0 %v11231_v18  ;;  %4275 = vmatpush2.bf16.msra.mxu1 %v11232_v19  ;;  %v11219_v15 = vld [vmem:[#allocation2 + $0x394] ss:$24 sps:$4 sm:$0xff]   ;;  %v11224_v18 = vld [vmem:[#allocation2 + $0x398] ss:$24 sps:$4 sm:$0xff]   ;;  %v11225_v19 = vld [vmem:[#allocation2 + $0x3c4] ss:$24 sps:$4 sm:$0xff]  }
  0x88   :  { %2220 = vmatprep.subr.bf16.mxu0 %v11872_v0  ;;  %4276 = vmatprep.subr.bf16.mxu1 %v11872_v0 }
  0x8b   :  { %2221 = vmatpush2.bf16.msra.mxu0 %v11245_v24  ;;  %4277 = vmatpush2.bf16.msra.mxu1 %v11246_v25  ;;  %v11235_v24 = vld [vmem:[#allocation2 + $0x3fc] ss:$24 sps:$4 sm:$0xff]   ;;  %v11237_v25 = vld [vmem:[#allocation2 + $0x3f0] ss:$24 sps:$4 sm:$0xff]  }
  0x8c   :  { %2222 = vmatprep.subr.bf16.mxu0 %v11872_v0  ;;  %4278 = vmatprep.subr.bf16.mxu1 %v11872_v0 }
  0x8d   :  { %1701 = vmatmul.mubr.bf16.gmra.mxu0 %v11131_v16  ;;  %1990 = vmatmul.mubr.bf16.gmra.mxu1 %v11132_v17  ;;  %v11221_v16 = vld [vmem:[#allocation2 + $0x39c] ss:$24 sps:$4 sm:$0xff]   ;;  %v11223_v17 = vld [vmem:[#allocation2 + $0x390] ss:$24 sps:$4 sm:$0xff]  }
  0x8e   :  { %1708 = vmatprep.mubr.bf16.mxu0 %v11135_v20  ;;  %1997 = vmatprep.mubr.bf16.mxu1 %v11137_v21  ;;  %v11227_v20 = vld [vmem:[#allocation2 + $0x3cc] ss:$24 sps:$4 sm:$0xff]   ;;  %v11229_v21 = vld [vmem:[#allocation2 + $0x3c0] ss:$24 sps:$4 sm:$0xff]  }
  0x8f   :  { %2223 = vmatpush2.bf16.msra.mxu0 %v11259_v35  ;;  %4279 = vmatpush2.bf16.msra.mxu1 %v11260_v36  ;;  %v11253_v35 = vld [vmem:[#allocation2 + $0x484] ss:$24 sps:$4 sm:$0xff]  }
  0x90   :  { %2224 = vmatprep.subr.bf16.mxu0 %v11872_v0  ;;  %4280 = vmatprep.subr.bf16.mxu1 %v11872_v0  ;;  %v11255_v36 = vld [vmem:[#allocation2 + $0x48c] ss:$24 sps:$4 sm:$0xff]  }
  0x93   :  { %2225 = vmatpush2.bf16.msra.mxu0 %v11273_v45  ;;  %4281 = vmatpush2.bf16.msra.mxu1 %v11274_v46  ;;  %v11265_v46 = vld [vmem:[#allocation2 + $0x4b0] ss:$24 sps:$4 sm:$0xff]  }
  0x94   :  { %2226 = vmatprep.subr.bf16.mxu0 %v11872_v0  ;;  %4282 = vmatprep.subr.bf16.mxu1 %v11872_v0 }
  0x95   :  { %1709 = vmatmul.mubr.bf16.gmra.mxu0 %v11139_v22  ;;  %1998 = vmatmul.mubr.bf16.gmra.mxu1 %v11140_v23  ;;  %v11230_v22 = vld [vmem:[#allocation2 + $0x3c8] ss:$24 sps:$4 sm:$0xff]   ;;  %v11233_v23 = vld [vmem:[#allocation2 + $0x3f4] ss:$24 sps:$4 sm:$0xff]  }
  0x96   :  { %1716 = vmatprep.mubr.bf16.mxu0 %v11141_v26  ;;  %2005 = vmatprep.mubr.bf16.mxu1 %v11143_v27  ;;  %v11238_v26 = vld [vmem:[#allocation2 + $0x3f8] ss:$24 sps:$4 sm:$0xff]   ;;  %v11239_v27 = vld [vmem:[#allocation2 + $0x424] ss:$24 sps:$4 sm:$0xff]  }
  0x97   :  { %2227 = vmatpush2.bf16.msra.mxu0 %v11287_v55  ;;  %4283 = vmatpush2.bf16.msra.mxu1 %v11288_v56  ;;  %v11269_v55 = vld [vmem:[#allocation2 + $0x4ec] ss:$24 sps:$4 sm:$0xff]  }
  0x98   :  { %2228 = vmatprep.subr.bf16.mxu0 %v11872_v0  ;;  %4284 = vmatprep.subr.bf16.mxu1 %v11872_v0 }
  0x9b   :  { %2229 = vmatpush2.bf16.msra.mxu0 %v11301_v2  ;;  %4285 = vmatpush2.bf16.msra.mxu1 %v11302_v3  ;;  %v11272_v2 = vld [vmem:[#allocation2 + $0x4e8] ss:$24 sps:$4 sm:$0xff]   ;;  %v11275_v3 = vld [vmem:[#allocation2 + $0x514] ss:$24 sps:$4 sm:$0xff]  }
  0x9c   :  { %4543 = vmatprep.subr.bf16.mxu0 %v11872_v0  ;;  %4832 = vmatprep.subr.bf16.mxu1 %v11872_v0 }
  0x9d   :  { %1717 = vmatmul.mubr.bf16.gmra.mxu0 %v11145_v28  ;;  %2006 = vmatmul.mubr.bf16.gmra.mxu1 %v11146_v29  ;;  %v11241_v28 = vld [vmem:[#allocation2 + $0x42c] ss:$24 sps:$4 sm:$0xff]   ;;  %v11243_v29 = vld [vmem:[#allocation2 + $0x420] ss:$24 sps:$4 sm:$0xff]  }
  0x9e   :  { %1724 = vmatprep.mubr.bf16.mxu0 %v11149_v30  ;;  %2013 = vmatprep.mubr.bf16.mxu1 %v11151_v31  ;;  %v11244_v30 = vld [vmem:[#allocation2 + $0x428] ss:$24 sps:$4 sm:$0xff]   ;;  %v11247_v31 = vld [vmem:[#allocation2 + $0x454] ss:$24 sps:$4 sm:$0xff]  }
  0xa5   :  { %1725 = vmatmul.mubr.bf16.gmra.mxu0 %v11153_v32  ;;  %2014 = vmatmul.mubr.bf16.gmra.mxu1 %v11154_v33  ;;  %v11249_v32 = vld [vmem:[#allocation2 + $0x45c] ss:$24 sps:$4 sm:$0xff]   ;;  %v11251_v33 = vld [vmem:[#allocation2 + $0x450] ss:$24 sps:$4 sm:$0xff]  }
  0xa6   :  { %1732 = vmatprep.mubr.bf16.mxu0 %v11155_v34  ;;  %2021 = vmatprep.mubr.bf16.mxu1 %v11157_v37  ;;  %v11252_v34 = vld [vmem:[#allocation2 + $0x458] ss:$24 sps:$4 sm:$0xff]  }
  0xa7   :  { %v11257_v37 = vld [vmem:[#allocation2 + $0x480] ss:$24 sps:$4 sm:$0xff]  }
  0xad   :  { %1733 = vmatmul.mubr.bf16.gmra.mxu0 %v11159_v38  ;;  %2022 = vmatmul.mubr.bf16.gmra.mxu1 %v11160_v39  ;;  %v11258_v38 = vld [vmem:[#allocation2 + $0x488] ss:$24 sps:$4 sm:$0xff]   ;;  %v11261_v39 = vld [vmem:[#allocation2 + $0x4b4] ss:$24 sps:$4 sm:$0xff]  }
  0xae   :  { %1740 = vmatprep.mubr.bf16.mxu0 %v11163_v40  ;;  %2029 = vmatprep.mubr.bf16.mxu1 %v11165_v41  ;;  %v12218_v40 = vld [vmem:[%s15194_s5] ss:$0 sm:$0xff]  ;;  %v11263_v41 = vld [vmem:[#allocation2 + $0x4bc] ss:$24 sps:$4 sm:$0xff]  }
  0xb5   :  { %1741 = vmatmul.mubr.bf16.gmra.mxu0 %v11167_v42  ;;  %2030 = vmatmul.mubr.bf16.gmra.mxu1 %v11168_v43 }
  0xb6   :  { %1748 = vmatprep.mubr.bf16.mxu0 %v11169_v44  ;;  %2037 = vmatprep.mubr.bf16.mxu1 %v11171_v47 }
  0xbd   :  { %1749 = vmatmul.mubr.bf16.gmra.mxu0 %v11173_v48  ;;  %2038 = vmatmul.mubr.bf16.gmra.mxu1 %v11174_v49  ;;  %v11266_v49 = vld [vmem:[#allocation2 + $0x4b8] ss:$24 sps:$4 sm:$0xff]  }
  0xbe   :  { %1756 = vmatprep.mubr.bf16.mxu0 %v11177_v50  ;;  %2045 = vmatprep.mubr.bf16.mxu1 %v11179_v51  ;;  %v11267_v50 = vld [vmem:[#allocation2 + $0x4e4] ss:$24 sps:$4 sm:$0xff]  }
  0xc5   :  { %1757 = vmatmul.mubr.bf16.gmra.mxu0 %v11181_v52  ;;  %2046 = vmatmul.mubr.bf16.gmra.mxu1 %v11182_v53 }
  0xc6   :  { %1764 = vmatprep.mubr.bf16.mxu0 %v11183_v54  ;;  %2053 = vmatprep.mubr.bf16.mxu1 %v11185_v57 }
  0xcd   :  { %1765 = vmatmul.mubr.bf16.gmra.mxu0 %v11187_v58  ;;  %2054 = vmatmul.mubr.bf16.gmra.mxu1 %v11188_v59 }
  0xce   :  { %1772 = vmatprep.mubr.bf16.mxu0 %v11191_v60  ;;  %2061 = vmatprep.mubr.bf16.mxu1 %v11193_v61 }
  0xd5   :  { %1773 = vmatmul.mubr.bf16.gmra.mxu0 %v11195_v62  ;;  %2062 = vmatmul.mubr.bf16.gmra.mxu1 %v11196_v63  ;;  %v11271_v62 = vld [vmem:[#allocation2 + $0x4e0] ss:$24 sps:$4 sm:$0xff]  }
  0xd6   :  { %1780 = vmatprep.mubr.bf16.mxu0 %v11197_v1  ;;  %2069 = vmatprep.mubr.bf16.mxu1 %v11199_v4 }
  0xdd   :  { %1781 = vmatmul.mubr.bf16.gmra.mxu0 %v11201_v5  ;;  %2070 = vmatmul.mubr.bf16.gmra.mxu1 %v11202_v6 }
  0xde   :  { %1788 = vmatprep.mubr.bf16.mxu0 %v11205_v7  ;;  %2077 = vmatprep.mubr.bf16.mxu1 %v11207_v8  ;;  %v11277_v8 = vld [vmem:[#allocation2 + $0x51c] ss:$24 sps:$4 sm:$0xff]  }
  0xe5   :  { %1789 = vmatmul.mubr.bf16.gmra.mxu0 %v11209_v9  ;;  %2078 = vmatmul.mubr.bf16.gmra.mxu1 %v11210_v10 }
  0xe6   :  { %1796 = vmatprep.mubr.bf16.mxu0 %v11211_v11  ;;  %2085 = vmatprep.mubr.bf16.mxu1 %v11213_v12 }
  0xed   :  { %1797 = vmatmul.mubr.bf16.gmra.mxu0 %v11215_v13  ;;  %2086 = vmatmul.mubr.bf16.gmra.mxu1 %v11216_v14 }
  0xee   :  { %1804 = vmatprep.mubr.bf16.mxu0 %v11219_v15  ;;  %2093 = vmatprep.mubr.bf16.mxu1 %v11221_v16  ;;  %v11279_v15 = vld [vmem:[#allocation2 + $0x510] ss:$24 sps:$4 sm:$0xff]  }
  0xf5   :  { %1805 = vmatmul.mubr.bf16.gmra.mxu0 %v11223_v17  ;;  %2094 = vmatmul.mubr.bf16.gmra.mxu1 %v11224_v18  ;;  %v11280_v18 = vld [vmem:[#allocation2 + $0x518] ss:$24 sps:$4 sm:$0xff]  }
  0xf6   :  { %1812 = vmatprep.mubr.bf16.mxu0 %v11225_v19  ;;  %2101 = vmatprep.mubr.bf16.mxu1 %v11227_v20  ;;  %v11283_v19 = vld [vmem:[#allocation2 + $0x544] ss:$24 sps:$4 sm:$0xff]  }
  0xfd   :  { %1813 = vmatmul.mubr.bf16.gmra.mxu0 %v11229_v21  ;;  %2102 = vmatmul.mubr.bf16.gmra.mxu1 %v11230_v22 }
  0xfe   :  { %1820 = vmatprep.mubr.bf16.mxu0 %v11233_v23  ;;  %2109 = vmatprep.mubr.bf16.mxu1 %v11235_v24  ;;  %v11286_v24 = vld [vmem:[#allocation2 + $0x54c] ss:$24 sps:$4 sm:$0xff]  }
 0x105   :  { %1821 = vmatmul.mubr.bf16.gmra.mxu0 %v11237_v25  ;;  %2110 = vmatmul.mubr.bf16.gmra.mxu1 %v11238_v26 }
 0x106   :  { %1828 = vmatprep.mubr.bf16.mxu0 %v11239_v27  ;;  %2117 = vmatprep.mubr.bf16.mxu1 %v11241_v28 }
 0x10d   :  { %1829 = vmatmul.mubr.bf16.gmra.mxu0 %v11243_v29  ;;  %2118 = vmatmul.mubr.bf16.gmra.mxu1 %v11244_v30 }
 0x10e   :  { %1836 = vmatprep.mubr.bf16.mxu0 %v11247_v31  ;;  %2125 = vmatprep.mubr.bf16.mxu1 %v11249_v32  ;;  %v11281_v31 = vld [vmem:[#allocation2 + $0x540] ss:$24 sps:$4 sm:$0xff]  }
 0x115   :  { %1837 = vmatmul.mubr.bf16.gmra.mxu0 %v11251_v33  ;;  %2126 = vmatmul.mubr.bf16.gmra.mxu1 %v11252_v34  ;;  %v11284_v34 = vld [vmem:[#allocation2 + $0x548] ss:$24 sps:$4 sm:$0xff]  }
 0x116   :  { %1844 = vmatprep.mubr.bf16.mxu0 %v11253_v35  ;;  %2133 = vmatprep.mubr.bf16.mxu1 %v11255_v36  ;;  %v11291_v35 = vld [vmem:[#allocation2 + $0x574] ss:$24 sps:$4 sm:$0xff]  }
 0x11d   :  { %v1654_v42 = vpop.f32.mrf.mxu0  ;;  %1845 = vmatmul.mubr.bf16.gmra.mxu0 %v11257_v37  ;;  %v1943_v44 = vpop.f32.mrf.mxu1  ;;  %2134 = vmatmul.mubr.bf16.gmra.mxu1 %v11258_v38 }
 0x11e   :  { %v1655_v43 = vadd.f32 %v12218_v40, %v1654_v42  ;;  %1852 = vmatprep.mubr.bf16.mxu0 %v11261_v39  ;;  %2141 = vmatprep.mubr.bf16.mxu1 %v11263_v41  ;;  %v11294_v41 = vld [vmem:[#allocation2 + $0x57c] ss:$24 sps:$4 sm:$0xff]  }
 0x11f   :  { %v1656_v45 = vpop.f32.mrf.mxu0  ;;  %v1945_v48 = vpop.f32.mrf.mxu1 }
 0x120   :  { %v12221_v47 = vadd.f32 %v1943_v44, %v1655_v43 }
 0x121   :  { %v1657_v51 = vpop.f32.mrf.mxu0  ;;  %v1946_v53 = vpop.f32.mrf.mxu1 }
 0x122   :  { %v1658_v52 = vadd.f32 %v12218_v40, %v1657_v51 }
 0x123   :  { %v1659_v54 = vpop.f32.mrf.mxu0  ;;  %v1948_v57 = vpop.f32.mrf.mxu1 }
 0x124   :  { %v12224_v56 = vadd.f32 %v1946_v53, %v1658_v52  ;;  %v11292_v52 = vld [vmem:[#allocation2 + $0x578] ss:$24 sps:$4 sm:$0xff]   ;;  %v11297_v53 = vld [vmem:[#allocation2 + $0x5a4] ss:$24 sps:$4 sm:$0xff]  }
 0x125   :  { %v1662_v58 = vpop.f32.mrf.mxu0  ;;  %1853 = vmatmul.mubr.bf16.gmra.mxu0 %v11265_v46  ;;  %v1951_v60 = vpop.f32.mrf.mxu1  ;;  %2142 = vmatmul.mubr.bf16.gmra.mxu1 %v11266_v49  ;;  %v11289_v49 = vld [vmem:[#allocation2 + $0x570] ss:$24 sps:$4 sm:$0xff]  }
 0x126   :  { %v1663_v59 = vadd.f32 %v12218_v40, %v1662_v58  ;;  %1860 = vmatprep.mubr.bf16.mxu0 %v11267_v50  ;;  %2149 = vmatprep.mubr.bf16.mxu1 %v11269_v55 }
 0x127   :  { %v1664_v61 = vpop.f32.mrf.mxu0  ;;  %v1953_v1 = vpop.f32.mrf.mxu1 }
 0x128   :  { %v12227_v63 = vadd.f32 %v1951_v60, %v1663_v59  ;;  %v11300_v59 = vld [vmem:[#allocation2 + $0x5ac] ss:$24 sps:$4 sm:$0xff]  }
 0x129   :  { %v1665_v4 = vpop.f32.mrf.mxu0  ;;  %v1954_v6 = vpop.f32.mrf.mxu1 }
 0x12a   :  { %v1666_v5 = vadd.f32 %v12218_v40, %v1665_v4  ;;  %v11295_v4 = vld [vmem:[#allocation2 + $0x5a0] ss:$24 sps:$4 sm:$0xff]  }
 0x12b   :  { %v1667_v7 = vpop.f32.mrf.mxu0  ;;  %v1956_v10 = vpop.f32.mrf.mxu1 }
 0x12c   :  { %v12230_v9 = vadd.f32 %v1954_v6, %v1666_v5  ;;  %v11298_v7 = vld [vmem:[#allocation2 + $0x5a8] ss:$24 sps:$4 sm:$0xff]  }
 0x12d   :  { %v1670_v11 = vpop.f32.mrf.mxu0  ;;  %1861 = vmatmul.mubr.bf16.gmra.mxu0 %v11271_v62  ;;  %v1959_v13 = vpop.f32.mrf.mxu1  ;;  %2150 = vmatmul.mubr.bf16.gmra.mxu1 %v11272_v2 }
 0x12e   :  { %v1671_v12 = vadd.f32 %v12218_v40, %v1670_v11  ;;  %1868 = vmatprep.mubr.bf16.mxu0 %v11275_v3  ;;  %2157 = vmatprep.mubr.bf16.mxu1 %v11277_v8  ;;  %v11305_v8 = vld [vmem:[#allocation2 + $0x5d4] ss:$24 sps:$4 sm:$0xff]  }
 0x12f   :  { %v1672_v14 = vpop.f32.mrf.mxu0  ;;  %v1961_v17 = vpop.f32.mrf.mxu1 }
 0x130   :  { %v12233_v16 = vadd.f32 %v1959_v13, %v1671_v12  ;;  %v11308_v14 = vld [vmem:[#allocation2 + $0x5dc] ss:$24 sps:$4 sm:$0xff]  }
 0x131   :  { %v1673_v20 = vpop.f32.mrf.mxu0  ;;  %v1962_v22 = vpop.f32.mrf.mxu1 }
 0x132   :  { %v1674_v21 = vadd.f32 %v12218_v40, %v1673_v20 }
 0x133   :  { %v1675_v23 = vpop.f32.mrf.mxu0  ;;  %v1964_v26 = vpop.f32.mrf.mxu1 }
 0x134   :  { %v12236_v25 = vadd.f32 %v1962_v22, %v1674_v21  ;;  %v11303_v22 = vld [vmem:[#allocation2 + $0x5d0] ss:$24 sps:$4 sm:$0xff]  }
 0x135   :  { %v1678_v27 = vpop.f32.mrf.mxu0  ;;  %1869 = vmatmul.mubr.bf16.gmra.mxu0 %v11279_v15  ;;  %v1967_v29 = vpop.f32.mrf.mxu1  ;;  %2158 = vmatmul.mubr.bf16.gmra.mxu1 %v11280_v18  ;;  %v11306_v26 = vld [vmem:[#allocation2 + $0x5d8] ss:$24 sps:$4 sm:$0xff]  }
 0x136   :  { %v1679_v28 = vadd.f32 %v12218_v40, %v1678_v27  ;;  %1876 = vmatprep.mubr.bf16.mxu0 %v11283_v19  ;;  %2165 = vmatprep.mubr.bf16.mxu1 %v11286_v24  ;;  %v11311_v27 = vld [vmem:[#allocation2 + $0x14] ss:$24 sps:$4 sm:$0xff]  }
 0x137   :  { %v1680_v30 = vpop.f32.mrf.mxu0  ;;  %v1969_v33 = vpop.f32.mrf.mxu1 }
 0x138   :  { %v12239_v32 = vadd.f32 %v1967_v29, %v1679_v28  ;;  %v11314_v33 = vld [vmem:[#allocation5 + $0x4] ss:$24 sps:$4 sm:$0xff]  }
 0x139   :  { %v1681_v36 = vpop.f32.mrf.mxu0  ;;  %v1970_v38 = vpop.f32.mrf.mxu1 }
 0x13a   :  { %v1682_v37 = vadd.f32 %v12218_v40, %v1681_v36 }
 0x13b   :  { %v1683_v39 = vpop.f32.mrf.mxu0  ;;  %v1972_v43 = vpop.f32.mrf.mxu1 }
 0x13c   :  { %v12242_v42 = vadd.f32 %v1970_v38, %v1682_v37 }
 0x13d   :  { %v1686_v44 = vpop.f32.mrf.mxu0  ;;  %1877 = vmatmul.mubr.bf16.gmra.mxu0 %v11281_v31  ;;  %v1975_v46 = vpop.f32.mrf.mxu1  ;;  %2166 = vmatmul.mubr.bf16.gmra.mxu1 %v11284_v34 }
 0x13e   :  { %v1687_v45 = vadd.f32 %v12218_v40, %v1686_v44  ;;  %1884 = vmatprep.mubr.bf16.mxu0 %v11291_v35  ;;  %2173 = vmatprep.mubr.bf16.mxu1 %v11294_v41  ;;  %v11309_v41 = vld [vmem:[#allocation2 + $0x10] ss:$24 sps:$4 sm:$0xff]  }
 0x13f   :  { %v1688_v48 = vpop.f32.mrf.mxu0  ;;  %v1977_v51 = vpop.f32.mrf.mxu1 }
 0x140   :  { %v12245_v50 = vadd.f32 %v1975_v46, %v1687_v45  ;;  %v11312_v45 = vld [vmem:[#allocation5] ss:$24 sps:$4 sm:$0xff]  }
 0x141   :  { %v1689_v54 = vpop.f32.mrf.mxu0  ;;  %v1978_v57 = vpop.f32.mrf.mxu1  ;;  %v11315_v46 = vld [vmem:[%s15195_s6 + $0xb8] sm:$0xff]  }
 0x142   :  { %v1690_v55 = vadd.f32 %v12218_v40, %v1689_v54  ;;  %v11319_v54 = vld [vmem:[#allocation2 + $0x44] ss:$24 sps:$4 sm:$0xff]  }
 0x143   :  { %v1691_v58 = vpop.f32.mrf.mxu0  ;;  %v1980_v61 = vpop.f32.mrf.mxu1 }
 0x144   :  { %v12248_v60 = vadd.f32 %v1978_v57, %v1690_v55  ;;  %v11322_v58 = vld [vmem:[#allocation5 + $0x34] ss:$24 sps:$4 sm:$0xff]  }
 0x145   :  { %v1694_v62 = vpop.f32.mrf.mxu0  ;;  %1885 = vmatmul.mubr.bf16.gmra.mxu0 %v11289_v49  ;;  %v1983_v2 = vpop.f32.mrf.mxu1  ;;  %2174 = vmatmul.mubr.bf16.gmra.mxu1 %v11292_v52 }
 0x146   :  { %v1695_v1 = vadd.f32 %v12218_v40, %v1694_v62  ;;  %1892 = vmatprep.mubr.bf16.mxu0 %v11297_v53  ;;  %2181 = vmatprep.mubr.bf16.mxu1 %v11300_v59  ;;  %v11316_v53 = vld [vmem:[%s15195_s6 + $0x138] sm:$0xff]   ;;  %v11329_v59 = vld [vmem:[%s15195_s6 + $0xb0] sm:$0xff]  }
 0x147   :  { %v1696_v3 = vpop.f32.mrf.mxu0  ;;  %v1985_v6 = vpop.f32.mrf.mxu1  ;;  %v11330_v62 = vld [vmem:[%s15195_s6 + $0x130] sm:$0xff]  }
 0x148   :  { %v12251_v5 = vadd.f32 %v1983_v2, %v1695_v1 }
 0x149   :  { %v1697_v10 = vpop.f32.mrf.mxu0  ;;  %v1986_v12 = vpop.f32.mrf.mxu1 }
 0x14a   :  { %v1698_v11 = vadd.f32 %v12218_v40, %v1697_v10  ;;  %v11325_v10 = vld [vmem:[#allocation2 + $0x74] ss:$24 sps:$4 sm:$0xff]  }
 0x14b   :  { %v1699_v13 = vpop.f32.mrf.mxu0  ;;  %v1988_v17 = vpop.f32.mrf.mxu1 }
 0x14c   :  { %v12254_v15 = vadd.f32 %v1986_v12, %v1698_v11  ;;  %v11328_v17 = vld [vmem:[#allocation5 + $0x64] ss:$24 sps:$4 sm:$0xff]  }
 0x14d   :  { %v1702_v18 = vpop.f32.mrf.mxu0  ;;  %1893 = vmatmul.mubr.bf16.gmra.mxu0 %v11295_v4  ;;  %v1991_v20 = vpop.f32.mrf.mxu1  ;;  %2182 = vmatmul.mubr.bf16.gmra.mxu1 %v11298_v7  ;;  %v11317_v4 = vld [vmem:[#allocation2 + $0x40] ss:$24 sps:$4 sm:$0xff]  }
 0x14e   :  { %v1703_v19 = vadd.f32 %v12218_v40, %v1702_v18  ;;  %1900 = vmatprep.mubr.bf16.mxu0 %v11305_v8  ;;  %2189 = vmatprep.mubr.bf16.mxu1 %v11308_v14  ;;  %v11320_v8 = vld [vmem:[#allocation5 + $0x30] ss:$24 sps:$4 sm:$0xff]  }
 0x14f   :  { %v1704_v21 = vpop.f32.mrf.mxu0  ;;  %v1993_v24 = vpop.f32.mrf.mxu1  ;;  %v11343_v18 = vld [vmem:[%s15195_s6 + $0xa8] sm:$0xff]  }
 0x150   :  { %v12257_v23 = vadd.f32 %v1991_v20, %v1703_v19  ;;  %v11344_v21 = vld [vmem:[%s15195_s6 + $0x128] sm:$0xff]   ;;  %v11357_v24 = vld [vmem:[%s15195_s6 + $0xa0] sm:$0xff]  }
 0x151   :  { %v1705_v28 = vpop.f32.mrf.mxu0  ;;  %v1994_v30 = vpop.f32.mrf.mxu1 }
 0x152   :  { %v1706_v29 = vadd.f32 %v12218_v40, %v1705_v28  ;;  %v11358_v28 = vld [vmem:[%s15195_s6 + $0x120] sm:$0xff]  }
 0x153   :  { %v1707_v31 = vpop.f32.mrf.mxu0  ;;  %v1996_v35 = vpop.f32.mrf.mxu1 }
 0x154   :  { %v12260_v34 = vadd.f32 %v1994_v30, %v1706_v29  ;;  %v11323_v30 = vld [vmem:[#allocation2 + $0x70] ss:$24 sps:$4 sm:$0xff]  }
 0x155   :  { %v1710_v36 = vpop.f32.mrf.mxu0  ;;  %1901 = vmatmul.mubr.bf16.gmra.mxu0 %v11303_v22  ;;  %v1999_v38 = vpop.f32.mrf.mxu1  ;;  %2190 = vmatmul.mubr.bf16.gmra.mxu1 %v11306_v26 }
 0x156   :  { %v1711_v37 = vadd.f32 %v12218_v40, %v1710_v36  ;;  %2230 = vmatprep.mubr.bf16.mxu0 %v11311_v27  ;;  %4286 = vmatprep.mubr.bf16.mxu1 %v11314_v33 }
 0x157   :  { %v1712_v39 = vpop.f32.mrf.mxu0  ;;  %v2001_v44 = vpop.f32.mrf.mxu1 }
 0x158   :  { %v12263_v43 = vadd.f32 %v1999_v38, %v1711_v37  ;;  %v11326_v38 = vld [vmem:[#allocation5 + $0x60] ss:$24 sps:$4 sm:$0xff]   ;;  %v11333_v39 = vld [vmem:[#allocation2 + $0xa4] ss:$24 sps:$4 sm:$0xff]   ;;  %v11336_v44 = vld [vmem:[#allocation5 + $0x94] ss:$24 sps:$4 sm:$0xff]  }
 0x159   :  { %v1713_v48 = vpop.f32.mrf.mxu0  ;;  %v2002_v51 = vpop.f32.mrf.mxu1 }
 0x15a   :  { %v1714_v49 = vadd.f32 %v12218_v40, %v1713_v48 }
 0x15b   :  { %v1715_v52 = vpop.f32.mrf.mxu0  ;;  %v2004_v57 = vpop.f32.mrf.mxu1 }
 0x15c   :  { %v12272_v55 = vadd.f32 %v2002_v51, %v1714_v49  ;;  %v11372_v49 = vld [vmem:[%s15195_s6 + $0x118] sm:$0xff]   ;;  %v11385_v57 = vld [vmem:[%s15195_s6 + $0x90] sm:$0xff]  }
 0x15d   :  { %v1718_v61 = vpop.f32.mrf.mxu0  ;;  %2231 = vmatmul.mubr.bf16.vlgmr.msra.gmra.mxu0 %v11309_v41  ;;  %v2007_v2 = vpop.f32.mrf.mxu1  ;;  %4287 = vmatmul.mubr.bf16.vlgmr.msra.gmra.mxu1 %v11312_v45  ;;  %v11371_v45 = vld [vmem:[%s15195_s6 + $0x98] sm:$0xff]  }
 0x15e   :  { %v1719_v1 = vadd.f32 %v12218_v40, %v1718_v61  ;;  %4544 = vmatpush1.bf16.msra.mxu0 %v11315_v46  ;;  %4833 = vmatpush1.bf16.msra.mxu1 %v11316_v53  ;;  %v11386_v61 = vld [vmem:[%s15195_s6 + $0x110] sm:$0xff]  }
 0x15f   :  { %v1720_v3 = vpop.f32.mrf.mxu0  ;;  %2238 = vmatprep.mubr.bf16.mxu0 %v11319_v54  ;;  %v2009_v7 = vpop.f32.mrf.mxu1  ;;  %4294 = vmatprep.mubr.bf16.mxu1 %v11322_v58 }
 0x160   :  { %v12281_v6 = vadd.f32 %v2007_v2, %v1719_v1  ;;  %4545 = vmatprep.subr.bf16.mxu0 %v11872_v0  ;;  %4834 = vmatprep.subr.bf16.mxu1 %v11872_v0  ;;  %v11331_v1 = vld [vmem:[#allocation2 + $0xa0] ss:$24 sps:$4 sm:$0xff]   ;;  %v11339_v7 = vld [vmem:[#allocation2 + $0xd4] ss:$24 sps:$4 sm:$0xff]  }
 0x161   :  { %v1721_v11 = vpop.f32.mrf.mxu0  ;;  %v2010_v13 = vpop.f32.mrf.mxu1 }
 0x162   :  { %v1722_v12 = vadd.f32 %v12218_v40, %v1721_v11  ;;  %4546 = vmatpush1.bf16.msra.mxu0 %v11329_v59  ;;  %4835 = vmatpush1.bf16.msra.mxu1 %v11330_v62  ;;  %v11399_v11 = vld [vmem:[%s15195_s6 + $0x88] sm:$0xff]  }
 0x163   :  { %v1723_v14 = vpop.f32.mrf.mxu0  ;;  %4547 = vmatprep.subr.bf16.mxu0 %v11872_v0  ;;  %v2012_v20 = vpop.f32.mrf.mxu1  ;;  %4836 = vmatprep.subr.bf16.mxu1 %v11872_v0 }
 0x164   :  { %v12290_v19 = vadd.f32 %v2010_v13, %v1722_v12  ;;  %v11400_v14 = vld [vmem:[%s15195_s6 + $0x108] sm:$0xff]  }
 0x165   :  { %v1726_v22 = vpop.f32.mrf.mxu0  ;;  %2239 = vmatmul.mubr.bf16.gmra.mxu0 %v11317_v4  ;;  %v2015_v27 = vpop.f32.mrf.mxu1  ;;  %4295 = vmatmul.mubr.bf16.gmra.mxu1 %v11320_v8  ;;  %v11334_v4 = vld [vmem:[#allocation5 + $0x90] ss:$24 sps:$4 sm:$0xff]  }
 0x166   :  { %v1727_v26 = vadd.f32 %v12218_v40, %v1726_v22  ;;  %2246 = vmatprep.mubr.bf16.mxu0 %v11325_v10  ;;  %4302 = vmatprep.mubr.bf16.mxu1 %v11328_v17  ;;  %v11342_v10 = vld [vmem:[#allocation5 + $0xc4] ss:$24 sps:$4 sm:$0xff]  }
 0x167   :  { %v1728_v29 = vpop.f32.mrf.mxu0  ;;  %4548 = vmatpush1.bf16.msra.mxu0 %v11343_v18  ;;  %v2017_v33 = vpop.f32.mrf.mxu1  ;;  %4837 = vmatpush1.bf16.msra.mxu1 %v11344_v21  ;;  %v11413_v22 = vld [vmem:[%s15195_s6 + $0x80] sm:$0xff]  }
 0x168   :  { %v12303_v31 = vadd.f32 %v2015_v27, %v1727_v26  ;;  %4549 = vmatprep.subr.bf16.mxu0 %v11872_v0  ;;  %4838 = vmatprep.subr.bf16.mxu1 %v11872_v0  ;;  %v11414_v27 = vld [vmem:[%s15195_s6 + $0x100] sm:$0xff]   ;;  %v11337_v29 = vld [vmem:[#allocation2 + $0xd0] ss:$24 sps:$4 sm:$0xff]  }
 0x169   :  { %v1729_v35 = vpop.f32.mrf.mxu0  ;;  %v2018_v37 = vpop.f32.mrf.mxu1 }
 0x16a   :  { %v1730_v36 = vadd.f32 %v12218_v40, %v1729_v35  ;;  %v11340_v35 = vld [vmem:[#allocation5 + $0xc0] ss:$24 sps:$4 sm:$0xff]  }
 0x16b   :  { %v1731_v41 = vpop.f32.mrf.mxu0  ;;  %4550 = vmatpush1.bf16.msra.mxu0 %v11357_v24  ;;  %v2020_v48 = vpop.f32.mrf.mxu1  ;;  %4839 = vmatpush1.bf16.msra.mxu1 %v11358_v28 }
 0x16c   :  { %v12311_v46 = vadd.f32 %v2018_v37, %v1730_v36  ;;  %4551 = vmatprep.subr.bf16.mxu0 %v11872_v0  ;;  %4840 = vmatprep.subr.bf16.mxu1 %v11872_v0  ;;  %v11347_v36 = vld [vmem:[#allocation2 + $0x104] ss:$24 sps:$4 sm:$0xff]  }
 0x16d   :  { %v1734_v51 = vpop.f32.mrf.mxu0  ;;  %2247 = vmatmul.mubr.bf16.gmra.mxu0 %v11323_v30  ;;  %v2023_v53 = vpop.f32.mrf.mxu1  ;;  %4303 = vmatmul.mubr.bf16.gmra.mxu1 %v11326_v38  ;;  %v11350_v38 = vld [vmem:[#allocation5 + $0xf4] ss:$24 sps:$4 sm:$0xff]  }
 0x16e   :  { %v1735_v52 = vadd.f32 %v12218_v40, %v1734_v51  ;;  %2254 = vmatprep.mubr.bf16.mxu0 %v11333_v39  ;;  %4310 = vmatprep.mubr.bf16.mxu1 %v11336_v44  ;;  %v11427_v39 = vld [vmem:[%s15195_s6 + $0xf8] sm:$0xff]  }
 0x16f   :  { %v1736_v54 = vpop.f32.mrf.mxu0  ;;  %4552 = vmatpush1.bf16.msra.mxu0 %v11371_v45  ;;  %v2025_v59 = vpop.f32.mrf.mxu1  ;;  %4841 = vmatpush1.bf16.msra.mxu1 %v11372_v49  ;;  %v11428_v45 = vld [vmem:[%s15195_s6 + $0x178] sm:$0xff]  }
 0x170   :  { %v12322_v58 = vadd.f32 %v2023_v53, %v1735_v52  ;;  %4553 = vmatprep.subr.bf16.mxu0 %v11872_v0  ;;  %4842 = vmatprep.subr.bf16.mxu1 %v11872_v0  ;;  %v11441_v53 = vld [vmem:[%s15195_s6 + $0xf0] sm:$0xff]  }
 0x171   :  { %v1737_v62 = vpop.f32.mrf.mxu0  ;;  %v2026_v3 = vpop.f32.mrf.mxu1  ;;  %v11442_v59 = vld [vmem:[%s15195_s6 + $0x170] sm:$0xff]  }
 0x172   :  { %v1738_v2 = vadd.f32 %v12218_v40, %v1737_v62  ;;  %v11345_v62 = vld [vmem:[#allocation2 + $0x100] ss:$24 sps:$4 sm:$0xff]  }
 0x173   :  { %v1739_v8 = vpop.f32.mrf.mxu0  ;;  %4554 = vmatpush1.bf16.msra.mxu0 %v11385_v57  ;;  %v2028_v13 = vpop.f32.mrf.mxu1  ;;  %4843 = vmatpush1.bf16.msra.mxu1 %v11386_v61 }
 0x174   :  { %v12333_v12 = vadd.f32 %v2026_v3, %v1738_v2  ;;  %4555 = vmatprep.subr.bf16.mxu0 %v11872_v0  ;;  %4844 = vmatprep.subr.bf16.mxu1 %v11872_v0  ;;  %v11348_v3 = vld [vmem:[#allocation5 + $0xf0] ss:$24 sps:$4 sm:$0xff]   ;;  %v11356_v8 = vld [vmem:[#allocation5 + $0x124] ss:$24 sps:$4 sm:$0xff]  }
 0x175   :  { %v1742_v17 = vpop.f32.mrf.mxu0  ;;  %2255 = vmatmul.mubr.bf16.gmra.mxu0 %v11331_v1  ;;  %v2031_v20 = vpop.f32.mrf.mxu1  ;;  %4311 = vmatmul.mubr.bf16.gmra.mxu1 %v11334_v4  ;;  %v11353_v4 = vld [vmem:[#allocation2 + $0x134] ss:$24 sps:$4 sm:$0xff]  }
 0x176   :  { %v1743_v18 = vadd.f32 %v12218_v40, %v1742_v17  ;;  %2262 = vmatprep.mubr.bf16.mxu0 %v11339_v7  ;;  %4318 = vmatprep.mubr.bf16.mxu1 %v11342_v10  ;;  %v11455_v10 = vld [vmem:[%s15195_s6 + $0xe8] sm:$0xff]   ;;  %v12387_v17 = vld [vmem:[%s15194_s5] ss:$0 sm:$0xff] }
 0x177   :  { %v1744_v21 = vpop.f32.mrf.mxu0  ;;  %4556 = vmatpush1.bf16.msra.mxu0 %v11399_v11  ;;  %v2033_v26 = vpop.f32.mrf.mxu1  ;;  %4845 = vmatpush1.bf16.msra.mxu1 %v11400_v14 }
 0x178   :  { %v12344_v24 = vadd.f32 %v2031_v20, %v1743_v18  ;;  %4557 = vmatprep.subr.bf16.mxu0 %v11872_v0  ;;  %4846 = vmatprep.subr.bf16.mxu1 %v11872_v0 }
 0x179   :  { %v1745_v28 = vpop.f32.mrf.mxu0  ;;  %v2034_v33 = vpop.f32.mrf.mxu1 }
 0x17a   :  { %v1746_v30 = vadd.f32 %v12218_v40, %v1745_v28  ;;  %v11351_v28 = vld [vmem:[#allocation2 + $0x130] ss:$24 sps:$4 sm:$0xff]  }
 0x17b   :  { %v1747_v37 = vpop.f32.mrf.mxu0  ;;  %4558 = vmatpush1.bf16.msra.mxu0 %v11413_v22  ;;  %v2036_v44 = vpop.f32.mrf.mxu1  ;;  %4847 = vmatpush1.bf16.msra.mxu1 %v11414_v27 }
 0x17c   :  { %v12355_v41 = vadd.f32 %v2034_v33, %v1746_v30  ;;  %4559 = vmatprep.subr.bf16.mxu0 %v11872_v0  ;;  %4848 = vmatprep.subr.bf16.mxu1 %v11872_v0  ;;  %v11354_v33 = vld [vmem:[#allocation5 + $0x120] ss:$24 sps:$4 sm:$0xff]   ;;  %v11364_v37 = vld [vmem:[#allocation5 + $0x154] ss:$24 sps:$4 sm:$0xff]  }
 0x17d   :  { %v1750_v48 = vpop.f32.mrf.mxu0  ;;  %2263 = vmatmul.mubr.bf16.gmra.mxu0 %v11337_v29  ;;  %v2039_v51 = vpop.f32.mrf.mxu1  ;;  %4319 = vmatmul.mubr.bf16.gmra.mxu1 %v11340_v35  ;;  %v11361_v35 = vld [vmem:[#allocation2 + $0x164] ss:$24 sps:$4 sm:$0xff]  }
 0x17e   :  { %v1751_v49 = vadd.f32 %v12218_v40, %v1750_v48  ;;  %2270 = vmatprep.mubr.bf16.mxu0 %v11347_v36  ;;  %4326 = vmatprep.mubr.bf16.mxu1 %v11350_v38 }
 0x17f   :  { %v1752_v52 = vpop.f32.mrf.mxu0  ;;  %4560 = vmatpush2.bf16.msra.mxu0 %v11427_v39  ;;  %v2041_v57 = vpop.f32.mrf.mxu1  ;;  %4849 = vmatpush2.bf16.msra.mxu1 %v11428_v45 }
 0x180   :  { %v12366_v54 = vadd.f32 %v2039_v51, %v1751_v49  ;;  %4561 = vmatprep.subr.bf16.mxu0 %v11872_v0  ;;  %4850 = vmatprep.subr.bf16.mxu1 %v11872_v0  ;;  %v11470_v57 = vld [vmem:[%s15195_s6 + $0x160] sm:$0xff]  }
 0x181   :  { %v1753_v61 = vpop.f32.mrf.mxu0  ;;  %v2042_v2 = vpop.f32.mrf.mxu1 }
 0x182   :  { %v1754_v1 = vadd.f32 %v12218_v40, %v1753_v61  ;;  %v11456_v40 = vld [vmem:[%s15195_s6 + $0x168] sm:$0xff]   ;;  %v11359_v61 = vld [vmem:[#allocation2 + $0x160] ss:$24 sps:$4 sm:$0xff]  }
 0x183   :  { %v1755_v7 = vpop.f32.mrf.mxu0  ;;  %4562 = vmatpush2.bf16.msra.mxu0 %v11441_v53  ;;  %v2044_v13 = vpop.f32.mrf.mxu1  ;;  %4851 = vmatpush2.bf16.msra.mxu1 %v11442_v59  ;;  %v11469_v53 = vld [vmem:[%s15195_s6 + $0xe0] sm:$0xff]  }
 0x184   :  { %v12377_v11 = vadd.f32 %v2042_v2, %v1754_v1  ;;  %4563 = vmatprep.subr.bf16.mxu0 %v11872_v0  ;;  %4852 = vmatprep.subr.bf16.mxu1 %v11872_v0  ;;  %v11362_v2 = vld [vmem:[#allocation5 + $0x150] ss:$24 sps:$4 sm:$0xff]   ;;  %v11370_v7 = vld [vmem:[#allocation5 + $0x184] ss:$24 sps:$4 sm:$0xff]  }
 0x185   :  { %v1758_v14 = vpop.f32.mrf.mxu0  ;;  %2271 = vmatmul.mubr.bf16.gmra.mxu0 %v11345_v62  ;;  %v2047_v20 = vpop.f32.mrf.mxu1  ;;  %4327 = vmatmul.mubr.bf16.gmra.mxu1 %v11348_v3  ;;  %v11367_v3 = vld [vmem:[#allocation2 + $0x194] ss:$24 sps:$4 sm:$0xff]  }
 0x186   :  { %v1759_v18 = vadd.f32 %v12387_v17, %v1758_v14  ;;  %2278 = vmatprep.mubr.bf16.mxu0 %v11353_v4  ;;  %4334 = vmatprep.mubr.bf16.mxu1 %v11356_v8 }
 0x187   :  { %v1760_v21 = vpop.f32.mrf.mxu0  ;;  %4564 = vmatpush2.bf16.msra.mxu0 %v11455_v10  ;;  %v2049_v26 = vpop.f32.mrf.mxu1  ;;  %4853 = vmatpush2.bf16.msra.mxu1 %v11456_v40 }
 0x188   :  { %v12390_v22 = vadd.f32 %v2047_v20, %v1759_v18  ;;  %4565 = vmatprep.subr.bf16.mxu0 %v11872_v0  ;;  %4854 = vmatprep.subr.bf16.mxu1 %v11872_v0 }
 0x189   :  { %v1761_v27 = vpop.f32.mrf.mxu0  ;;  %v2050_v30 = vpop.f32.mrf.mxu1 }
 0x18a   :  { %v1762_v29 = vadd.f32 %v12387_v17, %v1761_v27  ;;  %v11365_v27 = vld [vmem:[#allocation2 + $0x190] ss:$24 sps:$4 sm:$0xff]  }
 0x18b   :  { %v1763_v36 = vpop.f32.mrf.mxu0  ;;  %v2052_v39 = vpop.f32.mrf.mxu1  ;;  %4566 = vmatpush2.bf16.msra.mxu0 %v11469_v53  ;;  %4855 = vmatpush2.bf16.msra.mxu1 %v11470_v57 }
 0x18c   :  { %v12395_v38 = vadd.f32 %v2050_v30, %v1762_v29  ;;  %4567 = vmatprep.subr.bf16.mxu0 %v11872_v0  ;;  %4856 = vmatprep.subr.bf16.mxu1 %v11872_v0  ;;  %v11368_v30 = vld [vmem:[#allocation5 + $0x180] ss:$24 sps:$4 sm:$0xff]   ;;  %v11378_v36 = vld [vmem:[#allocation5 + $0x1b4] ss:$24 sps:$4 sm:$0xff]  }
 0x18d   :  { %v1766_v44 = vpop.f32.mrf.mxu0  ;;  %2279 = vmatmul.mubr.bf16.gmra.mxu0 %v11351_v28  ;;  %v2055_v48 = vpop.f32.mrf.mxu1  ;;  %4335 = vmatmul.mubr.bf16.gmra.mxu1 %v11354_v33  ;;  %v11375_v33 = vld [vmem:[#allocation2 + $0x1c4] ss:$24 sps:$4 sm:$0xff]  }
 0x18e   :  { %v1767_v45 = vadd.f32 %v12387_v17, %v1766_v44  ;;  %2286 = vmatprep.mubr.bf16.mxu0 %v11361_v35  ;;  %4342 = vmatprep.mubr.bf16.mxu1 %v11364_v37 }
 0x18f   :  { %v1768_v49 = vpop.f32.mrf.mxu0  ;;  %v2057_v52 = vpop.f32.mrf.mxu1 }
 0x190   :  { %v12398_v51 = vadd.f32 %v2055_v48, %v1767_v45 }
 0x191   :  { %v1769_v59 = vpop.f32.mrf.mxu0  ;;  %v2058_v1 = vpop.f32.mrf.mxu1 }
 0x192   :  { %v1770_v62 = vadd.f32 %v12387_v17, %v1769_v59  ;;  %v11373_v59 = vld [vmem:[#allocation2 + $0x1c0] ss:$24 sps:$4 sm:$0xff]  }
 0x193   :  { %v1771_v4 = vpop.f32.mrf.mxu0  ;;  %v2060_v10 = vpop.f32.mrf.mxu1 }
 0x194   :  { %v12409_v8 = vadd.f32 %v2058_v1, %v1770_v62  ;;  %v11484_v4 = vld [vmem:[%s15195_s6 + $0x158] sm:$0xff]  }
 0x195   :  { %v1774_v13 = vpop.f32.mrf.mxu0  ;;  %2287 = vmatmul.mubr.bf16.gmra.mxu0 %v11359_v61  ;;  %v2063_v14 = vpop.f32.mrf.mxu1  ;;  %4343 = vmatmul.mubr.bf16.gmra.mxu1 %v11362_v2  ;;  %v11376_v61 = vld [vmem:[#allocation5 + $0x1b0] ss:$24 sps:$4 sm:$0xff]   ;;  %v11381_v2 = vld [vmem:[#allocation2 + $0x1f4] ss:$24 sps:$4 sm:$0xff]   ;;  %v11384_v10 = vld [vmem:[#allocation5 + $0x1e4] ss:$24 sps:$4 sm:$0xff]  }
 0x196   :  { %v1775_v40 = vadd.f32 %v12387_v17, %v1774_v13  ;;  %2294 = vmatprep.mubr.bf16.mxu0 %v11367_v3  ;;  %4350 = vmatprep.mubr.bf16.mxu1 %v11370_v7  ;;  %v11483_v3 = vld [vmem:[%s15195_s6 + $0xd8] sm:$0xff]  }
 0x197   :  { %v1776_v18 = vpop.f32.mrf.mxu0  ;;  %v2065_v21 = vpop.f32.mrf.mxu1  ;;  %4568 = vmatpush2.bf16.msra.mxu0 %v11483_v3  ;;  %4857 = vmatpush2.bf16.msra.mxu1 %v11484_v4  ;;  %v11387_v3 = vld [vmem:[#allocation2 + $0x220] ss:$24 sps:$4 sm:$0xff]   ;;  %v11390_v4 = vld [vmem:[#allocation5 + $0x210] ss:$24 sps:$4 sm:$0xff]  }
 0x198   :  { %v12412_v20 = vadd.f32 %v2063_v14, %v1775_v40  ;;  %4569 = vmatprep.subr.bf16.mxu0 %v11872_v0  ;;  %4858 = vmatprep.subr.bf16.mxu1 %v11872_v0 }
 0x199   :  { %v1777_v26 = vpop.f32.mrf.mxu0  ;;  %v2066_v29 = vpop.f32.mrf.mxu1 }
 0x19a   :  { %v1778_v28 = vadd.f32 %v12387_v17, %v1777_v26 }
 0x19b   :  { %v1779_v35 = vpop.f32.mrf.mxu0  ;;  %v2068_v39 = vpop.f32.mrf.mxu1 }
 0x19c   :  { %v12415_v37 = vadd.f32 %v2066_v29, %v1778_v28  ;;  %v11389_v39 = vld [vmem:[#allocation2 + $0x224] ss:$24 sps:$4 sm:$0xff]  }
 0x19d   :  { %v1782_v44 = vpop.f32.mrf.mxu0  ;;  %2295 = vmatmul.mubr.bf16.gmra.mxu0 %v11365_v27  ;;  %v2071_v48 = vpop.f32.mrf.mxu1  ;;  %4351 = vmatmul.mubr.bf16.gmra.mxu1 %v11368_v30  ;;  %v11379_v30 = vld [vmem:[#allocation2 + $0x1f0] ss:$24 sps:$4 sm:$0xff]  }
 0x19e   :  { %v1783_v45 = vadd.f32 %v12387_v17, %v1782_v44  ;;  %2302 = vmatprep.mubr.bf16.mxu0 %v11375_v33  ;;  %4358 = vmatprep.mubr.bf16.mxu1 %v11378_v36  ;;  %v11382_v36 = vld [vmem:[#allocation5 + $0x1e0] ss:$24 sps:$4 sm:$0xff]  }
 0x19f   :  { %v1784_v49 = vpop.f32.mrf.mxu0  ;;  %v2073_v53 = vpop.f32.mrf.mxu1 }
 0x1a0   :  { %v12418_v52 = vadd.f32 %v2071_v48, %v1783_v45  ;;  %v11392_v45 = vld [vmem:[#allocation5 + $0x214] ss:$24 sps:$4 sm:$0xff]  }
 0x1a1   :  { %v1785_v57 = vpop.f32.mrf.mxu0  ;;  %v2074_v1 = vpop.f32.mrf.mxu1 }
 0x1a2   :  { %v1786_v62 = vadd.f32 %v12387_v17, %v1785_v57 }
 0x1a3   :  { %v1787_v7 = vpop.f32.mrf.mxu0  ;;  %v2076_v40 = vpop.f32.mrf.mxu1 }
 0x1a4   :  { %v12427_v13 = vadd.f32 %v2074_v1, %v1786_v62  ;;  %v11395_v40 = vld [vmem:[#allocation2 + $0x254] ss:$24 sps:$4 sm:$0xff]  }
 0x1a5   :  { %v1790_v14 = vpop.f32.mrf.mxu0  ;;  %2303 = vmatmul.mubr.bf16.gmra.mxu0 %v11373_v59  ;;  %v2079_v21 = vpop.f32.mrf.mxu1  ;;  %4359 = vmatmul.mubr.bf16.gmra.mxu1 %v11376_v61 }
 0x1a6   :  { %v1791_v18 = vadd.f32 %v12387_v17, %v1790_v14  ;;  %2310 = vmatprep.mubr.bf16.mxu0 %v11381_v2  ;;  %4366 = vmatprep.mubr.bf16.mxu1 %v11384_v10  ;;  %v11497_v14 = vld [vmem:[%s15195_s6 + $0xd0] sm:$0xff]  }
 0x1a7   :  { %v1792_v26 = vpop.f32.mrf.mxu0  ;;  %v2081_v28 = vpop.f32.mrf.mxu1  ;;  %4570 = vmatpush2.bf16.msra.mxu0 %v11497_v14 }
 0x1a8   :  { %v12432_v27 = vadd.f32 %v2079_v21, %v1791_v18  ;;  %v11498_v18 = vld [vmem:[%s15195_s6 + $0x150] sm:$0xff]   ;;  %v11398_v26 = vld [vmem:[#allocation5 + $0x244] ss:$24 sps:$4 sm:$0xff]   ;;  %4571 = vmatprep.subr.bf16.mxu0 %v11872_v0 }
 0x1a9   :  { %v1793_v29 = vpop.f32.mrf.mxu0  ;;  %v2082_v35 = vpop.f32.mrf.mxu1  ;;  %4859 = vmatpush2.bf16.msra.mxu1 %v11498_v18 }
 0x1aa   :  { %v1794_v33 = vadd.f32 %v12387_v17, %v1793_v29  ;;  %4860 = vmatprep.subr.bf16.mxu1 %v11872_v0 }
 0x1ab   :  { %v1795_v44 = vpop.f32.mrf.mxu0  ;;  %v2084_v49 = vpop.f32.mrf.mxu1 }
 0x1ac   :  { %v12435_v48 = vadd.f32 %v2082_v35, %v1794_v33  ;;  %v11393_v49 = vld [vmem:[#allocation2 + $0x250] ss:$24 sps:$4 sm:$0xff]  }
 0x1ad   :  { %v1798_v53 = vpop.f32.mrf.mxu0  ;;  %2311 = vmatmul.mubr.bf16.gmra.mxu0 %v11379_v30  ;;  %v2087_v59 = vpop.f32.mrf.mxu1  ;;  %4367 = vmatmul.mubr.bf16.gmra.mxu1 %v11382_v36 }
 0x1ae   :  { %v1799_v57 = vadd.f32 %v12387_v17, %v1798_v53  ;;  %2318 = vmatprep.mubr.bf16.mxu0 %v11389_v39  ;;  %4374 = vmatprep.mubr.bf16.mxu1 %v11392_v45 }
 0x1af   :  { %v1800_v61 = vpop.f32.mrf.mxu0  ;;  %v2089_v1 = vpop.f32.mrf.mxu1 }
 0x1b0   :  { %v12438_v62 = vadd.f32 %v2087_v59, %v1799_v57  ;;  %v11396_v59 = vld [vmem:[#allocation5 + $0x240] ss:$24 sps:$4 sm:$0xff]   ;;  %v11403_v61 = vld [vmem:[#allocation2 + $0x284] ss:$24 sps:$4 sm:$0xff]  }
 0x1b1   :  { %v1801_v2 = vpop.f32.mrf.mxu0  ;;  %v2090_v10 = vpop.f32.mrf.mxu1 }
 0x1b2   :  { %v1802_v7 = vadd.f32 %v12387_v17, %v1801_v2  ;;  %v11406_v2 = vld [vmem:[#allocation5 + $0x274] ss:$24 sps:$4 sm:$0xff]  }
 0x1b3   :  { %v1803_v21 = vpop.f32.mrf.mxu0  ;;  %v2092_v29 = vpop.f32.mrf.mxu1 }
 0x1b4   :  { %v12447_v28 = vadd.f32 %v2090_v10, %v1802_v7  ;;  %v11401_v29 = vld [vmem:[#allocation2 + $0x280] ss:$24 sps:$4 sm:$0xff]  }
 0x1b5   :  { %v1806_v30 = vpop.f32.mrf.mxu0  ;;  %2319 = vmatmul.mubr.bf16.gmra.mxu0 %v11387_v3  ;;  %v2095_v35 = vpop.f32.mrf.mxu1  ;;  %4375 = vmatmul.mubr.bf16.gmra.mxu1 %v11390_v4 }
 0x1b6   :  { %v1807_v33 = vadd.f32 %v12387_v17, %v1806_v30  ;;  %2326 = vmatprep.mubr.bf16.mxu0 %v11395_v40  ;;  %4382 = vmatprep.mubr.bf16.mxu1 %v11398_v26  ;;  %v11404_v30 = vld [vmem:[#allocation5 + $0x270] ss:$24 sps:$4 sm:$0xff]  }
 0x1b7   :  { %v1808_v36 = vpop.f32.mrf.mxu0  ;;  %v2097_v44 = vpop.f32.mrf.mxu1 }
 0x1b8   :  { %v12452_v39 = vadd.f32 %v2095_v35, %v1807_v33  ;;  %v11409_v36 = vld [vmem:[#allocation2 + $0x2b4] ss:$24 sps:$4 sm:$0xff]  }
 0x1b9   :  { %v1809_v45 = vpop.f32.mrf.mxu0  ;;  %v2098_v57 = vpop.f32.mrf.mxu1  ;;  %v11511_v44 = vld [vmem:[%s15195_s6 + $0xc8] sm:$0xff]  }
 0x1ba   :  { %v1810_v53 = vadd.f32 %v12387_v17, %v1809_v45  ;;  %v11512_v45 = vld [vmem:[%s15195_s6 + $0x148] sm:$0xff]   ;;  %4572 = vmatpush2.bf16.msra.mxu0 %v11511_v44 }
 0x1bb   :  { %v1811_v1 = vpop.f32.mrf.mxu0  ;;  %v2100_v4 = vpop.f32.mrf.mxu1  ;;  %4861 = vmatpush2.bf16.msra.mxu1 %v11512_v45  ;;  %4573 = vmatprep.subr.bf16.mxu0 %v11872_v0  ;;  %v11420_v44 = vld [vmem:[#allocation5 + $0x2d4] ss:$24 sps:$4 sm:$0xff]  }
 0x1bc   :  { %v12455_v3 = vadd.f32 %v2098_v57, %v1810_v53  ;;  %v11412_v53 = vld [vmem:[#allocation5 + $0x2a4] ss:$24 sps:$4 sm:$0xff]   ;;  %4862 = vmatprep.subr.bf16.mxu1 %v11872_v0 }
 0x1bd   :  { %v1814_v7 = vpop.f32.mrf.mxu0  ;;  %2327 = vmatmul.mubr.bf16.gmra.mxu0 %v11393_v49  ;;  %v2103_v40 = vpop.f32.mrf.mxu1  ;;  %4383 = vmatmul.mubr.bf16.gmra.mxu1 %v11396_v59 }
 0x1be   :  { %v1815_v10 = vadd.f32 %v12387_v17, %v1814_v7  ;;  %2334 = vmatprep.mubr.bf16.mxu0 %v11403_v61  ;;  %4390 = vmatprep.mubr.bf16.mxu1 %v11406_v2 }
 0x1bf   :  { %v1816_v14 = vpop.f32.mrf.mxu0  ;;  %v2105_v21 = vpop.f32.mrf.mxu1 }
 0x1c0   :  { %v12458_v18 = vadd.f32 %v2103_v40, %v1815_v10  ;;  %v11407_v14 = vld [vmem:[#allocation2 + $0x2b0] ss:$24 sps:$4 sm:$0xff]  }
 0x1c1   :  { %v1817_v26 = vpop.f32.mrf.mxu0  ;;  %v2106_v35 = vpop.f32.mrf.mxu1 }
 0x1c2   :  { %v1818_v33 = vadd.f32 %v12387_v17, %v1817_v26 }
 0x1c3   :  { %v1819_v49 = vpop.f32.mrf.mxu0  ;;  %v2108_v59 = vpop.f32.mrf.mxu1 }
 0x1c4   :  { %v12467_v57 = vadd.f32 %v2106_v35, %v1818_v33  ;;  %v11417_v33 = vld [vmem:[#allocation2 + $0x2e4] ss:$24 sps:$4 sm:$0xff]  }
 0x1c5   :  { %v1822_v61 = vpop.f32.mrf.mxu0  ;;  %2335 = vmatmul.mubr.bf16.gmra.mxu0 %v11401_v29  ;;  %v2111_v2 = vpop.f32.mrf.mxu1  ;;  %4391 = vmatmul.mubr.bf16.gmra.mxu1 %v11404_v30  ;;  %v11410_v29 = vld [vmem:[#allocation5 + $0x2a0] ss:$24 sps:$4 sm:$0xff]  }
 0x1c6   :  { %v1823_v1 = vadd.f32 %v12387_v17, %v1822_v61  ;;  %2342 = vmatprep.mubr.bf16.mxu0 %v11409_v36  ;;  %4398 = vmatprep.mubr.bf16.mxu1 %v11412_v53 }
 0x1c7   :  { %v1824_v4 = vpop.f32.mrf.mxu0  ;;  %v2113_v10 = vpop.f32.mrf.mxu1 }
 0x1c8   :  { %v12472_v7 = vadd.f32 %v2111_v2, %v1823_v1  ;;  %v11415_v2 = vld [vmem:[#allocation2 + $0x2e0] ss:$24 sps:$4 sm:$0xff]   ;;  %v11418_v4 = vld [vmem:[#allocation5 + $0x2d0] ss:$24 sps:$4 sm:$0xff]  }
 0x1c9   :  { %v1825_v40 = vpop.f32.mrf.mxu0  ;;  %v2114_v26 = vpop.f32.mrf.mxu1 }
 0x1ca   :  { %15272 = vst [vmem:[#allocation11_spill] sm:$0xff] %v12472_v7  ;;  %v1826_v21 = vadd.f32 %v12387_v17, %v1825_v40 }
 0x1cb   :  { %v1827_v35 = vpop.f32.mrf.mxu0  ;;  %v2116_v30 = vpop.f32.mrf.mxu1 }
 0x1cc   :  { %v12475_v45 = vadd.f32 %v2114_v26, %v1826_v21  ;;  %v11423_v21 = vld [vmem:[#allocation2 + $0x314] ss:$24 sps:$4 sm:$0xff]   ;;  %v11526_v26 = vld [vmem:[%s15195_s6 + $0x140] sm:$0xff]  }
 0x1cd   :  { %v1830_v36 = vpop.f32.mrf.mxu0  ;;  %2343 = vmatmul.mubr.bf16.gmra.mxu0 %v11407_v14  ;;  %v2119_v0 = vpop.f32.mrf.mxu1  ;;  %4399 = vmatmul.mubr.bf16.gmra.mxu1 %v11410_v29  ;;  %v11525_v14 = vld [vmem:[%s15195_s6 + $0xc0] sm:$0xff]  }
 0x1ce   :  { %15273 = vst [vmem:[#allocation12_spill] sm:$0xff] %v12475_v45  ;;  %v1831_v49 = vadd.f32 %v12387_v17, %v1830_v36  ;;  %2350 = vmatprep.mubr.bf16.mxu0 %v11417_v33  ;;  %4406 = vmatprep.mubr.bf16.mxu1 %v11420_v44  ;;  %v11426_v33 = vld [vmem:[#allocation5 + $0x304] ss:$24 sps:$4 sm:$0xff]  }
 0x1cf   :  { %v1832_v53 = vpop.f32.mrf.mxu0  ;;  %v2121_v61 = vpop.f32.mrf.mxu1  ;;  %4574 = vmatpush2.bf16.msra.mxu0 %v11525_v14  ;;  %4863 = vmatpush2.bf16.msra.mxu1 %v11526_v26  ;;  %v11431_v14 = vld [vmem:[#allocation2 + $0x344] ss:$24 sps:$4 sm:$0xff]  }
 0x1d0   :  { %v12478_v59 = vadd.f32 %v2119_v0, %v1831_v49 }
 0x1d1   :  { %v1833_v1 = vpop.f32.mrf.mxu0  ;;  %v2122_v40 = vpop.f32.mrf.mxu1 }
 0x1d2   :  { %15274 = vst [vmem:[#allocation13_spill] sm:$0xff] %v12478_v59  ;;  %v1834_v10 = vadd.f32 %v12387_v17, %v1833_v1 }
 0x1d3   :  { %v1835_v29 = vpop.f32.mrf.mxu0  ;;  %v2124_v44 = vpop.f32.mrf.mxu1 }
 0x1d4   :  { %v12487_v35 = vadd.f32 %v2122_v40, %v1834_v10  ;;  %v11421_v29 = vld [vmem:[#allocation2 + $0x310] ss:$24 sps:$4 sm:$0xff]   ;;  %v11424_v44 = vld [vmem:[#allocation5 + $0x300] ss:$24 sps:$4 sm:$0xff]  }
 0x1d5   :  { %v1838_v30 = vpop.f32.mrf.mxu0  ;;  %2351 = vmatmul.mubr.bf16.gmra.mxu0 %v11415_v2  ;;  %v2127_v49 = vpop.f32.mrf.mxu1  ;;  %4407 = vmatmul.mubr.bf16.gmra.mxu1 %v11418_v4 }
 0x1d6   :  { %15275 = vst [vmem:[#allocation14_spill] sm:$0xff] %v12487_v35  ;;  %v1839_v36 = vadd.f32 %v12387_v17, %v1838_v30  ;;  %2358 = vmatprep.mubr.bf16.mxu0 %v11423_v21  ;;  %4414 = vmatprep.mubr.bf16.mxu1 %v11426_v33  ;;  %v11434_v35 = vld [vmem:[#allocation5 + $0x334] ss:$24 sps:$4 sm:$0xff]  }
 0x1d7   :  { %v1840_v0 = vpop.f32.mrf.mxu0  ;;  %v2129_v61 = vpop.f32.mrf.mxu1 }
 0x1d8   :  { %v12490_v53 = vadd.f32 %v2127_v49, %v1839_v36  ;;  %v11429_v61 = vld [vmem:[#allocation2 + $0x340] ss:$24 sps:$4 sm:$0xff]  }
 0x1d9   :  { %v1841_v1 = vpop.f32.mrf.mxu0  ;;  %v2130_v40 = vpop.f32.mrf.mxu1 }
 0x1da   :  { %15276 = vst [vmem:[#allocation15_spill] sm:$0xff] %v12490_v53  ;;  %v1842_v10 = vadd.f32 %v12387_v17, %v1841_v1  ;;  %v11432_v1 = vld [vmem:[#allocation5 + $0x330] ss:$24 sps:$4 sm:$0xff]  }
 0x1db   :  { %v1843_v26 = vpop.f32.mrf.mxu0  ;;  %v2132_v30 = vpop.f32.mrf.mxu1  ;;  %v11435_v53 = vld [vmem:[#allocation2 + $0x370] ss:$24 sps:$4 sm:$0xff]  }
 0x1dc   :  { %v12493_v2 = vadd.f32 %v2130_v40, %v1842_v10  ;;  %v11437_v26 = vld [vmem:[#allocation2 + $0x374] ss:$24 sps:$4 sm:$0xff]  }
 0x1dd   :  { %v1846_v59 = vpop.f32.mrf.mxu0  ;;  %2359 = vmatmul.mubr.bf16.gmra.mxu0 %v11421_v29  ;;  %v2135_v21 = vpop.f32.mrf.mxu1  ;;  %4415 = vmatmul.mubr.bf16.gmra.mxu1 %v11424_v44  ;;  %v5409_v29 = vld [vmem:[%s15197_s8] sm:$0xf]  ;;  %v11440_v44 = vld [vmem:[#allocation5 + $0x364] ss:$24 sps:$4 sm:$0xff]  }
 0x1de   :  { %15277 = vst [vmem:[#allocation16_spill] sm:$0xff] %v12493_v2  ;;  %v1847_v4 = vadd.f32 %v12387_v17, %v1846_v59  ;;  %2366 = vmatprep.mubr.bf16.mxu0 %v11431_v14  ;;  %4422 = vmatprep.mubr.bf16.mxu1 %v11434_v35  ;;  %v6255_v59 = vld [vmem:[%s15199_s10] sm:$0xf]  ;;  %v12505_v14 = vsel %vm5674_vm0, %v5409_v29, 0 }
 0x1df   :  { %v1848_v33 = vpop.f32.mrf.mxu0  ;;  %v2137_v49 = vpop.f32.mrf.mxu1  ;;  %11043 = vmatprep.subr.msk.bf16.mxu0 %vm5674_vm0, %v5409_v29  ;;  %11044 = vmatprep.subr.msk.bf16.mxu1 %vm5674_vm0, %v6255_v59  ;;  %v12507_v30 = vsel %vm5674_vm0, %v6255_v59, 0 }
 0x1e0   :  { %v12496_v36 = vadd.f32 %v2135_v21, %v1847_v4 }
 0x1e1   :  { %v1849_v0 = vpop.f32.mrf.mxu0  ;;  %v2138_v40 = vpop.f32.mrf.mxu1 }
 0x1e2   :  { %15278 = vst [vmem:[#allocation17_spill] sm:$0xff] %v12496_v36  ;;  %v1850_v10 = vadd.f32 %v12387_v17, %v1849_v0 }
 0x1e3   :  { %v1851_v35 = vpop.f32.mrf.mxu0  ;;  %v2140_v21 = vpop.f32.mrf.mxu1 }
 0x1e4   :  { %v12509_v4 = vadd.f32 %v2138_v40, %v1850_v10  ;;  %v11438_v10 = vld [vmem:[#allocation5 + $0x360] ss:$24 sps:$4 sm:$0xff]   ;;  %v11445_v40 = vld [vmem:[#allocation2 + $0x3a4] ss:$24 sps:$4 sm:$0xff]  }
 0x1e5   :  { %v1854_v33 = vpop.f32.mrf.mxu0  ;;  %2367 = vmatmul.mubr.bf16.gmra.mxu0 %v11429_v61  ;;  %v2143_v0 = vpop.f32.mrf.mxu1  ;;  %4423 = vmatmul.mubr.bf16.gmra.mxu1 %v11432_v1 }
 0x1e6   :  { %15279 = vst [vmem:[#allocation18_spill] sm:$0xff] %v12509_v4  ;;  %v1855_v49 = vadd.f32 %v12387_v17, %v1854_v33  ;;  %2374 = vmatprep.mubr.bf16.mxu0 %v11437_v26  ;;  %4430 = vmatprep.mubr.bf16.mxu1 %v11440_v44  ;;  %v11448_v4 = vld [vmem:[#allocation5 + $0x394] ss:$24 sps:$4 sm:$0xff]  }
 0x1e7   :  { %v1856_v36 = vpop.f32.mrf.mxu0  ;;  %v2145_v2 = vpop.f32.mrf.mxu1 }
 0x1e8   :  { %v12512_v35 = vadd.f32 %v2143_v0, %v1855_v49  ;;  %v11443_v0 = vld [vmem:[#allocation2 + $0x3a0] ss:$24 sps:$4 sm:$0xff]  }
 0x1e9   :  { %v1857_v29 = vpop.f32.mrf.mxu0  ;;  %v2146_v45 = vpop.f32.mrf.mxu1 }
 0x1ea   :  { %15280 = vst [vmem:[#allocation19_spill] sm:$0xff] %v12512_v35  ;;  %v1858_v59 = vadd.f32 %v12387_v17, %v1857_v29 }
 0x1eb   :  { %v1859_v21 = vpop.f32.mrf.mxu0  ;;  %v2148_v33 = vpop.f32.mrf.mxu1 }
 0x1ec   :  { %v12515_v61 = vadd.f32 %v2146_v45, %v1858_v59  ;;  %v11446_v45 = vld [vmem:[#allocation5 + $0x390] ss:$24 sps:$4 sm:$0xff]   ;;  %v11451_v59 = vld [vmem:[#allocation2 + $0x3d4] ss:$24 sps:$4 sm:$0xff]  }
 0x1ed   :  { %v1862_v7 = vpop.f32.mrf.mxu0  ;;  %2375 = vmatmul.mubr.bf16.gmra.mxu0 %v11435_v53  ;;  %v2151_v1 = vpop.f32.mrf.mxu1  ;;  %4431 = vmatmul.mubr.bf16.gmra.mxu1 %v11438_v10 }
 0x1ee   :  { %15281 = vst [vmem:[#allocation20_spill] sm:$0xff] %v12515_v61  ;;  %v1863_v36 = vadd.f32 %v12387_v17, %v1862_v7  ;;  %2382 = vmatprep.mubr.bf16.mxu0 %v11445_v40  ;;  %4438 = vmatprep.mubr.bf16.mxu1 %v11448_v4  ;;  %v11454_v61 = vld [vmem:[#allocation5 + $0x3c4] ss:$24 sps:$4 sm:$0xff]  }
 0x1ef   :  { %v1864_v2 = vpop.f32.mrf.mxu0  ;;  %v2153_v44 = vpop.f32.mrf.mxu1 }
 0x1f0   :  { %v12518_v26 = vadd.f32 %v2151_v1, %v1863_v36  ;;  %v11449_v44 = vld [vmem:[#allocation2 + $0x3d0] ss:$24 sps:$4 sm:$0xff]  }
 0x1f1   :  { %v1865_v49 = vpop.f32.mrf.mxu0  ;;  %v2154_v21 = vpop.f32.mrf.mxu1 }
 0x1f2   :  { %15282 = vst [vmem:[#allocation21_spill] sm:$0xff] %v12518_v26  ;;  %v1866_v29 = vadd.f32 %v12387_v17, %v1865_v49 }
 0x1f3   :  { %v1867_v33 = vpop.f32.mrf.mxu0  ;;  %v2156_v7 = vpop.f32.mrf.mxu1 }
 0x1f4   :  { %v12521_v53 = vadd.f32 %v2154_v21, %v1866_v29  ;;  %v11452_v29 = vld [vmem:[#allocation5 + $0x3c0] ss:$24 sps:$4 sm:$0xff]   ;;  %v11459_v21 = vld [vmem:[#allocation2 + $0x404] ss:$24 sps:$4 sm:$0xff]  }
 0x1f5   :  { %v1870_v35 = vpop.f32.mrf.mxu0  ;;  %2383 = vmatmul.mubr.bf16.gmra.mxu0 %v11443_v0  ;;  %v2159_v4 = vpop.f32.mrf.mxu1  ;;  %4439 = vmatmul.mubr.bf16.gmra.mxu1 %v11446_v45 }
 0x1f6   :  { %15283 = vst [vmem:[#allocation22_spill] sm:$0xff] %v12521_v53  ;;  %v1871_v10 = vadd.f32 %v12387_v17, %v1870_v35  ;;  %2390 = vmatprep.mubr.bf16.mxu0 %v11451_v59  ;;  %4446 = vmatprep.mubr.bf16.mxu1 %v11454_v61  ;;  %v11462_v53 = vld [vmem:[#allocation5 + $0x3f4] ss:$24 sps:$4 sm:$0xff]  }
 0x1f7   :  { %v1872_v40 = vpop.f32.mrf.mxu0  ;;  %v2161_v1 = vpop.f32.mrf.mxu1 }
 0x1f8   :  { %v12524_v36 = vadd.f32 %v2159_v4, %v1871_v10  ;;  %v11457_v1 = vld [vmem:[#allocation2 + $0x400] ss:$24 sps:$4 sm:$0xff]  }
 0x1f9   :  { %v1873_v2 = vpop.f32.mrf.mxu0  ;;  %v2162_v33 = vpop.f32.mrf.mxu1 }
 0x1fa   :  { %15284 = vst [vmem:[#allocation23_spill] sm:$0xff] %v12524_v36  ;;  %v1874_v49 = vadd.f32 %v12387_v17, %v1873_v2 }
 0x1fb   :  { %v1875_v7 = vpop.f32.mrf.mxu0  ;;  %v2164_v35 = vpop.f32.mrf.mxu1 }
 0x1fc   :  { %v12527_v0 = vadd.f32 %v2162_v33, %v1874_v49  ;;  %v11460_v49 = vld [vmem:[#allocation5 + $0x3f0] ss:$24 sps:$4 sm:$0xff]   ;;  %v11465_v33 = vld [vmem:[#allocation2 + $0x434] ss:$24 sps:$4 sm:$0xff]  }
 0x1fd   :  { %v1878_v26 = vpop.f32.mrf.mxu0  ;;  %2391 = vmatmul.mubr.bf16.gmra.mxu0 %v11449_v44  ;;  %v2167_v61 = vpop.f32.mrf.mxu1  ;;  %4447 = vmatmul.mubr.bf16.gmra.mxu1 %v11452_v29 }
 0x1fe   :  { %15285 = vst [vmem:[#allocation24_spill] sm:$0xff] %v12527_v0  ;;  %v1879_v45 = vadd.f32 %v12387_v17, %v1878_v26  ;;  %2398 = vmatprep.mubr.bf16.mxu0 %v11459_v21  ;;  %4454 = vmatprep.mubr.bf16.mxu1 %v11462_v53  ;;  %v11468_v0 = vld [vmem:[#allocation5 + $0x424] ss:$24 sps:$4 sm:$0xff]  }
 0x1ff   :  { %v1880_v59 = vpop.f32.mrf.mxu0  ;;  %v2169_v4 = vpop.f32.mrf.mxu1 }
 0x200   :  { %v12530_v10 = vadd.f32 %v2167_v61, %v1879_v45  ;;  %v11463_v4 = vld [vmem:[#allocation2 + $0x430] ss:$24 sps:$4 sm:$0xff]  }
 0x201   :  { %v1881_v40 = vpop.f32.mrf.mxu0  ;;  %v2170_v7 = vpop.f32.mrf.mxu1 }
 0x202   :  { %15286 = vst [vmem:[#allocation25_spill] sm:$0xff] %v12530_v10  ;;  %v1882_v2 = vadd.f32 %v12387_v17, %v1881_v40 }
 0x203   :  { %v1883_v35 = vpop.f32.mrf.mxu0  ;;  %v2172_v26 = vpop.f32.mrf.mxu1 }
 0x204   :  { %v12533_v44 = vadd.f32 %v2170_v7, %v1882_v2  ;;  %v11466_v2 = vld [vmem:[#allocation5 + $0x420] ss:$24 sps:$4 sm:$0xff]   ;;  %v11473_v7 = vld [vmem:[#allocation2 + $0x464] ss:$24 sps:$4 sm:$0xff]  }
 0x205   :  { %v1886_v36 = vpop.f32.mrf.mxu0  ;;  %2399 = vmatmul.mubr.bf16.gmra.mxu0 %v11457_v1  ;;  %v2175_v53 = vpop.f32.mrf.mxu1  ;;  %4455 = vmatmul.mubr.bf16.gmra.mxu1 %v11460_v49 }
 0x206   :  { %15287 = vst [vmem:[#allocation26_spill] sm:$0xff] %v12533_v44  ;;  %v1887_v29 = vadd.f32 %v12387_v17, %v1886_v36  ;;  %2406 = vmatprep.mubr.bf16.mxu0 %v11465_v33  ;;  %4462 = vmatprep.mubr.bf16.mxu1 %v11468_v0  ;;  %v11476_v44 = vld [vmem:[#allocation5 + $0x454] ss:$24 sps:$4 sm:$0xff]  }
 0x207   :  { %v1888_v21 = vpop.f32.mrf.mxu0  ;;  %v2177_v61 = vpop.f32.mrf.mxu1 }
 0x208   :  { %v12536_v45 = vadd.f32 %v2175_v53, %v1887_v29  ;;  %v11471_v61 = vld [vmem:[#allocation2 + $0x460] ss:$24 sps:$4 sm:$0xff]  }
 0x209   :  { %v1889_v59 = vpop.f32.mrf.mxu0  ;;  %v2178_v35 = vpop.f32.mrf.mxu1 }
 0x20a   :  { %15288 = vst [vmem:[#allocation27_spill] sm:$0xff] %v12536_v45  ;;  %v1890_v40 = vadd.f32 %v12387_v17, %v1889_v59 }
 0x20b   :  { %v1891_v26 = vpop.f32.mrf.mxu0  ;;  %v2180_v36 = vpop.f32.mrf.mxu1 }
 0x20c   :  { %v12539_v1 = vadd.f32 %v2178_v35, %v1890_v40  ;;  %v11474_v40 = vld [vmem:[#allocation5 + $0x450] ss:$24 sps:$4 sm:$0xff]   ;;  %v11479_v35 = vld [vmem:[#allocation2 + $0x494] ss:$24 sps:$4 sm:$0xff]  }
 0x20d   :  { %v1894_v10 = vpop.f32.mrf.mxu0  ;;  %2407 = vmatmul.mubr.bf16.gmra.mxu0 %v11463_v4  ;;  %v2183_v0 = vpop.f32.mrf.mxu1  ;;  %4463 = vmatmul.mubr.bf16.gmra.mxu1 %v11466_v2 }
 0x20e   :  { %15289 = vst [vmem:[#allocation28_spill] sm:$0xff] %v12539_v1  ;;  %v1895_v49 = vadd.f32 %v12387_v17, %v1894_v10  ;;  %2414 = vmatprep.mubr.bf16.mxu0 %v11473_v7  ;;  %4470 = vmatprep.mubr.bf16.mxu1 %v11476_v44  ;;  %v11482_v1 = vld [vmem:[#allocation5 + $0x484] ss:$24 sps:$4 sm:$0xff]  }
 0x20f   :  { %v1896_v33 = vpop.f32.mrf.mxu0  ;;  %v2185_v53 = vpop.f32.mrf.mxu1 }
 0x210   :  { %v12542_v29 = vadd.f32 %v2183_v0, %v1895_v49  ;;  %v11477_v53 = vld [vmem:[#allocation2 + $0x490] ss:$24 sps:$4 sm:$0xff]  }
 0x211   :  { %v1897_v21 = vpop.f32.mrf.mxu0  ;;  %v2186_v26 = vpop.f32.mrf.mxu1 }
 0x212   :  { %15290 = vst [vmem:[#allocation29_spill] sm:$0xff] %v12542_v29  ;;  %v1898_v59 = vadd.f32 %v12387_v17, %v1897_v21 }
 0x213   :  { %v1899_v36 = vpop.f32.mrf.mxu0  ;;  %v2188_v10 = vpop.f32.mrf.mxu1 }
 0x214   :  { %v12545_v4 = vadd.f32 %v2186_v26, %v1898_v59  ;;  %v11480_v59 = vld [vmem:[#allocation5 + $0x480] ss:$24 sps:$4 sm:$0xff]   ;;  %v11487_v26 = vld [vmem:[#allocation2 + $0x4c4] ss:$24 sps:$4 sm:$0xff]  }
 0x215   :  { %v1902_v45 = vpop.f32.mrf.mxu0  ;;  %2415 = vmatmul.mubr.bf16.gmra.mxu0 %v11471_v61  ;;  %v2191_v44 = vpop.f32.mrf.mxu1  ;;  %4471 = vmatmul.mubr.bf16.gmra.mxu1 %v11474_v40 }
 0x216   :  { %15291 = vst [vmem:[#allocation30_spill] sm:$0xff] %v12545_v4  ;;  %v1903_v2 = vadd.f32 %v12387_v17, %v1902_v45  ;;  %2422 = vmatprep.mubr.bf16.mxu0 %v11479_v35  ;;  %4478 = vmatprep.mubr.bf16.mxu1 %v11482_v1  ;;  %v11490_v4 = vld [vmem:[#allocation5 + $0x4b4] ss:$24 sps:$4 sm:$0xff]  }
 0x217   :  { %v1904_v7 = vpop.f32.mrf.mxu0  ;;  %v2193_v0 = vpop.f32.mrf.mxu1 }
 0x218   :  { %v12548_v49 = vadd.f32 %v2191_v44, %v1903_v2  ;;  %v11485_v44 = vld [vmem:[#allocation2 + $0x4c0] ss:$24 sps:$4 sm:$0xff]  }
 0x219   :  { %v1905_v33 = vpop.f32.mrf.mxu0  ;;  %v2194_v36 = vpop.f32.mrf.mxu1 }
 0x21a   :  { %v1906_v21 = vadd.f32 %v12387_v17, %v1905_v33 }
 0x21b   :  { %v1907_v10 = vpop.f32.mrf.mxu0  ;;  %v2196_v45 = vpop.f32.mrf.mxu1 }
 0x21c   :  { %v12551_v61 = vadd.f32 %v2194_v36, %v1906_v21  ;;  %v11488_v21 = vld [vmem:[#allocation5 + $0x4b0] ss:$24 sps:$4 sm:$0xff]   ;;  %v11493_v36 = vld [vmem:[#allocation2 + $0x4f4] ss:$24 sps:$4 sm:$0xff]   ;;  %v11496_v10 = vld [vmem:[#allocation5 + $0x4e4] ss:$24 sps:$4 sm:$0xff]  }
 0x21d   :  { %v2232_v29 = vpop.f32.mrf.mxu0  ;;  %2423 = vmatmul.mubr.bf16.gmra.mxu0 %v11477_v53  ;;  %v12554_v1 = vpop.f32.mrf.mxu1  ;;  %4479 = vmatmul.mubr.bf16.gmra.mxu1 %v11480_v59 }
 0x21e   :  { %v2233_v40 = vadd.f32 %v2232_v29, %v12221_v47  ;;  %2430 = vmatprep.mubr.bf16.mxu0 %v11487_v26  ;;  %4486 = vmatprep.mubr.bf16.mxu1 %v11490_v4 }
 0x21f   :  { %v2234_v35 = vpop.f32.mrf.mxu0  ;;  %v4290_v2 = vpop.f32.mrf.mxu1 }
 0x220   :  { %v2551_v7 = vmul.f32 0.01, %v2233_v40  ;;  %vm2487_vm1 = vcmp.gt.f32.partialorder %v2233_v40, 0.0 }
 0x221   :  { %v2235_v17 = vpop.f32.mrf.mxu0  ;;  %v12557_v33 = vpop.f32.mrf.mxu1 }
 0x222   :  { %v2236_v0 = vadd.f32 %v2235_v17, %v12224_v56  ;;  %15292 = vst [vmem:[#allocation31_spill] sm:$0xff] %v12557_v33  ;;  %v12559_v26 = vsel %vm2487_vm1, %v2233_v40, %v2551_v7  ;;  %v11494_v7 = vld [vmem:[#allocation5 + $0x4e0] ss:$24 sps:$4 sm:$0xff]  }
 0x223   :  { %v2237_v53 = vpop.f32.mrf.mxu0  ;;  %v4293_v29 = vpop.f32.mrf.mxu1  ;;  %15293 = vst [vmem:[#allocation32_spill] sm:$0xff] %v12559_v26 }
 0x224   :  { %vm2488_vm2 = vcmp.gt.f32.partialorder %v2236_v0, 0.0  ;;  %v2552_v47 = vmul.f32 0.01, %v2236_v0  ;;  %v11491_v29 = vld [vmem:[#allocation2 + $0x4f0] ss:$24 sps:$4 sm:$0xff]  }
 0x225   :  { %v2240_v59 = vpop.f32.mrf.mxu0  ;;  %2431 = vmatmul.mubr.bf16.gmra.mxu0 %v11485_v44  ;;  %v12564_v35 = vpop.f32.mrf.mxu1  ;;  %4487 = vmatmul.mubr.bf16.gmra.mxu1 %v11488_v21 }
 0x226   :  { %v12561_v4 = vsel %vm2488_vm2, %v2236_v0, %v2552_v47  ;;  %v2241_v45 = vadd.f32 %v2240_v59, %v12227_v63  ;;  %2438 = vmatprep.mubr.bf16.mxu0 %v11493_v36  ;;  %4494 = vmatprep.mubr.bf16.mxu1 %v11496_v10  ;;  %v11501_v0 = vld [vmem:[#allocation2 + $0x524] ss:$24 sps:$4 sm:$0xff]   ;;  %v11504_v47 = vld [vmem:[#allocation5 + $0x514] ss:$24 sps:$4 sm:$0xff]  }
 0x227   :  { %15294 = vst [vmem:[#allocation33_spill] sm:$0xff] %v12561_v4  ;;  %v2242_v2 = vpop.f32.mrf.mxu0  ;;  %v4298_v17 = vpop.f32.mrf.mxu1 }
 0x228   :  { %v2553_v33 = vmul.f32 0.01, %v2241_v45  ;;  %vm2489_vm3 = vcmp.gt.f32.partialorder %v2241_v45, 0.0 }
 0x229   :  { %v2243_v53 = vpop.f32.mrf.mxu0  ;;  %v12569_v44 = vpop.f32.mrf.mxu1 }
 0x22a   :  { %v2244_v40 = vadd.f32 %v2243_v53, %v12230_v9  ;;  %v12571_v2 = vsel %vm2489_vm3, %v2241_v45, %v2553_v33 }
 0x22b   :  { %v2245_v63 = vpop.f32.mrf.mxu0  ;;  %v4301_v36 = vpop.f32.mrf.mxu1  ;;  %15295 = vst [vmem:[#allocation34_spill] sm:$0xff] %v12571_v2 }
 0x22c   :  { %vm2490_vm4 = vcmp.gt.f32.partialorder %v2244_v40, 0.0  ;;  %v2554_v21 = vmul.f32 0.01, %v2244_v40  ;;  %v11499_v36 = vld [vmem:[#allocation2 + $0x520] ss:$24 sps:$4 sm:$0xff]  }
 0x22d   :  { %v2248_v59 = vpop.f32.mrf.mxu0  ;;  %2439 = vmatmul.mubr.bf16.gmra.mxu0 %v11491_v29  ;;  %v12576_v56 = vpop.f32.mrf.mxu1  ;;  %4495 = vmatmul.mubr.bf16.gmra.mxu1 %v11494_v7  ;;  %v11502_v29 = vld [vmem:[#allocation5 + $0x510] ss:$24 sps:$4 sm:$0xff]  }
 0x22e   :  { %v12573_v10 = vsel %vm2490_vm4, %v2244_v40, %v2554_v21  ;;  %v2249_v17 = vadd.f32 %v2248_v59, %v12233_v16  ;;  %2446 = vmatprep.mubr.bf16.mxu0 %v11501_v0  ;;  %4502 = vmatprep.mubr.bf16.mxu1 %v11504_v47  ;;  %v11507_v40 = vld [vmem:[#allocation2 + $0x554] ss:$24 sps:$4 sm:$0xff]   ;;  %v11510_v21 = vld [vmem:[#allocation5 + $0x544] ss:$24 sps:$4 sm:$0xff]  }
 0x22f   :  { %15296 = vst [vmem:[#allocation35_spill] sm:$0xff] %v12573_v10  ;;  %v2250_v53 = vpop.f32.mrf.mxu0  ;;  %v4306_v63 = vpop.f32.mrf.mxu1 }
 0x230   :  { %v2555_v4 = vmul.f32 0.01, %v2249_v17  ;;  %vm2491_vm5 = vcmp.gt.f32.partialorder %v2249_v17, 0.0 }
 0x231   :  { %v2251_v26 = vpop.f32.mrf.mxu0  ;;  %v12581_v45 = vpop.f32.mrf.mxu1 }
 0x232   :  { %v2252_v33 = vadd.f32 %v2251_v26, %v12236_v25  ;;  %v12583_v53 = vsel %vm2491_vm5, %v2249_v17, %v2555_v4 }
 0x233   :  { %v2253_v16 = vpop.f32.mrf.mxu0  ;;  %v4309_v0 = vpop.f32.mrf.mxu1  ;;  %15297 = vst [vmem:[#allocation36_spill] sm:$0xff] %v12583_v53 }
 0x234   :  { %vm2492_vm6 = vcmp.gt.f32.partialorder %v2252_v33, 0.0  ;;  %v2556_v7 = vmul.f32 0.01, %v2252_v33  ;;  %v11505_v0 = vld [vmem:[#allocation2 + $0x550] ss:$24 sps:$4 sm:$0xff]  }
 0x235   :  { %v2256_v59 = vpop.f32.mrf.mxu0  ;;  %2447 = vmatmul.mubr.bf16.gmra.mxu0 %v11499_v36  ;;  %v12588_v9 = vpop.f32.mrf.mxu1  ;;  %4503 = vmatmul.mubr.bf16.gmra.mxu1 %v11502_v29  ;;  %v11508_v36 = vld [vmem:[#allocation5 + $0x540] ss:$24 sps:$4 sm:$0xff]  }
 0x236   :  { %v12585_v47 = vsel %vm2492_vm6, %v2252_v33, %v2556_v7  ;;  %v2257_v63 = vadd.f32 %v2256_v59, %v12239_v32  ;;  %2454 = vmatprep.mubr.bf16.mxu0 %v11507_v40  ;;  %4510 = vmatprep.mubr.bf16.mxu1 %v11510_v21  ;;  %v11515_v33 = vld [vmem:[#allocation2 + $0x584] ss:$24 sps:$4 sm:$0xff]   ;;  %v11518_v7 = vld [vmem:[#allocation5 + $0x574] ss:$24 sps:$4 sm:$0xff]  }
 0x237   :  { %15298 = vst [vmem:[#allocation37_spill] sm:$0xff] %v12585_v47  ;;  %v2258_v26 = vpop.f32.mrf.mxu0  ;;  %v4314_v16 = vpop.f32.mrf.mxu1 }
 0x238   :  { %v2557_v10 = vmul.f32 0.01, %v2257_v63  ;;  %vm2493_vm7 = vcmp.gt.f32.partialorder %v2257_v63, 0.0 }
 0x239   :  { %v2259_v2 = vpop.f32.mrf.mxu0  ;;  %v12593_v17 = vpop.f32.mrf.mxu1 }
 0x23a   :  { %v2260_v4 = vadd.f32 %v2259_v2, %v12242_v42  ;;  %v12595_v26 = vsel %vm2493_vm7, %v2257_v63, %v2557_v10 }
 0x23b   :  { %v2261_v32 = vpop.f32.mrf.mxu0  ;;  %v4317_v40 = vpop.f32.mrf.mxu1  ;;  %15299 = vst [vmem:[#allocation38_spill] sm:$0xff] %v12595_v26 }
 0x23c   :  { %vm2494_vm8 = vcmp.gt.f32.partialorder %v2260_v4, 0.0  ;;  %v2558_v29 = vmul.f32 0.01, %v2260_v4  ;;  %v11513_v40 = vld [vmem:[#allocation2 + $0x580] ss:$24 sps:$4 sm:$0xff]  }
 0x23d   :  { %v2264_v59 = vpop.f32.mrf.mxu0  ;;  %2455 = vmatmul.mubr.bf16.gmra.mxu0 %v11505_v0  ;;  %v12600_v25 = vpop.f32.mrf.mxu1  ;;  %4511 = vmatmul.mubr.bf16.gmra.mxu1 %v11508_v36  ;;  %v11516_v0 = vld [vmem:[#allocation5 + $0x570] ss:$24 sps:$4 sm:$0xff]  }
 0x23e   :  { %v12597_v21 = vsel %vm2494_vm8, %v2260_v4, %v2558_v29  ;;  %v2265_v16 = vadd.f32 %v2264_v59, %v12245_v50  ;;  %2462 = vmatprep.mubr.bf16.mxu0 %v11515_v33  ;;  %4518 = vmatprep.mubr.bf16.mxu1 %v11518_v7  ;;  %v11521_v4 = vld [vmem:[#allocation2 + $0x5b4] ss:$24 sps:$4 sm:$0xff]   ;;  %v11524_v29 = vld [vmem:[#allocation5 + $0x5a4] ss:$24 sps:$4 sm:$0xff]  }
 0x23f   :  { %15300 = vst [vmem:[#allocation39_spill] sm:$0xff] %v12597_v21  ;;  %v2266_v2 = vpop.f32.mrf.mxu0  ;;  %v4322_v32 = vpop.f32.mrf.mxu1 }
 0x240   :  { %v2559_v47 = vmul.f32 0.01, %v2265_v16  ;;  %vm2495_vm9 = vcmp.gt.f32.partialorder %v2265_v16, 0.0 }
 0x241   :  { %v2267_v53 = vpop.f32.mrf.mxu0  ;;  %v12605_v63 = vpop.f32.mrf.mxu1 }
 0x242   :  { %v2268_v10 = vadd.f32 %v2267_v53, %v12248_v60  ;;  %v12607_v2 = vsel %vm2495_vm9, %v2265_v16, %v2559_v47 }
 0x243   :  { %v2269_v50 = vpop.f32.mrf.mxu0  ;;  %v4325_v33 = vpop.f32.mrf.mxu1  ;;  %15301 = vst [vmem:[#allocation40_spill] sm:$0xff] %v12607_v2 }
 0x244   :  { %vm2496_vm10 = vcmp.gt.f32.partialorder %v2268_v10, 0.0  ;;  %v2560_v36 = vmul.f32 0.01, %v2268_v10  ;;  %v11519_v33 = vld [vmem:[#allocation2 + $0x5b0] ss:$24 sps:$4 sm:$0xff]  }
 0x245   :  { %v2272_v59 = vpop.f32.mrf.mxu0  ;;  %2463 = vmatmul.mubr.bf16.gmra.mxu0 %v11513_v40  ;;  %v12612_v42 = vpop.f32.mrf.mxu1  ;;  %4519 = vmatmul.mubr.bf16.gmra.mxu1 %v11516_v0  ;;  %v11522_v40 = vld [vmem:[#allocation5 + $0x5a0] ss:$24 sps:$4 sm:$0xff]  }
 0x246   :  { %v12609_v7 = vsel %vm2496_vm10, %v2268_v10, %v2560_v36  ;;  %v2273_v32 = vadd.f32 %v2272_v59, %v12251_v5  ;;  %2470 = vmatprep.mubr.bf16.mxu0 %v11521_v4  ;;  %4526 = vmatprep.mubr.bf16.mxu1 %v11524_v29  ;;  %v11529_v10 = vld [vmem:[#allocation2 + $0x5e4] ss:$24 sps:$4 sm:$0xff]   ;;  %v11532_v36 = vld [vmem:[#allocation5 + $0x5d4] ss:$24 sps:$4 sm:$0xff]  }
 0x247   :  { %15302 = vst [vmem:[#allocation41_spill] sm:$0xff] %v12609_v7  ;;  %v2274_v53 = vpop.f32.mrf.mxu0  ;;  %v4330_v50 = vpop.f32.mrf.mxu1 }
 0x248   :  { %v2561_v21 = vmul.f32 0.01, %v2273_v32  ;;  %vm2497_vm11 = vcmp.gt.f32.partialorder %v2273_v32, 0.0 }
 0x249   :  { %v2275_v26 = vpop.f32.mrf.mxu0  ;;  %v12617_v16 = vpop.f32.mrf.mxu1 }
 0x24a   :  { %v2276_v47 = vadd.f32 %v2275_v26, %v12254_v15  ;;  %v12619_v53 = vsel %vm2497_vm11, %v2273_v32, %v2561_v21 }
 0x24b   :  { %v2277_v5 = vpop.f32.mrf.mxu0  ;;  %v4333_v4 = vpop.f32.mrf.mxu1  ;;  %15303 = vst [vmem:[#allocation42_spill] sm:$0xff] %v12619_v53 }
 0x24c   :  { %vm2498_vm12 = vcmp.gt.f32.partialorder %v2276_v47, 0.0  ;;  %v2562_v0 = vmul.f32 0.01, %v2276_v47  ;;  %v11527_v4 = vld [vmem:[#allocation2 + $0x5e0] ss:$24 sps:$4 sm:$0xff]  }
 0x24d   :  { %v2280_v59 = vpop.f32.mrf.mxu0  ;;  %2471 = vmatmul.mubr.bf16.gmra.mxu0 %v11519_v33  ;;  %v12624_v60 = vpop.f32.mrf.mxu1  ;;  %4527 = vmatmul.mubr.bf16.gmra.mxu1 %v11522_v40  ;;  %v11530_v33 = vld [vmem:[#allocation5 + $0x5d0] ss:$24 sps:$4 sm:$0xff]  }
 0x24e   :  { %v12621_v29 = vsel %vm2498_vm12, %v2276_v47, %v2562_v0  ;;  %v2281_v50 = vadd.f32 %v2280_v59, %v12257_v23  ;;  %2478 = vmatprep.mubr.bf16.mxu0 %v11529_v10  ;;  %4534 = vmatprep.mubr.bf16.mxu1 %v11532_v36  ;;  %v11535_v47 = vld [vmem:[#allocation5 + $0xc] ss:$24 sps:$4 sm:$0xff]  }
 0x24f   :  { %15304 = vst [vmem:[#allocation43_spill] sm:$0xff] %v12621_v29  ;;  %v2282_v26 = vpop.f32.mrf.mxu0  ;;  %v4338_v5 = vpop.f32.mrf.mxu1  ;;  %v11538_v0 = vld [vmem:[#allocation5 + $0x14] ss:$24 sps:$4 sm:$0xff]  }
 0x250   :  { %v2563_v7 = vmul.f32 0.01, %v2281_v50  ;;  %vm2499_vm13 = vcmp.gt.f32.partialorder %v2281_v50, 0.0 }
 0x251   :  { %v2283_v2 = vpop.f32.mrf.mxu0  ;;  %v12629_v32 = vpop.f32.mrf.mxu1 }
 0x252   :  { %v2284_v21 = vadd.f32 %v2283_v2, %v12260_v34  ;;  %v12631_v26 = vsel %vm2499_vm13, %v2281_v50, %v2563_v7 }
 0x253   :  { %v2285_v23 = vpop.f32.mrf.mxu0  ;;  %v4341_v10 = vpop.f32.mrf.mxu1  ;;  %15305 = vst [vmem:[#allocation44_spill] sm:$0xff] %v12631_v26 }
 0x254   :  { %vm2500_vm14 = vcmp.gt.f32.partialorder %v2284_v21, 0.0  ;;  %v2564_v40 = vmul.f32 0.01, %v2284_v21  ;;  %v11533_v10 = vld [vmem:[#allocation5 + $0x8] ss:$24 sps:$4 sm:$0xff]  }
 0x255   :  { %v2288_v59 = vpop.f32.mrf.mxu0  ;;  %2479 = vmatmul.mubr.bf16.gmra.mxu0 %v11527_v4  ;;  %v12636_v15 = vpop.f32.mrf.mxu1  ;;  %4535 = vmatmul.mubr.bf16.gmra.mxu1 %v11530_v33  ;;  %v11536_v4 = vld [vmem:[#allocation5 + $0x10] ss:$24 sps:$4 sm:$0xff]  }
 0x256   :  { %v12633_v36 = vsel %vm2500_vm14, %v2284_v21, %v2564_v40  ;;  %v2289_v5 = vadd.f32 %v2288_v59, %v12263_v43  ;;  %4575 = vmatprep.mubr.bf16.mxu0 %v11535_v47  ;;  %4864 = vmatprep.mubr.bf16.mxu1 %v11538_v0  ;;  %v11541_v21 = vld [vmem:[#allocation5 + $0x3c] ss:$24 sps:$4 sm:$0xff]  }
 0x257   :  { %15306 = vst [vmem:[#allocation45_spill] sm:$0xff] %v12633_v36  ;;  %v2290_v2 = vpop.f32.mrf.mxu0  ;;  %v4346_v23 = vpop.f32.mrf.mxu1  ;;  %v11544_v40 = vld [vmem:[#allocation5 + $0x44] ss:$24 sps:$4 sm:$0xff]  }
 0x258   :  { %v2565_v29 = vmul.f32 0.01, %v2289_v5  ;;  %vm2501_vm15 = vcmp.gt.f32.partialorder %v2289_v5, 0.0 }
 0x259   :  { %v2291_v53 = vpop.f32.mrf.mxu0  ;;  %v12641_v50 = vpop.f32.mrf.mxu1 }
 0x25a   :  { %v2292_v7 = vadd.f32 %v2291_v53, %v12272_v55  ;;  %v12643_v2 = vsel %vm2501_vm15, %v2289_v5, %v2565_v29  ;;  %v11539_v5 = vld [vmem:[#allocation5 + $0x38] ss:$24 sps:$4 sm:$0xff]  }
 0x25b   :  { %v2293_v43 = vpop.f32.mrf.mxu0  ;;  %v4349_v47 = vpop.f32.mrf.mxu1  ;;  %15307 = vst [vmem:[#allocation46_spill] sm:$0xff] %v12643_v2 }
 0x25c   :  { %vm2502_vm0 = vcmp.gt.f32.partialorder %v2292_v7, 0.0  ;;  %v2566_v33 = vmul.f32 0.01, %v2292_v7  ;;  %v11550_v47 = vld [vmem:[#allocation5 + $0x74] ss:$24 sps:$4 sm:$0xff]  }
 0x25d   :  { %v2296_v59 = vpop.f32.mrf.mxu0  ;;  %4576 = vmatmul.mubr.bf16.vlgmr.msra.gmra.mxu0 %v11533_v10  ;;  %v12648_v34 = vpop.f32.mrf.mxu1  ;;  %4865 = vmatmul.mubr.bf16.vlgmr.msra.gmra.mxu1 %v11536_v4  ;;  %v11547_v4 = vld [vmem:[#allocation5 + $0x6c] ss:$24 sps:$4 sm:$0xff]  }
 0x25e   :  { %v12645_v0 = vsel %vm2502_vm0, %v2292_v7, %v2566_v33  ;;  %v2297_v23 = vadd.f32 %v2296_v59, %v12281_v6  ;;  %10640 = vmatpush3.bf16.msra.mxu0 %v12505_v14  ;;  %10706 = vmatpush3.bf16.msra.mxu1 %v12507_v30  ;;  %v11542_v33 = vld [vmem:[#allocation5 + $0x40] ss:$24 sps:$4 sm:$0xff]  }
 0x25f   :  { %15308 = vst [vmem:[#allocation47_spill] sm:$0xff] %v12645_v0  ;;  %v2298_v53 = vpop.f32.mrf.mxu0  ;;  %4583 = vmatprep.mubr.bf16.mxu0 %v11541_v21  ;;  %v4354_v43 = vpop.f32.mrf.mxu1  ;;  %4872 = vmatprep.mubr.bf16.mxu1 %v11544_v40 }
 0x260   :  { %v2567_v10 = vmul.f32 0.01, %v2297_v23  ;;  %vm2503_vm1 = vcmp.gt.f32.partialorder %v2297_v23, 0.0 }
 0x261   :  { %v2299_v29 = vpop.f32.mrf.mxu0  ;;  %v12655_v6 = vpop.f32.mrf.mxu1 }
 0x262   :  { %v2300_v7 = vadd.f32 %v2299_v29, %v12290_v19  ;;  %v12657_v30 = vsel %vm2503_vm1, %v2297_v23, %v2567_v10  ;;  %v11548_v10 = vld [vmem:[#allocation5 + $0x70] ss:$24 sps:$4 sm:$0xff]  }
 0x263   :  { %v2301_v14 = vpop.f32.mrf.mxu0  ;;  %v4357_v53 = vpop.f32.mrf.mxu1  ;;  %15309 = vst [vmem:[#allocation48_spill] sm:$0xff] %v12657_v30 }
 0x264   :  { %vm2504_vm2 = vcmp.gt.f32.partialorder %v2300_v7, 0.0  ;;  %v2568_v59 = vmul.f32 0.01, %v2300_v7  ;;  %v11545_v53 = vld [vmem:[#allocation5 + $0x68] ss:$24 sps:$4 sm:$0xff]  }
 0x265   :  { %v2304_v55 = vpop.f32.mrf.mxu0  ;;  %4584 = vmatmul.mubr.bf16.gmra.mxu0 %v11539_v5  ;;  %v12662_v43 = vpop.f32.mrf.mxu1  ;;  %4873 = vmatmul.mubr.bf16.gmra.mxu1 %v11542_v33 }
 0x266   :  { %v12659_v21 = vsel %vm2504_vm2, %v2300_v7, %v2568_v59  ;;  %v2305_v40 = vadd.f32 %v2304_v55, %v12303_v31  ;;  %4591 = vmatprep.mubr.bf16.mxu0 %v11547_v4  ;;  %4880 = vmatprep.mubr.bf16.mxu1 %v11550_v47  ;;  %v11553_v7 = vld [vmem:[#allocation5 + $0x9c] ss:$24 sps:$4 sm:$0xff]  }
 0x267   :  { %15310 = vst [vmem:[#allocation49_spill] sm:$0xff] %v12659_v21  ;;  %v2306_v29 = vpop.f32.mrf.mxu0  ;;  %v4362_v14 = vpop.f32.mrf.mxu1  ;;  %v11556_v55 = vld [vmem:[#allocation5 + $0xa4] ss:$24 sps:$4 sm:$0xff]  }
 0x268   :  { %v2569_v0 = vmul.f32 0.01, %v2305_v40  ;;  %vm2505_vm3 = vcmp.gt.f32.partialorder %v2305_v40, 0.0 }
 0x269   :  { %v2307_v2 = vpop.f32.mrf.mxu0  ;;  %v12667_v5 = vpop.f32.mrf.mxu1 }
 0x26a   :  { %v2308_v23 = vadd.f32 %v2307_v2, %v12311_v46  ;;  %v12669_v29 = vsel %vm2505_vm3, %v2305_v40, %v2569_v0 }
 0x26b   :  { %v2309_v31 = vpop.f32.mrf.mxu0  ;;  %v4365_v4 = vpop.f32.mrf.mxu1  ;;  %15311 = vst [vmem:[#allocation50_spill] sm:$0xff] %v12669_v29 }
 0x26c   :  { %vm2506_vm4 = vcmp.gt.f32.partialorder %v2308_v23, 0.0  ;;  %v2570_v33 = vmul.f32 0.01, %v2308_v23  ;;  %v11551_v4 = vld [vmem:[#allocation5 + $0x98] ss:$24 sps:$4 sm:$0xff]  }
 0x26d   :  { %v2312_v59 = vpop.f32.mrf.mxu0  ;;  %4592 = vmatmul.mubr.bf16.gmra.mxu0 %v11545_v53  ;;  %v12674_v19 = vpop.f32.mrf.mxu1  ;;  %4881 = vmatmul.mubr.bf16.gmra.mxu1 %v11548_v10  ;;  %v11554_v53 = vld [vmem:[#allocation5 + $0xa0] ss:$24 sps:$4 sm:$0xff]  }
 0x26e   :  { %v12671_v47 = vsel %vm2506_vm4, %v2308_v23, %v2570_v33  ;;  %v2313_v14 = vadd.f32 %v2312_v59, %v12322_v58  ;;  %4599 = vmatprep.mubr.bf16.mxu0 %v11553_v7  ;;  %4888 = vmatprep.mubr.bf16.mxu1 %v11556_v55  ;;  %v11559_v23 = vld [vmem:[#allocation5 + $0xcc] ss:$24 sps:$4 sm:$0xff]  }
 0x26f   :  { %15312 = vst [vmem:[#allocation51_spill] sm:$0xff] %v12671_v47  ;;  %v2314_v2 = vpop.f32.mrf.mxu0  ;;  %v4370_v31 = vpop.f32.mrf.mxu1  ;;  %v11562_v33 = vld [vmem:[#allocation5 + $0xd4] ss:$24 sps:$4 sm:$0xff]  }
 0x270   :  { %v2571_v21 = vmul.f32 0.01, %v2313_v14  ;;  %vm2507_vm5 = vcmp.gt.f32.partialorder %v2313_v14, 0.0 }
 0x271   :  { %v2315_v30 = vpop.f32.mrf.mxu0  ;;  %v12679_v40 = vpop.f32.mrf.mxu1 }
 0x272   :  { %v2316_v0 = vadd.f32 %v2315_v30, %v12333_v12  ;;  %v12681_v2 = vsel %vm2507_vm5, %v2313_v14, %v2571_v21 }
 0x273   :  { %v2317_v58 = vpop.f32.mrf.mxu0  ;;  %v4373_v7 = vpop.f32.mrf.mxu1  ;;  %15313 = vst [vmem:[#allocation52_spill] sm:$0xff] %v12681_v2 }
 0x274   :  { %vm2508_vm6 = vcmp.gt.f32.partialorder %v2316_v0, 0.0  ;;  %v2572_v10 = vmul.f32 0.01, %v2316_v0  ;;  %v11557_v7 = vld [vmem:[#allocation5 + $0xc8] ss:$24 sps:$4 sm:$0xff]  }
 0x275   :  { %v2320_v59 = vpop.f32.mrf.mxu0  ;;  %4600 = vmatmul.mubr.bf16.gmra.mxu0 %v11551_v4  ;;  %v12686_v46 = vpop.f32.mrf.mxu1  ;;  %4889 = vmatmul.mubr.bf16.gmra.mxu1 %v11554_v53  ;;  %v11560_v4 = vld [vmem:[#allocation5 + $0xd0] ss:$24 sps:$4 sm:$0xff]  }
 0x276   :  { %v12683_v55 = vsel %vm2508_vm6, %v2316_v0, %v2572_v10  ;;  %v2321_v31 = vadd.f32 %v2320_v59, %v12344_v24  ;;  %4607 = vmatprep.mubr.bf16.mxu0 %v11559_v23  ;;  %4896 = vmatprep.mubr.bf16.mxu1 %v11562_v33  ;;  %v11565_v0 = vld [vmem:[#allocation5 + $0xfc] ss:$24 sps:$4 sm:$0xff]  }
 0x277   :  { %15314 = vst [vmem:[#allocation53_spill] sm:$0xff] %v12683_v55  ;;  %v2322_v30 = vpop.f32.mrf.mxu0  ;;  %v4378_v58 = vpop.f32.mrf.mxu1  ;;  %v11568_v10 = vld [vmem:[#allocation5 + $0x104] ss:$24 sps:$4 sm:$0xff]  }
 0x278   :  { %v2573_v47 = vmul.f32 0.01, %v2321_v31  ;;  %vm2509_vm7 = vcmp.gt.f32.partialorder %v2321_v31, 0.0 }
 0x279   :  { %v2323_v29 = vpop.f32.mrf.mxu0  ;;  %v12691_v14 = vpop.f32.mrf.mxu1 }
 0x27a   :  { %v2324_v21 = vadd.f32 %v2323_v29, %v12355_v41  ;;  %v12693_v30 = vsel %vm2509_vm7, %v2321_v31, %v2573_v47 }
 0x27b   :  { %v2325_v24 = vpop.f32.mrf.mxu0  ;;  %v4381_v23 = vpop.f32.mrf.mxu1  ;;  %15315 = vst [vmem:[#allocation54_spill] sm:$0xff] %v12693_v30 }
 0x27c   :  { %vm2510_vm8 = vcmp.gt.f32.partialorder %v2324_v21, 0.0  ;;  %v2574_v53 = vmul.f32 0.01, %v2324_v21  ;;  %v11563_v23 = vld [vmem:[#allocation5 + $0xf8] ss:$24 sps:$4 sm:$0xff]  }
 0x27d   :  { %v2328_v59 = vpop.f32.mrf.mxu0  ;;  %4608 = vmatmul.mubr.bf16.gmra.mxu0 %v11557_v7  ;;  %v12698_v12 = vpop.f32.mrf.mxu1  ;;  %4897 = vmatmul.mubr.bf16.gmra.mxu1 %v11560_v4  ;;  %v11566_v7 = vld [vmem:[#allocation5 + $0x100] ss:$24 sps:$4 sm:$0xff]  }
 0x27e   :  { %v12695_v33 = vsel %vm2510_vm8, %v2324_v21, %v2574_v53  ;;  %v2329_v58 = vadd.f32 %v2328_v59, %v12366_v54  ;;  %4615 = vmatprep.mubr.bf16.mxu0 %v11565_v0  ;;  %4904 = vmatprep.mubr.bf16.mxu1 %v11568_v10  ;;  %v11571_v21 = vld [vmem:[#allocation5 + $0x12c] ss:$24 sps:$4 sm:$0xff]  }
 0x27f   :  { %15316 = vst [vmem:[#allocation55_spill] sm:$0xff] %v12695_v33  ;;  %v2330_v29 = vpop.f32.mrf.mxu0  ;;  %v4386_v24 = vpop.f32.mrf.mxu1  ;;  %v11574_v53 = vld [vmem:[#allocation5 + $0x134] ss:$24 sps:$4 sm:$0xff]  }
 0x280   :  { %v2575_v55 = vmul.f32 0.01, %v2329_v58  ;;  %vm2511_vm9 = vcmp.gt.f32.partialorder %v2329_v58, 0.0 }
 0x281   :  { %v2331_v2 = vpop.f32.mrf.mxu0  ;;  %v12703_v31 = vpop.f32.mrf.mxu1 }
 0x282   :  { %v2332_v47 = vadd.f32 %v2331_v2, %v12377_v11  ;;  %v12705_v29 = vsel %vm2511_vm9, %v2329_v58, %v2575_v55 }
 0x283   :  { %v2333_v54 = vpop.f32.mrf.mxu0  ;;  %v4389_v0 = vpop.f32.mrf.mxu1  ;;  %15317 = vst [vmem:[#allocation56_spill] sm:$0xff] %v12705_v29 }
 0x284   :  { %vm2512_vm10 = vcmp.gt.f32.partialorder %v2332_v47, 0.0  ;;  %v2576_v4 = vmul.f32 0.01, %v2332_v47  ;;  %v11569_v0 = vld [vmem:[#allocation5 + $0x128] ss:$24 sps:$4 sm:$0xff]  }
 0x285   :  { %v2336_v59 = vpop.f32.mrf.mxu0  ;;  %4616 = vmatmul.mubr.bf16.gmra.mxu0 %v11563_v23  ;;  %v12710_v41 = vpop.f32.mrf.mxu1  ;;  %4905 = vmatmul.mubr.bf16.gmra.mxu1 %v11566_v7  ;;  %v11572_v23 = vld [vmem:[#allocation5 + $0x130] ss:$24 sps:$4 sm:$0xff]  }
 0x286   :  { %v12707_v10 = vsel %vm2512_vm10, %v2332_v47, %v2576_v4  ;;  %v2337_v24 = vadd.f32 %v2336_v59, %v12390_v22  ;;  %4623 = vmatprep.mubr.bf16.mxu0 %v11571_v21  ;;  %4912 = vmatprep.mubr.bf16.mxu1 %v11574_v53  ;;  %v11577_v47 = vld [vmem:[#allocation5 + $0x15c] ss:$24 sps:$4 sm:$0xff]  }
 0x287   :  { %15318 = vst [vmem:[#allocation57_spill] sm:$0xff] %v12707_v10  ;;  %v2338_v2 = vpop.f32.mrf.mxu0  ;;  %v4394_v54 = vpop.f32.mrf.mxu1  ;;  %v11580_v4 = vld [vmem:[#allocation5 + $0x164] ss:$24 sps:$4 sm:$0xff]  }
 0x288   :  { %v2577_v33 = vmul.f32 0.01, %v2337_v24  ;;  %vm2513_vm11 = vcmp.gt.f32.partialorder %v2337_v24, 0.0 }
 0x289   :  { %v2339_v30 = vpop.f32.mrf.mxu0  ;;  %v12715_v58 = vpop.f32.mrf.mxu1 }
 0x28a   :  { %v2340_v55 = vadd.f32 %v2339_v30, %v12395_v38  ;;  %v12717_v2 = vsel %vm2513_vm11, %v2337_v24, %v2577_v33 }
 0x28b   :  { %v2341_v22 = vpop.f32.mrf.mxu0  ;;  %v4397_v21 = vpop.f32.mrf.mxu1  ;;  %15319 = vst [vmem:[#allocation58_spill] sm:$0xff] %v12717_v2 }
 0x28c   :  { %vm2514_vm12 = vcmp.gt.f32.partialorder %v2340_v55, 0.0  ;;  %v2578_v7 = vmul.f32 0.01, %v2340_v55  ;;  %v11575_v21 = vld [vmem:[#allocation5 + $0x158] ss:$24 sps:$4 sm:$0xff]  }
 0x28d   :  { %v2344_v59 = vpop.f32.mrf.mxu0  ;;  %4624 = vmatmul.mubr.bf16.gmra.mxu0 %v11569_v0  ;;  %v12722_v11 = vpop.f32.mrf.mxu1  ;;  %4913 = vmatmul.mubr.bf16.gmra.mxu1 %v11572_v23  ;;  %v11578_v0 = vld [vmem:[#allocation5 + $0x160] ss:$24 sps:$4 sm:$0xff]  }
 0x28e   :  { %v12719_v53 = vsel %vm2514_vm12, %v2340_v55, %v2578_v7  ;;  %v2345_v54 = vadd.f32 %v2344_v59, %v12398_v51  ;;  %4631 = vmatprep.mubr.bf16.mxu0 %v11577_v47  ;;  %4920 = vmatprep.mubr.bf16.mxu1 %v11580_v4  ;;  %v11583_v55 = vld [vmem:[#allocation5 + $0x18c] ss:$24 sps:$4 sm:$0xff]  }
 0x28f   :  { %15320 = vst [vmem:[#allocation59_spill] sm:$0xff] %v12719_v53  ;;  %v2346_v30 = vpop.f32.mrf.mxu0  ;;  %v4402_v22 = vpop.f32.mrf.mxu1  ;;  %v11586_v7 = vld [vmem:[#allocation5 + $0x194] ss:$24 sps:$4 sm:$0xff]  }
 0x290   :  { %v2579_v10 = vmul.f32 0.01, %v2345_v54  ;;  %vm2515_vm13 = vcmp.gt.f32.partialorder %v2345_v54, 0.0 }
 0x291   :  { %v2347_v29 = vpop.f32.mrf.mxu0  ;;  %v12727_v24 = vpop.f32.mrf.mxu1 }
 0x292   :  { %v2348_v33 = vadd.f32 %v2347_v29, %v12409_v8  ;;  %v12729_v30 = vsel %vm2515_vm13, %v2345_v54, %v2579_v10 }
 0x293   :  { %v2349_v51 = vpop.f32.mrf.mxu0  ;;  %v4405_v47 = vpop.f32.mrf.mxu1  ;;  %15321 = vst [vmem:[#allocation60_spill] sm:$0xff] %v12729_v30 }
 0x294   :  { %vm2516_vm14 = vcmp.gt.f32.partialorder %v2348_v33, 0.0  ;;  %v2580_v23 = vmul.f32 0.01, %v2348_v33  ;;  %v11581_v47 = vld [vmem:[#allocation5 + $0x188] ss:$24 sps:$4 sm:$0xff]  }
 0x295   :  { %v2352_v59 = vpop.f32.mrf.mxu0  ;;  %4632 = vmatmul.mubr.bf16.gmra.mxu0 %v11575_v21  ;;  %v12734_v38 = vpop.f32.mrf.mxu1  ;;  %4921 = vmatmul.mubr.bf16.gmra.mxu1 %v11578_v0  ;;  %v11584_v21 = vld [vmem:[#allocation5 + $0x190] ss:$24 sps:$4 sm:$0xff]  }
 0x296   :  { %v12731_v4 = vsel %vm2516_vm14, %v2348_v33, %v2580_v23  ;;  %v2353_v22 = vadd.f32 %v2352_v59, %v12412_v20  ;;  %4639 = vmatprep.mubr.bf16.mxu0 %v11583_v55  ;;  %4928 = vmatprep.mubr.bf16.mxu1 %v11586_v7  ;;  %v11589_v33 = vld [vmem:[#allocation5 + $0x1bc] ss:$24 sps:$4 sm:$0xff]  }
 0x297   :  { %15322 = vst [vmem:[#allocation61_spill] sm:$0xff] %v12731_v4  ;;  %v2354_v29 = vpop.f32.mrf.mxu0  ;;  %v4410_v51 = vpop.f32.mrf.mxu1  ;;  %v11592_v23 = vld [vmem:[#allocation5 + $0x1c4] ss:$24 sps:$4 sm:$0xff]  }
 0x298   :  { %v2581_v53 = vmul.f32 0.01, %v2353_v22  ;;  %vm2517_vm15 = vcmp.gt.f32.partialorder %v2353_v22, 0.0 }
 0x299   :  { %v2355_v2 = vpop.f32.mrf.mxu0  ;;  %v12739_v54 = vpop.f32.mrf.mxu1 }
 0x29a   :  { %v2356_v10 = vadd.f32 %v2355_v2, %v12415_v37  ;;  %v12741_v29 = vsel %vm2517_vm15, %v2353_v22, %v2581_v53 }
 0x29b   :  { %v2357_v20 = vpop.f32.mrf.mxu0  ;;  %v4413_v55 = vpop.f32.mrf.mxu1  ;;  %15323 = vst [vmem:[#allocation62_spill] sm:$0xff] %v12741_v29 }
 0x29c   :  { %vm2518_vm0 = vcmp.gt.f32.partialorder %v2356_v10, 0.0  ;;  %v2582_v0 = vmul.f32 0.01, %v2356_v10  ;;  %v11587_v55 = vld [vmem:[#allocation5 + $0x1b8] ss:$24 sps:$4 sm:$0xff]  }
 0x29d   :  { %v2360_v59 = vpop.f32.mrf.mxu0  ;;  %4640 = vmatmul.mubr.bf16.gmra.mxu0 %v11581_v47  ;;  %v12746_v8 = vpop.f32.mrf.mxu1  ;;  %4929 = vmatmul.mubr.bf16.gmra.mxu1 %v11584_v21  ;;  %v11590_v47 = vld [vmem:[#allocation5 + $0x1c0] ss:$24 sps:$4 sm:$0xff]  }
 0x29e   :  { %v12743_v7 = vsel %vm2518_vm0, %v2356_v10, %v2582_v0  ;;  %v2361_v51 = vadd.f32 %v2360_v59, %v12418_v52  ;;  %4647 = vmatprep.mubr.bf16.mxu0 %v11589_v33  ;;  %4936 = vmatprep.mubr.bf16.mxu1 %v11592_v23  ;;  %v11595_v10 = vld [vmem:[#allocation5 + $0x1ec] ss:$24 sps:$4 sm:$0xff]  }
 0x29f   :  { %15324 = vst [vmem:[#allocation63_spill] sm:$0xff] %v12743_v7  ;;  %v2362_v2 = vpop.f32.mrf.mxu0  ;;  %v4418_v20 = vpop.f32.mrf.mxu1  ;;  %v11598_v0 = vld [vmem:[#allocation5 + $0x1f4] ss:$24 sps:$4 sm:$0xff]  }
 0x2a0   :  { %v2583_v4 = vmul.f32 0.01, %v2361_v51  ;;  %vm2519_vm1 = vcmp.gt.f32.partialorder %v2361_v51, 0.0 }
 0x2a1   :  { %v2363_v30 = vpop.f32.mrf.mxu0  ;;  %v12751_v22 = vpop.f32.mrf.mxu1 }
 0x2a2   :  { %v2364_v53 = vadd.f32 %v2363_v30, %v12427_v13  ;;  %v12753_v2 = vsel %vm2519_vm1, %v2361_v51, %v2583_v4 }
 0x2a3   :  { %v2365_v52 = vpop.f32.mrf.mxu0  ;;  %v4421_v33 = vpop.f32.mrf.mxu1  ;;  %15325 = vst [vmem:[#allocation64_spill] sm:$0xff] %v12753_v2 }
 0x2a4   :  { %vm2520_vm2 = vcmp.gt.f32.partialorder %v2364_v53, 0.0  ;;  %v2584_v21 = vmul.f32 0.01, %v2364_v53  ;;  %v11593_v33 = vld [vmem:[#allocation5 + $0x1e8] ss:$24 sps:$4 sm:$0xff]  }
 0x2a5   :  { %v2368_v59 = vpop.f32.mrf.mxu0  ;;  %4648 = vmatmul.mubr.bf16.gmra.mxu0 %v11587_v55  ;;  %v12758_v37 = vpop.f32.mrf.mxu1  ;;  %4937 = vmatmul.mubr.bf16.gmra.mxu1 %v11590_v47  ;;  %v11596_v55 = vld [vmem:[#allocation5 + $0x1f0] ss:$24 sps:$4 sm:$0xff]  }
 0x2a6   :  { %v12755_v23 = vsel %vm2520_vm2, %v2364_v53, %v2584_v21  ;;  %v2369_v20 = vadd.f32 %v2368_v59, %v12432_v27  ;;  %4655 = vmatprep.mubr.bf16.mxu0 %v11595_v10  ;;  %4944 = vmatprep.mubr.bf16.mxu1 %v11598_v0  ;;  %v11601_v53 = vld [vmem:[#allocation5 + $0x21c] ss:$24 sps:$4 sm:$0xff]  }
 0x2a7   :  { %15326 = vst [vmem:[#allocation65_spill] sm:$0xff] %v12755_v23  ;;  %v2370_v30 = vpop.f32.mrf.mxu0  ;;  %v4426_v52 = vpop.f32.mrf.mxu1  ;;  %v11604_v21 = vld [vmem:[#allocation5 + $0x224] ss:$24 sps:$4 sm:$0xff]  }
 0x2a8   :  { %v2585_v7 = vmul.f32 0.01, %v2369_v20  ;;  %vm2521_vm3 = vcmp.gt.f32.partialorder %v2369_v20, 0.0 }
 0x2a9   :  { %v2371_v29 = vpop.f32.mrf.mxu0  ;;  %v12763_v51 = vpop.f32.mrf.mxu1 }
 0x2aa   :  { %v2372_v4 = vadd.f32 %v2371_v29, %v12435_v48  ;;  %v12765_v30 = vsel %vm2521_vm3, %v2369_v20, %v2585_v7 }
 0x2ab   :  { %v2373_v27 = vpop.f32.mrf.mxu0  ;;  %v4429_v10 = vpop.f32.mrf.mxu1  ;;  %15327 = vst [vmem:[#allocation66_spill] sm:$0xff] %v12765_v30 }
 0x2ac   :  { %vm2522_vm4 = vcmp.gt.f32.partialorder %v2372_v4, 0.0  ;;  %v2586_v47 = vmul.f32 0.01, %v2372_v4  ;;  %v11599_v10 = vld [vmem:[#allocation5 + $0x218] ss:$24 sps:$4 sm:$0xff]  }
 0x2ad   :  { %v2376_v59 = vpop.f32.mrf.mxu0  ;;  %4656 = vmatmul.mubr.bf16.gmra.mxu0 %v11593_v33  ;;  %v12770_v13 = vpop.f32.mrf.mxu1  ;;  %4945 = vmatmul.mubr.bf16.gmra.mxu1 %v11596_v55  ;;  %v11602_v33 = vld [vmem:[#allocation5 + $0x220] ss:$24 sps:$4 sm:$0xff]  }
 0x2ae   :  { %v12767_v0 = vsel %vm2522_vm4, %v2372_v4, %v2586_v47  ;;  %v2377_v52 = vadd.f32 %v2376_v59, %v12438_v62  ;;  %4663 = vmatprep.mubr.bf16.mxu0 %v11601_v53  ;;  %4952 = vmatprep.mubr.bf16.mxu1 %v11604_v21  ;;  %v11607_v4 = vld [vmem:[#allocation5 + $0x24c] ss:$24 sps:$4 sm:$0xff]  }
 0x2af   :  { %15328 = vst [vmem:[#allocation67_spill] sm:$0xff] %v12767_v0  ;;  %v2378_v29 = vpop.f32.mrf.mxu0  ;;  %v4434_v27 = vpop.f32.mrf.mxu1  ;;  %v11610_v47 = vld [vmem:[#allocation5 + $0x254] ss:$24 sps:$4 sm:$0xff]  }
 0x2b0   :  { %v2587_v23 = vmul.f32 0.01, %v2377_v52  ;;  %vm2523_vm5 = vcmp.gt.f32.partialorder %v2377_v52, 0.0 }
 0x2b1   :  { %v2379_v2 = vpop.f32.mrf.mxu0  ;;  %v12775_v20 = vpop.f32.mrf.mxu1 }
 0x2b2   :  { %v2380_v7 = vadd.f32 %v2379_v2, %v12447_v28  ;;  %v12777_v29 = vsel %vm2523_vm5, %v2377_v52, %v2587_v23 }
 0x2b3   :  { %v2381_v62 = vpop.f32.mrf.mxu0  ;;  %v4437_v53 = vpop.f32.mrf.mxu1  ;;  %15329 = vst [vmem:[#allocation68_spill] sm:$0xff] %v12777_v29 }
 0x2b4   :  { %vm2524_vm6 = vcmp.gt.f32.partialorder %v2380_v7, 0.0  ;;  %v2588_v55 = vmul.f32 0.01, %v2380_v7  ;;  %v11605_v53 = vld [vmem:[#allocation5 + $0x248] ss:$24 sps:$4 sm:$0xff]  }
 0x2b5   :  { %v2384_v59 = vpop.f32.mrf.mxu0  ;;  %4664 = vmatmul.mubr.bf16.gmra.mxu0 %v11599_v10  ;;  %v12782_v48 = vpop.f32.mrf.mxu1  ;;  %4953 = vmatmul.mubr.bf16.gmra.mxu1 %v11602_v33  ;;  %v11608_v10 = vld [vmem:[#allocation5 + $0x250] ss:$24 sps:$4 sm:$0xff]  }
 0x2b6   :  { %v12779_v21 = vsel %vm2524_vm6, %v2380_v7, %v2588_v55  ;;  %v2385_v27 = vadd.f32 %v2384_v59, %v12452_v39  ;;  %4671 = vmatprep.mubr.bf16.mxu0 %v11607_v4  ;;  %4960 = vmatprep.mubr.bf16.mxu1 %v11610_v47  ;;  %v11613_v7 = vld [vmem:[#allocation5 + $0x27c] ss:$24 sps:$4 sm:$0xff]  }
 0x2b7   :  { %15330 = vst [vmem:[#allocation69_spill] sm:$0xff] %v12779_v21  ;;  %v2386_v2 = vpop.f32.mrf.mxu0  ;;  %v4442_v62 = vpop.f32.mrf.mxu1  ;;  %v11616_v55 = vld [vmem:[#allocation5 + $0x284] ss:$24 sps:$4 sm:$0xff]  }
 0x2b8   :  { %v2589_v0 = vmul.f32 0.01, %v2385_v27  ;;  %vm2525_vm7 = vcmp.gt.f32.partialorder %v2385_v27, 0.0 }
 0x2b9   :  { %v2387_v30 = vpop.f32.mrf.mxu0  ;;  %v12787_v52 = vpop.f32.mrf.mxu1 }
 0x2ba   :  { %v2388_v23 = vadd.f32 %v2387_v30, %v12455_v3  ;;  %v12789_v2 = vsel %vm2525_vm7, %v2385_v27, %v2589_v0 }
 0x2bb   :  { %v2389_v39 = vpop.f32.mrf.mxu0  ;;  %v4445_v4 = vpop.f32.mrf.mxu1  ;;  %15331 = vst [vmem:[#allocation70_spill] sm:$0xff] %v12789_v2 }
 0x2bc   :  { %vm2526_vm8 = vcmp.gt.f32.partialorder %v2388_v23, 0.0  ;;  %v2590_v33 = vmul.f32 0.01, %v2388_v23  ;;  %v11611_v4 = vld [vmem:[#allocation5 + $0x278] ss:$24 sps:$4 sm:$0xff]  }
 0x2bd   :  { %v2392_v59 = vpop.f32.mrf.mxu0  ;;  %4672 = vmatmul.mubr.bf16.gmra.mxu0 %v11605_v53  ;;  %v12794_v28 = vpop.f32.mrf.mxu1  ;;  %4961 = vmatmul.mubr.bf16.gmra.mxu1 %v11608_v10  ;;  %v11614_v53 = vld [vmem:[#allocation5 + $0x280] ss:$24 sps:$4 sm:$0xff]  }
 0x2be   :  { %v12791_v47 = vsel %vm2526_vm8, %v2388_v23, %v2590_v33  ;;  %v2393_v62 = vadd.f32 %v2392_v59, %v12458_v18  ;;  %4679 = vmatprep.mubr.bf16.mxu0 %v11613_v7  ;;  %4968 = vmatprep.mubr.bf16.mxu1 %v11616_v55  ;;  %v11619_v23 = vld [vmem:[#allocation5 + $0x2ac] ss:$24 sps:$4 sm:$0xff]  }
 0x2bf   :  { %15332 = vst [vmem:[#allocation71_spill] sm:$0xff] %v12791_v47  ;;  %v2394_v30 = vpop.f32.mrf.mxu0  ;;  %v4450_v39 = vpop.f32.mrf.mxu1  ;;  %v11622_v33 = vld [vmem:[#allocation5 + $0x2b4] ss:$24 sps:$4 sm:$0xff]  }
 0x2c0   :  { %v2591_v21 = vmul.f32 0.01, %v2393_v62  ;;  %vm2527_vm9 = vcmp.gt.f32.partialorder %v2393_v62, 0.0  ;;  %v15336_v39 = vld [vmem:[#allocation11_spill] sm:$0xff] }
 0x2c1   :  { %v2395_v29 = vpop.f32.mrf.mxu0  ;;  %v12799_v27 = vpop.f32.mrf.mxu1 }
 0x2c2   :  { %v2396_v0 = vadd.f32 %v2395_v29, %v12467_v57  ;;  %15333 = vst [vmem:[#allocation72_spill] sm:$0xff] %v12799_v27  ;;  %v12801_v30 = vsel %vm2527_vm9, %v2393_v62, %v2591_v21 }
 0x2c3   :  { %v2397_v18 = vpop.f32.mrf.mxu0  ;;  %v4453_v7 = vpop.f32.mrf.mxu1  ;;  %15334 = vst [vmem:[#allocation73_spill] sm:$0xff] %v12801_v30 }
 0x2c4   :  { %vm2528_vm10 = vcmp.gt.f32.partialorder %v2396_v0, 0.0  ;;  %v2592_v10 = vmul.f32 0.01, %v2396_v0  ;;  %v11617_v7 = vld [vmem:[#allocation5 + $0x2a8] ss:$24 sps:$4 sm:$0xff]  }
 0x2c5   :  { %v2400_v59 = vpop.f32.mrf.mxu0  ;;  %4680 = vmatmul.mubr.bf16.gmra.mxu0 %v11611_v4  ;;  %v12806_v2 = vpop.f32.mrf.mxu1  ;;  %4969 = vmatmul.mubr.bf16.gmra.mxu1 %v11614_v53  ;;  %v15338_v4 = vld [vmem:[#allocation12_spill] sm:$0xff] }
 0x2c6   :  { %v12803_v55 = vsel %vm2528_vm10, %v2396_v0, %v2592_v10  ;;  %v2401_v3 = vadd.f32 %v2400_v59, %v15336_v39  ;;  %15337 = vst [vmem:[#allocation11_spill] sm:$0xff] %v12806_v2  ;;  %4687 = vmatprep.mubr.bf16.mxu0 %v11619_v23  ;;  %4976 = vmatprep.mubr.bf16.mxu1 %v11622_v33  ;;  %v11620_v0 = vld [vmem:[#allocation5 + $0x2b0] ss:$24 sps:$4 sm:$0xff]   ;;  %v11625_v10 = vld [vmem:[#allocation5 + $0x2dc] ss:$24 sps:$4 sm:$0xff]  }
 0x2c7   :  { %15335 = vst [vmem:[#allocation74_spill] sm:$0xff] %v12803_v55  ;;  %v2402_v29 = vpop.f32.mrf.mxu0  ;;  %v4458_v18 = vpop.f32.mrf.mxu1  ;;  %v11628_v39 = vld [vmem:[#allocation5 + $0x2e4] ss:$24 sps:$4 sm:$0xff]  }
 0x2c8   :  { %v2593_v26 = vmul.f32 0.01, %v2401_v3  ;;  %vm2529_vm11 = vcmp.gt.f32.partialorder %v2401_v3, 0.0  ;;  %v15342_v18 = vld [vmem:[#allocation13_spill] sm:$0xff] }
 0x2c9   :  { %v2403_v47 = vpop.f32.mrf.mxu0  ;;  %v12811_v62 = vpop.f32.mrf.mxu1 }
 0x2ca   :  { %v2404_v21 = vadd.f32 %v2403_v47, %v15338_v4  ;;  %15339 = vst [vmem:[#allocation12_spill] sm:$0xff] %v12811_v62  ;;  %v12813_v29 = vsel %vm2529_vm11, %v2401_v3, %v2593_v26 }
 0x2cb   :  { %v2405_v59 = vpop.f32.mrf.mxu0  ;;  %v4461_v23 = vpop.f32.mrf.mxu1  ;;  %15340 = vst [vmem:[#allocation75_spill] sm:$0xff] %v12813_v29 }
 0x2cc   :  { %vm2530_vm12 = vcmp.gt.f32.partialorder %v2404_v21, 0.0  ;;  %v2594_v53 = vmul.f32 0.01, %v2404_v21  ;;  %v11623_v23 = vld [vmem:[#allocation5 + $0x2d8] ss:$24 sps:$4 sm:$0xff]  }
 0x2cd   :  { %v2408_v36 = vpop.f32.mrf.mxu0  ;;  %4688 = vmatmul.mubr.bf16.gmra.mxu0 %v11617_v7  ;;  %v12818_v30 = vpop.f32.mrf.mxu1  ;;  %4977 = vmatmul.mubr.bf16.gmra.mxu1 %v11620_v0  ;;  %v15344_v7 = vld [vmem:[#allocation14_spill] sm:$0xff] }
 0x2ce   :  { %v12815_v33 = vsel %vm2530_vm12, %v2404_v21, %v2594_v53  ;;  %v2409_v57 = vadd.f32 %v2408_v36, %v15342_v18  ;;  %15343 = vst [vmem:[#allocation13_spill] sm:$0xff] %v12818_v30  ;;  %4695 = vmatprep.mubr.bf16.mxu0 %v11625_v10  ;;  %4984 = vmatprep.mubr.bf16.mxu1 %v11628_v39  ;;  %v11626_v21 = vld [vmem:[#allocation5 + $0x2e0] ss:$24 sps:$4 sm:$0xff]   ;;  %v11631_v53 = vld [vmem:[#allocation5 + $0x30c] ss:$24 sps:$4 sm:$0xff]  }
 0x2cf   :  { %15341 = vst [vmem:[#allocation76_spill] sm:$0xff] %v12815_v33  ;;  %v2410_v4 = vpop.f32.mrf.mxu0  ;;  %v4466_v59 = vpop.f32.mrf.mxu1  ;;  %v11634_v18 = vld [vmem:[#allocation5 + $0x314] ss:$24 sps:$4 sm:$0xff]  }
 0x2d0   :  { %v2595_v62 = vmul.f32 0.01, %v2409_v57  ;;  %vm2531_vm13 = vcmp.gt.f32.partialorder %v2409_v57, 0.0  ;;  %v15348_v59 = vld [vmem:[#allocation15_spill] sm:$0xff] }
 0x2d1   :  { %v2411_v55 = vpop.f32.mrf.mxu0  ;;  %v12823_v3 = vpop.f32.mrf.mxu1 }
 0x2d2   :  { %v2412_v26 = vadd.f32 %v2411_v55, %v15344_v7  ;;  %15345 = vst [vmem:[#allocation14_spill] sm:$0xff] %v12823_v3  ;;  %v12825_v4 = vsel %vm2531_vm13, %v2409_v57, %v2595_v62 }
 0x2d3   :  { %v2413_v36 = vpop.f32.mrf.mxu0  ;;  %v4469_v10 = vpop.f32.mrf.mxu1  ;;  %15346 = vst [vmem:[#allocation77_spill] sm:$0xff] %v12825_v4 }
 0x2d4   :  { %vm2532_vm14 = vcmp.gt.f32.partialorder %v2412_v26, 0.0  ;;  %v2596_v0 = vmul.f32 0.01, %v2412_v26  ;;  %v11629_v10 = vld [vmem:[#allocation5 + $0x308] ss:$24 sps:$4 sm:$0xff]  }
 0x2d5   :  { %v2416_v30 = vpop.f32.mrf.mxu0  ;;  %4696 = vmatmul.mubr.bf16.gmra.mxu0 %v11623_v23  ;;  %v12830_v29 = vpop.f32.mrf.mxu1  ;;  %4985 = vmatmul.mubr.bf16.gmra.mxu1 %v11626_v21  ;;  %v15350_v23 = vld [vmem:[#allocation16_spill] sm:$0xff] }
 0x2d6   :  { %v12827_v39 = vsel %vm2532_vm14, %v2412_v26, %v2596_v0  ;;  %v2417_v47 = vadd.f32 %v2416_v30, %v15348_v59  ;;  %15349 = vst [vmem:[#allocation15_spill] sm:$0xff] %v12830_v29  ;;  %4703 = vmatprep.mubr.bf16.mxu0 %v11631_v53  ;;  %4992 = vmatprep.mubr.bf16.mxu1 %v11634_v18  ;;  %v11632_v26 = vld [vmem:[#allocation5 + $0x310] ss:$24 sps:$4 sm:$0xff]   ;;  %v11637_v0 = vld [vmem:[#allocation5 + $0x33c] ss:$24 sps:$4 sm:$0xff]  }
 0x2d7   :  { %15347 = vst [vmem:[#allocation78_spill] sm:$0xff] %v12827_v39  ;;  %v2418_v7 = vpop.f32.mrf.mxu0  ;;  %v4474_v36 = vpop.f32.mrf.mxu1  ;;  %v11640_v59 = vld [vmem:[#allocation5 + $0x344] ss:$24 sps:$4 sm:$0xff]  }
 0x2d8   :  { %v2597_v3 = vmul.f32 0.01, %v2417_v47  ;;  %vm2533_vm15 = vcmp.gt.f32.partialorder %v2417_v47, 0.0  ;;  %v15354_v36 = vld [vmem:[#allocation17_spill] sm:$0xff] }
 0x2d9   :  { %v2419_v33 = vpop.f32.mrf.mxu0  ;;  %v12835_v62 = vpop.f32.mrf.mxu1 }
 0x2da   :  { %v2420_v57 = vadd.f32 %v2419_v33, %v15350_v23  ;;  %15351 = vst [vmem:[#allocation16_spill] sm:$0xff] %v12835_v62  ;;  %v12837_v7 = vsel %vm2533_vm15, %v2417_v47, %v2597_v3 }
 0x2db   :  { %v2421_v30 = vpop.f32.mrf.mxu0  ;;  %v4477_v53 = vpop.f32.mrf.mxu1  ;;  %15352 = vst [vmem:[#allocation79_spill] sm:$0xff] %v12837_v7 }
 0x2dc   :  { %vm2534_vm0 = vcmp.gt.f32.partialorder %v2420_v57, 0.0  ;;  %v2598_v21 = vmul.f32 0.01, %v2420_v57  ;;  %v11635_v53 = vld [vmem:[#allocation5 + $0x338] ss:$24 sps:$4 sm:$0xff]  }
 0x2dd   :  { %v2424_v29 = vpop.f32.mrf.mxu0  ;;  %4704 = vmatmul.mubr.bf16.gmra.mxu0 %v11629_v10  ;;  %v12842_v4 = vpop.f32.mrf.mxu1  ;;  %4993 = vmatmul.mubr.bf16.gmra.mxu1 %v11632_v26  ;;  %v15356_v10 = vld [vmem:[#allocation18_spill] sm:$0xff] }
 0x2de   :  { %v12839_v18 = vsel %vm2534_vm0, %v2420_v57, %v2598_v21  ;;  %v2425_v55 = vadd.f32 %v2424_v29, %v15354_v36  ;;  %15355 = vst [vmem:[#allocation17_spill] sm:$0xff] %v12842_v4  ;;  %4711 = vmatprep.mubr.bf16.mxu0 %v11637_v0  ;;  %5000 = vmatprep.mubr.bf16.mxu1 %v11640_v59  ;;  %v11638_v57 = vld [vmem:[#allocation5 + $0x340] ss:$24 sps:$4 sm:$0xff]   ;;  %v11643_v21 = vld [vmem:[#allocation5 + $0x36c] ss:$24 sps:$4 sm:$0xff]  }
 0x2df   :  { %15353 = vst [vmem:[#allocation80_spill] sm:$0xff] %v12839_v18  ;;  %v2426_v23 = vpop.f32.mrf.mxu0  ;;  %v4482_v30 = vpop.f32.mrf.mxu1  ;;  %v11646_v36 = vld [vmem:[#allocation5 + $0x374] ss:$24 sps:$4 sm:$0xff]   ;;  %v12852_v59 = vld [vmem:[%s15201_s12 + $0x18] sm:$0xff]  }
 0x2e0   :  { %v2599_v62 = vmul.f32 0.01, %v2425_v55  ;;  %vm2535_vm1 = vcmp.gt.f32.partialorder %v2425_v55, 0.0  ;;  %v12857_v23 = vld [vmem:[%s15201_s12 + $0x8] sm:$0xff]   ;;  %10771 = vmatprep.subr.bf16.mxu0 %v12852_v59 }
 0x2e1   :  { %v2427_v39 = vpop.f32.mrf.mxu0  ;;  %v12847_v3 = vpop.f32.mrf.mxu1  ;;  %10839 = vmatprep.subr.bf16.mxu1 %v12857_v23 }
 0x2e2   :  { %v2428_v47 = vadd.f32 %v2427_v39, %v15356_v10  ;;  %15357 = vst [vmem:[#allocation18_spill] sm:$0xff] %v12847_v3  ;;  %v12859_v30 = vsel %vm2535_vm1, %v2425_v55, %v2599_v62  ;;  %v11641_v62 = vld [vmem:[#allocation5 + $0x368] ss:$24 sps:$4 sm:$0xff]  }
 0x2e3   :  { %v2429_v29 = vpop.f32.mrf.mxu0  ;;  %v4485_v0 = vpop.f32.mrf.mxu1  ;;  %15358 = vst [vmem:[#allocation81_spill] sm:$0xff] %v12859_v30 }
 0x2e4   :  { %vm2536_vm2 = vcmp.gt.f32.partialorder %v2428_v47, 0.0  ;;  %v2600_v26 = vmul.f32 0.01, %v2428_v47  ;;  %v15360_v29 = vld [vmem:[#allocation19_spill] sm:$0xff] }
 0x2e5   :  { %v2432_v39 = vpop.f32.mrf.mxu0  ;;  %4712 = vmatmul.mubr.bf16.gmra.mxu0 %v11635_v53  ;;  %v12864_v7 = vpop.f32.mrf.mxu1  ;;  %5001 = vmatmul.mubr.bf16.gmra.mxu1 %v11638_v57  ;;  %v11649_v57 = vld [vmem:[#allocation5 + $0x39c] ss:$24 sps:$4 sm:$0xff]  }
 0x2e6   :  { %v12861_v10 = vsel %vm2536_vm2, %v2428_v47, %v2600_v26  ;;  %v2433_v33 = vadd.f32 %v2432_v39, %v15360_v29  ;;  %15361 = vst [vmem:[#allocation19_spill] sm:$0xff] %v12864_v7  ;;  %4719 = vmatprep.mubr.bf16.mxu0 %v11643_v21  ;;  %5008 = vmatprep.mubr.bf16.mxu1 %v11646_v36  ;;  %v15362_v47 = vld [vmem:[#allocation20_spill] sm:$0xff]  ;;  %v11652_v7 = vld [vmem:[#allocation5 + $0x3a4] ss:$24 sps:$4 sm:$0xff]  }
 0x2e7   :  { %15359 = vst [vmem:[#allocation82_spill] sm:$0xff] %v12861_v10  ;;  %v2434_v18 = vpop.f32.mrf.mxu0  ;;  %v4490_v3 = vpop.f32.mrf.mxu1  ;;  %v11644_v29 = vld [vmem:[#allocation5 + $0x370] ss:$24 sps:$4 sm:$0xff]  }
 0x2e8   :  { %v2601_v53 = vmul.f32 0.01, %v2433_v33  ;;  %vm2537_vm3 = vcmp.gt.f32.partialorder %v2433_v33, 0.0  ;;  %v15366_v10 = vld [vmem:[#allocation21_spill] sm:$0xff] }
 0x2e9   :  { %v2435_v55 = vpop.f32.mrf.mxu0  ;;  %v12871_v39 = vpop.f32.mrf.mxu1 }
 0x2ea   :  { %v2436_v26 = vadd.f32 %v2435_v55, %v15362_v47  ;;  %15363 = vst [vmem:[#allocation20_spill] sm:$0xff] %v12871_v39  ;;  %v12873_v3 = vsel %vm2537_vm3, %v2433_v33, %v2601_v53 }
 0x2eb   :  { %v2437_v21 = vpop.f32.mrf.mxu0  ;;  %v4493_v36 = vpop.f32.mrf.mxu1  ;;  %15364 = vst [vmem:[#allocation83_spill] sm:$0xff] %v12873_v3 }
 0x2ec   :  { %vm2538_vm4 = vcmp.gt.f32.partialorder %v2436_v26, 0.0  ;;  %v2602_v18 = vmul.f32 0.01, %v2436_v26  ;;  %v11647_v36 = vld [vmem:[#allocation5 + $0x398] ss:$24 sps:$4 sm:$0xff]  }
 0x2ed   :  { %v2440_v0 = vpop.f32.mrf.mxu0  ;;  %4720 = vmatmul.mubr.bf16.gmra.mxu0 %v11641_v62  ;;  %v12878_v2 = vpop.f32.mrf.mxu1  ;;  %5009 = vmatmul.mubr.bf16.gmra.mxu1 %v11644_v29  ;;  %v15368_v62 = vld [vmem:[#allocation22_spill] sm:$0xff] }
 0x2ee   :  { %v12875_v30 = vsel %vm2538_vm4, %v2436_v26, %v2602_v18  ;;  %v2441_v4 = vadd.f32 %v2440_v0, %v15366_v10  ;;  %15367 = vst [vmem:[#allocation21_spill] sm:$0xff] %v12878_v2  ;;  %4727 = vmatprep.mubr.bf16.mxu0 %v11649_v57  ;;  %5016 = vmatprep.mubr.bf16.mxu1 %v11652_v7  ;;  %v11650_v26 = vld [vmem:[#allocation5 + $0x3a0] ss:$24 sps:$4 sm:$0xff]   ;;  %v11655_v18 = vld [vmem:[#allocation5 + $0x3cc] ss:$24 sps:$4 sm:$0xff]  }
 0x2ef   :  { %15365 = vst [vmem:[#allocation84_spill] sm:$0xff] %v12875_v30  ;;  %v2442_v47 = vpop.f32.mrf.mxu0  ;;  %v4498_v21 = vpop.f32.mrf.mxu1  ;;  %v11658_v0 = vld [vmem:[#allocation5 + $0x3d4] ss:$24 sps:$4 sm:$0xff]  }
 0x2f0   :  { %v2603_v27 = vmul.f32 0.01, %v2441_v4  ;;  %vm2539_vm5 = vcmp.gt.f32.partialorder %v2441_v4, 0.0  ;;  %v15372_v21 = vld [vmem:[#allocation23_spill] sm:$0xff] }
 0x2f1   :  { %v2443_v39 = vpop.f32.mrf.mxu0  ;;  %v12883_v53 = vpop.f32.mrf.mxu1 }
 0x2f2   :  { %v2444_v33 = vadd.f32 %v2443_v39, %v15368_v62  ;;  %15369 = vst [vmem:[#allocation22_spill] sm:$0xff] %v12883_v53  ;;  %v12885_v47 = vsel %vm2539_vm5, %v2441_v4, %v2603_v27 }
 0x2f3   :  { %v2445_v10 = vpop.f32.mrf.mxu0  ;;  %v4501_v57 = vpop.f32.mrf.mxu1  ;;  %15370 = vst [vmem:[#allocation85_spill] sm:$0xff] %v12885_v47 }
 0x2f4   :  { %vm2540_vm6 = vcmp.gt.f32.partialorder %v2444_v33, 0.0  ;;  %v2604_v29 = vmul.f32 0.01, %v2444_v33  ;;  %v11653_v57 = vld [vmem:[#allocation5 + $0x3c8] ss:$24 sps:$4 sm:$0xff]  }
 0x2f5   :  { %v2448_v2 = vpop.f32.mrf.mxu0  ;;  %4728 = vmatmul.mubr.bf16.gmra.mxu0 %v11647_v36  ;;  %v12890_v3 = vpop.f32.mrf.mxu1  ;;  %5017 = vmatmul.mubr.bf16.gmra.mxu1 %v11650_v26  ;;  %v15374_v36 = vld [vmem:[#allocation24_spill] sm:$0xff] }
 0x2f6   :  { %v12887_v7 = vsel %vm2540_vm6, %v2444_v33, %v2604_v29  ;;  %v2449_v55 = vadd.f32 %v2448_v2, %v15372_v21  ;;  %15373 = vst [vmem:[#allocation23_spill] sm:$0xff] %v12890_v3  ;;  %4735 = vmatprep.mubr.bf16.mxu0 %v11655_v18  ;;  %5024 = vmatprep.mubr.bf16.mxu1 %v11658_v0  ;;  %v11656_v33 = vld [vmem:[#allocation5 + $0x3d0] ss:$24 sps:$4 sm:$0xff]   ;;  %v11661_v29 = vld [vmem:[#allocation5 + $0x3fc] ss:$24 sps:$4 sm:$0xff]  }
 0x2f7   :  { %15371 = vst [vmem:[#allocation86_spill] sm:$0xff] %v12887_v7  ;;  %v2450_v62 = vpop.f32.mrf.mxu0  ;;  %v4506_v10 = vpop.f32.mrf.mxu1  ;;  %v11664_v21 = vld [vmem:[#allocation5 + $0x404] ss:$24 sps:$4 sm:$0xff]  }
 0x2f8   :  { %v2605_v53 = vmul.f32 0.01, %v2449_v55  ;;  %vm2541_vm7 = vcmp.gt.f32.partialorder %v2449_v55, 0.0  ;;  %v15378_v10 = vld [vmem:[#allocation25_spill] sm:$0xff] }
 0x2f9   :  { %v2451_v30 = vpop.f32.mrf.mxu0  ;;  %v12895_v4 = vpop.f32.mrf.mxu1 }
 0x2fa   :  { %v2452_v27 = vadd.f32 %v2451_v30, %v15374_v36  ;;  %15375 = vst [vmem:[#allocation24_spill] sm:$0xff] %v12895_v4  ;;  %v12897_v62 = vsel %vm2541_vm7, %v2449_v55, %v2605_v53 }
 0x2fb   :  { %v2453_v2 = vpop.f32.mrf.mxu0  ;;  %v4509_v18 = vpop.f32.mrf.mxu1  ;;  %15376 = vst [vmem:[#allocation87_spill] sm:$0xff] %v12897_v62 }
 0x2fc   :  { %vm2542_vm8 = vcmp.gt.f32.partialorder %v2452_v27, 0.0  ;;  %v2606_v26 = vmul.f32 0.01, %v2452_v27  ;;  %v11659_v18 = vld [vmem:[#allocation5 + $0x3f8] ss:$24 sps:$4 sm:$0xff]  }
 0x2fd   :  { %v2456_v3 = vpop.f32.mrf.mxu0  ;;  %4736 = vmatmul.mubr.bf16.gmra.mxu0 %v11653_v57  ;;  %v12902_v47 = vpop.f32.mrf.mxu1  ;;  %5025 = vmatmul.mubr.bf16.gmra.mxu1 %v11656_v33  ;;  %v15380_v57 = vld [vmem:[#allocation26_spill] sm:$0xff] }
 0x2fe   :  { %v12899_v0 = vsel %vm2542_vm8, %v2452_v27, %v2606_v26  ;;  %v2457_v39 = vadd.f32 %v2456_v3, %v15378_v10  ;;  %15379 = vst [vmem:[#allocation25_spill] sm:$0xff] %v12902_v47  ;;  %4743 = vmatprep.mubr.bf16.mxu0 %v11661_v29  ;;  %5032 = vmatprep.mubr.bf16.mxu1 %v11664_v21  ;;  %v11662_v27 = vld [vmem:[#allocation5 + $0x400] ss:$24 sps:$4 sm:$0xff]   ;;  %v11667_v26 = vld [vmem:[#allocation5 + $0x42c] ss:$24 sps:$4 sm:$0xff]  }
 0x2ff   :  { %15377 = vst [vmem:[#allocation88_spill] sm:$0xff] %v12899_v0  ;;  %v2458_v36 = vpop.f32.mrf.mxu0  ;;  %v4514_v2 = vpop.f32.mrf.mxu1  ;;  %v11670_v10 = vld [vmem:[#allocation5 + $0x434] ss:$24 sps:$4 sm:$0xff]  }
 0x300   :  { %v2607_v4 = vmul.f32 0.01, %v2457_v39  ;;  %vm2543_vm9 = vcmp.gt.f32.partialorder %v2457_v39, 0.0  ;;  %v15384_v2 = vld [vmem:[#allocation27_spill] sm:$0xff] }
 0x301   :  { %v2459_v7 = vpop.f32.mrf.mxu0  ;;  %v12907_v53 = vpop.f32.mrf.mxu1 }
 0x302   :  { %v2460_v55 = vadd.f32 %v2459_v7, %v15380_v57  ;;  %15381 = vst [vmem:[#allocation26_spill] sm:$0xff] %v12907_v53  ;;  %v12909_v36 = vsel %vm2543_vm9, %v2457_v39, %v2607_v4 }
 0x303   :  { %v2461_v3 = vpop.f32.mrf.mxu0  ;;  %v4517_v29 = vpop.f32.mrf.mxu1  ;;  %15382 = vst [vmem:[#allocation89_spill] sm:$0xff] %v12909_v36 }
 0x304   :  { %vm2544_vm10 = vcmp.gt.f32.partialorder %v2460_v55, 0.0  ;;  %v2608_v33 = vmul.f32 0.01, %v2460_v55  ;;  %v11665_v29 = vld [vmem:[#allocation5 + $0x428] ss:$24 sps:$4 sm:$0xff]  }
 0x305   :  { %v2464_v47 = vpop.f32.mrf.mxu0  ;;  %4744 = vmatmul.mubr.bf16.gmra.mxu0 %v11659_v18  ;;  %v12914_v62 = vpop.f32.mrf.mxu1  ;;  %5033 = vmatmul.mubr.bf16.gmra.mxu1 %v11662_v27  ;;  %v15386_v18 = vld [vmem:[#allocation28_spill] sm:$0xff] }
 0x306   :  { %v12911_v21 = vsel %vm2544_vm10, %v2460_v55, %v2608_v33  ;;  %v2465_v30 = vadd.f32 %v2464_v47, %v15384_v2  ;;  %15385 = vst [vmem:[#allocation27_spill] sm:$0xff] %v12914_v62  ;;  %4751 = vmatprep.mubr.bf16.mxu0 %v11667_v26  ;;  %5040 = vmatprep.mubr.bf16.mxu1 %v11670_v10  ;;  %v11668_v55 = vld [vmem:[#allocation5 + $0x430] ss:$24 sps:$4 sm:$0xff]   ;;  %v11673_v33 = vld [vmem:[#allocation5 + $0x45c] ss:$24 sps:$4 sm:$0xff]  }
 0x307   :  { %15383 = vst [vmem:[#allocation90_spill] sm:$0xff] %v12911_v21  ;;  %v2466_v57 = vpop.f32.mrf.mxu0  ;;  %v4522_v3 = vpop.f32.mrf.mxu1  ;;  %v11676_v2 = vld [vmem:[#allocation5 + $0x464] ss:$24 sps:$4 sm:$0xff]  }
 0x308   :  { %v2609_v53 = vmul.f32 0.01, %v2465_v30  ;;  %vm2545_vm11 = vcmp.gt.f32.partialorder %v2465_v30, 0.0  ;;  %v15390_v3 = vld [vmem:[#allocation29_spill] sm:$0xff] }
 0x309   :  { %v2467_v0 = vpop.f32.mrf.mxu0  ;;  %v12919_v4 = vpop.f32.mrf.mxu1 }
 0x30a   :  { %v2468_v39 = vadd.f32 %v2467_v0, %v15386_v18  ;;  %15387 = vst [vmem:[#allocation28_spill] sm:$0xff] %v12919_v4  ;;  %v12921_v57 = vsel %vm2545_vm11, %v2465_v30, %v2609_v53 }
 0x30b   :  { %v2469_v47 = vpop.f32.mrf.mxu0  ;;  %v4525_v26 = vpop.f32.mrf.mxu1  ;;  %15388 = vst [vmem:[#allocation91_spill] sm:$0xff] %v12921_v57 }
 0x30c   :  { %vm2546_vm12 = vcmp.gt.f32.partialorder %v2468_v39, 0.0  ;;  %v2610_v27 = vmul.f32 0.01, %v2468_v39  ;;  %v11671_v26 = vld [vmem:[#allocation5 + $0x458] ss:$24 sps:$4 sm:$0xff]  }
 0x30d   :  { %v2472_v62 = vpop.f32.mrf.mxu0  ;;  %4752 = vmatmul.mubr.bf16.gmra.mxu0 %v11665_v29  ;;  %v12926_v36 = vpop.f32.mrf.mxu1  ;;  %5041 = vmatmul.mubr.bf16.gmra.mxu1 %v11668_v55  ;;  %v15392_v29 = vld [vmem:[#allocation30_spill] sm:$0xff] }
 0x30e   :  { %v12923_v10 = vsel %vm2546_vm12, %v2468_v39, %v2610_v27  ;;  %v2473_v7 = vadd.f32 %v2472_v62, %v15390_v3  ;;  %15391 = vst [vmem:[#allocation29_spill] sm:$0xff] %v12926_v36  ;;  %4759 = vmatprep.mubr.bf16.mxu0 %v11673_v33  ;;  %5048 = vmatprep.mubr.bf16.mxu1 %v11676_v2  ;;  %v11674_v39 = vld [vmem:[#allocation5 + $0x460] ss:$24 sps:$4 sm:$0xff]   ;;  %v11679_v27 = vld [vmem:[#allocation5 + $0x48c] ss:$24 sps:$4 sm:$0xff]  }
 0x30f   :  { %15389 = vst [vmem:[#allocation92_spill] sm:$0xff] %v12923_v10  ;;  %v2474_v18 = vpop.f32.mrf.mxu0  ;;  %v4530_v47 = vpop.f32.mrf.mxu1  ;;  %v11682_v3 = vld [vmem:[#allocation5 + $0x494] ss:$24 sps:$4 sm:$0xff]   ;;  %v15399_v10 = vld [vmem:[#allocation31_spill] sm:$0xff] }
 0x310   :  { %v2611_v4 = vmul.f32 0.01, %v2473_v7  ;;  %vm2547_vm13 = vcmp.gt.f32.partialorder %v2473_v7, 0.0 }
 0x311   :  { %v2475_v21 = vpop.f32.mrf.mxu0  ;;  %v12931_v53 = vpop.f32.mrf.mxu1 }
 0x312   :  { %v2476_v30 = vadd.f32 %v2475_v21, %v15392_v29  ;;  %v12933_v18 = vsel %vm2547_vm13, %v2473_v7, %v2611_v4  ;;  %v11677_v4 = vld [vmem:[#allocation5 + $0x488] ss:$24 sps:$4 sm:$0xff]   ;;  %vm5577_vm13 = vcmask 64512  }
 0x313   :  { %v2477_v62 = vpop.f32.mrf.mxu0  ;;  %v4533_v33 = vpop.f32.mrf.mxu1  ;;  %15393 = vst [vmem:[#allocation30_spill] sm:$0xff] %v12933_v18 }
 0x314   :  { %vm2548_vm14 = vcmp.gt.f32.partialorder %v2476_v30, 0.0  ;;  %v2612_v55 = vmul.f32 0.01, %v2476_v30  ;;  %v11688_v33 = vld [vmem:[#allocation5 + $0x4c4] ss:$24 sps:$4 sm:$0xff]  }
 0x315   :  { %v2480_v36 = vpop.f32.mrf.mxu0  ;;  %4760 = vmatmul.mubr.bf16.gmra.mxu0 %v11671_v26  ;;  %v12938_v0 = vpop.f32.mrf.mxu1  ;;  %5049 = vmatmul.mubr.bf16.gmra.mxu1 %v11674_v39  ;;  %v12945_v26 = vld [vmem:[%s15196_s7] ss:$0 sm:$0xff]  ;;  %v11680_v39 = vld [vmem:[#allocation5 + $0x490] ss:$24 sps:$4 sm:$0xff]  }
 0x316   :  { %v12935_v2 = vsel %vm2548_vm14, %v2476_v30, %v2612_v55  ;;  %v2481_v47 = vadd.f32 %v2480_v36, %v12548_v49  ;;  %15395 = vst [vmem:[#allocation94_spill] sm:$0xff] %v12938_v0  ;;  %4767 = vmatprep.mubr.bf16.mxu0 %v11679_v27  ;;  %5056 = vmatprep.mubr.bf16.mxu1 %v11682_v3  ;;  %v11685_v27 = vld [vmem:[#allocation5 + $0x4bc] ss:$24 sps:$4 sm:$0xff]  }
 0x317   :  { %15394 = vst [vmem:[#allocation93_spill] sm:$0xff] %v12935_v2  ;;  %v2482_v29 = vpop.f32.mrf.mxu0  ;;  %v4538_v62 = vpop.f32.mrf.mxu1  ;;  %v4289_v3 = vadd.f32 %v12945_v26, %v12554_v1  ;;  %v4292_v1 = vadd.f32 %v12945_v26, %v15399_v10 }
 0x318   :  { %v2613_v30 = vmul.f32 0.01, %v2481_v47  ;;  %vm2549_vm15 = vcmp.gt.f32.partialorder %v2481_v47, 0.0 }
 0x319   :  { %v2483_v7 = vpop.f32.mrf.mxu0  ;;  %v12948_v36 = vpop.f32.mrf.mxu1 }
 0x31a   :  { %v2484_v49 = vadd.f32 %v2483_v7, %v12551_v61  ;;  %15396 = vst [vmem:[#allocation95_spill] sm:$0xff] %v12948_v36  ;;  %v12952_v18 = vsel %vm2549_vm15, %v2481_v47, %v2613_v30 }
 0x31b   :  { %v2485_v55 = vpop.f32.mrf.mxu0  ;;  %v4541_v62 = vpop.f32.mrf.mxu1  ;;  %15397 = vst [vmem:[#allocation96_spill] sm:$0xff] %v12952_v18 }
 0x31c   :  { %vm2550_vm0 = vcmp.gt.f32.partialorder %v2484_v49, 0.0  ;;  %v2614_v29 = vmul.f32 0.01, %v2484_v49 }
 0x31d   :  { %v4577_v21 = vpop.f32.mrf.mxu0  ;;  %4768 = vmatmul.mubr.bf16.gmra.mxu0 %v11677_v4  ;;  %v4866_v7 = vpop.f32.mrf.mxu1  ;;  %5057 = vmatmul.mubr.bf16.gmra.mxu1 %v11680_v39  ;;  %v11683_v4 = vld [vmem:[#allocation5 + $0x4b8] ss:$24 sps:$4 sm:$0xff]   ;;  %v4297_v39 = vadd.f32 %v12945_v26, %v12564_v35 }
 0x31e   :  { %v12954_v2 = vsel %vm2550_vm0, %v2484_v49, %v2614_v29  ;;  %v4578_v61 = vadd.f32 %v4577_v21, %v4289_v3  ;;  %4775 = vmatprep.mubr.bf16.mxu0 %v11685_v27  ;;  %5064 = vmatprep.mubr.bf16.mxu1 %v11688_v33  ;;  %v11686_v49 = vld [vmem:[#allocation5 + $0x4c0] ss:$24 sps:$4 sm:$0xff]   ;;  %v11691_v29 = vld [vmem:[#allocation5 + $0x4ec] ss:$24 sps:$4 sm:$0xff]  }
 0x31f   :  { %15398 = vst [vmem:[#allocation97_spill] sm:$0xff] %v12954_v2  ;;  %v4579_v57 = vpop.f32.mrf.mxu0  ;;  %v4868_v62 = vpop.f32.mrf.mxu1  ;;  %v11694_v3 = vld [vmem:[#allocation5 + $0x4f4] ss:$24 sps:$4 sm:$0xff]   ;;  %v15406_v2 = vld [vmem:[#allocation14_spill] sm:$0xff] }
 0x320   :  { %v4867_v36 = vadd.f32 %v4866_v7, %v4578_v61 }
 0x321   :  { %v4580_v0 = vpop.f32.mrf.mxu0  ;;  %v4869_v30 = vpop.f32.mrf.mxu1 }
 0x322   :  { %v4581_v47 = vadd.f32 %v4580_v0, %v4292_v1  ;;  %v5185_v27 = vmul.f32 0.01, %v4867_v36  ;;  %vm5121_vm1 = vcmp.gt.f32.partialorder %v4867_v36, 0.0  ;;  %v4300_v1 = vadd.f32 %v12945_v26, %v12569_v44 }
 0x323   :  { %v4582_v21 = vpop.f32.mrf.mxu0  ;;  %v4871_v57 = vpop.f32.mrf.mxu1  ;;  %v4305_v44 = vadd.f32 %v12945_v26, %v12576_v56 }
 0x324   :  { %v4870_v55 = vadd.f32 %v4869_v30, %v4581_v47  ;;  %v12964_v62 = vsel %vm5121_vm1, %v4867_v36, %v5185_v27  ;;  %v11689_v57 = vld [vmem:[#allocation5 + $0x4e8] ss:$24 sps:$4 sm:$0xff]  }
 0x325   :  { %v4585_v33 = vpop.f32.mrf.mxu0  ;;  %4776 = vmatmul.mubr.bf16.gmra.mxu0 %v11683_v4  ;;  %v4874_v7 = vpop.f32.mrf.mxu1  ;;  %5065 = vmatmul.mubr.bf16.gmra.mxu1 %v11686_v49  ;;  %v11692_v49 = vld [vmem:[#allocation5 + $0x4f0] ss:$24 sps:$4 sm:$0xff]  }
 0x326   :  { %vm5122_vm2 = vcmp.gt.f32.partialorder %v4870_v55, 0.0  ;;  %v5186_v10 = vmul.f32 0.01, %v4870_v55  ;;  %v4586_v61 = vadd.f32 %v4585_v33, %v4297_v39  ;;  %4783 = vmatprep.mubr.bf16.mxu0 %v11691_v29  ;;  %5072 = vmatprep.mubr.bf16.mxu1 %v11694_v3  ;;  %v11697_v29 = vld [vmem:[#allocation5 + $0x51c] ss:$24 sps:$4 sm:$0xff]  }
 0x327   :  { %v4587_v0 = vpop.f32.mrf.mxu0  ;;  %v4876_v30 = vpop.f32.mrf.mxu1  ;;  %v11700_v3 = vld [vmem:[#allocation5 + $0x524] ss:$24 sps:$4 sm:$0xff]   ;;  %v11695_v4 = vld [vmem:[#allocation5 + $0x518] ss:$24 sps:$4 sm:$0xff]  }
 0x328   :  { %v12966_v35 = vsel %vm5122_vm2, %v4870_v55, %v5186_v10  ;;  %v4875_v47 = vadd.f32 %v4874_v7, %v4586_v61 }
 0x329   :  { %v4588_v21 = vpop.f32.mrf.mxu0  ;;  %v4877_v33 = vpop.f32.mrf.mxu1 }
 0x32a   :  { %v4589_v39 = vadd.f32 %v4588_v21, %v4300_v1  ;;  %v5187_v36 = vmul.f32 0.01, %v4875_v47  ;;  %vm5123_vm3 = vcmp.gt.f32.partialorder %v4875_v47, 0.0  ;;  %v4308_v21 = vadd.f32 %v12945_v26, %v12581_v45 }
 0x32b   :  { %v4590_v0 = vpop.f32.mrf.mxu0  ;;  %v4879_v55 = vpop.f32.mrf.mxu1  ;;  %v4313_v45 = vadd.f32 %v12945_v26, %v12588_v9 }
 0x32c   :  { %v4878_v27 = vadd.f32 %v4877_v33, %v4589_v39  ;;  %v12974_v0 = vsel %vm5123_vm3, %v4875_v47, %v5187_v36 }
 0x32d   :  { %v4593_v10 = vpop.f32.mrf.mxu0  ;;  %4784 = vmatmul.mubr.bf16.gmra.mxu0 %v11689_v57  ;;  %v4882_v30 = vpop.f32.mrf.mxu1  ;;  %5073 = vmatmul.mubr.bf16.gmra.mxu1 %v11692_v49  ;;  %v11698_v49 = vld [vmem:[#allocation5 + $0x520] ss:$24 sps:$4 sm:$0xff]  }
 0x32e   :  { %vm5124_vm4 = vcmp.gt.f32.partialorder %v4878_v27, 0.0  ;;  %v5188_v61 = vmul.f32 0.01, %v4878_v27  ;;  %v4594_v7 = vadd.f32 %v4593_v10, %v4305_v44  ;;  %4791 = vmatprep.mubr.bf16.mxu0 %v11697_v29  ;;  %5080 = vmatprep.mubr.bf16.mxu1 %v11700_v3  ;;  %v11703_v29 = vld [vmem:[#allocation5 + $0x54c] ss:$24 sps:$4 sm:$0xff]  }
 0x32f   :  { %v4595_v1 = vpop.f32.mrf.mxu0  ;;  %v4884_v33 = vpop.f32.mrf.mxu1  ;;  %v11706_v3 = vld [vmem:[#allocation5 + $0x554] ss:$24 sps:$4 sm:$0xff]   ;;  %v11701_v57 = vld [vmem:[#allocation5 + $0x548] ss:$24 sps:$4 sm:$0xff]  }
 0x330   :  { %v12976_v56 = vsel %vm5124_vm4, %v4878_v27, %v5188_v61  ;;  %v4883_v39 = vadd.f32 %v4882_v30, %v4594_v7 }
 0x331   :  { %v4596_v55 = vpop.f32.mrf.mxu0  ;;  %v4885_v10 = vpop.f32.mrf.mxu1 }
 0x332   :  { %v4597_v44 = vadd.f32 %v4596_v55, %v4308_v21  ;;  %v5189_v47 = vmul.f32 0.01, %v4883_v39  ;;  %vm5125_vm5 = vcmp.gt.f32.partialorder %v4883_v39, 0.0  ;;  %v4316_v55 = vadd.f32 %v12945_v26, %v12593_v17 }
 0x333   :  { %v4598_v1 = vpop.f32.mrf.mxu0  ;;  %v4887_v27 = vpop.f32.mrf.mxu1  ;;  %v4321_v17 = vadd.f32 %v12945_v26, %v12600_v25 }
 0x334   :  { %v4886_v36 = vadd.f32 %v4885_v10, %v4597_v44  ;;  %v12984_v1 = vsel %vm5125_vm5, %v4883_v39, %v5189_v47 }
 0x335   :  { %v4601_v61 = vpop.f32.mrf.mxu0  ;;  %4792 = vmatmul.mubr.bf16.gmra.mxu0 %v11695_v4  ;;  %v4890_v33 = vpop.f32.mrf.mxu1  ;;  %5081 = vmatmul.mubr.bf16.gmra.mxu1 %v11698_v49  ;;  %v11704_v49 = vld [vmem:[#allocation5 + $0x550] ss:$24 sps:$4 sm:$0xff]  }
 0x336   :  { %vm5126_vm6 = vcmp.gt.f32.partialorder %v4886_v36, 0.0  ;;  %v5190_v7 = vmul.f32 0.01, %v4886_v36  ;;  %v4602_v30 = vadd.f32 %v4601_v61, %v4313_v45  ;;  %4799 = vmatprep.mubr.bf16.mxu0 %v11703_v29  ;;  %5088 = vmatprep.mubr.bf16.mxu1 %v11706_v3  ;;  %v11709_v29 = vld [vmem:[#allocation5 + $0x57c] ss:$24 sps:$4 sm:$0xff]  }
 0x337   :  { %v4603_v21 = vpop.f32.mrf.mxu0  ;;  %v4892_v10 = vpop.f32.mrf.mxu1  ;;  %v11712_v3 = vld [vmem:[#allocation5 + $0x584] ss:$24 sps:$4 sm:$0xff]   ;;  %v11707_v4 = vld [vmem:[#allocation5 + $0x578] ss:$24 sps:$4 sm:$0xff]  }
 0x338   :  { %v12986_v9 = vsel %vm5126_vm6, %v4886_v36, %v5190_v7  ;;  %v4891_v44 = vadd.f32 %v4890_v33, %v4602_v30 }
 0x339   :  { %v4604_v27 = vpop.f32.mrf.mxu0  ;;  %v4893_v61 = vpop.f32.mrf.mxu1 }
 0x33a   :  { %v4605_v45 = vadd.f32 %v4604_v27, %v4316_v55  ;;  %v5191_v39 = vmul.f32 0.01, %v4891_v44  ;;  %vm5127_vm7 = vcmp.gt.f32.partialorder %v4891_v44, 0.0  ;;  %v4324_v27 = vadd.f32 %v12945_v26, %v12605_v63 }
 0x33b   :  { %v4606_v21 = vpop.f32.mrf.mxu0  ;;  %v4895_v36 = vpop.f32.mrf.mxu1  ;;  %v4329_v63 = vadd.f32 %v12945_v26, %v12612_v42 }
 0x33c   :  { %v4894_v47 = vadd.f32 %v4893_v61, %v4605_v45  ;;  %v12994_v21 = vsel %vm5127_vm7, %v4891_v44, %v5191_v39 }
 0x33d   :  { %v4609_v7 = vpop.f32.mrf.mxu0  ;;  %4800 = vmatmul.mubr.bf16.gmra.mxu0 %v11701_v57  ;;  %v4898_v10 = vpop.f32.mrf.mxu1  ;;  %5089 = vmatmul.mubr.bf16.gmra.mxu1 %v11704_v49  ;;  %v11710_v49 = vld [vmem:[#allocation5 + $0x580] ss:$24 sps:$4 sm:$0xff]  }
 0x33e   :  { %vm5128_vm8 = vcmp.gt.f32.partialorder %v4894_v47, 0.0  ;;  %v5192_v30 = vmul.f32 0.01, %v4894_v47  ;;  %v4610_v33 = vadd.f32 %v4609_v7, %v4321_v17  ;;  %4807 = vmatprep.mubr.bf16.mxu0 %v11709_v29  ;;  %5096 = vmatprep.mubr.bf16.mxu1 %v11712_v3  ;;  %v11715_v29 = vld [vmem:[#allocation5 + $0x5ac] ss:$24 sps:$4 sm:$0xff]  }
 0x33f   :  { %v4611_v55 = vpop.f32.mrf.mxu0  ;;  %v4900_v61 = vpop.f32.mrf.mxu1  ;;  %v11718_v3 = vld [vmem:[#allocation5 + $0x5b4] ss:$24 sps:$4 sm:$0xff]   ;;  %v11713_v57 = vld [vmem:[#allocation5 + $0x5a8] ss:$24 sps:$4 sm:$0xff]  }
 0x340   :  { %v12996_v25 = vsel %vm5128_vm8, %v4894_v47, %v5192_v30  ;;  %v4899_v45 = vadd.f32 %v4898_v10, %v4610_v33 }
 0x341   :  { %v4612_v36 = vpop.f32.mrf.mxu0  ;;  %v4901_v7 = vpop.f32.mrf.mxu1 }
 0x342   :  { %v4613_v17 = vadd.f32 %v4612_v36, %v4324_v27  ;;  %v5193_v44 = vmul.f32 0.01, %v4899_v45  ;;  %vm5129_vm9 = vcmp.gt.f32.partialorder %v4899_v45, 0.0  ;;  %v4332_v36 = vadd.f32 %v12945_v26, %v12617_v16 }
 0x343   :  { %v4614_v55 = vpop.f32.mrf.mxu0  ;;  %v4903_v47 = vpop.f32.mrf.mxu1  ;;  %v4337_v16 = vadd.f32 %v12945_v26, %v12624_v60 }
 0x344   :  { %v4902_v39 = vadd.f32 %v4901_v7, %v4613_v17  ;;  %v13004_v55 = vsel %vm5129_vm9, %v4899_v45, %v5193_v44 }
 0x345   :  { %v4617_v30 = vpop.f32.mrf.mxu0  ;;  %4808 = vmatmul.mubr.bf16.gmra.mxu0 %v11707_v4  ;;  %v4906_v61 = vpop.f32.mrf.mxu1  ;;  %5097 = vmatmul.mubr.bf16.gmra.mxu1 %v11710_v49  ;;  %v11716_v49 = vld [vmem:[#allocation5 + $0x5b0] ss:$24 sps:$4 sm:$0xff]  }
 0x346   :  { %vm5130_vm10 = vcmp.gt.f32.partialorder %v4902_v39, 0.0  ;;  %v5194_v33 = vmul.f32 0.01, %v4902_v39  ;;  %v4618_v10 = vadd.f32 %v4617_v30, %v4329_v63  ;;  %4815 = vmatprep.mubr.bf16.mxu0 %v11715_v29  ;;  %5104 = vmatprep.mubr.bf16.mxu1 %v11718_v3  ;;  %v11721_v29 = vld [vmem:[#allocation5 + $0x5dc] ss:$24 sps:$4 sm:$0xff]  }
 0x347   :  { %v4619_v27 = vpop.f32.mrf.mxu0  ;;  %v4908_v7 = vpop.f32.mrf.mxu1  ;;  %v11724_v3 = vld [vmem:[#allocation5 + $0x5e4] ss:$24 sps:$4 sm:$0xff]   ;;  %v11719_v4 = vld [vmem:[#allocation5 + $0x5d8] ss:$24 sps:$4 sm:$0xff]  }
 0x348   :  { %v13006_v42 = vsel %vm5130_vm10, %v4902_v39, %v5194_v33  ;;  %v4907_v17 = vadd.f32 %v4906_v61, %v4618_v10 }
 0x349   :  { %v4620_v47 = vpop.f32.mrf.mxu0  ;;  %v4909_v30 = vpop.f32.mrf.mxu1 }
 0x34a   :  { %v4621_v63 = vadd.f32 %v4620_v47, %v4332_v36  ;;  %v5195_v45 = vmul.f32 0.01, %v4907_v17  ;;  %vm5131_vm11 = vcmp.gt.f32.partialorder %v4907_v17, 0.0  ;;  %v4340_v47 = vadd.f32 %v12945_v26, %v12629_v32  ;;  %v11726_v32 = vld [vmem:[%s15192_s3] sm:$0xff]  }
 0x34b   :  { %v4622_v27 = vpop.f32.mrf.mxu0  ;;  %v4911_v39 = vpop.f32.mrf.mxu1 }
 0x34c   :  { %v4910_v44 = vadd.f32 %v4909_v30, %v4621_v63  ;;  %v13014_v27 = vsel %vm5131_vm11, %v4907_v17, %v5195_v45  ;;  %v4345_v17 = vadd.f32 %v12945_v26, %v12636_v15 }
 0x34d   :  { %v4625_v33 = vpop.f32.mrf.mxu0  ;;  %4816 = vmatmul.mubr.bf16.gmra.mxu0 %v11713_v57  ;;  %v4914_v7 = vpop.f32.mrf.mxu1  ;;  %5105 = vmatmul.mubr.bf16.gmra.mxu1 %v11716_v49  ;;  %v11722_v49 = vld [vmem:[#allocation5 + $0x5e0] ss:$24 sps:$4 sm:$0xff]   ;;  %v15402_v57 = vld [vmem:[#allocation12_spill] sm:$0xff] }
 0x34e   :  { %vm5132_vm12 = vcmp.gt.f32.partialorder %v4910_v44, 0.0  ;;  %v5196_v10 = vmul.f32 0.01, %v4910_v44  ;;  %v4626_v61 = vadd.f32 %v4625_v33, %v4337_v16  ;;  %4823 = vmatprep.mubr.bf16.mxu0 %v11721_v29  ;;  %5112 = vmatprep.mubr.bf16.mxu1 %v11724_v3  ;;  %v11725_v29 = vld [vmem:[%s15191_s2] sm:$0xff]  }
 0x34f   :  { %v4627_v36 = vpop.f32.mrf.mxu0  ;;  %v4916_v30 = vpop.f32.mrf.mxu1 }
 0x350   :  { %v13016_v60 = vsel %vm5132_vm12, %v4910_v44, %v5196_v10  ;;  %v4915_v63 = vadd.f32 %v4914_v7, %v4626_v61 }
 0x351   :  { %v4628_v39 = vpop.f32.mrf.mxu0  ;;  %v4917_v33 = vpop.f32.mrf.mxu1 }
 0x352   :  { %v4629_v16 = vadd.f32 %v4628_v39, %v4340_v47  ;;  %v5197_v45 = vmul.f32 0.01, %v4915_v63  ;;  %vm5133_vm14 = vcmp.gt.f32.partialorder %v4915_v63, 0.0  ;;  %v4348_v39 = vadd.f32 %v12945_v26, %v12641_v50  ;;  %v11728_v50 = vld [vmem:[%s15192_s3 + $0x8] sm:$0xff]  }
 0x353   :  { %v4630_v3 = vpop.f32.mrf.mxu0  ;;  %v4919_v10 = vpop.f32.mrf.mxu1 }
 0x354   :  { %v4918_v44 = vadd.f32 %v4917_v33, %v4629_v16  ;;  %v13032_v15 = vsel %vm5133_vm14, %v4915_v63, %v5197_v45  ;;  %v4353_v45 = vadd.f32 %v12945_v26, %v12648_v34 }
 0x355   :  { %v4633_v61 = vpop.f32.mrf.mxu0  ;;  %4824 = vmatmul.mubr.bf16.gmra.mxu0 %v11719_v4  ;;  %v4922_v47 = vpop.f32.mrf.mxu1  ;;  %5113 = vmatmul.mubr.bf16.gmra.mxu1 %v11722_v49  ;;  %v11727_v49 = vld [vmem:[%s15191_s2 + $0x8] sm:$0xff]  }
 0x356   :  { %vm5134_vm15 = vcmp.gt.f32.partialorder %v4918_v44, 0.0  ;;  %v5198_v7 = vmul.f32 0.01, %v4918_v44  ;;  %v4634_v36 = vadd.f32 %v4633_v61, %v4345_v17  ;;  %10641 = vmatprep.mubr.msk.bf16.mxu0 %vm5577_vm13, %v11725_v29  ;;  %10707 = vmatprep.mubr.msk.bf16.mxu1 %vm5577_vm13, %v11726_v32  ;;  %v11731_v32 = vld [vmem:[%s15191_s2 + $0x10] sm:$0xff]  }
 0x357   :  { %v4635_v30 = vpop.f32.mrf.mxu0  ;;  %v4924_v3 = vpop.f32.mrf.mxu1 }
 0x358   :  { %v13034_v16 = vsel %vm5134_vm15, %v4918_v44, %v5198_v7  ;;  %v4923_v33 = vadd.f32 %v4922_v47, %v4634_v36  ;;  %v11732_v36 = vld [vmem:[%s15192_s3 + $0x10] sm:$0xff]  }
 0x359   :  { %v4636_v17 = vpop.f32.mrf.mxu0  ;;  %v4925_v10 = vpop.f32.mrf.mxu1  ;;  %v11763_v47 = vld [vmem:[%s15201_s12 + $0x10] sm:$0xff]  }
 0x35a   :  { %v4637_v29 = vadd.f32 %v4636_v17, %v4348_v39  ;;  %v5199_v44 = vmul.f32 0.01, %v4923_v33  ;;  %vm5135_vm0 = vcmp.gt.f32.partialorder %v4923_v33, 0.0  ;;  %v11764_v39 = vld [vmem:[%s15201_s12] sm:$0xff]  }
 0x35b   :  { %v4638_v63 = vpop.f32.mrf.mxu0  ;;  %v4927_v7 = vpop.f32.mrf.mxu1 }
 0x35c   :  { %v4926_v61 = vadd.f32 %v4925_v10, %v4637_v29  ;;  %v4356_v29 = vadd.f32 %v12945_v26, %v12655_v6  ;;  %v11733_v6 = vld [vmem:[%s15191_s2 + $0x18] sm:$0xff]  }
 0x35d   :  { %v4641_v30 = vpop.f32.mrf.mxu0  ;;  %10642 = vmatmul.mubr.msk.bf16.vlgmr.msra.gmra.mxu0 %vm5577_vm13, %v11727_v49  ;;  %v4930_v17 = vpop.f32.mrf.mxu1  ;;  %10708 = vmatmul.mubr.msk.bf16.vlgmr.msra.gmra.mxu1 %vm5577_vm13, %v11728_v50  ;;  %v13065_v49 = vsel %vm5135_vm0, %v4923_v33, %v5199_v44  ;;  %v11734_v33 = vld [vmem:[%s15192_s3 + $0x18] sm:$0xff]   ;;  %v11736_v44 = vld [vmem:[%s15192_s3 + $0x20] sm:$0xff]  }
 0x35e   :  { %vm5136_vm1 = vcmp.gt.f32.partialorder %v4926_v61, 0.0  ;;  %v5200_v34 = vmul.f32 0.01, %v4926_v61  ;;  %v4642_v3 = vadd.f32 %v4641_v30, %v4353_v45  ;;  %10772 = vmatpush3.bf16.msra.mxu0 %v12852_v59  ;;  %10840 = vmatpush3.bf16.msra.mxu1 %v12857_v23 }
 0x35f   :  { %v4643_v10 = vpop.f32.mrf.mxu0  ;;  %10645 = vmatprep.mubr.msk.bf16.mxu0 %vm5577_vm13, %v11731_v32  ;;  %v4932_v4 = vpop.f32.mrf.mxu1  ;;  %10711 = vmatprep.mubr.msk.bf16.mxu1 %vm5577_vm13, %v11732_v36 }
 0x360   :  { %v13067_v63 = vsel %vm5136_vm1, %v4926_v61, %v5200_v34  ;;  %v4931_v7 = vadd.f32 %v4930_v17, %v4642_v3  ;;  %10773 = vmatprep.subr.bf16.mxu0 %v11763_v47  ;;  %10841 = vmatprep.subr.bf16.mxu1 %v11764_v39  ;;  %v11735_v4 = vld [vmem:[%s15191_s2 + $0x20] sm:$0xff]   ;;  %v4361_v61 = vadd.f32 %v12945_v26, %v12662_v43  ;;  %v13089_v3 = vld [vmem:[%s15201_s12 + $0x28] sm:$0xff]  }
 0x361   :  { %v4644_v50 = vpop.f32.mrf.mxu0  ;;  %v4933_v32 = vpop.f32.mrf.mxu1 }
 0x362   :  { %v4645_v23 = vadd.f32 %v4644_v50, %v4356_v29  ;;  %10774 = vmatpush3.bf16.msra.mxu0 %v11763_v47  ;;  %10842 = vmatpush3.bf16.msra.mxu1 %v11764_v39  ;;  %v5201_v36 = vmul.f32 0.01, %v4931_v7  ;;  %v13094_v47 = vld [vmem:[%s15201_s12 + $0x38] sm:$0xff]   ;;  %vm5137_vm2 = vcmp.gt.f32.partialorder %v4931_v7, 0.0  ;;  %v4364_v50 = vadd.f32 %v12945_v26, %v12667_v5  ;;  %v11738_v5 = vld [vmem:[%s15192_s3 + $0x28] sm:$0xff]  }
 0x363   :  { %v4646_v45 = vpop.f32.mrf.mxu0  ;;  %v4935_v34 = vpop.f32.mrf.mxu1  ;;  %10907 = vmatprep.subr.bf16.mxu0 %v13089_v3  ;;  %10975 = vmatprep.subr.bf16.mxu1 %v13094_v47 }
 0x364   :  { %v4934_v30 = vadd.f32 %v4933_v32, %v4645_v23  ;;  %v13103_v23 = vsel %vm5137_vm2, %v4931_v7, %v5201_v36  ;;  %v11739_v7 = vld [vmem:[%s15191_s2 + $0x30] sm:$0xff]  }
 0x365   :  { %v4649_v17 = vpop.f32.mrf.mxu0  ;;  %10646 = vmatmul.mubr.msk.bf16.gmra.mxu0 %vm5577_vm13, %v11733_v6  ;;  %v4938_v29 = vpop.f32.mrf.mxu1  ;;  %10712 = vmatmul.mubr.msk.bf16.gmra.mxu1 %vm5577_vm13, %v11734_v33  ;;  %v15400_v33 = vld [vmem:[#allocation72_spill] sm:$0xff] }
 0x366   :  { %vm5138_vm3 = vcmp.gt.f32.partialorder %v4934_v30, 0.0  ;;  %v5202_v39 = vmul.f32 0.01, %v4934_v30  ;;  %v4650_v43 = vadd.f32 %v4649_v17, %v4361_v61  ;;  %10649 = vmatprep.mubr.msk.bf16.mxu0 %vm5577_vm13, %v11735_v4  ;;  %10715 = vmatprep.mubr.msk.bf16.mxu1 %vm5577_vm13, %v11736_v44  ;;  %v11737_v44 = vld [vmem:[%s15191_s2 + $0x28] sm:$0xff]   ;;  %v4369_v17 = vadd.f32 %v12945_v26, %v12674_v19 }
 0x367   :  { %v4651_v10 = vpop.f32.mrf.mxu0  ;;  %v4940_v45 = vpop.f32.mrf.mxu1  ;;  %v4372_v19 = vadd.f32 %v12945_v26, %v12679_v40  ;;  %v11742_v40 = vld [vmem:[%s15192_s3 + $0x38] sm:$0xff]  }
 0x368   :  { %v13105_v32 = vsel %vm5138_vm3, %v4934_v30, %v5202_v39  ;;  %v4939_v6 = vadd.f32 %v4938_v29, %v4650_v43  ;;  %v11740_v30 = vld [vmem:[%s15192_s3 + $0x30] sm:$0xff]  }
 0x369   :  { %v4652_v4 = vpop.f32.mrf.mxu0  ;;  %v4941_v34 = vpop.f32.mrf.mxu1 }
 0x36a   :  { %v4653_v61 = vadd.f32 %v4652_v4, %v4364_v50  ;;  %v5203_v39 = vmul.f32 0.01, %v4939_v6  ;;  %vm5139_vm4 = vcmp.gt.f32.partialorder %v4939_v6, 0.0 }
 0x36b   :  { %v4654_v36 = vpop.f32.mrf.mxu0  ;;  %v4943_v29 = vpop.f32.mrf.mxu1 }
 0x36c   :  { %v4942_v43 = vadd.f32 %v4941_v34, %v4653_v61  ;;  %v13130_v61 = vsel %vm5139_vm4, %v4939_v6, %v5203_v39  ;;  %v11743_v6 = vld [vmem:[%s15191_s2 + $0x40] sm:$0xff]  }
 0x36d   :  { %v4657_v10 = vpop.f32.mrf.mxu0  ;;  %10650 = vmatmul.mubr.msk.bf16.gmra.mxu0 %vm5577_vm13, %v11737_v44  ;;  %v4946_v4 = vpop.f32.mrf.mxu1  ;;  %10716 = vmatmul.mubr.msk.bf16.gmra.mxu1 %vm5577_vm13, %v11738_v5  ;;  %v11741_v5 = vld [vmem:[%s15191_s2 + $0x38] sm:$0xff]   ;;  %v11744_v39 = vld [vmem:[%s15192_s3 + $0x40] sm:$0xff]  }
 0x36e   :  { %vm5140_vm5 = vcmp.gt.f32.partialorder %v4942_v43, 0.0  ;;  %v5204_v50 = vmul.f32 0.01, %v4942_v43  ;;  %v4658_v45 = vadd.f32 %v4657_v10, %v4369_v17  ;;  %10653 = vmatprep.mubr.msk.bf16.mxu0 %vm5577_vm13, %v11739_v7  ;;  %10719 = vmatprep.mubr.msk.bf16.mxu1 %vm5577_vm13, %v11740_v30 }
 0x36f   :  { %v4659_v36 = vpop.f32.mrf.mxu0  ;;  %v4948_v44 = vpop.f32.mrf.mxu1 }
 0x370   :  { %v13132_v34 = vsel %vm5140_vm5, %v4942_v43, %v5204_v50  ;;  %v4947_v29 = vadd.f32 %v4946_v4, %v4658_v45  ;;  %v4377_v43 = vadd.f32 %v12945_v26, %v12686_v46  ;;  %v4380_v46 = vadd.f32 %v12945_v26, %v12691_v14  ;;  %v11746_v14 = vld [vmem:[%s15192_s3 + $0x48] sm:$0xff]  }
 0x371   :  { %v4660_v10 = vpop.f32.mrf.mxu0  ;;  %v4949_v36 = vpop.f32.mrf.mxu1 }
 0x372   :  { %v4661_v7 = vadd.f32 %v4660_v10, %v4372_v19  ;;  %v5205_v50 = vmul.f32 0.01, %v4947_v29  ;;  %vm5141_vm6 = vcmp.gt.f32.partialorder %v4947_v29, 0.0 }
 0x373   :  { %v4662_v30 = vpop.f32.mrf.mxu0  ;;  %v4951_v4 = vpop.f32.mrf.mxu1 }
 0x374   :  { %v4950_v45 = vadd.f32 %v4949_v36, %v4661_v7  ;;  %v13156_v7 = vsel %vm5141_vm6, %v4947_v29, %v5205_v50  ;;  %v11747_v29 = vld [vmem:[%s15191_s2 + $0x50] sm:$0xff]   ;;  %v4385_v50 = vadd.f32 %v12945_v26, %v12698_v12  ;;  %v4388_v12 = vadd.f32 %v12945_v26, %v12703_v31  ;;  %v11750_v31 = vld [vmem:[%s15192_s3 + $0x58] sm:$0xff]  }
 0x375   :  { %v4665_v19 = vpop.f32.mrf.mxu0  ;;  %10654 = vmatmul.mubr.msk.bf16.gmra.mxu0 %vm5577_vm13, %v11741_v5  ;;  %v4954_v17 = vpop.f32.mrf.mxu1  ;;  %10720 = vmatmul.mubr.msk.bf16.gmra.mxu1 %vm5577_vm13, %v11742_v40  ;;  %v11745_v40 = vld [vmem:[%s15191_s2 + $0x48] sm:$0xff]  }
 0x376   :  { %vm5142_vm7 = vcmp.gt.f32.partialorder %v4950_v45, 0.0  ;;  %v5206_v44 = vmul.f32 0.01, %v4950_v45  ;;  %v4666_v10 = vadd.f32 %v4665_v19, %v4377_v43  ;;  %10657 = vmatprep.mubr.msk.bf16.mxu0 %vm5577_vm13, %v11743_v6  ;;  %10723 = vmatprep.mubr.msk.bf16.mxu1 %vm5577_vm13, %v11744_v39  ;;  %v11748_v39 = vld [vmem:[%s15192_s3 + $0x50] sm:$0xff]  }
 0x377   :  { %v4667_v30 = vpop.f32.mrf.mxu0  ;;  %v4956_v5 = vpop.f32.mrf.mxu1 }
 0x378   :  { %v13158_v36 = vsel %vm5142_vm7, %v4950_v45, %v5206_v44  ;;  %v4955_v4 = vadd.f32 %v4954_v17, %v4666_v10 }
 0x379   :  { %v4668_v19 = vpop.f32.mrf.mxu0  ;;  %v4957_v30 = vpop.f32.mrf.mxu1 }
 0x37a   :  { %v4669_v6 = vadd.f32 %v4668_v19, %v4380_v46  ;;  %v5207_v45 = vmul.f32 0.01, %v4955_v4  ;;  %vm5143_vm8 = vcmp.gt.f32.partialorder %v4955_v4, 0.0 }
 0x37b   :  { %v4670_v17 = vpop.f32.mrf.mxu0  ;;  %v4959_v10 = vpop.f32.mrf.mxu1 }
 0x37c   :  { %v4958_v44 = vadd.f32 %v4957_v30, %v4669_v6  ;;  %v13182_v6 = vsel %vm5143_vm8, %v4955_v4, %v5207_v45  ;;  %v11751_v4 = vld [vmem:[%s15191_s2 + $0x60] sm:$0xff]   ;;  %v4393_v45 = vadd.f32 %v12945_v26, %v12710_v41  ;;  %v4396_v41 = vadd.f32 %v12945_v26, %v12715_v58  ;;  %v11754_v58 = vld [vmem:[%s15192_s3 + $0x68] sm:$0xff]  }
 0x37d   :  { %v4673_v46 = vpop.f32.mrf.mxu0  ;;  %10658 = vmatmul.mubr.msk.bf16.gmra.mxu0 %vm5577_vm13, %v11745_v40  ;;  %v4962_v43 = vpop.f32.mrf.mxu1  ;;  %10724 = vmatmul.mubr.msk.bf16.gmra.mxu1 %vm5577_vm13, %v11746_v14  ;;  %v11749_v14 = vld [vmem:[%s15191_s2 + $0x58] sm:$0xff]  }
 0x37e   :  { %vm5144_vm9 = vcmp.gt.f32.partialorder %v4958_v44, 0.0  ;;  %v5208_v5 = vmul.f32 0.01, %v4958_v44  ;;  %v4674_v19 = vadd.f32 %v4673_v46, %v4385_v50  ;;  %10661 = vmatprep.mubr.msk.bf16.mxu0 %vm5577_vm13, %v11747_v29  ;;  %10727 = vmatprep.mubr.msk.bf16.mxu1 %vm5577_vm13, %v11748_v39  ;;  %v11752_v39 = vld [vmem:[%s15192_s3 + $0x60] sm:$0xff]  }
 0x37f   :  { %v4675_v17 = vpop.f32.mrf.mxu0  ;;  %v4964_v40 = vpop.f32.mrf.mxu1 }
 0x380   :  { %v13184_v30 = vsel %vm5144_vm9, %v4958_v44, %v5208_v5  ;;  %v4963_v10 = vadd.f32 %v4962_v43, %v4674_v19 }
 0x381   :  { %v4676_v46 = vpop.f32.mrf.mxu0  ;;  %v4965_v17 = vpop.f32.mrf.mxu1 }
 0x382   :  { %v4677_v29 = vadd.f32 %v4676_v46, %v4388_v12  ;;  %v5209_v44 = vmul.f32 0.01, %v4963_v10  ;;  %vm5145_vm10 = vcmp.gt.f32.partialorder %v4963_v10, 0.0 }
 0x383   :  { %v4678_v43 = vpop.f32.mrf.mxu0  ;;  %v4967_v19 = vpop.f32.mrf.mxu1 }
 0x384   :  { %v4966_v5 = vadd.f32 %v4965_v17, %v4677_v29  ;;  %v13208_v29 = vsel %vm5145_vm10, %v4963_v10, %v5209_v44  ;;  %v11755_v10 = vld [vmem:[%s15191_s2 + $0x70] sm:$0xff]   ;;  %v4401_v44 = vadd.f32 %v12945_v26, %v12722_v11  ;;  %v4404_v11 = vadd.f32 %v12945_v26, %v12727_v24  ;;  %v11758_v24 = vld [vmem:[%s15192_s3 + $0x78] sm:$0xff]  }
 0x385   :  { %v4681_v12 = vpop.f32.mrf.mxu0  ;;  %10662 = vmatmul.mubr.msk.bf16.gmra.mxu0 %vm5577_vm13, %v11749_v14  ;;  %v4970_v50 = vpop.f32.mrf.mxu1  ;;  %10728 = vmatmul.mubr.msk.bf16.gmra.mxu1 %vm5577_vm13, %v11750_v31  ;;  %v11753_v31 = vld [vmem:[%s15191_s2 + $0x68] sm:$0xff]  }
 0x386   :  { %vm5146_vm11 = vcmp.gt.f32.partialorder %v4966_v5, 0.0  ;;  %v5210_v40 = vmul.f32 0.01, %v4966_v5  ;;  %v4682_v46 = vadd.f32 %v4681_v12, %v4393_v45  ;;  %10665 = vmatprep.mubr.msk.bf16.mxu0 %vm5577_vm13, %v11751_v4  ;;  %10731 = vmatprep.mubr.msk.bf16.mxu1 %vm5577_vm13, %v11752_v39  ;;  %v11756_v39 = vld [vmem:[%s15192_s3 + $0x70] sm:$0xff]  }
 0x387   :  { %v4683_v43 = vpop.f32.mrf.mxu0  ;;  %v4972_v14 = vpop.f32.mrf.mxu1 }
 0x388   :  { %v13210_v17 = vsel %vm5146_vm11, %v4966_v5, %v5210_v40  ;;  %v4971_v19 = vadd.f32 %v4970_v50, %v4682_v46 }
 0x389   :  { %v4684_v12 = vpop.f32.mrf.mxu0  ;;  %v4973_v43 = vpop.f32.mrf.mxu1 }
 0x38a   :  { %v4685_v4 = vadd.f32 %v4684_v12, %v4396_v41  ;;  %v5211_v5 = vmul.f32 0.01, %v4971_v19  ;;  %vm5147_vm12 = vcmp.gt.f32.partialorder %v4971_v19, 0.0 }
 0x38b   :  { %v4686_v50 = vpop.f32.mrf.mxu0  ;;  %v4975_v46 = vpop.f32.mrf.mxu1 }
 0x38c   :  { %v4974_v40 = vadd.f32 %v4973_v43, %v4685_v4  ;;  %v13234_v4 = vsel %vm5147_vm12, %v4971_v19, %v5211_v5  ;;  %v11759_v19 = vld [vmem:[%s15191_s2 + $0x80] sm:$0xff]   ;;  %v4409_v5 = vadd.f32 %v12945_v26, %v12734_v38  ;;  %v4412_v38 = vadd.f32 %v12945_v26, %v12739_v54  ;;  %v11762_v54 = vld [vmem:[%s15192_s3 + $0x88] sm:$0xff]  }
 0x38d   :  { %v4689_v41 = vpop.f32.mrf.mxu0  ;;  %10666 = vmatmul.mubr.msk.bf16.gmra.mxu0 %vm5577_vm13, %v11753_v31  ;;  %v4978_v45 = vpop.f32.mrf.mxu1  ;;  %10732 = vmatmul.mubr.msk.bf16.gmra.mxu1 %vm5577_vm13, %v11754_v58  ;;  %v11757_v58 = vld [vmem:[%s15191_s2 + $0x78] sm:$0xff]  }
 0x38e   :  { %vm5148_vm14 = vcmp.gt.f32.partialorder %v4974_v40, 0.0  ;;  %v5212_v14 = vmul.f32 0.01, %v4974_v40  ;;  %v4690_v12 = vadd.f32 %v4689_v41, %v4401_v44  ;;  %10669 = vmatprep.mubr.msk.bf16.mxu0 %vm5577_vm13, %v11755_v10  ;;  %10735 = vmatprep.mubr.msk.bf16.mxu1 %vm5577_vm13, %v11756_v39  ;;  %v11760_v39 = vld [vmem:[%s15192_s3 + $0x80] sm:$0xff]  }
 0x38f   :  { %v4691_v50 = vpop.f32.mrf.mxu0  ;;  %v4980_v31 = vpop.f32.mrf.mxu1 }
 0x390   :  { %v13236_v43 = vsel %vm5148_vm14, %v4974_v40, %v5212_v14  ;;  %v4979_v46 = vadd.f32 %v4978_v45, %v4690_v12 }
 0x391   :  { %v4692_v41 = vpop.f32.mrf.mxu0  ;;  %v4981_v50 = vpop.f32.mrf.mxu1 }
 0x392   :  { %v4693_v10 = vadd.f32 %v4692_v41, %v4404_v11  ;;  %v5213_v40 = vmul.f32 0.01, %v4979_v46  ;;  %vm5149_vm15 = vcmp.gt.f32.partialorder %v4979_v46, 0.0 }
 0x393   :  { %v4694_v45 = vpop.f32.mrf.mxu0  ;;  %v4983_v12 = vpop.f32.mrf.mxu1 }
 0x394   :  { %v4982_v14 = vadd.f32 %v4981_v50, %v4693_v10  ;;  %v13260_v10 = vsel %vm5149_vm15, %v4979_v46, %v5213_v40  ;;  %v11765_v46 = vld [vmem:[%s15191_s2 + $0x90] sm:$0xff]   ;;  %v4417_v40 = vadd.f32 %v12945_v26, %v12746_v8  ;;  %v4420_v8 = vadd.f32 %v12945_v26, %v12751_v22  ;;  %v11768_v22 = vld [vmem:[%s15192_s3 + $0x98] sm:$0xff]   ;;  %v11769_v26 = vld [vmem:[%s15191_s2 + $0xa0] sm:$0xff]  }
 0x395   :  { %v4697_v11 = vpop.f32.mrf.mxu0  ;;  %10670 = vmatmul.mubr.msk.bf16.gmra.mxu0 %vm5577_vm13, %v11757_v58  ;;  %v4986_v44 = vpop.f32.mrf.mxu1  ;;  %10736 = vmatmul.mubr.msk.bf16.gmra.mxu1 %vm5577_vm13, %v11758_v24  ;;  %v11761_v24 = vld [vmem:[%s15191_s2 + $0x88] sm:$0xff]  }
 0x396   :  { %vm5150_vm0 = vcmp.gt.f32.partialorder %v4982_v14, 0.0  ;;  %v5214_v31 = vmul.f32 0.01, %v4982_v14  ;;  %v4698_v41 = vadd.f32 %v4697_v11, %v4409_v5  ;;  %10673 = vmatprep.mubr.msk.bf16.mxu0 %vm5577_vm13, %v11759_v19  ;;  %10739 = vmatprep.mubr.msk.bf16.mxu1 %vm5577_vm13, %v11760_v39  ;;  %v11766_v39 = vld [vmem:[%s15192_s3 + $0x90] sm:$0xff]  }
 0x397   :  { %v4699_v45 = vpop.f32.mrf.mxu0  ;;  %v4988_v58 = vpop.f32.mrf.mxu1 }
 0x398   :  { %v13262_v50 = vsel %vm5150_vm0, %v4982_v14, %v5214_v31  ;;  %v4987_v12 = vadd.f32 %v4986_v44, %v4698_v41  ;;  %vm7063_vm0 = vcmask 261120  }
 0x399   :  { %v4700_v11 = vpop.f32.mrf.mxu0  ;;  %v4989_v45 = vpop.f32.mrf.mxu1 }
 0x39a   :  { %v4701_v19 = vadd.f32 %v4700_v11, %v4412_v38  ;;  %v5215_v14 = vmul.f32 0.01, %v4987_v12  ;;  %vm5151_vm1 = vcmp.gt.f32.partialorder %v4987_v12, 0.0 }
 0x39b   :  { %v4702_v44 = vpop.f32.mrf.mxu0  ;;  %v4991_v41 = vpop.f32.mrf.mxu1 }
 0x39c   :  { %v4990_v31 = vadd.f32 %v4989_v45, %v4701_v19  ;;  %v13286_v19 = vsel %vm5151_vm1, %v4987_v12, %v5215_v14 }
 0x39d   :  { %v4705_v38 = vpop.f32.mrf.mxu0  ;;  %10674 = vmatmul.mubr.msk.bf16.gmra.mxu0 %vm5577_vm13, %v11761_v24  ;;  %v4994_v5 = vpop.f32.mrf.mxu1  ;;  %10740 = vmatmul.mubr.msk.bf16.gmra.mxu1 %vm5577_vm13, %v11762_v54  ;;  %v11767_v54 = vld [vmem:[%s15191_s2 + $0x98] sm:$0xff]  }
 0x39e   :  { %vm5152_vm2 = vcmp.gt.f32.partialorder %v4990_v31, 0.0  ;;  %v5216_v58 = vmul.f32 0.01, %v4990_v31  ;;  %v4706_v11 = vadd.f32 %v4705_v38, %v4417_v40  ;;  %10677 = vmatprep.mubr.msk.bf16.mxu0 %vm5577_vm13, %v11765_v46  ;;  %10743 = vmatprep.mubr.msk.bf16.mxu1 %vm5577_vm13, %v11766_v39  ;;  %v13307_v39 = vld [vmem:[%s15196_s7] ss:$0 sm:$0xff] }
 0x39f   :  { %v4707_v44 = vpop.f32.mrf.mxu0  ;;  %v4996_v24 = vpop.f32.mrf.mxu1  ;;  %v4425_v14 = vadd.f32 %v13307_v39, %v12758_v37  ;;  %v4428_v37 = vadd.f32 %v13307_v39, %v12763_v51  ;;  %v11772_v51 = vld [vmem:[%s15192_s3 + $0xa8] sm:$0xff]  }
 0x3a0   :  { %v13288_v45 = vsel %vm5152_vm2, %v4990_v31, %v5216_v58  ;;  %v4995_v41 = vadd.f32 %v4994_v5, %v4706_v11  ;;  %v11770_v5 = vld [vmem:[%s15192_s3 + $0xa0] sm:$0xff]  }
 0x3a1   :  { %v4708_v38 = vpop.f32.mrf.mxu0  ;;  %v4997_v44 = vpop.f32.mrf.mxu1 }
 0x3a2   :  { %v4709_v46 = vadd.f32 %v4708_v38, %v4420_v8  ;;  %v5217_v31 = vmul.f32 0.01, %v4995_v41  ;;  %vm5153_vm3 = vcmp.gt.f32.partialorder %v4995_v41, 0.0 }
 0x3a3   :  { %v4710_v12 = vpop.f32.mrf.mxu0  ;;  %v4999_v11 = vpop.f32.mrf.mxu1 }
 0x3a4   :  { %v4998_v58 = vadd.f32 %v4997_v44, %v4709_v46  ;;  %v13317_v46 = vsel %vm5153_vm3, %v4995_v41, %v5217_v31  ;;  %v11773_v41 = vld [vmem:[%s15191_s2 + $0xb0] sm:$0xff]  }
 0x3a5   :  { %v4713_v8 = vpop.f32.mrf.mxu0  ;;  %10678 = vmatmul.mubr.msk.bf16.gmra.mxu0 %vm5577_vm13, %v11767_v54  ;;  %v5002_v12 = vpop.f32.mrf.mxu1  ;;  %10744 = vmatmul.mubr.msk.bf16.gmra.mxu1 %vm5577_vm13, %v11768_v22  ;;  %v11771_v22 = vld [vmem:[%s15191_s2 + $0xa8] sm:$0xff]   ;;  %v11774_v31 = vld [vmem:[%s15192_s3 + $0xb0] sm:$0xff]  }
 0x3a6   :  { %vm5154_vm4 = vcmp.gt.f32.partialorder %v4998_v58, 0.0  ;;  %v5218_v24 = vmul.f32 0.01, %v4998_v58  ;;  %v4714_v38 = vadd.f32 %v4713_v8, %v4425_v14  ;;  %10681 = vmatprep.mubr.msk.bf16.mxu0 %vm5577_vm13, %v11769_v26  ;;  %10747 = vmatprep.mubr.msk.bf16.mxu1 %vm5577_vm13, %v11770_v5 }
 0x3a7   :  { %v4715_v40 = vpop.f32.mrf.mxu0  ;;  %v5004_v54 = vpop.f32.mrf.mxu1 }
 0x3a8   :  { %v13319_v44 = vsel %vm5154_vm4, %v4998_v58, %v5218_v24  ;;  %v5003_v11 = vadd.f32 %v5002_v12, %v4714_v38  ;;  %v4433_v58 = vadd.f32 %v13307_v39, %v12770_v13  ;;  %v4436_v13 = vadd.f32 %v13307_v39, %v12775_v20  ;;  %v11776_v20 = vld [vmem:[%s15192_s3 + $0xb8] sm:$0xff]  }
 0x3a9   :  { %v4716_v8 = vpop.f32.mrf.mxu0  ;;  %v5005_v26 = vpop.f32.mrf.mxu1 }
 0x3aa   :  { %v4717_v40 = vadd.f32 %v4716_v8, %v4428_v37  ;;  %v5219_v24 = vmul.f32 0.01, %v5003_v11  ;;  %vm5155_vm5 = vcmp.gt.f32.partialorder %v5003_v11, 0.0 }
 0x3ab   :  { %v4718_v5 = vpop.f32.mrf.mxu0  ;;  %v5007_v12 = vpop.f32.mrf.mxu1 }
 0x3ac   :  { %v5006_v38 = vadd.f32 %v5005_v26, %v4717_v40  ;;  %v13343_v40 = vsel %vm5155_vm5, %v5003_v11, %v5219_v24  ;;  %v11777_v11 = vld [vmem:[%s15191_s2 + $0xc0] sm:$0xff]   ;;  %v4441_v24 = vadd.f32 %v13307_v39, %v12782_v48  ;;  %v4444_v48 = vadd.f32 %v13307_v39, %v12787_v52  ;;  %v11780_v52 = vld [vmem:[%s15192_s3 + $0xc8] sm:$0xff]  }
 0x3ad   :  { %v4721_v37 = vpop.f32.mrf.mxu0  ;;  %10682 = vmatmul.mubr.msk.bf16.gmra.mxu0 %vm5577_vm13, %v11771_v22  ;;  %v5010_v14 = vpop.f32.mrf.mxu1  ;;  %10748 = vmatmul.mubr.msk.bf16.gmra.mxu1 %vm5577_vm13, %v11772_v51  ;;  %v11775_v51 = vld [vmem:[%s15191_s2 + $0xb8] sm:$0xff]  }
 0x3ae   :  { %vm5156_vm6 = vcmp.gt.f32.partialorder %v5006_v38, 0.0  ;;  %v5220_v54 = vmul.f32 0.01, %v5006_v38  ;;  %v4722_v8 = vadd.f32 %v4721_v37, %v4433_v58  ;;  %10685 = vmatprep.mubr.msk.bf16.mxu0 %vm5577_vm13, %v11773_v41  ;;  %10751 = vmatprep.mubr.msk.bf16.mxu1 %vm5577_vm13, %v11774_v31  ;;  %v11778_v31 = vld [vmem:[%s15192_s3 + $0xc0] sm:$0xff]  }
 0x3af   :  { %v4723_v5 = vpop.f32.mrf.mxu0  ;;  %v5012_v22 = vpop.f32.mrf.mxu1 }
 0x3b0   :  { %v13345_v26 = vsel %vm5156_vm6, %v5006_v38, %v5220_v54  ;;  %v5011_v12 = vadd.f32 %v5010_v14, %v4722_v8 }
 0x3b1   :  { %v4724_v37 = vpop.f32.mrf.mxu0  ;;  %v5013_v5 = vpop.f32.mrf.mxu1 }
 0x3b2   :  { %v4725_v41 = vadd.f32 %v4724_v37, %v4436_v13  ;;  %v5221_v38 = vmul.f32 0.01, %v5011_v12  ;;  %vm5157_vm7 = vcmp.gt.f32.partialorder %v5011_v12, 0.0 }
 0x3b3   :  { %v4726_v14 = vpop.f32.mrf.mxu0  ;;  %v5015_v8 = vpop.f32.mrf.mxu1 }
 0x3b4   :  { %v5014_v54 = vadd.f32 %v5013_v5, %v4725_v41  ;;  %v13369_v41 = vsel %vm5157_vm7, %v5011_v12, %v5221_v38  ;;  %v11781_v12 = vld [vmem:[%s15191_s2 + $0xd0] sm:$0xff]   ;;  %v4449_v38 = vadd.f32 %v13307_v39, %v12794_v28  ;;  %v4452_v28 = vadd.f32 %v13307_v39, %v15400_v33  ;;  %v11784_v33 = vld [vmem:[%s15192_s3 + $0xd8] sm:$0xff]  }
 0x3b5   :  { %v4729_v13 = vpop.f32.mrf.mxu0  ;;  %10686 = vmatmul.mubr.msk.bf16.gmra.mxu0 %vm5577_vm13, %v11775_v51  ;;  %v5018_v58 = vpop.f32.mrf.mxu1  ;;  %10752 = vmatmul.mubr.msk.bf16.gmra.mxu1 %vm5577_vm13, %v11776_v20  ;;  %v11779_v20 = vld [vmem:[%s15191_s2 + $0xc8] sm:$0xff]  }
 0x3b6   :  { %vm5158_vm8 = vcmp.gt.f32.partialorder %v5014_v54, 0.0  ;;  %v5222_v22 = vmul.f32 0.01, %v5014_v54  ;;  %v4730_v37 = vadd.f32 %v4729_v13, %v4441_v24  ;;  %10689 = vmatprep.mubr.msk.bf16.mxu0 %vm5577_vm13, %v11777_v11  ;;  %10755 = vmatprep.mubr.msk.bf16.mxu1 %vm5577_vm13, %v11778_v31  ;;  %v11782_v31 = vld [vmem:[%s15192_s3 + $0xd0] sm:$0xff]  }
 0x3b7   :  { %v4731_v14 = vpop.f32.mrf.mxu0  ;;  %v5020_v51 = vpop.f32.mrf.mxu1 }
 0x3b8   :  { %v13371_v5 = vsel %vm5158_vm8, %v5014_v54, %v5222_v22  ;;  %v5019_v8 = vadd.f32 %v5018_v58, %v4730_v37 }
 0x3b9   :  { %v4732_v13 = vpop.f32.mrf.mxu0  ;;  %v5021_v14 = vpop.f32.mrf.mxu1 }
 0x3ba   :  { %v4733_v11 = vadd.f32 %v4732_v13, %v4444_v48  ;;  %v5223_v54 = vmul.f32 0.01, %v5019_v8  ;;  %vm5159_vm9 = vcmp.gt.f32.partialorder %v5019_v8, 0.0 }
 0x3bb   :  { %v4734_v58 = vpop.f32.mrf.mxu0  ;;  %v5023_v37 = vpop.f32.mrf.mxu1 }
 0x3bc   :  { %v5022_v22 = vadd.f32 %v5021_v14, %v4733_v11  ;;  %v13395_v11 = vsel %vm5159_vm9, %v5019_v8, %v5223_v54  ;;  %v11785_v8 = vld [vmem:[%s15191_s2 + $0xe0] sm:$0xff]  }
 0x3bd   :  { %v4737_v48 = vpop.f32.mrf.mxu0  ;;  %10690 = vmatmul.mubr.msk.bf16.gmra.mxu0 %vm5577_vm13, %v11779_v20  ;;  %v5026_v24 = vpop.f32.mrf.mxu1  ;;  %10756 = vmatmul.mubr.msk.bf16.gmra.mxu1 %vm5577_vm13, %v11780_v52  ;;  %v11783_v52 = vld [vmem:[%s15191_s2 + $0xd8] sm:$0xff]   ;;  %v15401_v54 = vld [vmem:[#allocation11_spill] sm:$0xff] }
 0x3be   :  { %vm5160_vm10 = vcmp.gt.f32.partialorder %v5022_v22, 0.0  ;;  %v5224_v51 = vmul.f32 0.01, %v5022_v22  ;;  %v4738_v13 = vadd.f32 %v4737_v48, %v4449_v38  ;;  %10693 = vmatprep.mubr.msk.bf16.mxu0 %vm5577_vm13, %v11781_v12  ;;  %10759 = vmatprep.mubr.msk.bf16.mxu1 %vm5577_vm13, %v11782_v31  ;;  %v11786_v31 = vld [vmem:[%s15192_s3 + $0xe0] sm:$0xff]  }
 0x3bf   :  { %v4739_v58 = vpop.f32.mrf.mxu0  ;;  %v5028_v20 = vpop.f32.mrf.mxu1 }
 0x3c0   :  { %v13397_v14 = vsel %vm5160_vm10, %v5022_v22, %v5224_v51  ;;  %v5027_v37 = vadd.f32 %v5026_v24, %v4738_v13  ;;  %v4457_v22 = vadd.f32 %v13307_v39, %v15401_v54  ;;  %v4460_v54 = vadd.f32 %v13307_v39, %v15402_v57  ;;  %v11788_v57 = vld [vmem:[%s15192_s3 + $0xe8] sm:$0xff]  }
 0x3c1   :  { %v4740_v48 = vpop.f32.mrf.mxu0  ;;  %v5029_v58 = vpop.f32.mrf.mxu1 }
 0x3c2   :  { %v4741_v12 = vadd.f32 %v4740_v48, %v4452_v28  ;;  %v5225_v51 = vmul.f32 0.01, %v5027_v37  ;;  %vm5161_vm11 = vcmp.gt.f32.partialorder %v5027_v37, 0.0 }
 0x3c3   :  { %v4742_v24 = vpop.f32.mrf.mxu0  ;;  %v5031_v28 = vpop.f32.mrf.mxu1 }
 0x3c4   :  { %v5030_v13 = vadd.f32 %v5029_v58, %v4741_v12  ;;  %v13421_v12 = vsel %vm5161_vm11, %v5027_v37, %v5225_v51  ;;  %v11789_v37 = vld [vmem:[%s15191_s2 + $0xf0] sm:$0xff]  }
 0x3c5   :  { %v4745_v20 = vpop.f32.mrf.mxu0  ;;  %10694 = vmatmul.mubr.msk.bf16.gmra.mxu0 %vm5577_vm13, %v11783_v52  ;;  %v5034_v59 = vpop.f32.mrf.mxu1  ;;  %10760 = vmatmul.mubr.msk.bf16.gmra.mxu1 %vm5577_vm13, %v11784_v33  ;;  %15403 = vst [vmem:[#allocation31_spill] sm:$0xff] %v13421_v12  ;;  %v11787_v33 = vld [vmem:[%s15191_s2 + $0xe8] sm:$0xff]  }
 0x3c6   :  { %vm5162_vm12 = vcmp.gt.f32.partialorder %v5030_v13, 0.0  ;;  %v5226_v48 = vmul.f32 0.01, %v5030_v13  ;;  %v4746_v38 = vadd.f32 %v4745_v20, %v4457_v22  ;;  %10697 = vmatprep.mubr.msk.bf16.mxu0 %vm5577_vm13, %v11785_v8  ;;  %10763 = vmatprep.mubr.msk.bf16.mxu1 %vm5577_vm13, %v11786_v31  ;;  %v15405_v31 = vld [vmem:[#allocation13_spill] sm:$0xff] }
 0x3c7   :  { %v4747_v24 = vpop.f32.mrf.mxu0  ;;  %v5036_v52 = vpop.f32.mrf.mxu1  ;;  %v4465_v51 = vadd.f32 %v13307_v39, %v15405_v31  ;;  %v4468_v31 = vadd.f32 %v13307_v39, %v15406_v2  ;;  %v11792_v2 = vld [vmem:[%s15192_s3 + $0xf8] sm:$0xff]  }
 0x3c8   :  { %v13423_v58 = vsel %vm5162_vm12, %v5030_v13, %v5226_v48  ;;  %v5035_v28 = vadd.f32 %v5034_v59, %v4746_v38  ;;  %v11790_v38 = vld [vmem:[%s15192_s3 + $0xf0] sm:$0xff]  }
 0x3c9   :  { %15404 = vst [vmem:[#allocation72_spill] sm:$0xff] %v13423_v58  ;;  %v4748_v20 = vpop.f32.mrf.mxu0  ;;  %v5037_v24 = vpop.f32.mrf.mxu1 }
 0x3ca   :  { %v4749_v8 = vadd.f32 %v4748_v20, %v4460_v54  ;;  %v5227_v13 = vmul.f32 0.01, %v5035_v28  ;;  %vm5163_vm14 = vcmp.gt.f32.partialorder %v5035_v28, 0.0 }
 0x3cb   :  { %v4750_v59 = vpop.f32.mrf.mxu0  ;;  %v5039_v54 = vpop.f32.mrf.mxu1 }
 0x3cc   :  { %v5038_v48 = vadd.f32 %v5037_v24, %v4749_v8  ;;  %v13447_v8 = vsel %vm5163_vm14, %v5035_v28, %v5227_v13 }
 0x3cd   :  { %v4753_v52 = vpop.f32.mrf.mxu0  ;;  %10698 = vmatmul.mubr.msk.bf16.gmra.mxu0 %vm5577_vm13, %v11787_v33  ;;  %v5042_v18 = vpop.f32.mrf.mxu1  ;;  %10764 = vmatmul.mubr.msk.bf16.gmra.mxu1 %vm5577_vm13, %v11788_v57  ;;  %15407 = vst [vmem:[#allocation11_spill] sm:$0xff] %v13447_v8  ;;  %v11791_v57 = vld [vmem:[%s15191_s2 + $0xf8] sm:$0xff]  }
 0x3ce   :  { %vm5164_vm15 = vcmp.gt.f32.partialorder %v5038_v48, 0.0  ;;  %v5228_v20 = vmul.f32 0.01, %v5038_v48  ;;  %v4754_v22 = vadd.f32 %v4753_v52, %v4465_v51  ;;  %10701 = vmatprep.mubr.msk.bf16.mxu0 %vm5577_vm13, %v11789_v37  ;;  %10767 = vmatprep.mubr.msk.bf16.mxu1 %vm5577_vm13, %v11790_v38  ;;  %v15409_v38 = vld [vmem:[#allocation15_spill] sm:$0xff]  ;;  %v15411_v51 = vld [vmem:[#allocation33_spill] sm:$0xff] }
 0x3cf   :  { %v4755_v59 = vpop.f32.mrf.mxu0  ;;  %v5044_v33 = vpop.f32.mrf.mxu1 }
 0x3d0   :  { %v13449_v24 = vsel %vm5164_vm15, %v5038_v48, %v5228_v20  ;;  %v5043_v54 = vadd.f32 %v5042_v18, %v4754_v22  ;;  %v4473_v18 = vadd.f32 %v13307_v39, %v15409_v38  ;;  %v15412_v38 = vld [vmem:[#allocation32_spill] sm:$0xff] }
 0x3d1   :  { %15408 = vst [vmem:[#allocation12_spill] sm:$0xff] %v13449_v24  ;;  %v4756_v52 = vpop.f32.mrf.mxu0  ;;  %v5045_v59 = vpop.f32.mrf.mxu1  ;;  %v15413_v8 = vpack.c.bf16 %v15411_v51, %v15412_v38  ;;  %v15415_v51 = vld [vmem:[#allocation17_spill] sm:$0xff] }
 0x3d2   :  { %v4757_v37 = vadd.f32 %v4756_v52, %v4468_v31  ;;  %v5229_v22 = vmul.f32 0.01, %v5043_v54  ;;  %vm5165_vm1 = vcmp.gt.f32.partialorder %v5043_v54, 0.0 }
 0x3d3   :  { %v4758_v28 = vpop.f32.mrf.mxu0  ;;  %v5047_v48 = vpop.f32.mrf.mxu1 }
 0x3d4   :  { %v5046_v13 = vadd.f32 %v5045_v59, %v4757_v37  ;;  %v15410_v28 = vpack.c.bf16 %v12966_v35, %v12964_v62  ;;  %v15414_v59 = vld [vmem:[#allocation16_spill] sm:$0xff]  ;;  %v13473_v48 = vsel %vm5165_vm1, %v5043_v54, %v5229_v22  ;;  %v11795_v54 = vld [vmem:[%s15201_s12 + $0x20] sm:$0xff]  }
 0x3d5   :  { %v4761_v20 = vpop.f32.mrf.mxu0  ;;  %10702 = vmatmul.mubr.msk.bf16.gmra.mxu0 %vm5577_vm13, %v11791_v57  ;;  %v5050_v52 = vpop.f32.mrf.mxu1  ;;  %10768 = vmatmul.mubr.msk.bf16.gmra.mxu1 %vm5577_vm13, %v11792_v2  ;;  %v4476_v57 = vadd.f32 %v13307_v39, %v15414_v59 }
 0x3d6   :  { %vm5166_vm2 = vcmp.gt.f32.partialorder %v5046_v13, 0.0  ;;  %v5230_v33 = vmul.f32 0.01, %v5046_v13  ;;  %v4762_v31 = vadd.f32 %v4761_v20, %v4473_v18  ;;  %10775 = vmatprep.mubr.msk.bf16.mxu0 %vm7063_vm0, %v15410_v28  ;;  %10843 = vmatprep.mubr.msk.bf16.mxu1 %vm7063_vm0, %v15413_v8  ;;  %v4481_v8 = vadd.f32 %v13307_v39, %v15415_v51 }
 0x3d7   :  { %v4763_v37 = vpop.f32.mrf.mxu0  ;;  %v5052_v2 = vpop.f32.mrf.mxu1 }
 0x3d8   :  { %v13475_v18 = vsel %vm5166_vm2, %v5046_v13, %v5230_v33  ;;  %v5051_v20 = vadd.f32 %v5050_v52, %v4762_v31  ;;  %v15416_v13 = vpack.c.bf16 %v12976_v56, %v12974_v0  ;;  %v15418_v52 = vld [vmem:[#allocation34_spill] sm:$0xff]  ;;  %v15422_v2 = vld [vmem:[#allocation37_spill] sm:$0xff] }
 0x3d9   :  { %v5335_v62 = vpack.c.bf16 %v13475_v18, %v13473_v48  ;;  %v4764_v35 = vpop.f32.mrf.mxu0  ;;  %v5053_v24 = vpop.f32.mrf.mxu1  ;;  %v15421_v0 = vld [vmem:[#allocation18_spill] sm:$0xff]  ;;  %v13780_v48 = vld [vmem:[%s15198_s9] ss:$0 sm:$0xff] }
 0x3da   :  { %v4765_v28 = vadd.f32 %v4764_v35, %v4476_v57  ;;  %v5231_v38 = vmul.f32 0.01, %v5051_v20  ;;  %vm5167_vm13 = vcmp.gt.f32.partialorder %v5051_v20, 0.0  ;;  %v15420_v57 = vpack.c.bf16 %v12986_v9, %v12984_v1  ;;  %v15423_v35 = vld [vmem:[#allocation36_spill] sm:$0xff]  ;;  %v13785_v18 = vld [vmem:[%s15200_s11] ss:$0 sm:$0xff] }
 0x3db   :  { %v4766_v12 = vpop.f32.mrf.mxu0  ;;  %v5055_v58 = vpop.f32.mrf.mxu1  ;;  %v4484_v56 = vadd.f32 %v13307_v39, %v15421_v0 }
 0x3dc   :  { %v5054_v37 = vadd.f32 %v5053_v24, %v4765_v28  ;;  %v11796_v12 = vld [vmem:[%s15201_s12 + $0x30] sm:$0xff]   ;;  %v15417_v58 = vld [vmem:[#allocation35_spill] sm:$0xff]  ;;  %v15424_v28 = vpack.c.bf16 %v15422_v2, %v15423_v35 }
 0x3dd   :  { %v4769_v22 = vpop.f32.mrf.mxu0  ;;  %10776 = vmatmul.mubr.msk.bf16.vlgmr.msra.gmra.mxu0 %vm7063_vm0, %v15416_v13  ;;  %v5058_v24 = vpop.f32.mrf.mxu1  ;;  %v15419_v59 = vpack.c.bf16 %v15417_v58, %v15418_v52  ;;  %v15427_v2 = vld [vmem:[#allocation39_spill] sm:$0xff] }
 0x3de   :  { %vm5168_vm3 = vcmp.gt.f32.partialorder %v5054_v37, 0.0  ;;  %v5232_v33 = vmul.f32 0.01, %v5054_v37  ;;  %v4770_v31 = vadd.f32 %v4769_v22, %v4481_v8  ;;  %10779 = vmatprep.mubr.msk.bf16.mxu0 %vm7063_vm0, %v15420_v57  ;;  %10908 = vmatpush3.bf16.msra.mxu0 %v13089_v3  ;;  %v13506_v8 = vsel %vm5167_vm13, %v5051_v20, %v5231_v38  ;;  %v15425_v3 = vld [vmem:[#allocation19_spill] sm:$0xff] }
 0x3df   :  { %10844 = vmatmul.mubr.msk.bf16.vlgmr.msra.gmra.mxu1 %vm7063_vm0, %v15419_v59  ;;  %v4771_v51 = vpop.f32.mrf.mxu0  ;;  %v5060_v58 = vpop.f32.mrf.mxu1  ;;  %10909 = vmatprep.subr.bf16.mxu0 %v11795_v54  ;;  %v4489_v20 = vadd.f32 %v13307_v39, %v15425_v3 }
 0x3e0   :  { %10847 = vmatprep.mubr.msk.bf16.mxu1 %vm7063_vm0, %v15424_v28  ;;  %v13508_v22 = vsel %vm5168_vm3, %v5054_v37, %v5232_v33  ;;  %v5059_v13 = vadd.f32 %v5058_v24, %v4770_v31  ;;  %10976 = vmatpush3.bf16.msra.mxu1 %v13094_v47  ;;  %v15426_v47 = vpack.c.bf16 %v12996_v25, %v12994_v21  ;;  %v15432_v51 = vld [vmem:[#allocation40_spill] sm:$0xff] }
 0x3e1   :  { %v5336_v1 = vpack.c.bf16 %v13508_v22, %v13506_v8  ;;  %v4772_v9 = vpop.f32.mrf.mxu0  ;;  %10977 = vmatprep.subr.bf16.mxu1 %v11796_v12  ;;  %v5061_v59 = vpop.f32.mrf.mxu1  ;;  %v15430_v28 = vpack.c.bf16 %v13006_v42, %v13004_v55  ;;  %v15434_v25 = vld [vmem:[#allocation20_spill] sm:$0xff]  ;;  %v15525_v8 = vld [vmem:[#allocation81_spill] sm:$0xff] }
 0x3e2   :  { %v4773_v52 = vadd.f32 %v4772_v9, %v4484_v56  ;;  %10910 = vmatpush3.bf16.msra.mxu0 %v11795_v54  ;;  %v5233_v38 = vmul.f32 0.01, %v5059_v13  ;;  %vm5169_vm4 = vcmp.gt.f32.partialorder %v5059_v13, 0.0  ;;  %v15428_v54 = vld [vmem:[#allocation38_spill] sm:$0xff]  ;;  %v4492_v9 = vadd.f32 %v13307_v39, %v15434_v25  ;;  %v15442_v25 = vld [vmem:[#allocation44_spill] sm:$0xff] }
 0x3e3   :  { %v4774_v57 = vpop.f32.mrf.mxu0  ;;  %v5063_v33 = vpop.f32.mrf.mxu1  ;;  %v15429_v35 = vpack.c.bf16 %v15427_v2, %v15428_v54 }
 0x3e4   :  { %v5062_v37 = vadd.f32 %v5061_v59, %v4773_v52  ;;  %10978 = vmatpush3.bf16.msra.mxu1 %v11796_v12  ;;  %v15431_v12 = vld [vmem:[#allocation41_spill] sm:$0xff]  ;;  %v13533_v52 = vsel %vm5169_vm4, %v5059_v13, %v5233_v38  ;;  %v15436_v38 = vpack.c.bf16 %v13016_v60, %v13014_v27  ;;  %v15444_v60 = vld [vmem:[#allocation22_spill] sm:$0xff] }
 0x3e5   :  { %v4777_v31 = vpop.f32.mrf.mxu0  ;;  %10780 = vmatmul.mubr.msk.bf16.gmra.mxu0 %vm7063_vm0, %v15426_v47  ;;  %v5066_v56 = vpop.f32.mrf.mxu1  ;;  %v15433_v58 = vpack.c.bf16 %v15431_v12, %v15432_v51  ;;  %v15435_v47 = vld [vmem:[#allocation21_spill] sm:$0xff]  ;;  %v15438_v12 = vld [vmem:[#allocation42_spill] sm:$0xff] }
 0x3e6   :  { %vm5170_vm5 = vcmp.gt.f32.partialorder %v5062_v37, 0.0  ;;  %v5234_v24 = vmul.f32 0.01, %v5062_v37  ;;  %v4778_v0 = vadd.f32 %v4777_v31, %v4489_v20  ;;  %10783 = vmatprep.mubr.msk.bf16.mxu0 %vm7063_vm0, %v15430_v28  ;;  %v4497_v2 = vadd.f32 %v13307_v39, %v15435_v47 }
 0x3e7   :  { %10848 = vmatmul.mubr.msk.bf16.gmra.mxu1 %vm7063_vm0, %v15429_v35  ;;  %v4779_v21 = vpop.f32.mrf.mxu0  ;;  %v5068_v3 = vpop.f32.mrf.mxu1 }
 0x3e8   :  { %10851 = vmatprep.mubr.msk.bf16.mxu1 %vm7063_vm0, %v15433_v58  ;;  %v13535_v59 = vsel %vm5170_vm5, %v5062_v37, %v5234_v24  ;;  %v5067_v57 = vadd.f32 %v5066_v56, %v4778_v0  ;;  %v15437_v56 = vld [vmem:[#allocation43_spill] sm:$0xff]  ;;  %v15440_v58 = vpack.c.bf16 %v13034_v16, %v13032_v15  ;;  %v15441_v21 = vld [vmem:[#allocation45_spill] sm:$0xff]  ;;  %v4500_v3 = vadd.f32 %v13307_v39, %v15444_v60 }
 0x3e9   :  { %v5337_v55 = vpack.c.bf16 %v13535_v59, %v13533_v52  ;;  %v4780_v42 = vpop.f32.mrf.mxu0  ;;  %v5069_v33 = vpop.f32.mrf.mxu1  ;;  %v15439_v51 = vpack.c.bf16 %v15437_v56, %v15438_v12 }
 0x3ea   :  { %v4781_v20 = vadd.f32 %v4780_v42, %v4492_v9  ;;  %v5235_v54 = vmul.f32 0.01, %v5067_v57  ;;  %vm5171_vm6 = vcmp.gt.f32.partialorder %v5067_v57, 0.0  ;;  %v15443_v9 = vpack.c.bf16 %v15441_v21, %v15442_v25 }
 0x3eb   :  { %v4782_v31 = vpop.f32.mrf.mxu0  ;;  %v5071_v28 = vpop.f32.mrf.mxu1  ;;  %v15450_v25 = vpack.c.bf16 %v13105_v32, %v13103_v23 }
 0x3ec   :  { %v5070_v35 = vadd.f32 %v5069_v33, %v4781_v20  ;;  %v13559_v42 = vsel %vm5171_vm6, %v5067_v57, %v5235_v54  ;;  %v15446_v54 = vpack.c.bf16 %v13067_v63, %v13065_v49  ;;  %v15454_v63 = vld [vmem:[#allocation24_spill] sm:$0xff] }
 0x3ed   :  { %v4785_v13 = vpop.f32.mrf.mxu0  ;;  %10784 = vmatmul.mubr.msk.bf16.gmra.mxu0 %vm7063_vm0, %v15436_v38  ;;  %v5074_v0 = vpop.f32.mrf.mxu1 }
 0x3ee   :  { %vm5172_vm7 = vcmp.gt.f32.partialorder %v5070_v35, 0.0  ;;  %v5236_v37 = vmul.f32 0.01, %v5070_v35  ;;  %v4786_v24 = vadd.f32 %v4785_v13, %v4497_v2  ;;  %10787 = vmatprep.mubr.msk.bf16.mxu0 %vm7063_vm0, %v15440_v58  ;;  %v15445_v13 = vld [vmem:[#allocation23_spill] sm:$0xff]  ;;  %v15448_v58 = vld [vmem:[#allocation46_spill] sm:$0xff] }
 0x3ef   :  { %10852 = vmatmul.mubr.msk.bf16.gmra.mxu1 %vm7063_vm0, %v15439_v51  ;;  %v4787_v27 = vpop.f32.mrf.mxu0  ;;  %v5076_v31 = vpop.f32.mrf.mxu1  ;;  %v4505_v38 = vadd.f32 %v13307_v39, %v15445_v13 }
 0x3f0   :  { %10855 = vmatprep.mubr.msk.bf16.mxu1 %vm7063_vm0, %v15443_v9  ;;  %v13561_v20 = vsel %vm5172_vm7, %v5070_v35, %v5236_v37  ;;  %v5075_v33 = vadd.f32 %v5074_v0, %v4786_v24  ;;  %v15447_v0 = vld [vmem:[#allocation47_spill] sm:$0xff]  ;;  %v15451_v9 = vld [vmem:[#allocation49_spill] sm:$0xff]  ;;  %v15452_v27 = vld [vmem:[#allocation48_spill] sm:$0xff] }
 0x3f1   :  { %v5338_v15 = vpack.c.bf16 %v13561_v20, %v13559_v42  ;;  %v4788_v16 = vpop.f32.mrf.mxu0  ;;  %v5077_v2 = vpop.f32.mrf.mxu1  ;;  %v15449_v21 = vpack.c.bf16 %v15447_v0, %v15448_v58  ;;  %v15453_v60 = vpack.c.bf16 %v15451_v9, %v15452_v27  ;;  %v15460_v9 = vpack.c.bf16 %v13158_v36, %v13156_v7  ;;  %v15461_v27 = vld [vmem:[#allocation53_spill] sm:$0xff] }
 0x3f2   :  { %v4789_v47 = vadd.f32 %v4788_v16, %v4500_v3  ;;  %v5237_v56 = vmul.f32 0.01, %v5075_v33  ;;  %vm5173_vm8 = vcmp.gt.f32.partialorder %v5075_v33, 0.0  ;;  %v4508_v3 = vadd.f32 %v13307_v39, %v15454_v63  ;;  %v15532_v7 = vld [vmem:[#allocation85_spill] sm:$0xff] }
 0x3f3   :  { %v4790_v28 = vpop.f32.mrf.mxu0  ;;  %v5079_v51 = vpop.f32.mrf.mxu1 }
 0x3f4   :  { %v5078_v12 = vadd.f32 %v5077_v2, %v4789_v47  ;;  %v13585_v31 = vsel %vm5173_vm8, %v5075_v33, %v5237_v56  ;;  %v15455_v51 = vld [vmem:[#allocation25_spill] sm:$0xff]  ;;  %v15456_v56 = vpack.c.bf16 %v13132_v34, %v13130_v61  ;;  %v15464_v34 = vld [vmem:[#allocation26_spill] sm:$0xff] }
 0x3f5   :  { %v4793_v57 = vpop.f32.mrf.mxu0  ;;  %10788 = vmatmul.mubr.msk.bf16.gmra.mxu0 %vm7063_vm0, %v15446_v54  ;;  %v5082_v24 = vpop.f32.mrf.mxu1  ;;  %v4516_v63 = vadd.f32 %v13307_v39, %v15464_v34 }
 0x3f6   :  { %vm5174_vm9 = vcmp.gt.f32.partialorder %v5078_v12, 0.0  ;;  %v5238_v35 = vmul.f32 0.01, %v5078_v12  ;;  %v4794_v37 = vadd.f32 %v4793_v57, %v4505_v38  ;;  %10791 = vmatprep.mubr.msk.bf16.mxu0 %vm7063_vm0, %v15450_v25  ;;  %v4513_v57 = vadd.f32 %v13307_v39, %v15455_v51 }
 0x3f7   :  { %10856 = vmatmul.mubr.msk.bf16.gmra.mxu1 %vm7063_vm0, %v15449_v21  ;;  %v4795_v49 = vpop.f32.mrf.mxu0  ;;  %v5084_v2 = vpop.f32.mrf.mxu1  ;;  %v15458_v21 = vld [vmem:[#allocation50_spill] sm:$0xff] }
 0x3f8   :  { %10859 = vmatprep.mubr.msk.bf16.mxu1 %vm7063_vm0, %v15453_v60  ;;  %v13587_v16 = vsel %vm5174_vm9, %v5078_v12, %v5238_v35  ;;  %v5083_v47 = vadd.f32 %v5082_v24, %v4794_v37  ;;  %v15457_v24 = vld [vmem:[#allocation51_spill] sm:$0xff]  ;;  %v15462_v60 = vld [vmem:[#allocation52_spill] sm:$0xff] }
 0x3f9   :  { %v5339_v23 = vpack.c.bf16 %v13587_v16, %v13585_v31  ;;  %v4796_v32 = vpop.f32.mrf.mxu0  ;;  %v5085_v13 = vpop.f32.mrf.mxu1  ;;  %v15459_v25 = vpack.c.bf16 %v15457_v24, %v15458_v21  ;;  %v15463_v49 = vpack.c.bf16 %v15461_v27, %v15462_v60  ;;  %v15468_v21 = vld [vmem:[#allocation54_spill] sm:$0xff]  ;;  %v15471_v27 = vld [vmem:[#allocation57_spill] sm:$0xff]  ;;  %v15472_v60 = vld [vmem:[#allocation56_spill] sm:$0xff] }
 0x3fa   :  { %v4797_v28 = vadd.f32 %v4796_v32, %v4508_v3  ;;  %v5239_v54 = vmul.f32 0.01, %v5083_v47  ;;  %vm5175_vm10 = vcmp.gt.f32.partialorder %v5083_v47, 0.0 }
 0x3fb   :  { %v4798_v38 = vpop.f32.mrf.mxu0  ;;  %v5087_v58 = vpop.f32.mrf.mxu1 }
 0x3fc   :  { %v5086_v0 = vadd.f32 %v5085_v13, %v4797_v28  ;;  %v13611_v3 = vsel %vm5175_vm10, %v5083_v47, %v5239_v54  ;;  %v15466_v54 = vpack.c.bf16 %v13184_v30, %v13182_v6  ;;  %v15474_v30 = vld [vmem:[#allocation28_spill] sm:$0xff] }
 0x3fd   :  { %v4801_v33 = vpop.f32.mrf.mxu0  ;;  %10792 = vmatmul.mubr.msk.bf16.gmra.mxu0 %vm7063_vm0, %v15456_v56  ;;  %v5090_v37 = vpop.f32.mrf.mxu1 }
 0x3fe   :  { %vm5176_vm11 = vcmp.gt.f32.partialorder %v5086_v0, 0.0  ;;  %v5240_v12 = vmul.f32 0.01, %v5086_v0  ;;  %v4802_v35 = vadd.f32 %v4801_v33, %v4513_v57  ;;  %10795 = vmatprep.mubr.msk.bf16.mxu0 %vm7063_vm0, %v15460_v9  ;;  %v15465_v57 = vld [vmem:[#allocation27_spill] sm:$0xff]  ;;  %v15470_v9 = vpack.c.bf16 %v13210_v17, %v13208_v29 }
 0x3ff   :  { %10860 = vmatmul.mubr.msk.bf16.gmra.mxu1 %vm7063_vm0, %v15459_v25  ;;  %v4803_v61 = vpop.f32.mrf.mxu0  ;;  %v5092_v28 = vpop.f32.mrf.mxu1  ;;  %v4521_v58 = vadd.f32 %v13307_v39, %v15465_v57  ;;  %v15475_v57 = vld [vmem:[#allocation29_spill] sm:$0xff] }
 0x400   :  { %10863 = vmatprep.mubr.msk.bf16.mxu1 %vm7063_vm0, %v15463_v49  ;;  %v13613_v2 = vsel %vm5176_vm11, %v5086_v0, %v5240_v12  ;;  %v5091_v32 = vadd.f32 %v5090_v37, %v4802_v35  ;;  %v15467_v37 = vld [vmem:[#allocation55_spill] sm:$0xff]  ;;  %v15473_v49 = vpack.c.bf16 %v15471_v27, %v15472_v60  ;;  %v4524_v61 = vadd.f32 %v13307_v39, %v15474_v30  ;;  %v15482_v27 = vld [vmem:[#allocation60_spill] sm:$0xff] }
 0x401   :  { %v4804_v36 = vpop.f32.mrf.mxu0  ;;  %v5093_v38 = vpop.f32.mrf.mxu1  ;;  %v15469_v25 = vpack.c.bf16 %v15467_v37, %v15468_v21  ;;  %v15478_v37 = vld [vmem:[#allocation58_spill] sm:$0xff] }
 0x402   :  { %v4805_v13 = vadd.f32 %v4804_v36, %v4516_v63  ;;  %v5241_v33 = vmul.f32 0.01, %v5091_v32  ;;  %vm5177_vm12 = vcmp.gt.f32.partialorder %v5091_v32, 0.0 }
 0x403   :  { %v4806_v51 = vpop.f32.mrf.mxu0  ;;  %v5095_v24 = vpop.f32.mrf.mxu1 }
 0x404   :  { %v5094_v56 = vadd.f32 %v5093_v38, %v4805_v13  ;;  %v13637_v34 = vsel %vm5177_vm12, %v5091_v32, %v5241_v33  ;;  %v15476_v33 = vpack.c.bf16 %v13236_v43, %v13234_v4  ;;  %v4532_v43 = vadd.f32 %v13307_v39, %v12931_v53 }
 0x405   :  { %v4809_v47 = vpop.f32.mrf.mxu0  ;;  %10796 = vmatmul.mubr.msk.bf16.gmra.mxu0 %vm7063_vm0, %v15466_v54  ;;  %v5098_v35 = vpop.f32.mrf.mxu1 }
 0x406   :  { %vm5178_vm14 = vcmp.gt.f32.partialorder %v5094_v56, 0.0  ;;  %v5242_v0 = vmul.f32 0.01, %v5094_v56  ;;  %v4810_v12 = vadd.f32 %v4809_v47, %v4521_v58  ;;  %10799 = vmatprep.mubr.msk.bf16.mxu0 %vm7063_vm0, %v15470_v9  ;;  %v4529_v58 = vadd.f32 %v13307_v39, %v15475_v57  ;;  %v15481_v9 = vld [vmem:[#allocation61_spill] sm:$0xff] }
 0x407   :  { %10864 = vmatmul.mubr.msk.bf16.gmra.mxu1 %vm7063_vm0, %v15469_v25  ;;  %v4811_v6 = vpop.f32.mrf.mxu0  ;;  %v5100_v36 = vpop.f32.mrf.mxu1  ;;  %v15480_v25 = vpack.c.bf16 %v13262_v50, %v13260_v10  ;;  %v15483_v60 = vpack.c.bf16 %v15481_v9, %v15482_v27  ;;  %v15529_v10 = vld [vmem:[#allocation83_spill] sm:$0xff] }
 0x408   :  { %10867 = vmatprep.mubr.msk.bf16.mxu1 %vm7063_vm0, %v15473_v49  ;;  %v13639_v63 = vsel %vm5178_vm14, %v5094_v56, %v5242_v0  ;;  %v5099_v28 = vadd.f32 %v5098_v35, %v4810_v12  ;;  %v15477_v35 = vld [vmem:[#allocation59_spill] sm:$0xff] }
 0x409   :  { %v4812_v17 = vpop.f32.mrf.mxu0  ;;  %v5101_v38 = vpop.f32.mrf.mxu1  ;;  %v15479_v21 = vpack.c.bf16 %v15477_v35, %v15478_v37  ;;  %v15490_v35 = vld [vmem:[#allocation65_spill] sm:$0xff]  ;;  %v15491_v37 = vld [vmem:[#allocation64_spill] sm:$0xff] }
 0x40a   :  { %v4813_v13 = vadd.f32 %v4812_v17, %v4524_v61  ;;  %v5243_v24 = vmul.f32 0.01, %v5099_v28  ;;  %vm5179_vm15 = vcmp.gt.f32.partialorder %v5099_v28, 0.0 }
 0x40b   :  { %v4814_v51 = vpop.f32.mrf.mxu0  ;;  %v5103_v54 = vpop.f32.mrf.mxu1 }
 0x40c   :  { %v5102_v47 = vadd.f32 %v5101_v38, %v4813_v13  ;;  %v13663_v49 = vsel %vm5179_vm15, %v5099_v28, %v5243_v24  ;;  %v15484_v38 = vld [vmem:[#allocation94_spill] sm:$0xff]  ;;  %v15485_v28 = vpack.c.bf16 %v13288_v45, %v13286_v19  ;;  %v15493_v45 = vld [vmem:[#allocation95_spill] sm:$0xff] }
 0x40d   :  { %v4817_v32 = vpop.f32.mrf.mxu0  ;;  %10800 = vmatmul.mubr.msk.bf16.gmra.mxu0 %vm7063_vm0, %v15476_v33  ;;  %v5106_v12 = vpop.f32.mrf.mxu1  ;;  %v4537_v51 = vadd.f32 %v13307_v39, %v15484_v38  ;;  %v15486_v33 = vld [vmem:[#allocation63_spill] sm:$0xff] }
 0x40e   :  { %vm5180_vm1 = vcmp.gt.f32.partialorder %v5102_v47, 0.0  ;;  %v5244_v56 = vmul.f32 0.01, %v5102_v47  ;;  %v4818_v0 = vadd.f32 %v4817_v32, %v4529_v58  ;;  %10803 = vmatprep.mubr.msk.bf16.mxu0 %vm7063_vm0, %v15480_v25  ;;  %v4540_v25 = vadd.f32 %v13307_v39, %v15493_v45  ;;  %v15504_v45 = vld [vmem:[#allocation70_spill] sm:$0xff] }
 0x40f   :  { %10868 = vmatmul.mubr.msk.bf16.gmra.mxu1 %vm7063_vm0, %v15479_v21  ;;  %v4819_v4 = vpop.f32.mrf.mxu0  ;;  %v5108_v61 = vpop.f32.mrf.mxu1  ;;  %v15492_v21 = vpack.c.bf16 %v15490_v35, %v15491_v37  ;;  %v15494_v39 = vpack.c.bf16 %v13345_v26, %v13343_v40  ;;  %v15502_v37 = vpack.c.bf16 %v13397_v14, %v13395_v11 }
 0x410   :  { %10871 = vmatprep.mubr.msk.bf16.mxu1 %vm7063_vm0, %v15483_v60  ;;  %v13665_v6 = vsel %vm5180_vm1, %v5102_v47, %v5244_v56  ;;  %v5107_v30 = vadd.f32 %v5106_v12, %v4818_v0  ;;  %v15487_v56 = vld [vmem:[#allocation62_spill] sm:$0xff]  ;;  %v15489_v12 = vpack.c.bf16 %v13319_v44, %v13317_v46  ;;  %v15528_v46 = vld [vmem:[#allocation84_spill] sm:$0xff] }
 0x411   :  { %v4820_v50 = vpop.f32.mrf.mxu0  ;;  %v5109_v17 = vpop.f32.mrf.mxu1  ;;  %v15488_v0 = vpack.c.bf16 %v15486_v33, %v15487_v56  ;;  %v15530_v29 = vpack.c.bf16 %v15528_v46, %v15529_v10 }
 0x412   :  { %v4821_v36 = vadd.f32 %v4820_v50, %v4532_v43  ;;  %v5245_v57 = vmul.f32 0.01, %v5107_v30  ;;  %vm5181_vm2 = vcmp.gt.f32.partialorder %v5107_v30, 0.0 }
 0x413   :  { %v4822_v13 = vpop.f32.mrf.mxu0  ;;  %v5111_v54 = vpop.f32.mrf.mxu1 }
 0x414   :  { %v5110_v58 = vadd.f32 %v5109_v17, %v4821_v36  ;;  %v13689_v9 = vsel %vm5181_vm2, %v5107_v30, %v5245_v57  ;;  %v15495_v57 = vld [vmem:[#allocation67_spill] sm:$0xff] }
 0x415   :  { %v4825_v53 = vpop.f32.mrf.mxu0  ;;  %10804 = vmatmul.mubr.msk.bf16.gmra.mxu0 %vm7063_vm0, %v15485_v28  ;;  %v5114_v32 = vpop.f32.mrf.mxu1  ;;  %v15499_v28 = vld [vmem:[#allocation69_spill] sm:$0xff] }
 0x416   :  { %vm5182_vm13 = vcmp.gt.f32.partialorder %v5110_v58, 0.0  ;;  %v5246_v24 = vmul.f32 0.01, %v5110_v58  ;;  %v4826_v47 = vadd.f32 %v4825_v53, %v4537_v51  ;;  %10807 = vmatprep.mubr.msk.bf16.mxu0 %vm7063_vm0, %v15489_v12  ;;  %v15498_v53 = vpack.c.bf16 %v13371_v5, %v13369_v41 }
 0x417   :  { %10872 = vmatmul.mubr.msk.bf16.gmra.mxu1 %vm7063_vm0, %v15488_v0  ;;  %v4827_v19 = vpop.f32.mrf.mxu0  ;;  %v5116_v4 = vpop.f32.mrf.mxu1 }
 0x418   :  { %10875 = vmatprep.mubr.msk.bf16.mxu1 %vm7063_vm0, %v15492_v21  ;;  %v13691_v27 = vsel %vm5182_vm13, %v5110_v58, %v5246_v24  ;;  %v5115_v60 = vadd.f32 %v5114_v32, %v4826_v47  ;;  %v15496_v58 = vld [vmem:[#allocation66_spill] sm:$0xff]  ;;  %v15500_v24 = vld [vmem:[#allocation68_spill] sm:$0xff]  ;;  %v15503_v19 = vld [vmem:[#allocation71_spill] sm:$0xff] }
 0x419   :  { %v4828_v44 = vpop.f32.mrf.mxu0  ;;  %v5117_v61 = vpop.f32.mrf.mxu1  ;;  %v15497_v54 = vpack.c.bf16 %v15495_v57, %v15496_v58  ;;  %v15501_v47 = vpack.c.bf16 %v15499_v28, %v15500_v24  ;;  %v15507_v4 = vld [vmem:[#allocation31_spill] sm:$0xff]  ;;  %v15512_v57 = vld [vmem:[#allocation12_spill] sm:$0xff] }
 0x41a   :  { %v4829_v43 = vadd.f32 %v4828_v44, %v4540_v25  ;;  %v5247_v36 = vmul.f32 0.01, %v5115_v60  ;;  %vm5183_vm3 = vcmp.gt.f32.partialorder %v5115_v60, 0.0  ;;  %v15505_v25 = vpack.c.bf16 %v15503_v19, %v15504_v45  ;;  %v15513_v58 = vld [vmem:[#allocation11_spill] sm:$0xff]  ;;  %v15515_v28 = vld [vmem:[#allocation76_spill] sm:$0xff]  ;;  %v15519_v19 = vld [vmem:[#allocation77_spill] sm:$0xff] }
 0x41b   :  { %v4830_v50 = vpop.f32.mrf.mxu0  ;;  %v5119_v13 = vpop.f32.mrf.mxu1  ;;  %v15516_v24 = vld [vmem:[#allocation75_spill] sm:$0xff] }
 0x41c   :  { %v5118_v17 = vadd.f32 %v5117_v61, %v4829_v43  ;;  %v13711_v26 = vsel %vm5183_vm3, %v5115_v60, %v5247_v36  ;;  %v15506_v60 = vld [vmem:[#allocation72_spill] sm:$0xff]  ;;  %v15509_v43 = vld [vmem:[#allocation74_spill] sm:$0xff]  ;;  %v15510_v61 = vld [vmem:[#allocation73_spill] sm:$0xff] }
 0x41d   :  { %v10643_v38 = vpop.f32.mrf.mxu0  ;;  %10808 = vmatmul.mubr.msk.bf16.gmra.mxu0 %vm7063_vm0, %v15494_v39  ;;  %v10709_v51 = vpop.f32.mrf.mxu1  ;;  %v15508_v44 = vpack.c.bf16 %v15506_v60, %v15507_v4  ;;  %v15511_v50 = vpack.c.bf16 %v15509_v43, %v15510_v61 }
 0x41e   :  { %vm5184_vm4 = vcmp.gt.f32.partialorder %v5118_v17, 0.0  ;;  %v5248_v30 = vmul.f32 0.01, %v5118_v17  ;;  %10811 = vmatprep.mubr.msk.bf16.mxu0 %vm7063_vm0, %v15498_v53 }
 0x41f   :  { %10876 = vmatmul.mubr.msk.bf16.gmra.mxu1 %vm7063_vm0, %v15497_v54  ;;  %v5712_v40 = vpop.f32.mrf.mxu0  ;;  %v6556_v33 = vpop.f32.mrf.mxu1  ;;  %v15514_v54 = vpack.c.bf16 %v15512_v57, %v15513_v58  ;;  %v15521_v57 = vld [vmem:[#allocation80_spill] sm:$0xff]  ;;  %v15522_v58 = vld [vmem:[#allocation79_spill] sm:$0xff] }
 0x420   :  { %10879 = vmatprep.mubr.msk.bf16.mxu1 %vm7063_vm0, %v15501_v47  ;;  %v13713_v32 = vsel %vm5184_vm4, %v5118_v17, %v5248_v30  ;;  %v15517_v47 = vpack.c.bf16 %v15515_v28, %v15516_v24  ;;  %v5721_v28 = vadd.f32 %v10643_v38, %v13780_v48  ;;  %v6565_v24 = vadd.f32 %v10709_v51, %v13785_v18 }
 0x421   :  { %v10644_v0 = vpop.f32.mrf.mxu0  ;;  %v10710_v12 = vpop.f32.mrf.mxu1 }
 0x422   :  { %v6568_v38 = vadd.f32 %v10710_v12, %v13785_v18  ;;  %vm5969_vm5 = vcmp.gt.f32.partialorder %v5721_v28, 0.0  ;;  %vm6813_vm6 = vcmp.gt.f32.partialorder %v6565_v24, 0.0 }
 0x423   :  { %v5715_v35 = vpop.f32.mrf.mxu0  ;;  %v6559_v41 = vpop.f32.mrf.mxu1 }
 0x424   :  { %v5716_v51 = vadd.f32 %v13780_v48, %v5715_v35  ;;  %v6560_v59 = vadd.f32 %v13785_v18, %v6559_v41  ;;  %vm6814_vm9 = vcmp.gt.f32.partialorder %v6568_v38, 0.0 }
 0x425   :  { %v10647_v5 = vpop.f32.mrf.mxu0  ;;  %10812 = vmatmul.mubr.msk.bf16.gmra.mxu0 %vm7063_vm0, %v15502_v37  ;;  %v13721_v21 = vpop.f32.mrf.mxu1  ;;  %v15518_v37 = vld [vmem:[#allocation78_spill] sm:$0xff] }
 0x426   :  { %10815 = vmatprep.mubr.msk.bf16.mxu0 %vm7063_vm0, %v15508_v44  ;;  %v15520_v45 = vpack.c.bf16 %v15518_v37, %v15519_v19  ;;  %v5713_v37 = vadd.f32 %v13780_v48, %v5712_v40  ;;  %v5724_v19 = vadd.f32 %v10644_v0, %v13780_v48  ;;  %v6877_v0 = vmul.f32 0.01, %v6565_v24 }
 0x427   :  { %10880 = vmatmul.mubr.msk.bf16.gmra.mxu1 %vm7063_vm0, %v15505_v25  ;;  %v13735_v11 = vpop.f32.mrf.mxu0  ;;  %v13737_v14 = vpop.f32.mrf.mxu1  ;;  %vm5968_vm10 = vcmp.gt.f32.partialorder %v5716_v51, 0.0  ;;  %v5737_v41 = vadd.f32 %v10647_v5, %v13780_v48  ;;  %vm6812_vm11 = vcmp.gt.f32.partialorder %v6560_v59, 0.0  ;;  %v6581_v31 = vadd.f32 %v13721_v21, %v13785_v18 }
 0x428   :  { %10883 = vmatprep.mubr.msk.bf16.mxu1 %vm7063_vm0, %v15511_v50  ;;  %vm5967_vm7 = vcmp.gt.f32.partialorder %v5713_v37, 0.0  ;;  %vm5970_vm8 = vcmp.gt.f32.partialorder %v5724_v19, 0.0  ;;  %v6034_v35 = vmul.f32 0.01, %v5724_v19  ;;  %v13856_v10 = vsel %vm6813_vm6, %v6565_v24, %v6877_v0 }
 0x429   :  { %v13739_v36 = vpop.f32.mrf.mxu0  ;;  %v13741_v17 = vpop.f32.mrf.mxu1  ;;  %vm5973_vm14 = vcmp.gt.f32.partialorder %v5737_v41, 0.0  ;;  %vm6817_vm15 = vcmp.gt.f32.partialorder %v6581_v31, 0.0 }
 0x42a   :  { %v6584_v21 = vadd.f32 %v13741_v17, %v13785_v18 }
 0x42b   :  { %v13743_v13 = vpop.f32.mrf.mxu0  ;;  %v13745_v39 = vpop.f32.mrf.mxu1 }
 0x42c   :  { %vm6818_vm2 = vcmp.gt.f32.partialorder %v6584_v21, 0.0 }
 0x42d   :  { %v13747_v30 = vpop.f32.mrf.mxu0  ;;  %10816 = vmatmul.mubr.msk.bf16.gmra.mxu0 %vm7063_vm0, %v15514_v54  ;;  %v13753_v53 = vpop.f32.mrf.mxu1  ;;  %v15523_v54 = vpack.c.bf16 %v15521_v57, %v15522_v58  ;;  %v6033_v57 = vmul.f32 0.01, %v5721_v28  ;;  %v6557_v58 = vadd.f32 %v13785_v18, %v6556_v33  ;;  %v6876_v33 = vmul.f32 0.01, %v6560_v59 }
 0x42e   :  { %10819 = vmatprep.mubr.msk.bf16.mxu0 %vm7063_vm0, %v5335_v62 }
 0x42f   :  { %10884 = vmatmul.mubr.msk.bf16.gmra.mxu1 %vm7063_vm0, %v15517_v47  ;;  %v13767_v25 = vpop.f32.mrf.mxu0  ;;  %v13769_v60 = vpop.f32.mrf.mxu1  ;;  %v15524_v47 = vld [vmem:[#allocation82_spill] sm:$0xff]  ;;  %v13847_v42 = vsel %vm5969_vm5, %v5721_v28, %v6033_v57  ;;  %v6875_v20 = vmul.f32 0.01, %v6557_v58  ;;  %vm6811_vm12 = vcmp.gt.f32.partialorder %v6557_v58, 0.0  ;;  %v5740_v28 = vadd.f32 %v13739_v36, %v13780_v48 }
 0x430   :  { %10887 = vmatprep.mubr.msk.bf16.mxu1 %vm7063_vm0, %v15520_v45  ;;  %v15526_v22 = vpack.c.bf16 %v15524_v47, %v15525_v8  ;;  %v6878_v47 = vmul.f32 0.01, %v6568_v38  ;;  %v6032_v8 = vmul.f32 0.01, %v5716_v51  ;;  %v6037_v57 = vmul.f32 0.01, %v5737_v41 }
 0x431   :  { %v13771_v4 = vpop.f32.mrf.mxu0  ;;  %v13773_v44 = vpop.f32.mrf.mxu1  ;;  %v6573_v36 = vadd.f32 %v13785_v18, %v13737_v14  ;;  %v6576_v14 = vadd.f32 %v13785_v18, %v13745_v39  ;;  %vm5974_vm1 = vcmp.gt.f32.partialorder %v5740_v28, 0.0  ;;  %v15539_v39 = vpack.c.bf16 %v13639_v63, %v13637_v34 }
 0x432   :  { %v13872_v46 = vsel %vm5968_vm10, %v5716_v51, %v6032_v8  ;;  %v5729_v51 = vadd.f32 %v13780_v48, %v13735_v11  ;;  %v15537_v11 = vld [vmem:[#allocation87_spill] sm:$0xff]  ;;  %v5753_v34 = vadd.f32 %v13747_v30, %v13780_v48  ;;  %v5756_v30 = vadd.f32 %v13771_v4, %v13780_v48 }
 0x433   :  { %v13775_v43 = vpop.f32.mrf.mxu0  ;;  %v13787_v62 = vpop.f32.mrf.mxu1  ;;  %vm6815_vm4 = vcmp.gt.f32.partialorder %v6573_v36, 0.0  ;;  %vm6816_vm5 = vcmp.gt.f32.partialorder %v6576_v14, 0.0  ;;  %v6589_v4 = vadd.f32 %v13785_v18, %v13769_v60 }
 0x434   :  { %vm5971_vm3 = vcmp.gt.f32.partialorder %v5729_v51, 0.0  ;;  %vm5977_vm6 = vcmp.gt.f32.partialorder %v5753_v34, 0.0 }
 0x435   :  { %v13789_v61 = vpop.f32.mrf.mxu0  ;;  %10820 = vmatmul.mubr.msk.bf16.gmra.mxu0 %vm7063_vm0, %v5336_v1  ;;  %v13795_v50 = vpop.f32.mrf.mxu1 }
 0x436   :  { %10823 = vmatprep.mubr.msk.bf16.mxu0 %vm7063_vm0, %v5337_v55 }
 0x437   :  { %10888 = vmatmul.mubr.msk.bf16.gmra.mxu1 %vm7063_vm0, %v15523_v54  ;;  %v13811_v1 = vpop.f32.mrf.mxu0  ;;  %v13815_v45 = vpop.f32.mrf.mxu1  ;;  %v6031_v54 = vmul.f32 0.01, %v5713_v37 }
 0x438   :  { %10891 = vmatprep.mubr.msk.bf16.mxu1 %vm7063_vm0, %v15526_v22 }
 0x439   :  { %v13819_v52 = vpop.f32.mrf.mxu0  ;;  %v13822_v55 = vpop.f32.mrf.mxu1 }
 0x43b   :  { %v13825_v40 = vpop.f32.mrf.mxu0  ;;  %v13827_v12 = vpop.f32.mrf.mxu1 }
 0x43d   :  { %v13829_v22 = vpop.f32.mrf.mxu0  ;;  %10824 = vmatmul.mubr.msk.bf16.gmra.mxu0 %vm7063_vm0, %v5338_v15  ;;  %v13836_v56 = vpop.f32.mrf.mxu1  ;;  %v15531_v15 = vld [vmem:[#allocation86_spill] sm:$0xff] }
 0x43e   :  { %15527 = vst [vmem:[#allocation13_spill] sm:$0xff] %v13836_v56  ;;  %10827 = vmatprep.mubr.msk.bf16.mxu0 %vm7063_vm0, %v5339_v23  ;;  %v15533_v5 = vpack.c.bf16 %v15531_v15, %v15532_v7  ;;  %v13866_v23 = vsel %vm5970_vm8, %v5724_v19, %v6034_v35  ;;  %v13869_v7 = vsel %vm6814_vm9, %v6568_v38, %v6878_v47  ;;  %v6038_v47 = vmul.f32 0.01, %v5740_v28 }
 0x43f   :  { %10892 = vmatmul.mubr.msk.bf16.gmra.mxu1 %vm7063_vm0, %v15530_v29  ;;  %v13853_v56 = vpop.f32.mrf.mxu0  ;;  %v13859_v29 = vsel %vm5967_vm7, %v5713_v37, %v6031_v54  ;;  %v13863_v16 = vpop.f32.mrf.mxu1  ;;  %v13878_v37 = vsel %vm6812_vm11, %v6560_v59, %v6876_v33  ;;  %v5732_v19 = vadd.f32 %v13780_v48, %v13743_v13  ;;  %v13886_v38 = vsel %vm6811_vm12, %v6557_v58, %v6875_v20  ;;  %v15536_v54 = vld [vmem:[#allocation88_spill] sm:$0xff] }
 0x440   :  { %10895 = vmatprep.mubr.msk.bf16.mxu1 %vm7063_vm0, %v15533_v5  ;;  %v6881_v58 = vmul.f32 0.01, %v6581_v31  ;;  %v15534_v33 = vpack.c.bf16 %v13613_v2, %v13611_v3  ;;  %v13912_v20 = vsel %vm5973_vm14, %v5737_v41, %v6037_v57  ;;  %v6882_v15 = vmul.f32 0.01, %v6584_v21  ;;  %v15540_v41 = vld [vmem:[#allocation90_spill] sm:$0xff]  ;;  %v15541_v57 = vld [vmem:[#allocation89_spill] sm:$0xff] }
 0x441   :  { %v13876_v24 = vpop.f32.mrf.mxu0  ;;  %v13884_v0 = vpop.f32.mrf.mxu1  ;;  %v6036_v5 = vmul.f32 0.01, %v5732_v19  ;;  %v15538_v13 = vpack.c.bf16 %v15536_v54, %v15537_v11  ;;  %v6035_v3 = vmul.f32 0.01, %v5729_v51  ;;  %v6879_v2 = vmul.f32 0.01, %v6573_v36 }
 0x442   :  { %vm5972_vm13 = vcmp.gt.f32.partialorder %v5732_v19, 0.0  ;;  %v13931_v54 = vsel %vm6817_vm15, %v6581_v31, %v6881_v58  ;;  %v6880_v11 = vmul.f32 0.01, %v6576_v14  ;;  %v5745_v58 = vadd.f32 %v13780_v48, %v13767_v25 }
 0x443   :  { %v13892_v59 = vpop.f32.mrf.mxu0  ;;  %v13900_v35 = vpop.f32.mrf.mxu1  ;;  %v13946_v31 = vsel %vm5972_vm13, %v5732_v19, %v6036_v5  ;;  %v6042_v25 = vmul.f32 0.01, %v5756_v30  ;;  %vm5978_vm9 = vcmp.gt.f32.partialorder %v5756_v30, 0.0  ;;  %vm6819_vm12 = vcmp.gt.f32.partialorder %v6589_v4, 0.0 }
 0x444   :  { %v6039_v60 = vmul.f32 0.01, %v5745_v58  ;;  %vm5975_vm8 = vcmp.gt.f32.partialorder %v5745_v58, 0.0 }
 0x445   :  { %v13906_v8 = vpop.f32.mrf.mxu0  ;;  %10828 = vmatmul.mubr.msk.bf16.gmra.mxu0 %vm7063_vm0, %v15534_v33  ;;  %v13914_v17 = vpop.f32.mrf.mxu1  ;;  %v15542_v33 = vpack.c.bf16 %v15540_v41, %v15541_v57  ;;  %v13944_v57 = vsel %vm6818_vm2, %v6584_v21, %v6882_v15  ;;  %v5748_v21 = vadd.f32 %v13780_v48, %v13775_v43  ;;  %v6041_v15 = vmul.f32 0.01, %v5753_v34 }
 0x446   :  { %15535 = vst [vmem:[#allocation14_spill] sm:$0xff] %v13914_v17  ;;  %10831 = vmatprep.mubr.msk.bf16.mxu0 %vm7063_vm0, %v15539_v39  ;;  %v6597_v39 = vadd.f32 %v13753_v53, %v13785_v18  ;;  %v6600_v53 = vadd.f32 %v13773_v44, %v13785_v18  ;;  %v13975_v43 = vsel %vm6816_vm5, %v6576_v14, %v6880_v11  ;;  %v15548_v44 = vld [vmem:[#allocation92_spill] sm:$0xff] }
 0x447   :  { %10896 = vmatmul.mubr.msk.bf16.gmra.mxu1 %vm7063_vm0, %v15538_v13  ;;  %v13928_v17 = vpop.f32.mrf.mxu0  ;;  %v13935_v63 = vpop.f32.mrf.mxu1  ;;  %v13938_v13 = vsel %vm5974_vm1, %v5740_v28, %v6038_v47  ;;  %v13954_v28 = vsel %vm5971_vm3, %v5729_v51, %v6035_v3  ;;  %v13956_v47 = vsel %vm6815_vm4, %v6573_v36, %v6879_v2  ;;  %v15547_v2 = vpack.c.bf16 %v13665_v6, %v13663_v49 }
 0x448   :  { %10899 = vmatprep.mubr.msk.bf16.mxu1 %vm7063_vm0, %v15542_v33  ;;  %15543 = vst [vmem:[#allocation15_spill] sm:$0xff] %v13935_v63  ;;  %v6885_v5 = vmul.f32 0.01, %v6597_v39  ;;  %vm6821_vm7 = vcmp.gt.f32.partialorder %v6597_v39, 0.0  ;;  %v6592_v36 = vadd.f32 %v13785_v18, %v13787_v62  ;;  %v15549_v63 = vld [vmem:[#allocation91_spill] sm:$0xff]  ;;  %v15551_v11 = vpack.c.bf16 %v13691_v27, %v13689_v9 }
 0x449   :  { %v13942_v41 = vpop.f32.mrf.mxu0  ;;  %v13952_v33 = vpop.f32.mrf.mxu1  ;;  %v15550_v14 = vpack.c.bf16 %v15548_v44, %v15549_v63  ;;  %v6886_v49 = vmul.f32 0.01, %v6600_v53  ;;  %v6040_v6 = vmul.f32 0.01, %v5748_v21  ;;  %v6883_v44 = vmul.f32 0.01, %v6589_v4 }
 0x44a   :  { %vm6822_vm10 = vcmp.gt.f32.partialorder %v6600_v53, 0.0  ;;  %vm5976_vm11 = vcmp.gt.f32.partialorder %v5748_v21, 0.0  ;;  %v14006_v27 = vsel %vm5977_vm6, %v5753_v34, %v6041_v15  ;;  %v6884_v63 = vmul.f32 0.01, %v6592_v36 }
 0x44b   :  { %v13962_v19 = vpop.f32.mrf.mxu0  ;;  %v13968_v51 = vpop.f32.mrf.mxu1  ;;  %v6613_v34 = vadd.f32 %v13795_v50, %v13785_v18  ;;  %vm6820_vm14 = vcmp.gt.f32.partialorder %v6592_v36, 0.0  ;;  %v6616_v50 = vadd.f32 %v13822_v55, %v13785_v18 }
 0x44c   :  { %15544 = vst [vmem:[#allocation33_spill] sm:$0xff] %v13962_v19  ;;  %15545 = vst [vmem:[#allocation32_spill] sm:$0xff] %v13968_v51 }
 0x44d   :  { %v13977_v3 = vpop.f32.mrf.mxu0  ;;  %10832 = vmatmul.mubr.msk.bf16.gmra.mxu0 %vm7063_vm0, %v15547_v2  ;;  %v13985_v51 = vpop.f32.mrf.mxu1  ;;  %v15552_v2 = vld [vmem:[#allocation93_spill] sm:$0xff]  ;;  %vm6825_vm1 = vcmp.gt.f32.partialorder %v6613_v34, 0.0  ;;  %vm6826_vm3 = vcmp.gt.f32.partialorder %v6616_v50, 0.0 }
 0x44e   :  { %15546 = vst [vmem:[#allocation16_spill] sm:$0xff] %v13977_v3  ;;  %10835 = vmatprep.mubr.msk.bf16.mxu0 %vm7063_vm0, %v15551_v11  ;;  %v15553_v3 = vld [vmem:[#allocation30_spill] sm:$0xff]  ;;  %v14016_v11 = vsel %vm5975_vm8, %v5745_v58, %v6039_v60  ;;  %v5772_v58 = vadd.f32 %v13819_v52, %v13780_v48  ;;  %v6608_v52 = vadd.f32 %v13785_v18, %v13827_v12  ;;  %v15558_v12 = vld [vmem:[#allocation97_spill] sm:$0xff] }
 0x44f   :  { %10900 = vmatmul.mubr.msk.bf16.gmra.mxu1 %vm7063_vm0, %v15550_v14  ;;  %v15554_v19 = vpack.c.bf16 %v15552_v2, %v15553_v3  ;;  %v13999_v62 = vpop.f32.mrf.mxu0  ;;  %v14003_v9 = vpop.f32.mrf.mxu1  ;;  %v14009_v14 = vsel %vm6821_vm7, %v6597_v39, %v6885_v5  ;;  %v14019_v2 = vsel %vm5978_vm9, %v5756_v30, %v6042_v25  ;;  %v14025_v39 = vsel %vm6822_vm10, %v6600_v53, %v6886_v49 }
 0x450   :  { %v14027_v5 = vsel %vm5976_vm11, %v5748_v21, %v6040_v6  ;;  %v14035_v30 = vsel %vm6819_vm12, %v6589_v4, %v6883_v44  ;;  %v5764_v53 = vadd.f32 %v13780_v48, %v13825_v40  ;;  %v15556_v4 = vpack.c.bf16 %v13713_v32, %v13711_v26  ;;  %v15559_v44 = vld [vmem:[#allocation96_spill] sm:$0xff] }
 0x451   :  { %10903 = vmatprep.mubr.msk.bf16.mxu1 %vm7063_vm0, %v15554_v19  ;;  %v5769_v19 = vadd.f32 %v13789_v61, %v13780_v48  ;;  %v14013_v3 = vpop.f32.mrf.mxu0  ;;  %v14023_v15 = vpop.f32.mrf.mxu1  ;;  %v5761_v61 = vadd.f32 %v13780_v48, %v13811_v1  ;;  %v6605_v1 = vadd.f32 %v13785_v18, %v13815_v45  ;;  %v15561_v26 = vpack.c.bf16 %v13872_v46, %v13859_v29 }
 0x452   :  { %v14070_v32 = vsel %vm6820_vm14, %v6592_v36, %v6884_v63  ;;  %v6046_v55 = vmul.f32 0.01, %v5772_v58  ;;  %v15562_v6 = vpack.c.bf16 %v13878_v37, %v13886_v38  ;;  %vm5982_vm13 = vcmp.gt.f32.partialorder %v5772_v58, 0.0 }
 0x453   :  { %v14033_v60 = vpop.f32.mrf.mxu0  ;;  %v14041_v25 = vpop.f32.mrf.mxu1  ;;  %vm5981_vm15 = vcmp.gt.f32.partialorder %v5769_v19, 0.0  ;;  %v6045_v21 = vmul.f32 0.01, %v5769_v19  ;;  %v6043_v40 = vmul.f32 0.01, %v5761_v61  ;;  %vm5979_vm2 = vcmp.gt.f32.partialorder %v5761_v61, 0.0 }
 0x454   :  { %v6887_v46 = vmul.f32 0.01, %v6605_v1  ;;  %vm5980_vm4 = vcmp.gt.f32.partialorder %v5764_v53, 0.0  ;;  %v6888_v36 = vmul.f32 0.01, %v6608_v52  ;;  %vm6823_vm5 = vcmp.gt.f32.partialorder %v6605_v1, 0.0 }
 0x455   :  { %v14047_v49 = vpop.f32.mrf.mxu0  ;;  %10836 = vmatmul.mubr.msk.bf16.gmra.mxu0 %vm7063_vm0, %v15556_v4  ;;  %v14059_v45 = vpop.f32.mrf.mxu1  ;;  %v6889_v4 = vmul.f32 0.01, %v6613_v34  ;;  %v14085_v37 = vsel %vm5981_vm15, %v5769_v19, %v6045_v21  ;;  %vm6824_vm6 = vcmp.gt.f32.partialorder %v6608_v52, 0.0 }
 0x456   :  { %15555 = vst [vmem:[#allocation17_spill] sm:$0xff] %v14047_v49  ;;  %15557 = vst [vmem:[#allocation35_spill] sm:$0xff] %v14059_v45  ;;  %v15560_v49 = vpack.c.bf16 %v15558_v12, %v15559_v44  ;;  %10911 = vmatprep.mubr.msk.bf16.mxu0 %vm7063_vm0, %v15561_v26  ;;  %v6044_v12 = vmul.f32 0.01, %v5764_v53  ;;  %v14093_v26 = vsel %vm5979_vm2, %v5761_v61, %v6043_v40 }
 0x457   :  { %v14076_v45 = vpop.f32.mrf.mxu0  ;;  %v14078_v29 = vpop.f32.mrf.mxu1  ;;  %v14112_v40 = vsel %vm6823_vm5, %v6605_v1, %v6887_v46  ;;  %v5780_v1 = vadd.f32 %v13780_v48, %v13892_v59 }
 0x458   :  { %10904 = vmatmul.mubr.msk.bf16.gmra.mxu1 %vm7063_vm0, %v15560_v49  ;;  %15563 = vst [vmem:[#allocation34_spill] sm:$0xff] %v14076_v45  ;;  %v6890_v49 = vmul.f32 0.01, %v6616_v50  ;;  %15564 = vst [vmem:[#allocation18_spill] sm:$0xff] %v14078_v29  ;;  %v14096_v29 = vsel %vm5982_vm13, %v5772_v58, %v6046_v55  ;;  %v14104_v21 = vsel %vm5980_vm4, %v5764_v53, %v6044_v12 }
 0x459   :  { %10979 = vmatprep.mubr.msk.bf16.mxu1 %vm7063_vm0, %v15562_v6  ;;  %v14080_v63 = vpop.f32.mrf.mxu0  ;;  %v14087_v38 = vpop.f32.mrf.mxu1  ;;  %v14090_v6 = vsel %vm6825_vm1, %v6613_v34, %v6889_v4  ;;  %v5777_v34 = vadd.f32 %v13780_v48, %v13853_v56  ;;  %v14114_v58 = vsel %vm6824_vm6, %v6608_v52, %v6888_v36  ;;  %v15568_v55 = vpack.c.bf16 %v13866_v23, %v13847_v42 }
 0x45a   :  { %15565 = vst [vmem:[#allocation37_spill] sm:$0xff] %v14080_v63  ;;  %15566 = vst [vmem:[#allocation36_spill] sm:$0xff] %v14087_v38  ;;  %v5785_v63 = vadd.f32 %v13829_v22, %v13780_v48  ;;  %v14102_v19 = vsel %vm6826_vm3, %v6616_v50, %v6890_v49  ;;  %v15567_v38 = vld [vmem:[#allocation13_spill] sm:$0xff]  ;;  %v5788_v22 = vadd.f32 %v13876_v24, %v13780_v48  ;;  %vm5984_vm12 = vcmp.gt.f32.partialorder %v5780_v1, 0.0 }
 0x45b   :  { %v14100_v44 = vpop.f32.mrf.mxu0  ;;  %v6629_v45 = vadd.f32 %v15567_v38, %v13785_v18  ;;  %v14110_v61 = vpop.f32.mrf.mxu1  ;;  %v6632_v50 = vadd.f32 %v13884_v0, %v13785_v18  ;;  %v6624_v52 = vadd.f32 %v13785_v18, %v13900_v35  ;;  %v15569_v0 = vpack.c.bf16 %v13869_v7, %v13856_v10 }
 0x45c   :  { %v15570_v42 = vpack.c.bf16 %v13946_v31, %v13954_v28  ;;  %vm5985_vm7 = vcmp.gt.f32.partialorder %v5785_v63, 0.0  ;;  %v6621_v35 = vadd.f32 %v13785_v18, %v13863_v16  ;;  %v15571_v10 = vpack.c.bf16 %v13975_v43, %v13956_v47 }
 0x45d   :  { %v14120_v53 = vpop.f32.mrf.mxu0  ;;  %10912 = vmatmul.mubr.msk.bf16.vlgmr.msra.gmra.mxu0 %vm7063_vm0, %v15568_v55  ;;  %v14132_v24 = vpop.f32.mrf.mxu1  ;;  %v6049_v28 = vmul.f32 0.01, %v5785_v63  ;;  %v6893_v4 = vmul.f32 0.01, %v6629_v45  ;;  %v6047_v49 = vmul.f32 0.01, %v5777_v34 }
 0x45e   :  { %10915 = vmatprep.mubr.msk.bf16.mxu0 %vm7063_vm0, %v15570_v42  ;;  %vm6829_vm8 = vcmp.gt.f32.partialorder %v6629_v45, 0.0  ;;  %vm5983_vm9 = vcmp.gt.f32.partialorder %v5777_v34, 0.0  ;;  %v6050_v46 = vmul.f32 0.01, %v5788_v22  ;;  %v6894_v36 = vmul.f32 0.01, %v6632_v50 }
 0x45f   :  { %v14152_v7 = vpop.f32.mrf.mxu0  ;;  %v14156_v12 = vpop.f32.mrf.mxu1  ;;  %vm5986_vm10 = vcmp.gt.f32.partialorder %v5788_v22, 0.0  ;;  %vm6830_vm11 = vcmp.gt.f32.partialorder %v6632_v50, 0.0  ;;  %v6048_v47 = vmul.f32 0.01, %v5780_v1  ;;  %v6892_v43 = vmul.f32 0.01, %v6624_v52 }
 0x460   :  { %10980 = vmatmul.mubr.msk.bf16.vlgmr.msra.gmra.mxu1 %vm7063_vm0, %v15569_v0  ;;  %15572 = vst [vmem:[#allocation19_spill] sm:$0xff] %v14156_v12  ;;  %v6891_v55 = vmul.f32 0.01, %v6621_v35  ;;  %vm6828_vm14 = vcmp.gt.f32.partialorder %v6624_v52, 0.0  ;;  %v5801_v0 = vadd.f32 %v13906_v8, %v13780_v48  ;;  %v14170_v23 = vsel %vm6829_vm8, %v6629_v45, %v6893_v4  ;;  %v15574_v8 = vld [vmem:[#allocation14_spill] sm:$0xff] }
 0x461   :  { %10983 = vmatprep.mubr.msk.bf16.mxu1 %vm7063_vm0, %v15571_v10  ;;  %v14158_v16 = vpop.f32.mrf.mxu0  ;;  %v14160_v38 = vpop.f32.mrf.mxu1  ;;  %v14167_v10 = vsel %vm5985_vm7, %v5785_v63, %v6049_v28  ;;  %v14173_v56 = vsel %vm5983_vm9, %v5777_v34, %v6047_v49  ;;  %vm6827_vm15 = vcmp.gt.f32.partialorder %v6621_v35, 0.0  ;;  %v14177_v59 = vsel %vm5986_vm10, %v5788_v22, %v6050_v46 }
 0x462   :  { %15573 = vst [vmem:[#allocation39_spill] sm:$0xff] %v14160_v38  ;;  %v14179_v38 = vsel %vm6830_vm11, %v6632_v50, %v6894_v36  ;;  %v6645_v12 = vadd.f32 %v15574_v8, %v13785_v18  ;;  %v5804_v63 = vadd.f32 %v13942_v41, %v13780_v48  ;;  %v15575_v45 = vpack.c.bf16 %v13938_v13, %v13912_v20 }
 0x463   :  { %v14164_v42 = vpop.f32.mrf.mxu0  ;;  %v14175_v31 = vpop.f32.mrf.mxu1  ;;  %v14191_v34 = vsel %vm5984_vm12, %v5780_v1, %v6048_v47  ;;  %v14193_v4 = vsel %vm6828_vm14, %v6624_v52, %v6892_v43  ;;  %v6648_v22 = vadd.f32 %v13952_v33, %v13785_v18  ;;  %v15576_v49 = vpack.c.bf16 %v13944_v57, %v13931_v54  ;;  %v15578_v52 = vld [vmem:[#allocation33_spill] sm:$0xff] }
 0x464   :  { %v15577_v41 = vpack.c.bf16 %v14027_v5, %v14016_v11  ;;  %v14207_v20 = vsel %vm6827_vm15, %v6621_v35, %v6891_v55  ;;  %v6053_v13 = vmul.f32 0.01, %v5801_v0  ;;  %v5793_v1 = vadd.f32 %v13780_v48, %v13928_v17  ;;  %v15580_v11 = vld [vmem:[#allocation15_spill] sm:$0xff]  ;;  %v15581_v35 = vld [vmem:[#allocation32_spill] sm:$0xff] }
 0x465   :  { %v14185_v28 = vpop.f32.mrf.mxu0  ;;  %10916 = vmatmul.mubr.msk.bf16.gmra.mxu0 %vm7063_vm0, %v15575_v45  ;;  %v14197_v50 = vpop.f32.mrf.mxu1  ;;  %v5796_v33 = vadd.f32 %v13780_v48, %v15578_v52  ;;  %v15579_v46 = vpack.c.bf16 %v14070_v32, %v14035_v30  ;;  %vm5989_vm1 = vcmp.gt.f32.partialorder %v5801_v0, 0.0  ;;  %v6637_v5 = vadd.f32 %v13785_v18, %v15580_v11  ;;  %v15585_v30 = vld [vmem:[#allocation16_spill] sm:$0xff] }
 0x466   :  { %10919 = vmatprep.mubr.msk.bf16.mxu0 %vm7063_vm0, %v15577_v41  ;;  %v6640_v17 = vadd.f32 %v13785_v18, %v15581_v35  ;;  %v6054_v43 = vmul.f32 0.01, %v5804_v63  ;;  %vm6833_vm2 = vcmp.gt.f32.partialorder %v6645_v12, 0.0  ;;  %v6897_v8 = vmul.f32 0.01, %v6645_v12 }
 0x467   :  { %v14217_v54 = vpop.f32.mrf.mxu0  ;;  %v14225_v36 = vpop.f32.mrf.mxu1  ;;  %vm5990_vm13 = vcmp.gt.f32.partialorder %v5804_v63, 0.0  ;;  %v6898_v45 = vmul.f32 0.01, %v6648_v22  ;;  %v14237_v41 = vsel %vm5989_vm1, %v5801_v0, %v6053_v13  ;;  %v6051_v52 = vmul.f32 0.01, %v5793_v1 }
 0x468   :  { %10984 = vmatmul.mubr.msk.bf16.gmra.mxu1 %vm7063_vm0, %v15576_v49  ;;  %vm6834_vm3 = vcmp.gt.f32.partialorder %v6648_v22, 0.0  ;;  %vm5987_vm4 = vcmp.gt.f32.partialorder %v5793_v1, 0.0  ;;  %v6895_v35 = vmul.f32 0.01, %v6637_v5  ;;  %vm5988_vm5 = vcmp.gt.f32.partialorder %v5796_v33, 0.0 }
 0x469   :  { %10987 = vmatprep.mubr.msk.bf16.mxu1 %vm7063_vm0, %v15579_v46  ;;  %v14233_v55 = vpop.f32.mrf.mxu0  ;;  %v14235_v49 = vpop.f32.mrf.mxu1  ;;  %v6052_v46 = vmul.f32 0.01, %v5796_v33  ;;  %v6896_v47 = vmul.f32 0.01, %v6640_v17  ;;  %vm6831_vm6 = vcmp.gt.f32.partialorder %v6637_v5, 0.0  ;;  %v14243_v32 = vsel %vm5990_vm13, %v5804_v63, %v6054_v43 }
 0x46a   :  { %15582 = vst [vmem:[#allocation38_spill] sm:$0xff] %v14233_v55  ;;  %15583 = vst [vmem:[#allocation41_spill] sm:$0xff] %v14235_v49  ;;  %vm6832_vm7 = vcmp.gt.f32.partialorder %v6640_v17, 0.0  ;;  %v5817_v49 = vadd.f32 %v15585_v30, %v13780_v48  ;;  %v15586_v13 = vpack.c.bf16 %v14019_v2, %v14006_v27  ;;  %v14256_v55 = vsel %vm6834_vm3, %v6648_v22, %v6898_v45 }
 0x46b   :  { %v14239_v11 = vpop.f32.mrf.mxu0  ;;  %v14241_v57 = vpop.f32.mrf.mxu1  ;;  %v6661_v63 = vadd.f32 %v13985_v51, %v13785_v18  ;;  %v15587_v30 = vpack.c.bf16 %v14025_v39, %v14009_v14  ;;  %v15588_v27 = vpack.c.bf16 %v14104_v21, %v14093_v26  ;;  %v14271_v2 = vsel %vm5987_vm4, %v5793_v1, %v6051_v52 }
 0x46c   :  { %15584 = vst [vmem:[#allocation40_spill] sm:$0xff] %v14239_v11  ;;  %v14254_v11 = vsel %vm6833_vm2, %v6645_v12, %v6897_v8  ;;  %v14274_v12 = vsel %vm5988_vm5, %v5796_v33, %v6052_v46  ;;  %v5820_v51 = vadd.f32 %v14013_v3, %v13780_v48  ;;  %v6664_v22 = vadd.f32 %v14023_v15, %v13785_v18 }
 0x46d   :  { %v14247_v0 = vpop.f32.mrf.mxu0  ;;  %10920 = vmatmul.mubr.msk.bf16.gmra.mxu0 %vm7063_vm0, %v15586_v13  ;;  %v14260_v43 = vpop.f32.mrf.mxu1  ;;  %v15589_v14 = vpack.c.bf16 %v14114_v58, %v14112_v40  ;;  %v14287_v26 = vsel %vm6831_vm6, %v6637_v5, %v6895_v35  ;;  %v14292_v1 = vsel %vm6832_vm7, %v6640_v17, %v6896_v47  ;;  %v5809_v3 = vadd.f32 %v13780_v48, %v13999_v62  ;;  %v15591_v13 = vld [vmem:[#allocation17_spill] sm:$0xff] }
 0x46e   :  { %10923 = vmatprep.mubr.msk.bf16.mxu0 %vm7063_vm0, %v15588_v27  ;;  %v6057_v58 = vmul.f32 0.01, %v5817_v49  ;;  %v5812_v33 = vadd.f32 %v13780_v48, %v14033_v60  ;;  %v6656_v5 = vadd.f32 %v13785_v18, %v14041_v25  ;;  %vm5993_vm8 = vcmp.gt.f32.partialorder %v5817_v49, 0.0 }
 0x46f   :  { %v14284_v39 = vpop.f32.mrf.mxu0  ;;  %v14296_v15 = vpop.f32.mrf.mxu1  ;;  %v6901_v47 = vmul.f32 0.01, %v6661_v63  ;;  %v6653_v62 = vadd.f32 %v13785_v18, %v14003_v9  ;;  %vm6837_vm9 = vcmp.gt.f32.partialorder %v6661_v63, 0.0  ;;  %v6058_v60 = vmul.f32 0.01, %v5820_v51 }
 0x470   :  { %10988 = vmatmul.mubr.msk.bf16.gmra.mxu1 %vm7063_vm0, %v15587_v30  ;;  %v6902_v46 = vmul.f32 0.01, %v6664_v22  ;;  %v6055_v25 = vmul.f32 0.01, %v5809_v3  ;;  %vm5994_vm10 = vcmp.gt.f32.partialorder %v5820_v51, 0.0  ;;  %vm6838_vm11 = vcmp.gt.f32.partialorder %v6664_v22, 0.0 }
 0x471   :  { %10991 = vmatprep.mubr.msk.bf16.mxu1 %vm7063_vm0, %v15589_v14  ;;  %v14304_v8 = vpop.f32.mrf.mxu0  ;;  %v14310_v45 = vpop.f32.mrf.mxu1  ;;  %v5833_v30 = vadd.f32 %v15591_v13, %v13780_v48  ;;  %v14320_v14 = vsel %vm5993_vm8, %v5817_v49, %v6057_v58  ;;  %vm5991_vm12 = vcmp.gt.f32.partialorder %v5809_v3, 0.0  ;;  %v6056_v9 = vmul.f32 0.01, %v5812_v33 }
 0x472   :  { %v6900_v40 = vmul.f32 0.01, %v6656_v5  ;;  %v15592_v52 = vpack.c.bf16 %v14096_v29, %v14085_v37  ;;  %v14328_v17 = vsel %vm6837_vm9, %v6661_v63, %v6901_v47  ;;  %vm5992_vm14 = vcmp.gt.f32.partialorder %v5812_v33, 0.0  ;;  %v15595_v63 = vld [vmem:[#allocation35_spill] sm:$0xff] }
 0x473   :  { %v14314_v35 = vpop.f32.mrf.mxu0  ;;  %v14318_v27 = vpop.f32.mrf.mxu1  ;;  %vm6836_vm15 = vcmp.gt.f32.partialorder %v6656_v5, 0.0  ;;  %v15593_v49 = vpack.c.bf16 %v14102_v19, %v14090_v6  ;;  %v15594_v58 = vpack.c.bf16 %v14191_v34, %v14173_v56  ;;  %vm6835_vm1 = vcmp.gt.f32.partialorder %v6653_v62, 0.0 }
 0x474   :  { %15590 = vst [vmem:[#allocation20_spill] sm:$0xff] %v14314_v35  ;;  %v6899_v35 = vmul.f32 0.01, %v6653_v62  ;;  %v14341_v29 = vsel %vm5994_vm10, %v5820_v51, %v6058_v60  ;;  %v14344_v37 = vsel %vm6838_vm11, %v6664_v22, %v6902_v46  ;;  %v6677_v47 = vadd.f32 %v15595_v63, %v13785_v18  ;;  %v15597_v51 = vld [vmem:[#allocation34_spill] sm:$0xff] }
 0x475   :  { %v14322_v21 = vpop.f32.mrf.mxu0  ;;  %10924 = vmatmul.mubr.msk.bf16.gmra.mxu0 %vm7063_vm0, %v15592_v52  ;;  %v14330_v13 = vpop.f32.mrf.mxu1  ;;  %v15596_v6 = vpack.c.bf16 %v14193_v4, %v14207_v20  ;;  %v14355_v56 = vsel %vm5991_vm12, %v5809_v3, %v6055_v25  ;;  %vm5997_vm2 = vcmp.gt.f32.partialorder %v5833_v30, 0.0  ;;  %v6061_v34 = vmul.f32 0.01, %v5833_v30  ;;  %v15599_v4 = vld [vmem:[#allocation37_spill] sm:$0xff] }
 0x476   :  { %10927 = vmatprep.mubr.msk.bf16.mxu0 %vm7063_vm0, %v15594_v58  ;;  %v5825_v52 = vadd.f32 %v13780_v48, %v15597_v51  ;;  %v14362_v60 = vsel %vm5992_vm14, %v5812_v33, %v6056_v9  ;;  %v14365_v46 = vsel %vm6836_vm15, %v6656_v5, %v6900_v40  ;;  %v5836_v20 = vadd.f32 %v15599_v4, %v13780_v48 }
 0x477   :  { %v14352_v19 = vpop.f32.mrf.mxu0  ;;  %v14359_v22 = vpop.f32.mrf.mxu1  ;;  %v14374_v58 = vsel %vm6835_vm1, %v6653_v62, %v6899_v35  ;;  %v5828_v40 = vadd.f32 %v13780_v48, %v14100_v44  ;;  %vm6841_vm13 = vcmp.gt.f32.partialorder %v6677_v47, 0.0  ;;  %v6905_v9 = vmul.f32 0.01, %v6677_v47 }
 0x478   :  { %10992 = vmatmul.mubr.msk.bf16.gmra.mxu1 %vm7063_vm0, %v15593_v49  ;;  %15598 = vst [vmem:[#allocation21_spill] sm:$0xff] %v14359_v22  ;;  %v15600_v49 = vld [vmem:[#allocation36_spill] sm:$0xff]  ;;  %v6672_v62 = vadd.f32 %v13785_v18, %v14110_v61  ;;  %v6171_v4 = vpack.c.bf16 %v14362_v60, %v14355_v56  ;;  %v14395_v44 = vsel %vm5997_vm2, %v5833_v30, %v6061_v34  ;;  %v6059_v33 = vmul.f32 0.01, %v5825_v52 }
 0x479   :  { %10995 = vmatprep.mubr.msk.bf16.mxu1 %vm7063_vm0, %v15596_v6  ;;  %v6680_v3 = vadd.f32 %v15600_v49, %v13785_v18  ;;  %v14371_v25 = vpop.f32.mrf.mxu0  ;;  %v14382_v5 = vpop.f32.mrf.mxu1  ;;  %v15602_v6 = vld [vmem:[#allocation18_spill] sm:$0xff]  ;;  %vm5995_vm3 = vcmp.gt.f32.partialorder %v5825_v52, 0.0  ;;  %v6062_v22 = vmul.f32 0.01, %v5836_v20  ;;  %v5849_v61 = vadd.f32 %v14120_v53, %v13780_v48 }
 0x47a   :  { %15601 = vst [vmem:[#allocation43_spill] sm:$0xff] %v14382_v5  ;;  %v6669_v51 = vadd.f32 %v13785_v18, %v15602_v6  ;;  %v15603_v56 = vpack.c.bf16 %v14177_v59, %v14167_v10  ;;  %vm5998_vm4 = vcmp.gt.f32.partialorder %v5836_v20, 0.0  ;;  %v6060_v30 = vmul.f32 0.01, %v5828_v40 }
 0x47b   :  { %v14388_v35 = vpop.f32.mrf.mxu0  ;;  %v14397_v63 = vpop.f32.mrf.mxu1  ;;  %v6906_v6 = vmul.f32 0.01, %v6680_v3  ;;  %vm6842_vm5 = vcmp.gt.f32.partialorder %v6680_v3, 0.0  ;;  %v6693_v34 = vadd.f32 %v14132_v24, %v13785_v18  ;;  %v15605_v49 = vpack.c.bf16 %v14179_v38, %v14170_v23 }
 0x47c   :  { %v15606_v53 = vpack.c.bf16 %v14274_v12, %v14271_v2  ;;  %v14420_v59 = vsel %vm6841_vm13, %v6677_v47, %v6905_v9  ;;  %v6903_v10 = vmul.f32 0.01, %v6669_v51  ;;  %vm5996_vm6 = vcmp.gt.f32.partialorder %v5828_v40, 0.0 }
 0x47d   :  { %v14401_v5 = vpop.f32.mrf.mxu0  ;;  %10928 = vmatmul.mubr.msk.bf16.gmra.mxu0 %vm7063_vm0, %v15603_v56  ;;  %v14409_v60 = vpop.f32.mrf.mxu1  ;;  %v6904_v56 = vmul.f32 0.01, %v6672_v62  ;;  %v15607_v24 = vpack.c.bf16 %v14292_v1, %v14287_v26  ;;  %v14429_v23 = vsel %vm5995_vm3, %v5825_v52, %v6059_v33  ;;  %vm6839_vm7 = vcmp.gt.f32.partialorder %v6669_v51, 0.0 }
 0x47e   :  { %15604 = vst [vmem:[#allocation42_spill] sm:$0xff] %v14409_v60  ;;  %10931 = vmatprep.mubr.msk.bf16.mxu0 %vm7063_vm0, %v15606_v53  ;;  %vm6840_vm8 = vcmp.gt.f32.partialorder %v6672_v62, 0.0  ;;  %v5852_v38 = vadd.f32 %v14158_v16, %v13780_v48  ;;  %v14436_v12 = vsel %vm5998_vm4, %v5836_v20, %v6062_v22  ;;  %v14439_v47 = vsel %vm6842_vm5, %v6680_v3, %v6906_v6  ;;  %v15609_v3 = vld [vmem:[#allocation39_spill] sm:$0xff] }
 0x47f   :  { %v14426_v60 = vpop.f32.mrf.mxu0  ;;  %v14433_v2 = vpop.f32.mrf.mxu1  ;;  %vm6001_vm9 = vcmp.gt.f32.partialorder %v5849_v61, 0.0  ;;  %v6065_v26 = vmul.f32 0.01, %v5849_v61  ;;  %v14443_v9 = vsel %vm5996_vm6, %v5828_v40, %v6060_v30  ;;  %v6909_v52 = vmul.f32 0.01, %v6693_v34 }
 0x480   :  { %10996 = vmatmul.mubr.msk.bf16.gmra.mxu1 %vm7063_vm0, %v15605_v49  ;;  %v5841_v33 = vadd.f32 %v13780_v48, %v14152_v7  ;;  %v15608_v49 = vld [vmem:[#allocation19_spill] sm:$0xff]  ;;  %v14451_v22 = vsel %vm6839_vm7, %v6669_v51, %v6903_v10  ;;  %v14453_v20 = vsel %vm6840_vm8, %v6672_v62, %v6904_v56  ;;  %vm6845_vm10 = vcmp.gt.f32.partialorder %v6693_v34, 0.0 }
 0x481   :  { %10999 = vmatprep.mubr.msk.bf16.mxu1 %vm7063_vm0, %v15607_v24  ;;  %v14441_v1 = vpop.f32.mrf.mxu0  ;;  %v6685_v16 = vadd.f32 %v13785_v18, %v15608_v49  ;;  %v14449_v53 = vpop.f32.mrf.mxu1  ;;  %v6696_v6 = vadd.f32 %v15609_v3, %v13785_v18  ;;  %v6066_v30 = vmul.f32 0.01, %v5852_v38  ;;  %v5844_v7 = vadd.f32 %v13780_v48, %v14164_v42 }
 0x482   :  { %v6688_v49 = vadd.f32 %v13785_v18, %v14175_v31  ;;  %v6173_v10 = vpack.c.bf16 %v14443_v9, %v14429_v23  ;;  %v14472_v56 = vsel %vm6001_vm9, %v5849_v61, %v6065_v26  ;;  %vm6002_vm11 = vcmp.gt.f32.partialorder %v5852_v38, 0.0 }
 0x483   :  { %v14457_v24 = vpop.f32.mrf.mxu0  ;;  %v14465_v51 = vpop.f32.mrf.mxu1  ;;  %v15612_v42 = vpack.c.bf16 %v14243_v32, %v14237_v41  ;;  %v7017_v31 = vpack.c.bf16 %v14453_v20, %v14451_v22  ;;  %v14482_v40 = vsel %vm6845_vm10, %v6693_v34, %v6909_v52  ;;  %v6063_v62 = vmul.f32 0.01, %v5841_v33  ;;  %v15616_v22 = vld [vmem:[#allocation38_spill] sm:$0xff] }
 0x484   :  { %15610 = vst [vmem:[#allocation45_spill] sm:$0xff] %v14457_v24  ;;  %15611 = vst [vmem:[#allocation44_spill] sm:$0xff] %v14465_v51  ;;  %v6907_v51 = vmul.f32 0.01, %v6685_v16  ;;  %v15613_v61 = vpack.c.bf16 %v14256_v55, %v14254_v11  ;;  %vm5999_vm12 = vcmp.gt.f32.partialorder %v5841_v33, 0.0  ;;  %vm6843_vm14 = vcmp.gt.f32.partialorder %v6685_v16, 0.0 }
 0x485   :  { %v14474_v3 = vpop.f32.mrf.mxu0  ;;  %10932 = vmatmul.mubr.msk.bf16.gmra.mxu0 %vm7063_vm0, %v15612_v42  ;;  %v14484_v24 = vpop.f32.mrf.mxu1  ;;  %vm6846_vm15 = vcmp.gt.f32.partialorder %v6696_v6, 0.0  ;;  %v6910_v32 = vmul.f32 0.01, %v6696_v6  ;;  %v15614_v41 = vpack.c.bf16 %v14365_v46, %v14374_v58  ;;  %v14498_v23 = vsel %vm6002_vm11, %v5852_v38, %v6066_v30 }
 0x486   :  { %10935 = vmatprep.mubr.msk.bf16.mxu0 %vm7063_vm0, %v6171_v4  ;;  %v6064_v26 = vmul.f32 0.01, %v5844_v7  ;;  %v6908_v55 = vmul.f32 0.01, %v6688_v49  ;;  %v5865_v11 = vadd.f32 %v14185_v28, %v13780_v48  ;;  %vm6000_vm1 = vcmp.gt.f32.partialorder %v5844_v7, 0.0 }
 0x487   :  { %v14495_v34 = vpop.f32.mrf.mxu0  ;;  %v14502_v4 = vpop.f32.mrf.mxu1  ;;  %vm6844_vm2 = vcmp.gt.f32.partialorder %v6688_v49, 0.0  ;;  %v6709_v9 = vadd.f32 %v14197_v50, %v13785_v18  ;;  %v5857_v46 = vadd.f32 %v13780_v48, %v14217_v54  ;;  %v14511_v38 = vsel %vm5999_vm12, %v5841_v33, %v6063_v62  ;;  %v15617_v54 = vld [vmem:[#allocation41_spill] sm:$0xff] }
 0x488   :  { %11000 = vmatmul.mubr.msk.bf16.gmra.mxu1 %vm7063_vm0, %v15613_v61  ;;  %15615 = vst [vmem:[#allocation22_spill] sm:$0xff] %v14502_v4  ;;  %v14514_v52 = vsel %vm6843_vm14, %v6685_v16, %v6907_v51  ;;  %v6701_v28 = vadd.f32 %v13785_v18, %v14225_v36  ;;  %v5868_v20 = vadd.f32 %v15616_v22, %v13780_v48  ;;  %v15618_v61 = vld [vmem:[#allocation40_spill] sm:$0xff]  ;;  %v6069_v22 = vmul.f32 0.01, %v5865_v11 }
 0x489   :  { %11003 = vmatprep.mubr.msk.bf16.mxu1 %vm7063_vm0, %v15614_v41  ;;  %v14508_v58 = vpop.f32.mrf.mxu0  ;;  %v14520_v30 = vpop.f32.mrf.mxu1  ;;  %v6712_v42 = vadd.f32 %v15617_v54, %v13785_v18  ;;  %v5860_v33 = vadd.f32 %v13780_v48, %v15618_v61  ;;  %v6704_v16 = vadd.f32 %v13785_v18, %v14241_v57  ;;  %v14533_v36 = vsel %vm6846_vm15, %v6696_v6, %v6910_v32 }
 0x48a   :  { %v6128_v62 = vsel %vm6000_vm1, %v5844_v7, %v6064_v26  ;;  %v14537_v41 = vsel %vm6844_vm2, %v6688_v49, %v6908_v55  ;;  %vm6005_vm13 = vcmp.gt.f32.partialorder %v5865_v11, 0.0  ;;  %vm6849_vm3 = vcmp.gt.f32.partialorder %v6709_v9, 0.0 }
 0x48b   :  { %v14530_v51 = vpop.f32.mrf.mxu0  ;;  %v14539_v50 = vpop.f32.mrf.mxu1  ;;  %v6913_v54 = vmul.f32 0.01, %v6709_v9  ;;  %v6067_v61 = vmul.f32 0.01, %v5857_v46  ;;  %v15620_v57 = vpack.c.bf16 %v14341_v29, %v14320_v14  ;;  %vm6003_vm4 = vcmp.gt.f32.partialorder %v5857_v46, 0.0 }
 0x48c   :  { %v6911_v6 = vmul.f32 0.01, %v6701_v28  ;;  %vm6006_vm5 = vcmp.gt.f32.partialorder %v5868_v20, 0.0  ;;  %v6070_v7 = vmul.f32 0.01, %v5868_v20  ;;  %v15622_v32 = vpack.c.bf16 %v14344_v37, %v14328_v17 }
 0x48d   :  { %v14541_v4 = vpop.f32.mrf.mxu0  ;;  %10936 = vmatmul.mubr.msk.bf16.gmra.mxu0 %vm7063_vm0, %v15620_v57  ;;  %v14547_v49 = vpop.f32.mrf.mxu1  ;;  %v6914_v55 = vmul.f32 0.01, %v6712_v42  ;;  %v6068_v14 = vmul.f32 0.01, %v5860_v33  ;;  %v6912_v29 = vmul.f32 0.01, %v6704_v16  ;;  %v5881_v17 = vadd.f32 %v14247_v0, %v13780_v48 }
 0x48e   :  { %15619 = vst [vmem:[#allocation23_spill] sm:$0xff] %v14541_v4  ;;  %15621 = vst [vmem:[#allocation47_spill] sm:$0xff] %v14547_v49  ;;  %10939 = vmatprep.mubr.msk.bf16.mxu0 %vm7063_vm0, %v6173_v10  ;;  %vm6850_vm6 = vcmp.gt.f32.partialorder %v6712_v42, 0.0  ;;  %vm6004_vm7 = vcmp.gt.f32.partialorder %v5860_v33, 0.0  ;;  %vm6848_vm8 = vcmp.gt.f32.partialorder %v6704_v16, 0.0  ;;  %v6175_v10 = vpack.c.bf16 %v6128_v62, %v14511_v38 }
 0x48f   :  { %v14557_v57 = vpop.f32.mrf.mxu0  ;;  %v14561_v37 = vpop.f32.mrf.mxu1  ;;  %v14567_v26 = vsel %vm6005_vm13, %v5865_v11, %v6069_v22  ;;  %vm6847_vm9 = vcmp.gt.f32.partialorder %v6701_v28, 0.0  ;;  %v14572_v49 = vsel %vm6849_vm3, %v6709_v9, %v6913_v54  ;;  %v14575_v4 = vsel %vm6003_vm4, %v5857_v46, %v6067_v61 }
 0x490   :  { %11004 = vmatmul.mubr.msk.bf16.gmra.mxu1 %vm7063_vm0, %v15622_v32  ;;  %v7019_v32 = vpack.c.bf16 %v14537_v41, %v14514_v52  ;;  %v14578_v0 = vsel %vm6006_vm5, %v5868_v20, %v6070_v7  ;;  %v5884_v38 = vadd.f32 %v14304_v8, %v13780_v48  ;;  %v14584_v52 = vsel %vm6850_vm6, %v6712_v42, %v6914_v55 }
 0x491   :  { %11007 = vmatprep.mubr.msk.bf16.mxu1 %vm7063_vm0, %v7017_v31  ;;  %v14569_v31 = vpop.f32.mrf.mxu0  ;;  %v14582_v62 = vpop.f32.mrf.mxu1  ;;  %v14586_v11 = vsel %vm6004_vm7, %v5860_v33, %v6068_v14  ;;  %v14588_v41 = vsel %vm6848_vm8, %v6704_v16, %v6912_v29  ;;  %v6725_v9 = vadd.f32 %v14260_v43, %v13785_v18  ;;  %v14594_v46 = vsel %vm6847_vm9, %v6701_v28, %v6911_v6  ;;  %v14609_v28 = vld [vmem:[%s15198_s9] ss:$0 sm:$0xff]  ;;  %v15624_v16 = vld [vmem:[#allocation20_spill] sm:$0xff] }
 0x492   :  { %15623 = vst [vmem:[#allocation46_spill] sm:$0xff] %v14582_v62  ;;  %v6073_v20 = vmul.f32 0.01, %v5881_v17  ;;  %v5873_v54 = vadd.f32 %v13780_v48, %v14284_v39  ;;  %v6717_v8 = vadd.f32 %v13785_v18, %v14296_v15  ;;  %vm6009_vm10 = vcmp.gt.f32.partialorder %v5881_v17, 0.0 }
 0x493   :  { %v14592_v22 = vpop.f32.mrf.mxu0  ;;  %v14600_v42 = vpop.f32.mrf.mxu1  ;;  %v6728_v43 = vadd.f32 %v14310_v45, %v13785_v18  ;;  %v5876_v48 = vadd.f32 %v14609_v28, %v15624_v16  ;;  %v15626_v15 = vpack.c.bf16 %v14436_v12, %v14395_v44  ;;  %v6177_v18 = vpack.c.bf16 %v14586_v11, %v14575_v4  ;;  %v14635_v12 = vld [vmem:[%s15200_s11] ss:$0 sm:$0xff] }
 0x494   :  { %v7021_v45 = vpack.c.bf16 %v14588_v41, %v14594_v46  ;;  %v6074_v6 = vmul.f32 0.01, %v5884_v38  ;;  %v15628_v55 = vpack.c.bf16 %v14439_v47, %v14420_v59  ;;  %vm6853_vm11 = vcmp.gt.f32.partialorder %v6725_v9, 0.0 }
 0x495   :  { %v14613_v39 = vpop.f32.mrf.mxu0  ;;  %10940 = vmatmul.mubr.msk.bf16.gmra.mxu0 %vm7063_vm0, %v15626_v15  ;;  %v14625_v7 = vpop.f32.mrf.mxu1  ;;  %v6917_v44 = vmul.f32 0.01, %v6725_v9  ;;  %vm6010_vm12 = vcmp.gt.f32.partialorder %v5884_v38, 0.0  ;;  %v6720_v4 = vadd.f32 %v14635_v12, %v14318_v27  ;;  %v14643_v59 = vsel %vm6009_vm10, %v5881_v17, %v6073_v20 }
 0x496   :  { %15625 = vst [vmem:[#allocation49_spill] sm:$0xff] %v14613_v39  ;;  %15627 = vst [vmem:[#allocation48_spill] sm:$0xff] %v14625_v7  ;;  %10943 = vmatprep.mubr.msk.bf16.mxu0 %vm7063_vm0, %v6175_v10  ;;  %vm6007_vm14 = vcmp.gt.f32.partialorder %v5873_v54, 0.0  ;;  %v6071_v47 = vmul.f32 0.01, %v5873_v54  ;;  %vm6851_vm15 = vcmp.gt.f32.partialorder %v6717_v8, 0.0  ;;  %v14649_v16 = vsel %vm6010_vm12, %v5884_v38, %v6074_v6 }
 0x497   :  { %v14640_v14 = vpop.f32.mrf.mxu0  ;;  %v6915_v29 = vmul.f32 0.01, %v6717_v8  ;;  %v14645_v10 = vpop.f32.mrf.mxu1  ;;  %vm6854_vm1 = vcmp.gt.f32.partialorder %v6728_v43, 0.0  ;;  %v6918_v11 = vmul.f32 0.01, %v6728_v43  ;;  %vm6008_vm2 = vcmp.gt.f32.partialorder %v5876_v48, 0.0 }
 0x498   :  { %11008 = vmatmul.mubr.msk.bf16.gmra.mxu1 %vm7063_vm0, %v15628_v55  ;;  %15629 = vst [vmem:[#allocation24_spill] sm:$0xff] %v14640_v14  ;;  %15630 = vst [vmem:[#allocation25_spill] sm:$0xff] %v14645_v10  ;;  %v6072_v41 = vmul.f32 0.01, %v5876_v48  ;;  %v5897_v27 = vadd.f32 %v14609_v28, %v14322_v21  ;;  %v6741_v17 = vadd.f32 %v14635_v12, %v14330_v13  ;;  %v6916_v15 = vmul.f32 0.01, %v6720_v4 }
 0x499   :  { %11011 = vmatprep.mubr.msk.bf16.mxu1 %vm7063_vm0, %v7019_v32  ;;  %v14647_v46 = vpop.f32.mrf.mxu0  ;;  %v14655_v32 = vpop.f32.mrf.mxu1  ;;  %v14658_v20 = vsel %vm6853_vm11, %v6725_v9, %v6917_v44  ;;  %v5889_v55 = vadd.f32 %v14609_v28, %v14352_v19  ;;  %v5900_v38 = vadd.f32 %v14609_v28, %v14371_v25  ;;  %v14667_v61 = vsel %vm6007_vm14, %v5873_v54, %v6071_v47  ;;  %v15634_v13 = vld [vmem:[#allocation43_spill] sm:$0xff]  ;;  %v15636_v7 = vld [vmem:[#allocation21_spill] sm:$0xff] }
 0x49a   :  { %15631 = vst [vmem:[#allocation51_spill] sm:$0xff] %v14647_v46  ;;  %15632 = vst [vmem:[#allocation50_spill] sm:$0xff] %v14655_v32  ;;  %v14670_v21 = vsel %vm6851_vm15, %v6717_v8, %v6915_v29  ;;  %vm6852_vm13 = vcmp.gt.f32.partialorder %v6720_v4, 0.0  ;;  %v6744_v9 = vadd.f32 %v14635_v12, %v15634_v13  ;;  %v14679_v33 = vsel %vm6854_vm1, %v6728_v43, %v6918_v11 }
 0x49b   :  { %v14664_v6 = vpop.f32.mrf.mxu0  ;;  %v14674_v44 = vpop.f32.mrf.mxu1  ;;  %v6136_v25 = vsel %vm6008_vm2, %v5876_v48, %v6072_v41  ;;  %v6733_v54 = vadd.f32 %v14635_v12, %v15636_v7  ;;  %v15637_v8 = vpack.c.bf16 %v14498_v23, %v14472_v56  ;;  %vm6013_vm3 = vcmp.gt.f32.partialorder %v5897_v27, 0.0 }
 0x49c   :  { %15633 = vst [vmem:[#allocation53_spill] sm:$0xff] %v14664_v6  ;;  %15635 = vst [vmem:[#allocation52_spill] sm:$0xff] %v14674_v44  ;;  %v6077_v29 = vmul.f32 0.01, %v5897_v27  ;;  %vm6857_vm4 = vcmp.gt.f32.partialorder %v6741_v17, 0.0  ;;  %v15638_v43 = vpack.c.bf16 %v14533_v36, %v14482_v40  ;;  %v6980_v48 = vsel %vm6852_vm13, %v6720_v4, %v6916_v15 }
 0x49d   :  { %v14684_v47 = vpop.f32.mrf.mxu0  ;;  %10944 = vmatmul.mubr.msk.bf16.gmra.mxu0 %vm7063_vm0, %v15637_v8  ;;  %v6921_v13 = vmul.f32 0.01, %v6741_v17  ;;  %v6075_v7 = vmul.f32 0.01, %v5889_v55  ;;  %v6078_v11 = vmul.f32 0.01, %v5900_v38  ;;  %v5892_v56 = vadd.f32 %v14609_v28, %v14388_v35 }
 0x49e   :  { %10947 = vmatprep.mubr.msk.bf16.mxu0 %vm7063_vm0, %v6177_v18  ;;  %vm6011_vm5 = vcmp.gt.f32.partialorder %v5889_v55, 0.0  ;;  %vm6014_vm6 = vcmp.gt.f32.partialorder %v5900_v38, 0.0  ;;  %v6922_v41 = vmul.f32 0.01, %v6744_v9  ;;  %v6736_v40 = vadd.f32 %v14635_v12, %v14397_v63 }
 0x49f   :  { %v14690_v19 = vpop.f32.mrf.mxu1  ;;  %v14701_v23 = vpop.f32.mrf.mxu0  ;;  %v6179_v4 = vpack.c.bf16 %v6136_v25, %v14667_v61  ;;  %v6919_v15 = vmul.f32 0.01, %v6733_v54  ;;  %vm6858_vm7 = vcmp.gt.f32.partialorder %v6744_v9, 0.0  ;;  %v14714_v8 = vsel %vm6013_vm3, %v5897_v27, %v6077_v29  ;;  %v15639_v29 = vld [vmem:[#allocation42_spill] sm:$0xff] }
 0x4a0   :  { %11012 = vmatmul.mubr.msk.bf16.gmra.mxu1 %vm7063_vm0, %v15638_v43  ;;  %v14717_v43 = vsel %vm6857_vm4, %v6741_v17, %v6921_v13  ;;  %vm6855_vm8 = vcmp.gt.f32.partialorder %v6733_v54, 0.0  ;;  %v14721_v39 = vsel %vm6011_vm5, %v5889_v55, %v6075_v7  ;;  %v14723_v18 = vsel %vm6014_vm6, %v5900_v38, %v6078_v11 }
 0x4a1   :  { %11015 = vmatprep.mubr.msk.bf16.mxu1 %vm7063_vm0, %v7021_v45  ;;  %v14705_v36 = vpop.f32.mrf.mxu1  ;;  %v14710_v35 = vpop.f32.mrf.mxu0  ;;  %v7023_v45 = vpack.c.bf16 %v6980_v48, %v14670_v21  ;;  %v6076_v61 = vmul.f32 0.01, %v5892_v56  ;;  %v5913_v25 = vadd.f32 %v14609_v28, %v14401_v5  ;;  %v14729_v21 = vsel %vm6858_vm7, %v6744_v9, %v6922_v41  ;;  %v15641_v41 = vld [vmem:[#allocation45_spill] sm:$0xff] }
 0x4a2   :  { %vm6012_vm9 = vcmp.gt.f32.partialorder %v5892_v56, 0.0  ;;  %v6920_v27 = vmul.f32 0.01, %v6736_v40  ;;  %v6757_v17 = vadd.f32 %v14635_v12, %v15639_v29  ;;  %v6983_v48 = vsel %vm6855_vm8, %v6733_v54, %v6919_v15  ;;  %v15643_v29 = vld [vmem:[#allocation44_spill] sm:$0xff] }
 0x4a3   :  { %v14719_v63 = vpop.f32.mrf.mxu1  ;;  %v14727_v32 = vpop.f32.mrf.mxu0  ;;  %vm6856_vm10 = vcmp.gt.f32.partialorder %v6736_v40, 0.0  ;;  %v5905_v55 = vadd.f32 %v14609_v28, %v14426_v60  ;;  %v6749_v38 = vadd.f32 %v14635_v12, %v14433_v2  ;;  %v15640_v9 = vpack.c.bf16 %v14578_v0, %v14567_v26 }
 0x4a4   :  { %v5916_v11 = vadd.f32 %v14609_v28, %v14441_v1  ;;  %v6760_v54 = vadd.f32 %v14635_v12, %v14449_v53  ;;  %v5908_v60 = vadd.f32 %v14609_v28, %v15641_v41  ;;  %v15642_v2 = vpack.c.bf16 %v14584_v52, %v14572_v49 }
 0x4a5   :  { %v14733_v13 = vpop.f32.mrf.mxu1  ;;  %v10781_v5 = vpop.f32.mrf.mxu0  ;;  %10948 = vmatmul.mubr.msk.bf16.gmra.mxu0 %vm7063_vm0, %v15640_v9  ;;  %v6140_v0 = vsel %vm6012_vm9, %v5892_v56, %v6076_v61  ;;  %vm6017_vm11 = vcmp.gt.f32.partialorder %v5913_v25, 0.0  ;;  %v6752_v1 = vadd.f32 %v14635_v12, %v15643_v29  ;;  %v6984_v9 = vsel %vm6856_vm10, %v6736_v40, %v6920_v27 }
 0x4a6   :  { %10951 = vmatprep.mubr.msk.bf16.mxu0 %vm7063_vm0, %v6179_v4  ;;  %v6081_v41 = vmul.f32 0.01, %v5913_v25  ;;  %vm6861_vm12 = vcmp.gt.f32.partialorder %v6757_v17, 0.0  ;;  %v6925_v49 = vmul.f32 0.01, %v6757_v17  ;;  %vm6015_vm14 = vcmp.gt.f32.partialorder %v5905_v55, 0.0 }
 0x4a7   :  { %v10849_v15 = vpop.f32.mrf.mxu1  ;;  %v7210_v53 = vpop.f32.mrf.mxu0  ;;  %vm6859_vm15 = vcmp.gt.f32.partialorder %v6749_v38, 0.0  ;;  %v6923_v26 = vmul.f32 0.01, %v6749_v38  ;;  %v6181_v61 = vpack.c.bf16 %v6140_v0, %v14721_v39  ;;  %v6082_v7 = vmul.f32 0.01, %v5916_v11 }
 0x4a8   :  { %11016 = vmatmul.mubr.msk.bf16.gmra.mxu1 %vm7063_vm0, %v15642_v2  ;;  %v6079_v2 = vmul.f32 0.01, %v5905_v55  ;;  %v6926_v29 = vmul.f32 0.01, %v6760_v54  ;;  %v6080_v46 = vmul.f32 0.01, %v5908_v60  ;;  %v7025_v27 = vpack.c.bf16 %v6984_v9, %v6983_v48 }
 0x4a9   :  { %11019 = vmatprep.mubr.msk.bf16.mxu1 %vm7063_vm0, %v7023_v45  ;;  %v7607_v52 = vpop.f32.mrf.mxu1  ;;  %v10782_v56 = vpop.f32.mrf.mxu0  ;;  %vm6018_vm1 = vcmp.gt.f32.partialorder %v5916_v11, 0.0  ;;  %vm6862_vm2 = vcmp.gt.f32.partialorder %v6760_v54, 0.0  ;;  %vm6016_vm13 = vcmp.gt.f32.partialorder %v5908_v60, 0.0  ;;  %v6924_v45 = vmul.f32 0.01, %v6752_v1 }
 0x4aa   :  { %v14765_v10 = vsel %vm6017_vm11, %v5913_v25, %v6081_v41  ;;  %v14768_v14 = vsel %vm6861_vm12, %v6757_v17, %v6925_v49  ;;  %vm6860_vm3 = vcmp.gt.f32.partialorder %v6752_v1, 0.0  ;;  %v6143_v39 = vsel %vm6015_vm14, %v5905_v55, %v6079_v2  ;;  %v15646_v41 = vld [vmem:[#allocation22_spill] sm:$0xff] }
 0x4ab   :  { %v10850_v4 = vpop.f32.mrf.mxu1  ;;  %v7213_v40 = vpop.f32.mrf.mxu0  ;;  %v6987_v0 = vsel %vm6859_vm15, %v6749_v38, %v6923_v26  ;;  %v5929_v6 = vadd.f32 %v14609_v28, %v14474_v3  ;;  %v14776_v62 = vadd.f32 %v14690_v19, %v14684_v47  ;;  %v15644_v25 = vpack.c.bf16 %v14649_v16, %v14643_v59 }
 0x4ac   :  { %v14783_v17 = vsel %vm6018_vm1, %v5916_v11, %v6082_v7  ;;  %v14786_v55 = vsel %vm6862_vm2, %v6760_v54, %v6926_v29  ;;  %v6144_v38 = vsel %vm6016_vm13, %v5908_v60, %v6080_v46  ;;  %v14791_v3 = vadd.f32 %v14705_v36, %v14701_v23 }
 0x4ad   :  { %v7610_v44 = vpop.f32.mrf.mxu1  ;;  %v10785_v48 = vpop.f32.mrf.mxu0  ;;  %10952 = vmatmul.mubr.msk.bf16.gmra.mxu0 %vm7063_vm0, %v15644_v25  ;;  %v15645_v47 = vpack.c.bf16 %v14679_v33, %v14658_v20  ;;  %v6988_v59 = vsel %vm6860_vm3, %v6752_v1, %v6924_v45  ;;  %v14799_v16 = vadd.f32 %v14635_v12, %v14484_v24  ;;  %v14803_v7 = vadd.f32 %v14609_v28, %v14495_v34 }
 0x4ae   :  { %10955 = vmatprep.mubr.msk.bf16.mxu0 %vm7063_vm0, %v6181_v61  ;;  %v14809_v23 = vadd.f32 %v14719_v63, %v14710_v35  ;;  %v14813_v33 = vadd.f32 %v14733_v13, %v14727_v32  ;;  %v14815_v20 = vadd.f32 %v10849_v15, %v10781_v5  ;;  %v14817_v24 = vadd.f32 %v7607_v52, %v7210_v53 }
 0x4af   :  { %v10853_v19 = vpop.f32.mrf.mxu1  ;;  %v7226_v46 = vpop.f32.mrf.mxu0  ;;  %v5924_v34 = vadd.f32 %v14609_v28, %v14530_v51  ;;  %v14821_v11 = vadd.f32 %v10850_v4, %v10782_v56  ;;  %v14823_v54 = vadd.f32 %v7610_v44, %v7213_v40  ;;  %v6085_v63 = vmul.f32 0.01, %v5929_v6 }
 0x4b0   :  { %11020 = vmatmul.mubr.msk.bf16.gmra.mxu1 %vm7063_vm0, %v15645_v47  ;;  %v14825_v60 = vadd.f32 %v10853_v19, %v10785_v48  ;;  %v5932_v32 = vadd.f32 %v14609_v28, %v14508_v58  ;;  %v6768_v13 = vadd.f32 %v14635_v12, %v14539_v50  ;;  %v6184_v51 = vpack.c.bf16 %v14783_v17, %v14765_v10 }
 0x4b1   :  { %11023 = vmatprep.mubr.msk.bf16.mxu1 %vm7063_vm0, %v7025_v27  ;;  %v7623_v36 = vpop.f32.mrf.mxu1  ;;  %v10786_v35 = vpop.f32.mrf.mxu0  ;;  %vm6021_vm4 = vcmp.gt.f32.partialorder %v5929_v6, 0.0  ;;  %v6776_v44 = vadd.f32 %v14635_v12, %v14520_v30  ;;  %v7028_v53 = vpack.c.bf16 %v14786_v55, %v14768_v14  ;;  %v6183_v58 = vpack.c.bf16 %v6144_v38, %v6143_v39 }
 0x4b2   :  { %v14831_v5 = vadd.f32 %v7623_v36, %v7226_v46  ;;  %v7027_v9 = vpack.c.bf16 %v6988_v59, %v6987_v0  ;;  %v6765_v50 = vadd.f32 %v14635_v12, %v15646_v41  ;;  %v6929_v52 = vmul.f32 0.01, %v14799_v16 }
 0x4b3   :  { %v10854_v15 = vpop.f32.mrf.mxu1  ;;  %v7229_v1 = vpop.f32.mrf.mxu0  ;;  %v6083_v10 = vmul.f32 0.01, %v14803_v7  ;;  %v6084_v2 = vmul.f32 0.01, %v5924_v34  ;;  %v15647_v61 = vpack.c.bf16 %v14723_v18, %v14714_v8  ;;  %v14851_v14 = vsel %vm6021_vm4, %v5929_v6, %v6085_v63  ;;  %v15649_v63 = vld [vmem:[#allocation23_spill] sm:$0xff] }
 0x4b4   :  { %v14837_v26 = vadd.f32 %v10854_v15, %v10786_v35  ;;  %v6086_v29 = vmul.f32 0.01, %v5932_v32  ;;  %vm6020_vm5 = vcmp.gt.f32.partialorder %v5924_v34, 0.0  ;;  %v6928_v4 = vmul.f32 0.01, %v6768_v13 }
 0x4b5   :  { %v7626_v49 = vpop.f32.mrf.mxu1  ;;  %v10789_v30 = vpop.f32.mrf.mxu0  ;;  %10956 = vmatmul.mubr.msk.bf16.gmra.mxu0 %vm7063_vm0, %v15647_v61  ;;  %v15648_v40 = vpack.c.bf16 %v14729_v21, %v14717_v43  ;;  %vm6022_vm6 = vcmp.gt.f32.partialorder %v5932_v32, 0.0  ;;  %v6930_v27 = vmul.f32 0.01, %v6776_v44  ;;  %vm6864_vm7 = vcmp.gt.f32.partialorder %v6768_v13, 0.0 }
 0x4b6   :  { %v14845_v56 = vadd.f32 %v7626_v49, %v7229_v1  ;;  %10959 = vmatprep.mubr.msk.bf16.mxu0 %vm7063_vm0, %v6183_v58  ;;  %vm6865_vm8 = vcmp.gt.f32.partialorder %v14799_v16, 0.0  ;;  %vm6019_vm9 = vcmp.gt.f32.partialorder %v14803_v7, 0.0  ;;  %v6927_v18 = vmul.f32 0.01, %v6765_v50  ;;  %v15650_v49 = vld [vmem:[#allocation47_spill] sm:$0xff] }
 0x4b7   :  { %v10857_v45 = vpop.f32.mrf.mxu1  ;;  %v7242_v6 = vpop.f32.mrf.mxu0  ;;  %vm6866_vm10 = vcmp.gt.f32.partialorder %v6776_v44, 0.0  ;;  %vm6863_vm11 = vcmp.gt.f32.partialorder %v6765_v50, 0.0  ;;  %v6148_v43 = vsel %vm6020_vm5, %v5924_v34, %v6084_v2  ;;  %v5940_v21 = vadd.f32 %v14609_v28, %v14592_v22  ;;  %v15651_v2 = vld [vmem:[#allocation46_spill] sm:$0xff] }
 0x4b8   :  { %11024 = vmatmul.mubr.msk.bf16.gmra.mxu1 %vm7063_vm0, %v15648_v40  ;;  %v14858_v39 = vadd.f32 %v10857_v45, %v10789_v30  ;;  %v14869_v25 = vsel %vm6022_vm6, %v5932_v32, %v6086_v29  ;;  %v6992_v17 = vsel %vm6864_vm7, %v6768_v13, %v6928_v4  ;;  %v5937_v55 = vadd.f32 %v14609_v28, %v14557_v57 }
 0x4b9   :  { %11027 = vmatprep.mubr.msk.bf16.mxu1 %vm7063_vm0, %v7027_v9  ;;  %v7639_v8 = vpop.f32.mrf.mxu1  ;;  %v10790_v48 = vpop.f32.mrf.mxu0  ;;  %v6784_v38 = vadd.f32 %v14635_v12, %v14600_v42  ;;  %v14876_v47 = vsel %vm6865_vm8, %v14799_v16, %v6929_v52  ;;  %v6147_v59 = vsel %vm6019_vm9, %v14803_v7, %v6083_v10  ;;  %v14879_v22 = vsel %vm6866_vm10, %v6776_v44, %v6930_v27 }
 0x4ba   :  { %v14866_v0 = vadd.f32 %v7639_v8, %v7242_v6  ;;  %v6991_v34 = vsel %vm6863_vm11, %v6765_v50, %v6927_v18  ;;  %v6185_v35 = vpack.c.bf16 %v6148_v43, %v6147_v59  ;;  %v14885_v32 = vadd.f32 %v14609_v28, %v15649_v63  ;;  %v15653_v6 = vld [vmem:[#allocation52_spill] sm:$0xff] }
 0x4bb   :  { %v10858_v19 = vpop.f32.mrf.mxu1  ;;  %v7245_v36 = vpop.f32.mrf.mxu0  ;;  %v6781_v57 = vadd.f32 %v14635_v12, %v14561_v37  ;;  %v6186_v16 = vpack.c.bf16 %v14869_v25, %v14851_v14  ;;  %v7029_v13 = vpack.c.bf16 %v6992_v17, %v6991_v34  ;;  %v6088_v7 = vmul.f32 0.01, %v5940_v21 }
 0x4bc   :  { %v14881_v46 = vadd.f32 %v10858_v19, %v10790_v48  ;;  %v7030_v1 = vpack.c.bf16 %v14879_v22, %v14876_v47  ;;  %v6087_v58 = vmul.f32 0.01, %v5937_v55  ;;  %vm6024_vm12 = vcmp.gt.f32.partialorder %v5940_v21, 0.0  ;;  %v15654_v48 = vld [vmem:[#allocation24_spill] sm:$0xff]  ;;  %v15655_v22 = vld [vmem:[#allocation25_spill] sm:$0xff] }
 0x4bd   :  { %v7642_v42 = vpop.f32.mrf.mxu1  ;;  %v10793_v44 = vpop.f32.mrf.mxu0  ;;  %10960 = vmatmul.mubr.msk.bf16.gmra.mxu0 %vm7063_vm0, %v6184_v51  ;;  %v6932_v9 = vmul.f32 0.01, %v6784_v38  ;;  %vm6023_vm14 = vcmp.gt.f32.partialorder %v5937_v55, 0.0  ;;  %v5948_v37 = vadd.f32 %v14609_v28, %v14569_v31  ;;  %vm6868_vm15 = vcmp.gt.f32.partialorder %v6784_v38, 0.0  ;;  %v15652_v31 = vld [vmem:[#allocation53_spill] sm:$0xff] }
 0x4be   :  { %v14891_v15 = vadd.f32 %v7642_v42, %v7245_v36  ;;  %10963 = vmatprep.mubr.msk.bf16.mxu0 %vm7063_vm0, %v6185_v35  ;;  %vm6025_vm1 = vcmp.gt.f32.partialorder %v14885_v32, 0.0  ;;  %v6789_v52 = vadd.f32 %v14635_v12, %v15650_v49  ;;  %v6931_v10 = vmul.f32 0.01, %v6781_v57 }
 0x4bf   :  { %v10861_v41 = vpop.f32.mrf.mxu1  ;;  %v7258_v51 = vpop.f32.mrf.mxu0  ;;  %vm6867_vm2 = vcmp.gt.f32.partialorder %v6781_v57, 0.0  ;;  %v6152_v61 = vsel %vm6024_vm12, %v5940_v21, %v6088_v7  ;;  %v5956_v14 = vadd.f32 %v14609_v28, %v15652_v31  ;;  %v6089_v45 = vmul.f32 0.01, %v14885_v32 }
 0x4c0   :  { %11028 = vmatmul.mubr.msk.bf16.gmra.mxu1 %vm7063_vm0, %v7028_v53  ;;  %v14900_v50 = vadd.f32 %v10861_v41, %v10793_v44  ;;  %v6792_v53 = vadd.f32 %v14635_v12, %v15651_v2  ;;  %v6151_v40 = vsel %vm6023_vm14, %v5937_v55, %v6087_v58  ;;  %v6996_v27 = vsel %vm6868_vm15, %v6784_v38, %v6932_v9 }
 0x4c1   :  { %11031 = vmatprep.mubr.msk.bf16.mxu1 %vm7063_vm0, %v7029_v13  ;;  %v7655_v30 = vpop.f32.mrf.mxu1  ;;  %v10794_v4 = vpop.f32.mrf.mxu0  ;;  %v6800_v18 = vadd.f32 %v14635_v12, %v15653_v6  ;;  %vm6026_vm13 = vcmp.gt.f32.partialorder %v5948_v37, 0.0  ;;  %v6090_v43 = vmul.f32 0.01, %v5948_v37  ;;  %v5953_v21 = vadd.f32 %v14609_v28, %v15654_v48 }
 0x4c2   :  { %v14911_v29 = vadd.f32 %v7655_v30, %v7258_v51  ;;  %v6995_v19 = vsel %vm6867_vm2, %v6781_v57, %v6931_v10  ;;  %v6934_v47 = vmul.f32 0.01, %v6792_v53  ;;  %v6187_v59 = vpack.c.bf16 %v6152_v61, %v6151_v40  ;;  %v15656_v51 = vld [vmem:[#allocation51_spill] sm:$0xff] }
 0x4c3   :  { %v10862_v8 = vpop.f32.mrf.mxu1  ;;  %v7261_v17 = vpop.f32.mrf.mxu0  ;;  %v6797_v55 = vadd.f32 %v14635_v12, %v15655_v22  ;;  %vm6870_vm3 = vcmp.gt.f32.partialorder %v6792_v53, 0.0  ;;  %v7031_v38 = vpack.c.bf16 %v6996_v27, %v6995_v19  ;;  %v6092_v34 = vmul.f32 0.01, %v5956_v14 }
 0x4c4   :  { %v14920_v25 = vadd.f32 %v10862_v8, %v10794_v4  ;;  %vm6869_vm4 = vcmp.gt.f32.partialorder %v6789_v52, 0.0  ;;  %v6933_v42 = vmul.f32 0.01, %v6789_v52  ;;  %vm6028_vm5 = vcmp.gt.f32.partialorder %v5956_v14, 0.0  ;;  %v15658_v4 = vld [vmem:[#allocation49_spill] sm:$0xff] }
 0x4c5   :  { %v7658_v36 = vpop.f32.mrf.mxu1  ;;  %v10797_v63 = vpop.f32.mrf.mxu0  ;;  %10964 = vmatmul.mubr.msk.bf16.gmra.mxu0 %vm7063_vm0, %v6186_v16  ;;  %v6936_v13 = vmul.f32 0.01, %v6800_v18  ;;  %v6154_v57 = vsel %vm6026_vm13, %v5948_v37, %v6090_v43  ;;  %v6091_v44 = vmul.f32 0.01, %v5953_v21  ;;  %vm6872_vm6 = vcmp.gt.f32.partialorder %v6800_v18, 0.0  ;;  %v15659_v43 = vld [vmem:[#allocation48_spill] sm:$0xff] }
 0x4c6   :  { %v14924_v35 = vadd.f32 %v7658_v36, %v7261_v17  ;;  %10967 = vmatprep.mubr.msk.bf16.mxu0 %vm7063_vm0, %v6187_v59  ;;  %v6998_v16 = vsel %vm6870_vm3, %v6792_v53, %v6934_v47  ;;  %vm6027_vm7 = vcmp.gt.f32.partialorder %v5953_v21, 0.0  ;;  %v6935_v41 = vmul.f32 0.01, %v6797_v55 }
 0x4c7   :  { %v10865_v7 = vpop.f32.mrf.mxu1  ;;  %v7274_v9 = vpop.f32.mrf.mxu0  ;;  %v5964_v49 = vadd.f32 %v14609_v28, %v15656_v51  ;;  %vm6871_vm8 = vcmp.gt.f32.partialorder %v6797_v55, 0.0  ;;  %v6156_v37 = vsel %vm6028_vm5, %v5956_v14, %v6092_v34  ;;  %v6153_v31 = vsel %vm6025_vm1, %v14885_v32, %v6089_v45 }
 0x4c8   :  { %11032 = vmatmul.mubr.msk.bf16.gmra.mxu1 %vm7063_vm0, %v7030_v1  ;;  %v14930_v58 = vadd.f32 %v10865_v7, %v10797_v63  ;;  %v15657_v1 = vld [vmem:[#allocation50_spill] sm:$0xff]  ;;  %v6997_v53 = vsel %vm6869_vm4, %v6789_v52, %v6933_v42  ;;  %v5961_v40 = vadd.f32 %v14609_v28, %v15658_v4  ;;  %v7000_v27 = vsel %vm6872_vm6, %v6800_v18, %v6936_v13 }
 0x4c9   :  { %11035 = vmatprep.mubr.msk.bf16.mxu1 %vm7063_vm0, %v7031_v38  ;;  %v7671_v10 = vpop.f32.mrf.mxu1  ;;  %v6808_v2 = vadd.f32 %v14635_v12, %v15657_v1  ;;  %v10798_v61 = vpop.f32.mrf.mxu0  ;;  %v6188_v8 = vpack.c.bf16 %v6154_v57, %v6153_v31  ;;  %v6805_v48 = vadd.f32 %v14635_v12, %v15659_v43  ;;  %v6155_v14 = vsel %vm6027_vm7, %v5953_v21, %v6091_v44 }
 0x4ca   :  { %v14939_v30 = vadd.f32 %v7671_v10, %v7274_v9  ;;  %v7032_v47 = vpack.c.bf16 %v6998_v16, %v6997_v53  ;;  %v6999_v32 = vsel %vm6871_vm8, %v6797_v55, %v6935_v41  ;;  %v6094_v45 = vmul.f32 0.01, %v5964_v49 }
 0x4cb   :  { %v10866_v6 = vpop.f32.mrf.mxu1  ;;  %v7277_v19 = vpop.f32.mrf.mxu0  ;;  %v6189_v52 = vpack.c.bf16 %v6156_v37, %v6155_v14  ;;  %vm6030_vm9 = vcmp.gt.f32.partialorder %v5964_v49, 0.0  ;;  %v6938_v28 = vmul.f32 0.01, %v6808_v2  ;;  %v7033_v22 = vpack.c.bf16 %v7000_v27, %v6999_v32 }
 0x4cc   :  { %v14951_v17 = vadd.f32 %v10866_v6, %v10798_v61  ;;  %v6093_v12 = vmul.f32 0.01, %v5961_v40  ;;  %vm6874_vm10 = vcmp.gt.f32.partialorder %v6808_v2, 0.0  ;;  %vm6029_vm11 = vcmp.gt.f32.partialorder %v5961_v40, 0.0 }
 0x4cd   :  { %v7674_v59 = vpop.f32.mrf.mxu1  ;;  %v10801_v36 = vpop.f32.mrf.mxu0  ;;  %10968 = vmatmul.mubr.msk.bf16.gmra.mxu0 %vm7063_vm0, %v6188_v8  ;;  %v6937_v55 = vmul.f32 0.01, %v6805_v48  ;;  %vm6873_vm12 = vcmp.gt.f32.partialorder %v6805_v48, 0.0  ;;  %v6158_v63 = vsel %vm6030_vm9, %v5964_v49, %v6094_v45  ;;  %v7002_v13 = vsel %vm6874_vm10, %v6808_v2, %v6938_v28 }
 0x4ce   :  { %v14954_v18 = vadd.f32 %v7674_v59, %v7277_v19  ;;  %10971 = vmatprep.mubr.msk.bf16.mxu0 %vm7063_vm0, %v6189_v52  ;;  %v6157_v44 = vsel %vm6029_vm11, %v5961_v40, %v6093_v12 }
 0x4cf   :  { %v10869_v21 = vpop.f32.mrf.mxu1  ;;  %v7290_v34 = vpop.f32.mrf.mxu0  ;;  %v7001_v16 = vsel %vm6873_vm12, %v6805_v48, %v6937_v55  ;;  %v6190_v41 = vpack.c.bf16 %v6158_v63, %v6157_v44 }
 0x4d0   :  { %11036 = vmatmul.mubr.msk.bf16.gmra.mxu1 %vm7063_vm0, %v7032_v47  ;;  %v14959_v38 = vadd.f32 %v10869_v21, %v10801_v36  ;;  %v7034_v1 = vpack.c.bf16 %v7002_v13, %v7001_v16 }
 0x4d1   :  { %11039 = vmatprep.mubr.msk.bf16.mxu1 %vm7063_vm0, %v7033_v22  ;;  %v7687_v42 = vpop.f32.mrf.mxu1  ;;  %v10802_v57 = vpop.f32.mrf.mxu0 }
 0x4d2   :  { %v14963_v7 = vadd.f32 %v7687_v42, %v7290_v34 }
 0x4d3   :  { %v10870_v9 = vpop.f32.mrf.mxu1  ;;  %v7293_v10 = vpop.f32.mrf.mxu0 }
 0x4d4   :  { %v14965_v51 = vadd.f32 %v10870_v9, %v10802_v57 }
 0x4d5   :  { %v7690_v37 = vpop.f32.mrf.mxu1  ;;  %v10805_v31 = vpop.f32.mrf.mxu0  ;;  %10972 = vmatmul.mubr.msk.bf16.gmra.mxu0 %vm7063_vm0, %v6190_v41 }
 0x4d6   :  { %v14967_v61 = vadd.f32 %v7690_v37, %v7293_v10 }
 0x4d7   :  { %v10873_v49 = vpop.f32.mrf.mxu1  ;;  %v7306_v53 = vpop.f32.mrf.mxu0 }
 0x4d8   :  { %11040 = vmatmul.mubr.msk.bf16.gmra.mxu1 %vm7063_vm0, %v7034_v1  ;;  %v14971_v2 = vadd.f32 %v10873_v49, %v10805_v31 }
 0x4d9   :  { %v7703_v4 = vpop.f32.mrf.mxu1  ;;  %v10806_v27 = vpop.f32.mrf.mxu0 }
 0x4da   :  { %v14973_v40 = vadd.f32 %v7703_v4, %v7306_v53 }
 0x4db   :  { %v10874_v6 = vpop.f32.mrf.mxu1  ;;  %v7309_v43 = vpop.f32.mrf.mxu0 }
 0x4dc   :  { %v14975_v8 = vadd.f32 %v10874_v6, %v10806_v27 }
 0x4dd   :  { %v7706_v48 = vpop.f32.mrf.mxu1  ;;  %v10809_v19 = vpop.f32.mrf.mxu0 }
 0x4de   :  { %v14977_v14 = vadd.f32 %v7706_v48, %v7309_v43 }
 0x4df   :  { %v10877_v47 = vpop.f32.mrf.mxu1  ;;  %v7322_v45 = vpop.f32.mrf.mxu0 }
 0x4e0   :  { %v14979_v32 = vadd.f32 %v10877_v47, %v10809_v19 }
 0x4e1   :  { %v7719_v52 = vpop.f32.mrf.mxu1  ;;  %v10810_v28 = vpop.f32.mrf.mxu0 }
 0x4e2   :  { %v14981_v59 = vadd.f32 %v7719_v52, %v7322_v45 }
 0x4e3   :  { %v10878_v22 = vpop.f32.mrf.mxu1  ;;  %v7325_v12 = vpop.f32.mrf.mxu0 }
 0x4e4   :  { %v14983_v36 = vadd.f32 %v10878_v22, %v10810_v28 }
 0x4e5   :  { %v7722_v21 = vpop.f32.mrf.mxu1  ;;  %v10813_v34 = vpop.f32.mrf.mxu0 }
 0x4e6   :  { %v14985_v55 = vadd.f32 %v7722_v21, %v7325_v12 }
 0x4e7   :  { %v10881_v63 = vpop.f32.mrf.mxu1  ;;  %v7338_v13 = vpop.f32.mrf.mxu0 }
 0x4e8   :  { %v14987_v42 = vadd.f32 %v10881_v63, %v10813_v34 }
 0x4e9   :  { %v7735_v57 = vpop.f32.mrf.mxu1  ;;  %v10814_v9 = vpop.f32.mrf.mxu0 }
 0x4ea   :  { %v14989_v44 = vadd.f32 %v7735_v57, %v7338_v13 }
 0x4eb   :  { %v10882_v16 = vpop.f32.mrf.mxu1  ;;  %v7341_v10 = vpop.f32.mrf.mxu0 }
 0x4ec   :  { %v14991_v41 = vadd.f32 %v10882_v16, %v10814_v9 }
 0x4ed   :  { %v7738_v1 = vpop.f32.mrf.mxu1  ;;  %v10817_v31 = vpop.f32.mrf.mxu0 }
 0x4ee   :  { %v14993_v37 = vadd.f32 %v7738_v1, %v7341_v10 }
 0x4ef   :  { %v10885_v49 = vpop.f32.mrf.mxu1  ;;  %v7354_v4 = vpop.f32.mrf.mxu0 }
 0x4f0   :  { %v14995_v53 = vadd.f32 %v10885_v49, %v10817_v31 }
 0x4f1   :  { %v7751_v27 = vpop.f32.mrf.mxu1  ;;  %v10818_v43 = vpop.f32.mrf.mxu0 }
 0x4f2   :  { %v14997_v6 = vadd.f32 %v7751_v27, %v7354_v4 }
 0x4f3   :  { %v10886_v48 = vpop.f32.mrf.mxu1  ;;  %v7357_v47 = vpop.f32.mrf.mxu0 }
 0x4f4   :  { %v14999_v19 = vadd.f32 %v10886_v48, %v10818_v43 }
 0x4f5   :  { %v7754_v45 = vpop.f32.mrf.mxu1  ;;  %v10821_v28 = vpop.f32.mrf.mxu0 }
 0x4f6   :  { %v15001_v52 = vadd.f32 %v7754_v45, %v7357_v47 }
 0x4f7   :  { %v10889_v22 = vpop.f32.mrf.mxu1  ;;  %v7370_v21 = vpop.f32.mrf.mxu0 }
 0x4f8   :  { %v15003_v12 = vadd.f32 %v10889_v22, %v10821_v28 }
 0x4f9   :  { %v7767_v34 = vpop.f32.mrf.mxu1  ;;  %v10822_v13 = vpop.f32.mrf.mxu0 }
 0x4fa   :  { %15660 = vst [vmem:[#allocation26_spill] sm:$0xff] %v15003_v12  ;;  %v15005_v63 = vadd.f32 %v7767_v34, %v7370_v21 }
 0x4fb   :  { %v10890_v57 = vpop.f32.mrf.mxu1  ;;  %v7373_v16 = vpop.f32.mrf.mxu0 }
 0x4fc   :  { %15661 = vst [vmem:[#allocation27_spill] sm:$0xff] %v15005_v63  ;;  %v15007_v9 = vadd.f32 %v10890_v57, %v10822_v13 }
 0x4fd   :  { %v7770_v10 = vpop.f32.mrf.mxu1  ;;  %v10825_v31 = vpop.f32.mrf.mxu0 }
 0x4fe   :  { %15662 = vst [vmem:[#allocation55_spill] sm:$0xff] %v15007_v9  ;;  %v15009_v1 = vadd.f32 %v7770_v10, %v7373_v16 }
 0x4ff   :  { %v10893_v49 = vpop.f32.mrf.mxu1  ;;  %v7386_v27 = vpop.f32.mrf.mxu0 }
 0x500   :  { %15663 = vst [vmem:[#allocation54_spill] sm:$0xff] %v15009_v1  ;;  %v15011_v4 = vadd.f32 %v10893_v49, %v10825_v31 }
 0x501   :  { %v7783_v43 = vpop.f32.mrf.mxu1  ;;  %v10826_v47 = vpop.f32.mrf.mxu0 }
 0x502   :  { %15664 = vst [vmem:[#allocation57_spill] sm:$0xff] %v15011_v4  ;;  %v15013_v48 = vadd.f32 %v7783_v43, %v7386_v27 }
 0x503   :  { %v10894_v45 = vpop.f32.mrf.mxu1  ;;  %v7389_v22 = vpop.f32.mrf.mxu0 }
 0x504   :  { %15665 = vst [vmem:[#allocation56_spill] sm:$0xff] %v15013_v48  ;;  %v15015_v28 = vadd.f32 %v10894_v45, %v10826_v47 }
 0x505   :  { %v7786_v21 = vpop.f32.mrf.mxu1  ;;  %v10829_v13 = vpop.f32.mrf.mxu0 }
 0x506   :  { %15666 = vst [vmem:[#allocation28_spill] sm:$0xff] %v15015_v28  ;;  %v15017_v34 = vadd.f32 %v7786_v21, %v7389_v22 }
 0x507   :  { %v10897_v57 = vpop.f32.mrf.mxu1  ;;  %v7402_v10 = vpop.f32.mrf.mxu0 }
 0x508   :  { %15667 = vst [vmem:[#allocation29_spill] sm:$0xff] %v15017_v34  ;;  %v15019_v16 = vadd.f32 %v10897_v57, %v10829_v13 }
 0x509   :  { %v7799_v1 = vpop.f32.mrf.mxu1  ;;  %v10830_v49 = vpop.f32.mrf.mxu0 }
 0x50a   :  { %15668 = vst [vmem:[#allocation59_spill] sm:$0xff] %v15019_v16  ;;  %v15021_v31 = vadd.f32 %v7799_v1, %v7402_v10 }
 0x50b   :  { %v10898_v4 = vpop.f32.mrf.mxu1  ;;  %v7405_v43 = vpop.f32.mrf.mxu0 }
 0x50c   :  { %15669 = vst [vmem:[#allocation58_spill] sm:$0xff] %v15021_v31  ;;  %v15023_v27 = vadd.f32 %v10898_v4, %v10830_v49 }
 0x50d   :  { %v7802_v48 = vpop.f32.mrf.mxu1  ;;  %v10833_v45 = vpop.f32.mrf.mxu0 }
 0x50e   :  { %15670 = vst [vmem:[#allocation61_spill] sm:$0xff] %v15023_v27  ;;  %v15025_v47 = vadd.f32 %v7802_v48, %v7405_v43 }
 0x50f   :  { %v10901_v28 = vpop.f32.mrf.mxu1  ;;  %v7418_v21 = vpop.f32.mrf.mxu0 }
 0x510   :  { %15671 = vst [vmem:[#allocation60_spill] sm:$0xff] %v15025_v47  ;;  %v15027_v22 = vadd.f32 %v10901_v28, %v10833_v45 }
 0x511   :  { %v7815_v34 = vpop.f32.mrf.mxu1  ;;  %v10834_v57 = vpop.f32.mrf.mxu0 }
 0x512   :  { %15672 = vst [vmem:[#allocation94_spill] sm:$0xff] %v15027_v22  ;;  %v15029_v13 = vadd.f32 %v7815_v34, %v7418_v21 }
 0x513   :  { %v10902_v16 = vpop.f32.mrf.mxu1  ;;  %v7421_v10 = vpop.f32.mrf.mxu0 }
 0x514   :  { %15673 = vst [vmem:[#allocation63_spill] sm:$0xff] %v15029_v13  ;;  %v15031_v1 = vadd.f32 %v10902_v16, %v10834_v57 }
 0x515   :  { %v7818_v31 = vpop.f32.mrf.mxu1  ;;  %v10837_v49 = vpop.f32.mrf.mxu0 }
 0x516   :  { %15674 = vst [vmem:[#allocation62_spill] sm:$0xff] %v15031_v1  ;;  %v15033_v4 = vadd.f32 %v7818_v31, %v7421_v10 }
 0x517   :  { %v7434_v43 = vpop.f32.mrf.mxu0 }
 0x518   :  { %15675 = vst [vmem:[#allocation65_spill] sm:$0xff] %v15033_v4  ;;  %v10905_v27 = vpop.f32.mrf.mxu1 }
 0x519   :  { %v15035_v48 = vadd.f32 %v10905_v27, %v10837_v49  ;;  %v10838_v45 = vpop.f32.mrf.mxu0  ;;  %v15047_v27 = vld [vmem:[%s15202_s13] ss:$0 sm:$0xff] }
 0x51a   :  { %v7831_v47 = vpop.f32.mrf.mxu1 }
 0x51b   :  { %15676 = vst [vmem:[#allocation64_spill] sm:$0xff] %v15035_v48  ;;  %v15037_v28 = vadd.f32 %v7831_v47, %v7434_v43  ;;  %v7437_v21 = vpop.f32.mrf.mxu0 }
 0x51c   :  { %v10906_v22 = vpop.f32.mrf.mxu1 }
 0x51d   :  { %15677 = vst [vmem:[#allocation95_spill] sm:$0xff] %v15037_v28  ;;  %v15039_v34 = vadd.f32 %v10906_v22, %v10838_v45  ;;  %v10913_v57 = vpop.f32.mrf.mxu0 }
 0x51e   :  { %v7834_v13 = vpop.f32.mrf.mxu1  ;;  %v8245_v31 = vadd.f32 %v10913_v57, %v14776_v62 }
 0x51f   :  { %15678 = vst [vmem:[#allocation67_spill] sm:$0xff] %v15039_v34  ;;  %v15041_v16 = vadd.f32 %v7834_v13, %v7437_v21  ;;  %v7988_v49 = vpop.f32.mrf.mxu0 }
 0x520   :  { %v10981_v10 = vpop.f32.mrf.mxu1  ;;  %v8243_v43 = vadd.f32 %v7988_v49, %v14791_v3 }
 0x521   :  { %15679 = vst [vmem:[#allocation66_spill] sm:$0xff] %v15041_v16  ;;  %v8706_v47 = vadd.f32 %v10981_v10, %v8245_v31  ;;  %v10914_v22 = vpop.f32.mrf.mxu0 }
 0x522   :  { %v8449_v28 = vpop.f32.mrf.mxu1  ;;  %v8246_v13 = vadd.f32 %v10914_v22, %v14809_v23 }
 0x523   :  { %v8777_v45 = vadd.f32 %v15047_v27, %v8706_v47  ;;  %v8704_v34 = vadd.f32 %v8449_v28, %v8243_v43  ;;  %v7991_v16 = vpop.f32.mrf.mxu0 }
 0x524   :  { %v10982_v21 = vpop.f32.mrf.mxu1  ;;  %v8244_v1 = vadd.f32 %v7991_v16, %v14813_v33 }
 0x525   :  { %v8707_v62 = vadd.f32 %v10982_v21, %v8246_v13  ;;  %v8905_v48 = vmul.f32 0.01, %v8777_v45  ;;  %v8775_v4 = vadd.f32 %v15047_v27, %v8704_v34  ;;  %v10917_v9 = vpop.f32.mrf.mxu0  ;;  %vm8841_vm0 = vcmp.gt.f32.partialorder %v8777_v45, 0.0 }
 0x526   :  { %v8452_v57 = vpop.f32.mrf.mxu1  ;;  %v8249_v49 = vadd.f32 %v10917_v9, %v14815_v20 }
 0x527   :  { %v8778_v3 = vadd.f32 %v15047_v27, %v8707_v62  ;;  %v8705_v10 = vadd.f32 %v8452_v57, %v8244_v1  ;;  %v8004_v28 = vpop.f32.mrf.mxu0  ;;  %v8969_v22 = vsel %vm8841_vm0, %v8777_v45, %v8905_v48  ;;  %v8903_v13 = vmul.f32 0.01, %v8775_v4 }
 0x528   :  { %v10985_v31 = vpop.f32.mrf.mxu1  ;;  %v8247_v47 = vadd.f32 %v8004_v28, %v14817_v24  ;;  %vm8839_vm15 = vcmp.gt.f32.partialorder %v8775_v4, 0.0 }
 0x529   :  { %vm8842_vm14 = vcmp.gt.f32.partialorder %v8778_v3, 0.0  ;;  %v8906_v23 = vmul.f32 0.01, %v8778_v3  ;;  %v8776_v34 = vadd.f32 %v15047_v27, %v8705_v10  ;;  %v8710_v21 = vadd.f32 %v10985_v31, %v8249_v49  ;;  %v10918_v33 = vpop.f32.mrf.mxu0 }
 0x52a   :  { %v8465_v43 = vpop.f32.mrf.mxu1  ;;  %v8250_v62 = vadd.f32 %v10918_v33, %v14821_v11  ;;  %v8967_v28 = vsel %vm8839_vm15, %v8775_v4, %v8903_v13 }
 0x52b   :  { %v8970_v16 = vsel %vm8842_vm14, %v8778_v3, %v8906_v23  ;;  %v8708_v63 = vadd.f32 %v8465_v43, %v8247_v47  ;;  %vm8840_vm1 = vcmp.gt.f32.partialorder %v8776_v34, 0.0  ;;  %v8904_v20 = vmul.f32 0.01, %v8776_v34  ;;  %v8007_v12 = vpop.f32.mrf.mxu0 }
 0x52c   :  { %v10986_v1 = vpop.f32.mrf.mxu1  ;;  %v10254_v57 = vpack.c.bf16 %v8970_v16, %v8969_v22  ;;  %v8781_v9 = vadd.f32 %v15047_v27, %v8710_v21  ;;  %v8248_v48 = vadd.f32 %v8007_v12, %v14823_v54 }
 0x52d   :  { %v8711_v24 = vadd.f32 %v10986_v1, %v8250_v62  ;;  %v8968_v31 = vsel %vm8840_vm1, %v8776_v34, %v8904_v20  ;;  %v8779_v10 = vadd.f32 %v15047_v27, %v8708_v63  ;;  %v10921_v3 = vpop.f32.mrf.mxu0 }
 0x52e   :  { %v8468_v45 = vpop.f32.mrf.mxu1  ;;  %10406 = vst [vmem:[#allocation7 + $0x8] sm:$0xff] %v10254_v57   ;;  %v10249_v49 = vpack.c.bf16 %v8968_v31, %v8967_v28  ;;  %v8909_v23 = vmul.f32 0.01, %v8781_v9  ;;  %vm8845_vm2 = vcmp.gt.f32.partialorder %v8781_v9, 0.0  ;;  %v8253_v22 = vadd.f32 %v10921_v3, %v14825_v60 }
 0x52f   :  { %v8782_v11 = vadd.f32 %v15047_v27, %v8711_v24  ;;  %v8709_v43 = vadd.f32 %v8468_v45, %v8248_v48  ;;  %v8020_v21 = vpop.f32.mrf.mxu0  ;;  %vm8843_vm3 = vcmp.gt.f32.partialorder %v8779_v10, 0.0  ;;  %v8907_v13 = vmul.f32 0.01, %v8779_v10 }
 0x530   :  { %v10989_v47 = vpop.f32.mrf.mxu1  ;;  %10250 = vst [vmem:[#allocation7] sm:$0xff] %v10249_v49   ;;  %v8251_v12 = vadd.f32 %v8020_v21, %v14831_v5  ;;  %v8973_v16 = vsel %vm8845_vm2, %v8781_v9, %v8909_v23 }
 0x531   :  { %vm8846_vm13 = vcmp.gt.f32.partialorder %v8782_v11, 0.0  ;;  %v8910_v54 = vmul.f32 0.01, %v8782_v11  ;;  %v8780_v63 = vadd.f32 %v15047_v27, %v8709_v43  ;;  %v8714_v34 = vadd.f32 %v10989_v47, %v8253_v22  ;;  %v10922_v33 = vpop.f32.mrf.mxu0 }
 0x532   :  { %v8481_v4 = vpop.f32.mrf.mxu1  ;;  %v8254_v57 = vadd.f32 %v10922_v33, %v14837_v26  ;;  %v8971_v3 = vsel %vm8843_vm3, %v8779_v10, %v8907_v13 }
 0x533   :  { %v8974_v62 = vsel %vm8846_vm13, %v8782_v11, %v8910_v54  ;;  %v8712_v1 = vadd.f32 %v8481_v4, %v8251_v12  ;;  %vm8844_vm4 = vcmp.gt.f32.partialorder %v8780_v63, 0.0  ;;  %v8908_v24 = vmul.f32 0.01, %v8780_v63  ;;  %v8023_v45 = vpop.f32.mrf.mxu0 }
 0x534   :  { %v10990_v20 = vpop.f32.mrf.mxu1  ;;  %v10264_v60 = vpack.c.bf16 %v8974_v62, %v8973_v16  ;;  %v8785_v48 = vadd.f32 %v15047_v27, %v8714_v34  ;;  %v8252_v28 = vadd.f32 %v8023_v45, %v14845_v56 }
 0x535   :  { %v8715_v5 = vadd.f32 %v10990_v20, %v8254_v57  ;;  %v8972_v49 = vsel %vm8844_vm4, %v8780_v63, %v8908_v24  ;;  %v8783_v9 = vadd.f32 %v15047_v27, %v8712_v1  ;;  %v10925_v23 = vpop.f32.mrf.mxu0 }
 0x536   :  { %v8484_v31 = vpop.f32.mrf.mxu1  ;;  %10408 = vst [vmem:[#allocation7 + $0x18] sm:$0xff] %v10264_v60   ;;  %v10259_v11 = vpack.c.bf16 %v8972_v49, %v8971_v3  ;;  %v8913_v26 = vmul.f32 0.01, %v8785_v48  ;;  %vm8849_vm5 = vcmp.gt.f32.partialorder %v8785_v48, 0.0  ;;  %v8257_v21 = vadd.f32 %v10925_v23, %v14858_v39 }
 0x537   :  { %v8786_v47 = vadd.f32 %v15047_v27, %v8715_v5  ;;  %v8713_v22 = vadd.f32 %v8484_v31, %v8252_v28  ;;  %v8036_v54 = vpop.f32.mrf.mxu0  ;;  %vm8847_vm7 = vcmp.gt.f32.partialorder %v8783_v9, 0.0  ;;  %v8911_v4 = vmul.f32 0.01, %v8783_v9 }
 0x538   :  { %v10993_v43 = vpop.f32.mrf.mxu1  ;;  %10407 = vst [vmem:[#allocation7 + $0x10] sm:$0xff] %v10259_v11   ;;  %v8255_v10 = vadd.f32 %v8036_v54, %v14866_v0  ;;  %v8977_v33 = vsel %vm8849_vm5, %v8785_v48, %v8913_v26 }
 0x539   :  { %vm8850_vm6 = vcmp.gt.f32.partialorder %v8786_v47, 0.0  ;;  %v8914_v56 = vmul.f32 0.01, %v8786_v47  ;;  %v8784_v13 = vadd.f32 %v15047_v27, %v8713_v22  ;;  %v8718_v63 = vadd.f32 %v10993_v43, %v8257_v21  ;;  %v10926_v34 = vpop.f32.mrf.mxu0 }
 0x53a   :  { %v8497_v12 = vpop.f32.mrf.mxu1  ;;  %v8258_v1 = vadd.f32 %v10926_v34, %v14881_v46  ;;  %v8975_v28 = vsel %vm8847_vm7, %v8783_v9, %v8911_v4 }
 0x53b   :  { %v8978_v16 = vsel %vm8850_vm6, %v8786_v47, %v8914_v56  ;;  %v8716_v62 = vadd.f32 %v8497_v12, %v8255_v10  ;;  %vm8848_vm8 = vcmp.gt.f32.partialorder %v8784_v13, 0.0  ;;  %v8912_v20 = vmul.f32 0.01, %v8784_v13  ;;  %v8039_v24 = vpop.f32.mrf.mxu0 }
 0x53c   :  { %v10994_v57 = vpop.f32.mrf.mxu1  ;;  %v10274_v39 = vpack.c.bf16 %v8978_v16, %v8977_v33  ;;  %v8789_v60 = vadd.f32 %v15047_v27, %v8718_v63  ;;  %v8256_v45 = vadd.f32 %v8039_v24, %v14891_v15 }
 0x53d   :  { %v8719_v0 = vadd.f32 %v10994_v57, %v8258_v1  ;;  %v8976_v31 = vsel %vm8848_vm8, %v8784_v13, %v8912_v20  ;;  %v8787_v48 = vadd.f32 %v15047_v27, %v8716_v62  ;;  %v10929_v3 = vpop.f32.mrf.mxu0 }
 0x53e   :  { %v8500_v5 = vpop.f32.mrf.mxu1  ;;  %10410 = vst [vmem:[#allocation7 + $0x28] sm:$0xff] %v10274_v39   ;;  %v10269_v49 = vpack.c.bf16 %v8976_v31, %v8975_v28  ;;  %v8917_v46 = vmul.f32 0.01, %v8789_v60  ;;  %vm8853_vm9 = vcmp.gt.f32.partialorder %v8789_v60, 0.0  ;;  %v8261_v47 = vadd.f32 %v10929_v3, %v14900_v50 }
 0x53f   :  { %v8790_v23 = vadd.f32 %v15047_v27, %v8719_v0  ;;  %v8717_v26 = vadd.f32 %v8500_v5, %v8256_v45  ;;  %v8052_v43 = vpop.f32.mrf.mxu0  ;;  %vm8851_vm11 = vcmp.gt.f32.partialorder %v8787_v48, 0.0  ;;  %v8915_v21 = vmul.f32 0.01, %v8787_v48 }
 0x540   :  { %v10997_v11 = vpop.f32.mrf.mxu1  ;;  %10409 = vst [vmem:[#allocation7 + $0x20] sm:$0xff] %v10269_v49   ;;  %v8259_v9 = vadd.f32 %v8052_v43, %v14911_v29  ;;  %v8981_v12 = vsel %vm8853_vm9, %v8789_v60, %v8917_v46 }
 0x541   :  { %vm8854_vm10 = vcmp.gt.f32.partialorder %v8790_v23, 0.0  ;;  %v8918_v15 = vmul.f32 0.01, %v8790_v23  ;;  %v8788_v54 = vadd.f32 %v15047_v27, %v8717_v26  ;;  %v8722_v56 = vadd.f32 %v10997_v11, %v8261_v47  ;;  %v10930_v10 = vpop.f32.mrf.mxu0 }
 0x542   :  { %v8513_v22 = vpop.f32.mrf.mxu1  ;;  %v8262_v63 = vadd.f32 %v10930_v10, %v14920_v25  ;;  %v8979_v39 = vsel %vm8851_vm11, %v8787_v48, %v8915_v21 }
 0x543   :  { %v8982_v4 = vsel %vm8854_vm10, %v8790_v23, %v8918_v15  ;;  %v8720_v13 = vadd.f32 %v8513_v22, %v8259_v9  ;;  %vm8852_vm12 = vcmp.gt.f32.partialorder %v8788_v54, 0.0  ;;  %v8916_v33 = vmul.f32 0.01, %v8788_v54  ;;  %v8055_v62 = vpop.f32.mrf.mxu0 }
 0x544   :  { %v10998_v34 = vpop.f32.mrf.mxu1  ;;  %v10284_v50 = vpack.c.bf16 %v8982_v4, %v8981_v12  ;;  %v8793_v16 = vadd.f32 %v15047_v27, %v8722_v56  ;;  %v8260_v1 = vadd.f32 %v8055_v62, %v14924_v35 }
 0x545   :  { %v8723_v29 = vadd.f32 %v10998_v34, %v8262_v63  ;;  %v8980_v20 = vsel %vm8852_vm12, %v8788_v54, %v8916_v33  ;;  %v8791_v60 = vadd.f32 %v15047_v27, %v8720_v13  ;;  %v10933_v24 = vpop.f32.mrf.mxu0 }
 0x546   :  { %v8516_v57 = vpop.f32.mrf.mxu1  ;;  %10412 = vst [vmem:[#allocation7 + $0x38] sm:$0xff] %v10284_v50   ;;  %v10279_v0 = vpack.c.bf16 %v8980_v20, %v8979_v39  ;;  %v8921_v25 = vmul.f32 0.01, %v8793_v16  ;;  %vm8857_vm0 = vcmp.gt.f32.partialorder %v8793_v16, 0.0  ;;  %v8265_v31 = vadd.f32 %v10933_v24, %v14930_v58 }
 0x547   :  { %v8794_v45 = vadd.f32 %v15047_v27, %v8723_v29  ;;  %v8721_v28 = vadd.f32 %v8516_v57, %v8260_v1  ;;  %v8068_v3 = vpop.f32.mrf.mxu0  ;;  %vm8855_vm15 = vcmp.gt.f32.partialorder %v8791_v60, 0.0  ;;  %v8919_v46 = vmul.f32 0.01, %v8791_v60 }
 0x548   :  { %v11001_v5 = vpop.f32.mrf.mxu1  ;;  %10411 = vst [vmem:[#allocation7 + $0x30] sm:$0xff] %v10279_v0   ;;  %v8263_v48 = vadd.f32 %v8068_v3, %v14939_v30  ;;  %v8985_v47 = vsel %vm8857_vm0, %v8793_v16, %v8921_v25 }
 0x549   :  { %vm8858_vm14 = vcmp.gt.f32.partialorder %v8794_v45, 0.0  ;;  %v8922_v35 = vmul.f32 0.01, %v8794_v45  ;;  %v8792_v23 = vadd.f32 %v15047_v27, %v8721_v28  ;;  %v8726_v11 = vadd.f32 %v11001_v5, %v8265_v31  ;;  %v10934_v26 = vpop.f32.mrf.mxu0 }
 0x54a   :  { %v8529_v49 = vpop.f32.mrf.mxu1  ;;  %v8266_v9 = vadd.f32 %v10934_v26, %v14951_v17  ;;  %v8983_v4 = vsel %vm8855_vm15, %v8791_v60, %v8919_v46 }
 0x54b   :  { %v8986_v43 = vsel %vm8858_vm14, %v8794_v45, %v8922_v35  ;;  %v8724_v15 = vadd.f32 %v8529_v49, %v8263_v48  ;;  %vm8856_vm1 = vcmp.gt.f32.partialorder %v8792_v23, 0.0  ;;  %v8920_v21 = vmul.f32 0.01, %v8792_v23  ;;  %v8071_v56 = vpop.f32.mrf.mxu0 }
 0x54c   :  { %v11002_v22 = vpop.f32.mrf.mxu1  ;;  %v10294_v58 = vpack.c.bf16 %v8986_v43, %v8985_v47  ;;  %v8797_v54 = vadd.f32 %v15047_v27, %v8726_v11  ;;  %v8264_v10 = vadd.f32 %v8071_v56, %v14954_v18 }
 0x54d   :  { %v8727_v30 = vadd.f32 %v11002_v22, %v8266_v9  ;;  %v8984_v13 = vsel %vm8856_vm1, %v8792_v23, %v8920_v21  ;;  %v8795_v63 = vadd.f32 %v15047_v27, %v8724_v15  ;;  %v10937_v34 = vpop.f32.mrf.mxu0 }
 0x54e   :  { %v8532_v12 = vpop.f32.mrf.mxu1  ;;  %10414 = vst [vmem:[#allocation7 + $0x48] sm:$0xff] %v10294_v58   ;;  %v10289_v50 = vpack.c.bf16 %v8984_v13, %v8983_v4  ;;  %v8925_v17 = vmul.f32 0.01, %v8797_v54  ;;  %vm8861_vm2 = vcmp.gt.f32.partialorder %v8797_v54, 0.0  ;;  %v8269_v29 = vadd.f32 %v10937_v34, %v14959_v38 }
 0x54f   :  { %v8798_v33 = vadd.f32 %v15047_v27, %v8727_v30  ;;  %v8725_v62 = vadd.f32 %v8532_v12, %v8264_v10  ;;  %v8084_v1 = vpop.f32.mrf.mxu0  ;;  %vm8859_vm3 = vcmp.gt.f32.partialorder %v8795_v63, 0.0  ;;  %v8923_v20 = vmul.f32 0.01, %v8795_v63 }
 0x550   :  { %v11005_v16 = vpop.f32.mrf.mxu1  ;;  %10413 = vst [vmem:[#allocation7 + $0x40] sm:$0xff] %v10289_v50   ;;  %v8267_v57 = vadd.f32 %v8084_v1, %v14963_v7  ;;  %v8989_v25 = vsel %vm8861_vm2, %v8797_v54, %v8925_v17 }
 0x551   :  { %vm8862_vm13 = vcmp.gt.f32.partialorder %v8798_v33, 0.0  ;;  %v8926_v18 = vmul.f32 0.01, %v8798_v33  ;;  %v8796_v60 = vadd.f32 %v15047_v27, %v8725_v62  ;;  %v8730_v24 = vadd.f32 %v11005_v16, %v8269_v29  ;;  %v10938_v0 = vpop.f32.mrf.mxu0 }
 0x552   :  { %v8545_v39 = vpop.f32.mrf.mxu1  ;;  %v8270_v28 = vadd.f32 %v10938_v0, %v14965_v51  ;;  %v8987_v23 = vsel %vm8859_vm3, %v8795_v63, %v8923_v20 }
 0x553   :  { %v8990_v45 = vsel %vm8862_vm13, %v8798_v33, %v8926_v18  ;;  %v8728_v5 = vadd.f32 %v8545_v39, %v8267_v57  ;;  %vm8860_vm4 = vcmp.gt.f32.partialorder %v8796_v60, 0.0  ;;  %v8924_v3 = vmul.f32 0.01, %v8796_v60  ;;  %v8087_v48 = vpop.f32.mrf.mxu0 }
 0x554   :  { %v11006_v31 = vpop.f32.mrf.mxu1  ;;  %v10304_v38 = vpack.c.bf16 %v8990_v45, %v8989_v25  ;;  %v8801_v35 = vadd.f32 %v15047_v27, %v8730_v24  ;;  %v8268_v49 = vadd.f32 %v8087_v48, %v14967_v61 }
 0x555   :  { %v8731_v7 = vadd.f32 %v11006_v31, %v8270_v28  ;;  %v8988_v11 = vsel %vm8860_vm4, %v8796_v60, %v8924_v3  ;;  %v8799_v26 = vadd.f32 %v15047_v27, %v8728_v5  ;;  %v10941_v47 = vpop.f32.mrf.mxu0 }
 0x556   :  { %v8548_v46 = vpop.f32.mrf.mxu1  ;;  %10416 = vst [vmem:[#allocation7 + $0x58] sm:$0xff] %v10304_v38   ;;  %v10299_v43 = vpack.c.bf16 %v8988_v11, %v8987_v23  ;;  %v8929_v51 = vmul.f32 0.01, %v8801_v35  ;;  %vm8865_vm5 = vcmp.gt.f32.partialorder %v8801_v35, 0.0  ;;  %v8273_v58 = vadd.f32 %v10941_v47, %v14971_v2 }
 0x557   :  { %v8802_v15 = vadd.f32 %v15047_v27, %v8731_v7  ;;  %v8729_v22 = vadd.f32 %v8548_v46, %v8268_v49  ;;  %v8100_v21 = vpop.f32.mrf.mxu0  ;;  %vm8863_vm7 = vcmp.gt.f32.partialorder %v8799_v26, 0.0  ;;  %v8927_v30 = vmul.f32 0.01, %v8799_v26 }
 0x558   :  { %v11009_v9 = vpop.f32.mrf.mxu1  ;;  %10415 = vst [vmem:[#allocation7 + $0x50] sm:$0xff] %v10299_v43   ;;  %v8271_v54 = vadd.f32 %v8100_v21, %v14973_v40  ;;  %v8993_v13 = vsel %vm8865_vm5, %v8801_v35, %v8929_v51 }
 0x559   :  { %vm8866_vm6 = vcmp.gt.f32.partialorder %v8802_v15, 0.0  ;;  %v8930_v61 = vmul.f32 0.01, %v8802_v15  ;;  %v8800_v10 = vadd.f32 %v15047_v27, %v8729_v22  ;;  %v8734_v12 = vadd.f32 %v11009_v9, %v8273_v58  ;;  %v10942_v4 = vpop.f32.mrf.mxu0 }
 0x55a   :  { %v8561_v56 = vpop.f32.mrf.mxu1  ;;  %v8274_v50 = vadd.f32 %v10942_v4, %v14975_v8  ;;  %v8991_v18 = vsel %vm8863_vm7, %v8799_v26, %v8927_v30 }
 0x55b   :  { %v8994_v63 = vsel %vm8866_vm6, %v8802_v15, %v8930_v61  ;;  %v8732_v34 = vadd.f32 %v8561_v56, %v8271_v54  ;;  %vm8864_vm8 = vcmp.gt.f32.partialorder %v8800_v10, 0.0  ;;  %v8928_v33 = vmul.f32 0.01, %v8800_v10  ;;  %v8103_v62 = vpop.f32.mrf.mxu0 }
 0x55c   :  { %v11010_v17 = vpop.f32.mrf.mxu1  ;;  %v10314_v2 = vpack.c.bf16 %v8994_v63, %v8993_v13  ;;  %v8805_v16 = vadd.f32 %v15047_v27, %v8734_v12  ;;  %v8272_v29 = vadd.f32 %v8103_v62, %v14977_v14 }
 0x55d   :  { %v8735_v40 = vadd.f32 %v11010_v17, %v8274_v50  ;;  %v8992_v57 = vsel %vm8864_vm8, %v8800_v10, %v8928_v33  ;;  %v8803_v39 = vadd.f32 %v15047_v27, %v8732_v34  ;;  %v10945_v20 = vpop.f32.mrf.mxu0 }
 0x55e   :  { %v8564_v1 = vpop.f32.mrf.mxu1  ;;  %10418 = vst [vmem:[#allocation7 + $0x68] sm:$0xff] %v10314_v2   ;;  %v10309_v60 = vpack.c.bf16 %v8992_v57, %v8991_v18  ;;  %v8933_v8 = vmul.f32 0.01, %v8805_v16  ;;  %vm8869_vm9 = vcmp.gt.f32.partialorder %v8805_v16, 0.0  ;;  %v8277_v45 = vadd.f32 %v10945_v20, %v14979_v32 }
 0x55f   :  { %v8806_v24 = vadd.f32 %v15047_v27, %v8735_v40  ;;  %v8733_v25 = vadd.f32 %v8564_v1, %v8272_v29  ;;  %v8116_v5 = vpop.f32.mrf.mxu0  ;;  %vm8867_vm11 = vcmp.gt.f32.partialorder %v8803_v39, 0.0  ;;  %v8931_v38 = vmul.f32 0.01, %v8803_v39 }
 0x560   :  { %v11013_v0 = vpop.f32.mrf.mxu1  ;;  %10417 = vst [vmem:[#allocation7 + $0x60] sm:$0xff] %v10309_v60   ;;  %v8275_v28 = vadd.f32 %v8116_v5, %v14981_v59  ;;  %v8997_v7 = vsel %vm8869_vm9, %v8805_v16, %v8933_v8 }
 0x561   :  { %vm8870_vm10 = vcmp.gt.f32.partialorder %v8806_v24, 0.0  ;;  %v8934_v14 = vmul.f32 0.01, %v8806_v24  ;;  %v8804_v3 = vadd.f32 %v15047_v27, %v8733_v25  ;;  %v8738_v35 = vadd.f32 %v11013_v0, %v8277_v45  ;;  %v10946_v48 = vpop.f32.mrf.mxu0 }
 0x562   :  { %v8577_v31 = vpop.f32.mrf.mxu1  ;;  %v8278_v23 = vadd.f32 %v10946_v48, %v14983_v36  ;;  %v8995_v9 = vsel %vm8867_vm11, %v8803_v39, %v8931_v38 }
 0x563   :  { %v8998_v49 = vsel %vm8870_vm10, %v8806_v24, %v8934_v14  ;;  %v8736_v46 = vadd.f32 %v8577_v31, %v8275_v28  ;;  %vm8868_vm12 = vcmp.gt.f32.partialorder %v8804_v3, 0.0  ;;  %v8932_v26 = vmul.f32 0.01, %v8804_v3  ;;  %v8119_v43 = vpop.f32.mrf.mxu0 }
 0x564   :  { %v11014_v11 = vpop.f32.mrf.mxu1  ;;  %v10324_v32 = vpack.c.bf16 %v8998_v49, %v8997_v7  ;;  %v8809_v47 = vadd.f32 %v15047_v27, %v8738_v35  ;;  %v8276_v51 = vadd.f32 %v8119_v43, %v14985_v55 }
 0x565   :  { %v8739_v59 = vadd.f32 %v11014_v11, %v8278_v23  ;;  %v8996_v22 = vsel %vm8868_vm12, %v8804_v3, %v8932_v26  ;;  %v8807_v58 = vadd.f32 %v15047_v27, %v8736_v46  ;;  %v10949_v21 = vpop.f32.mrf.mxu0 }
 0x566   :  { %v8580_v15 = vpop.f32.mrf.mxu1  ;;  %10420 = vst [vmem:[#allocation7 + $0x78] sm:$0xff] %v10324_v32   ;;  %v10319_v61 = vpack.c.bf16 %v8996_v22, %v8995_v9  ;;  %v8937_v36 = vmul.f32 0.01, %v8809_v47  ;;  %vm8873_vm0 = vcmp.gt.f32.partialorder %v8809_v47, 0.0  ;;  %v8281_v10 = vadd.f32 %v10949_v21, %v14987_v42 }
 0x567   :  { %v8810_v54 = vadd.f32 %v15047_v27, %v8739_v59  ;;  %v8737_v30 = vadd.f32 %v8580_v15, %v8276_v51  ;;  %v8132_v12 = vpop.f32.mrf.mxu0  ;;  %vm8871_vm15 = vcmp.gt.f32.partialorder %v8807_v58, 0.0  ;;  %v8935_v63 = vmul.f32 0.01, %v8807_v58 }
 0x568   :  { %v11017_v56 = vpop.f32.mrf.mxu1  ;;  %10419 = vst [vmem:[#allocation7 + $0x70] sm:$0xff] %v10319_v61   ;;  %v8279_v4 = vadd.f32 %v8132_v12, %v14989_v44  ;;  %v9001_v2 = vsel %vm8873_vm0, %v8809_v47, %v8937_v36  ;;  %v15681_v12 = vld [vmem:[#allocation27_spill] sm:$0xff] }
 0x569   :  { %vm8874_vm14 = vcmp.gt.f32.partialorder %v8810_v54, 0.0  ;;  %v8938_v55 = vmul.f32 0.01, %v8810_v54  ;;  %v8808_v34 = vadd.f32 %v15047_v27, %v8737_v30  ;;  %v8742_v50 = vadd.f32 %v11017_v56, %v8281_v10  ;;  %v10950_v17 = vpop.f32.mrf.mxu0  ;;  %v15680_v56 = vld [vmem:[#allocation26_spill] sm:$0xff] }
 0x56a   :  { %v8593_v13 = vpop.f32.mrf.mxu1  ;;  %v8282_v62 = vadd.f32 %v10950_v17, %v14991_v41  ;;  %v8999_v20 = vsel %vm8871_vm15, %v8807_v58, %v8935_v63 }
 0x56b   :  { %v9002_v33 = vsel %vm8874_vm14, %v8810_v54, %v8938_v55  ;;  %v8740_v16 = vadd.f32 %v8593_v13, %v8279_v4  ;;  %vm8872_vm1 = vcmp.gt.f32.partialorder %v8808_v34, 0.0  ;;  %v8936_v29 = vmul.f32 0.01, %v8808_v34  ;;  %v8135_v18 = vpop.f32.mrf.mxu0 }
 0x56c   :  { %v11018_v40 = vpop.f32.mrf.mxu1  ;;  %v10334_v42 = vpack.c.bf16 %v9002_v33, %v9001_v2  ;;  %v8813_v1 = vadd.f32 %v15047_v27, %v8742_v50  ;;  %v8280_v57 = vadd.f32 %v8135_v18, %v14993_v37 }
 0x56d   :  { %v8743_v44 = vadd.f32 %v11018_v40, %v8282_v62  ;;  %v9000_v60 = vsel %vm8872_vm1, %v8808_v34, %v8936_v29  ;;  %v8811_v8 = vadd.f32 %v15047_v27, %v8740_v16  ;;  %v10953_v24 = vpop.f32.mrf.mxu0  ;;  %v15682_v16 = vld [vmem:[#allocation55_spill] sm:$0xff] }
 0x56e   :  { %v8596_v39 = vpop.f32.mrf.mxu1  ;;  %10422 = vst [vmem:[#allocation7 + $0x88] sm:$0xff] %v10334_v42   ;;  %v10329_v0 = vpack.c.bf16 %v9000_v60, %v8999_v20  ;;  %v8941_v41 = vmul.f32 0.01, %v8813_v1  ;;  %vm8877_vm2 = vcmp.gt.f32.partialorder %v8813_v1, 0.0  ;;  %v8285_v14 = vadd.f32 %v10953_v24, %v14995_v53 }
 0x56f   :  { %v8814_v25 = vadd.f32 %v15047_v27, %v8743_v44  ;;  %v8741_v5 = vadd.f32 %v8596_v39, %v8280_v57  ;;  %v8148_v28 = vpop.f32.mrf.mxu0  ;;  %vm8875_vm3 = vcmp.gt.f32.partialorder %v8811_v8, 0.0  ;;  %v8939_v3 = vmul.f32 0.01, %v8811_v8  ;;  %v15683_v57 = vld [vmem:[#allocation54_spill] sm:$0xff] }
 0x570   :  { %v11021_v45 = vpop.f32.mrf.mxu1  ;;  %10421 = vst [vmem:[#allocation7 + $0x80] sm:$0xff] %v10329_v0   ;;  %v8283_v31 = vadd.f32 %v8148_v28, %v14997_v6  ;;  %v9005_v49 = vsel %vm8877_vm2, %v8813_v1, %v8941_v41  ;;  %v15684_v28 = vld [vmem:[#allocation57_spill] sm:$0xff] }
 0x571   :  { %vm8878_vm13 = vcmp.gt.f32.partialorder %v8814_v25, 0.0  ;;  %v8942_v37 = vmul.f32 0.01, %v8814_v25  ;;  %v8812_v35 = vadd.f32 %v15047_v27, %v8741_v5  ;;  %v8746_v48 = vadd.f32 %v11021_v45, %v8285_v14  ;;  %v10954_v7 = vpop.f32.mrf.mxu0 }
 0x572   :  { %v8609_v38 = vpop.f32.mrf.mxu1  ;;  %v8286_v11 = vadd.f32 %v10954_v7, %v14999_v19  ;;  %v9003_v15 = vsel %vm8875_vm3, %v8811_v8, %v8939_v3  ;;  %v15685_v3 = vld [vmem:[#allocation56_spill] sm:$0xff] }
 0x573   :  { %v9006_v46 = vsel %vm8878_vm13, %v8814_v25, %v8942_v37  ;;  %v8744_v23 = vadd.f32 %v8609_v38, %v8283_v31  ;;  %vm8876_vm4 = vcmp.gt.f32.partialorder %v8812_v35, 0.0  ;;  %v8940_v26 = vmul.f32 0.01, %v8812_v35  ;;  %v8151_v43 = vpop.f32.mrf.mxu0 }
 0x574   :  { %v11022_v32 = vpop.f32.mrf.mxu1  ;;  %v10344_v53 = vpack.c.bf16 %v9006_v46, %v9005_v49  ;;  %v8817_v47 = vadd.f32 %v15047_v27, %v8746_v48  ;;  %v8284_v59 = vadd.f32 %v8151_v43, %v15001_v52 }
 0x575   :  { %v8747_v6 = vadd.f32 %v11022_v32, %v8286_v11  ;;  %v9004_v9 = vsel %vm8876_vm4, %v8812_v35, %v8940_v26  ;;  %v8815_v22 = vadd.f32 %v15047_v27, %v8744_v23  ;;  %v10957_v58 = vpop.f32.mrf.mxu0  ;;  %v15686_v26 = vld [vmem:[#allocation28_spill] sm:$0xff] }
 0x576   :  { %v8612_v51 = vpop.f32.mrf.mxu1  ;;  %10424 = vst [vmem:[#allocation7 + $0x98] sm:$0xff] %v10344_v53   ;;  %v10339_v21 = vpack.c.bf16 %v9004_v9, %v9003_v15  ;;  %v8945_v19 = vmul.f32 0.01, %v8817_v47  ;;  %vm8881_vm5 = vcmp.gt.f32.partialorder %v8817_v47, 0.0  ;;  %v8289_v30 = vadd.f32 %v10957_v58, %v15680_v56 }
 0x577   :  { %v8818_v61 = vadd.f32 %v15047_v27, %v8747_v6  ;;  %v8745_v54 = vadd.f32 %v8612_v51, %v8284_v59  ;;  %v8164_v10 = vpop.f32.mrf.mxu0  ;;  %vm8879_vm7 = vcmp.gt.f32.partialorder %v8815_v22, 0.0  ;;  %v8943_v13 = vmul.f32 0.01, %v8815_v22 }
 0x578   :  { %v11025_v36 = vpop.f32.mrf.mxu1  ;;  %10423 = vst [vmem:[#allocation7 + $0x90] sm:$0xff] %v10339_v21   ;;  %v8287_v55 = vadd.f32 %v8164_v10, %v15681_v12  ;;  %v9009_v17 = vsel %vm8881_vm5, %v8817_v47, %v8945_v19 }
 0x579   :  { %vm8882_vm6 = vcmp.gt.f32.partialorder %v8818_v61, 0.0  ;;  %v8946_v52 = vmul.f32 0.01, %v8818_v61  ;;  %v8816_v63 = vadd.f32 %v15047_v27, %v8745_v54  ;;  %v8750_v34 = vadd.f32 %v11025_v36, %v8289_v30  ;;  %v10958_v50 = vpop.f32.mrf.mxu0 }
 0x57a   :  { %v8625_v4 = vpop.f32.mrf.mxu1  ;;  %v8290_v62 = vadd.f32 %v10958_v50, %v15682_v16  ;;  %v9007_v60 = vsel %vm8879_vm7, %v8815_v22, %v8943_v13  ;;  %v15687_v22 = vld [vmem:[#allocation29_spill] sm:$0xff] }
 0x57b   :  { %v9010_v2 = vsel %vm8882_vm6, %v8818_v61, %v8946_v52  ;;  %v8748_v33 = vadd.f32 %v8625_v4, %v8287_v55  ;;  %vm8880_vm8 = vcmp.gt.f32.partialorder %v8816_v63, 0.0  ;;  %v8944_v29 = vmul.f32 0.01, %v8816_v63  ;;  %v8167_v18 = vpop.f32.mrf.mxu0  ;;  %v15688_v55 = vld [vmem:[#allocation59_spill] sm:$0xff] }
 0x57c   :  { %v11026_v40 = vpop.f32.mrf.mxu1  ;;  %v10354_v42 = vpack.c.bf16 %v9010_v2, %v9009_v17  ;;  %v8821_v1 = vadd.f32 %v15047_v27, %v8750_v34  ;;  %v8288_v39 = vadd.f32 %v8167_v18, %v15683_v57  ;;  %v15689_v34 = vld [vmem:[#allocation58_spill] sm:$0xff] }
 0x57d   :  { %v8751_v44 = vadd.f32 %v11026_v40, %v8290_v62  ;;  %v9008_v8 = vsel %vm8880_vm8, %v8816_v63, %v8944_v29  ;;  %v8819_v24 = vadd.f32 %v15047_v27, %v8748_v33  ;;  %v10961_v0 = vpop.f32.mrf.mxu0 }
 0x57e   :  { %v8628_v20 = vpop.f32.mrf.mxu1  ;;  %10426 = vst [vmem:[#allocation7 + $0xa8] sm:$0xff] %v10354_v42   ;;  %v10349_v41 = vpack.c.bf16 %v9008_v8, %v9007_v60  ;;  %v8949_v25 = vmul.f32 0.01, %v8821_v1  ;;  %vm8885_vm9 = vcmp.gt.f32.partialorder %v8821_v1, 0.0  ;;  %v8293_v37 = vadd.f32 %v10961_v0, %v15684_v28 }
 0x57f   :  { %v8822_v45 = vadd.f32 %v15047_v27, %v8751_v44  ;;  %v8749_v14 = vadd.f32 %v8628_v20, %v8288_v39  ;;  %v8180_v31 = vpop.f32.mrf.mxu0  ;;  %vm8883_vm11 = vcmp.gt.f32.partialorder %v8819_v24, 0.0  ;;  %v8947_v7 = vmul.f32 0.01, %v8819_v24 }
 0x580   :  { %v11029_v5 = vpop.f32.mrf.mxu1  ;;  %10425 = vst [vmem:[#allocation7 + $0xa0] sm:$0xff] %v10349_v41   ;;  %v8291_v35 = vadd.f32 %v8180_v31, %v15685_v3  ;;  %v9013_v11 = vsel %vm8885_vm9, %v8821_v1, %v8949_v25  ;;  %v15690_v1 = vld [vmem:[#allocation61_spill] sm:$0xff] }
 0x581   :  { %vm8886_vm10 = vcmp.gt.f32.partialorder %v8822_v45, 0.0  ;;  %v8950_v38 = vmul.f32 0.01, %v8822_v45  ;;  %v8820_v49 = vadd.f32 %v15047_v27, %v8749_v14  ;;  %v8754_v46 = vadd.f32 %v11029_v5, %v8293_v37  ;;  %v10962_v23 = vpop.f32.mrf.mxu0 }
 0x582   :  { %v8641_v48 = vpop.f32.mrf.mxu1  ;;  %v8294_v47 = vadd.f32 %v10962_v23, %v15686_v26  ;;  %v9011_v19 = vsel %vm8883_vm11, %v8819_v24, %v8947_v7  ;;  %v15691_v24 = vld [vmem:[#allocation60_spill] sm:$0xff] }
 0x583   :  { %v9014_v32 = vsel %vm8886_vm10, %v8822_v45, %v8950_v38  ;;  %v8752_v53 = vadd.f32 %v8641_v48, %v8291_v35  ;;  %vm8884_vm12 = vcmp.gt.f32.partialorder %v8820_v49, 0.0  ;;  %v8948_v59 = vmul.f32 0.01, %v8820_v49  ;;  %v8183_v15 = vpop.f32.mrf.mxu0  ;;  %v15692_v35 = vld [vmem:[#allocation94_spill] sm:$0xff] }
 0x584   :  { %v11030_v43 = vpop.f32.mrf.mxu1  ;;  %v10364_v6 = vpack.c.bf16 %v9014_v32, %v9013_v11  ;;  %v8825_v51 = vadd.f32 %v15047_v27, %v8754_v46  ;;  %v8292_v58 = vadd.f32 %v8183_v15, %v15687_v22  ;;  %v15693_v46 = vld [vmem:[#allocation63_spill] sm:$0xff] }
 0x585   :  { %v8755_v9 = vadd.f32 %v11030_v43, %v8294_v47  ;;  %v9012_v61 = vsel %vm8884_vm12, %v8820_v49, %v8948_v59  ;;  %v8823_v36 = vadd.f32 %v15047_v27, %v8752_v53  ;;  %v10965_v54 = vpop.f32.mrf.mxu0 }
 0x586   :  { %v8644_v21 = vpop.f32.mrf.mxu1  ;;  %10428 = vst [vmem:[#allocation7 + $0xb8] sm:$0xff] %v10364_v6   ;;  %v10359_v56 = vpack.c.bf16 %v9012_v61, %v9011_v19  ;;  %v8953_v30 = vmul.f32 0.01, %v8825_v51  ;;  %vm8889_vm0 = vcmp.gt.f32.partialorder %v8825_v51, 0.0  ;;  %v8297_v4 = vadd.f32 %v10965_v54, %v15688_v55 }
 0x587   :  { %v8826_v10 = vadd.f32 %v15047_v27, %v8755_v9  ;;  %v8753_v12 = vadd.f32 %v8644_v21, %v8292_v58  ;;  %v8196_v13 = vpop.f32.mrf.mxu0  ;;  %vm8887_vm15 = vcmp.gt.f32.partialorder %v8823_v36, 0.0  ;;  %v8951_v2 = vmul.f32 0.01, %v8823_v36 }
 0x588   :  { %v11033_v52 = vpop.f32.mrf.mxu1  ;;  %10427 = vst [vmem:[#allocation7 + $0xb0] sm:$0xff] %v10359_v56   ;;  %v8295_v50 = vadd.f32 %v8196_v13, %v15689_v34  ;;  %v9017_v40 = vsel %vm8889_vm0, %v8825_v51, %v8953_v30  ;;  %v15694_v51 = vld [vmem:[#allocation62_spill] sm:$0xff] }
 0x589   :  { %vm8890_vm14 = vcmp.gt.f32.partialorder %v8826_v10, 0.0  ;;  %v8954_v63 = vmul.f32 0.01, %v8826_v10  ;;  %v8824_v33 = vadd.f32 %v15047_v27, %v8753_v12  ;;  %v8758_v16 = vadd.f32 %v11033_v52, %v8297_v4  ;;  %v10966_v62 = vpop.f32.mrf.mxu0  ;;  %v11801_v52 = vld [vmem:[%s15202_s13] ss:$0 sm:$0xff]  ;;  %s11873_s13 = smov [#allocation7]  }
 0x58a   :  { %v8657_v17 = vpop.f32.mrf.mxu1  ;;  %v8298_v18 = vadd.f32 %v10966_v62, %v15690_v1  ;;  %v9015_v25 = vsel %vm8887_vm15, %v8823_v36, %v8951_v2  ;;  %v15695_v36 = vld [vmem:[#allocation65_spill] sm:$0xff]  ;;  %s9356_s29 = sshll.u32 %s11873_s13, 4  ;;  %s9357_s29 = int_to_ptr.vmem [resolvable:$true] %s9356_s29 }
 0x58b   :  { %v9018_v42 = vsel %vm8890_vm14, %v8826_v10, %v8954_v63  ;;  %v8756_v29 = vadd.f32 %v8657_v17, %v8295_v50  ;;  %vm8888_vm1 = vcmp.gt.f32.partialorder %v8824_v33, 0.0  ;;  %v8952_v39 = vmul.f32 0.01, %v8824_v33  ;;  %v8199_v60 = vpop.f32.mrf.mxu0  ;;  %v15696_v50 = vld [vmem:[#allocation64_spill] sm:$0xff]  ;;  %s11842_s30 = scalar_lea.vmem %s9357_s29, 4096  ;;  %p11847_p11 = scmp.lt.s32.totalorder %s9357_s29, %s9357_s29 }
 0x58c   :  { %v11034_v44 = vpop.f32.mrf.mxu1  ;;  %v10374_v57 = vpack.c.bf16 %v9018_v42, %v9017_v40  ;;  %v8829_v20 = vadd.f32 %v15047_v27, %v8758_v16  ;;  %v8296_v0 = vadd.f32 %v8199_v60, %v15691_v24  ;;  %v15697_v16 = vld [vmem:[#allocation95_spill] sm:$0xff]  ;;  %p11843_p10 = scmp.ne.s32.totalorder %s9357_s29, %s11842_s30  ;;  %p11848_p12 = scmp.lt.s32.totalorder %s11842_s30, %s11842_s30 }
 0x58d   :  { %v8759_v8 = vadd.f32 %v11034_v44, %v8298_v18  ;;  %v9016_v45 = vsel %vm8888_vm1, %v8824_v33, %v8952_v39  ;;  %v8827_v5 = vadd.f32 %v15047_v27, %v8756_v29  ;;  %v10969_v14 = vpop.f32.mrf.mxu0 }
 0x58e   :  { %v8660_v41 = vpop.f32.mrf.mxu1  ;;  %10430 = vst [vmem:[#allocation7 + $0xc8] sm:$0xff] %v10374_v57   ;;  %v10369_v28 = vpack.c.bf16 %v9016_v45, %v9015_v25  ;;  %v8957_v37 = vmul.f32 0.01, %v8829_v20  ;;  %vm8893_vm2 = vcmp.gt.f32.partialorder %v8829_v20, 0.0  ;;  %v8301_v48 = vadd.f32 %v10969_v14, %v15692_v35  ;;  %p11849_p13 = por %p11848_p12, %p11847_p11 }
 0x58f   :  { %v8830_v31 = vadd.f32 %v15047_v27, %v8759_v8  ;;  %v8757_v3 = vadd.f32 %v8660_v41, %v8296_v0  ;;  %v8212_v7 = vpop.f32.mrf.mxu0  ;;  %vm8891_vm3 = vcmp.gt.f32.partialorder %v8827_v5, 0.0  ;;  %v8955_v32 = vmul.f32 0.01, %v8827_v5 }
 0x590   :  { %v11037_v38 = vpop.f32.mrf.mxu1  ;;  %10429 = vst [vmem:[#allocation7 + $0xc0] sm:$0xff] %v10369_v28   ;;  %v8299_v23 = vadd.f32 %v8212_v7, %v15693_v46  ;;  %v9021_v43 = vsel %vm8893_vm2, %v8829_v20, %v8957_v37  ;;  %v15698_v20 = vld [vmem:[#allocation67_spill] sm:$0xff]  ;;  %p11850_p0 = pnand %p11849_p13, %p11843_p10 }
 0x591   :  { %vm8894_vm13 = vcmp.gt.f32.partialorder %v8830_v31, 0.0  ;;  %v8958_v49 = vmul.f32 0.01, %v8830_v31  ;;  %v8828_v53 = vadd.f32 %v15047_v27, %v8757_v3  ;;  %v8762_v26 = vadd.f32 %v11037_v38, %v8301_v48  ;;  %v10970_v47 = vpop.f32.mrf.mxu0 }
 0x592   :  { %v8673_v11 = vpop.f32.mrf.mxu1  ;;  %v8302_v15 = vadd.f32 %v10970_v47, %v15694_v51  ;;  %v9019_v30 = vsel %vm8891_vm3, %v8827_v5, %v8955_v32  ;;  %v15699_v5 = vld [vmem:[#allocation66_spill] sm:$0xff] }
 0x593   :  { %v9022_v6 = vsel %vm8894_vm13, %v8830_v31, %v8958_v49  ;;  %v8760_v59 = vadd.f32 %v8673_v11, %v8299_v23  ;;  %vm8892_vm4 = vcmp.gt.f32.partialorder %v8828_v53, 0.0  ;;  %v8956_v58 = vmul.f32 0.01, %v8828_v53  ;;  %v8215_v19 = vpop.f32.mrf.mxu0 }
 0x594   :  { %v11038_v9 = vpop.f32.mrf.mxu1  ;;  %v10384_v22 = vpack.c.bf16 %v9022_v6, %v9021_v43  ;;  %v8833_v21 = vadd.f32 %v15047_v27, %v8762_v26  ;;  %v8300_v54 = vadd.f32 %v8215_v19, %v15695_v36 }
 0x595   :  { %v8763_v61 = vadd.f32 %v11038_v9, %v8302_v15  ;;  %v9020_v10 = vsel %vm8892_vm4, %v8828_v53, %v8956_v58  ;;  %v8831_v12 = vadd.f32 %v11801_v52, %v8760_v59  ;;  %v10973_v55 = vpop.f32.mrf.mxu0 }
 0x596   :  { %v8676_v56 = vpop.f32.mrf.mxu1  ;;  %10432 = vst [vmem:[#allocation7 + $0xd8] sm:$0xff] %v10384_v22   ;;  %v10379_v4 = vpack.c.bf16 %v9020_v10, %v9019_v30  ;;  %v8961_v13 = vmul.f32 0.01, %v8833_v21  ;;  %vm8897_vm5 = vcmp.gt.f32.partialorder %v8833_v21, 0.0  ;;  %v8305_v17 = vadd.f32 %v10973_v55, %v15696_v50 }
 0x597   :  { %v8834_v63 = vadd.f32 %v11801_v52, %v8763_v61  ;;  %v8761_v27 = vadd.f32 %v8676_v56, %v8300_v54  ;;  %v8228_v2 = vpop.f32.mrf.mxu0  ;;  %vm8895_vm7 = vcmp.gt.f32.partialorder %v8831_v12, 0.0  ;;  %v8959_v42 = vmul.f32 0.01, %v8831_v12 }
 0x598   :  { %v11041_v34 = vpop.f32.mrf.mxu1  ;;  %10431 = vst [vmem:[#allocation7 + $0xd0] sm:$0xff] %v10379_v4   ;;  %v8303_v62 = vadd.f32 %v8228_v2, %v15697_v16  ;;  %v9025_v44 = vsel %vm8897_vm5, %v8833_v21, %v8961_v13 }
 0x599   :  { %vm8898_vm6 = vcmp.gt.f32.partialorder %v8834_v63, 0.0  ;;  %v8962_v33 = vmul.f32 0.01, %v8834_v63  ;;  %v8832_v29 = vadd.f32 %v11801_v52, %v8761_v27  ;;  %v8766_v1 = vadd.f32 %v11041_v34, %v8305_v17  ;;  %v10974_v18 = vpop.f32.mrf.mxu0 }
 0x59a   :  { %v8689_v40 = vpop.f32.mrf.mxu1  ;;  %v8306_v60 = vadd.f32 %v10974_v18, %v15698_v20  ;;  %v9023_v28 = vsel %vm8895_vm7, %v8831_v12, %v8959_v42 }
 0x59b   :  { %v9026_v57 = vsel %vm8898_vm6, %v8834_v63, %v8962_v33  ;;  %v8764_v39 = vadd.f32 %v8689_v40, %v8303_v62  ;;  %vm8896_vm8 = vcmp.gt.f32.partialorder %v8832_v29, 0.0  ;;  %v8960_v0 = vmul.f32 0.01, %v8832_v29  ;;  %v8231_v25 = vpop.f32.mrf.mxu0 }
 0x59c   :  { %v11042_v8 = vpop.f32.mrf.mxu1  ;;  %v10394_v24 = vpack.c.bf16 %v9026_v57, %v9025_v44  ;;  %v8837_v41 = vadd.f32 %v11801_v52, %v8766_v1  ;;  %v8304_v14 = vadd.f32 %v8231_v25, %v15699_v5 }
 0x59d   :  { %v8767_v45 = vadd.f32 %v11042_v8, %v8306_v60  ;;  %v9024_v37 = vsel %vm8896_vm8, %v8832_v29, %v8960_v0  ;;  %v8835_v31 = vadd.f32 %v11801_v52, %v8764_v39 }
 0x59e   :  { %10434 = vst [vmem:[#allocation7 + $0xe8] sm:$0xff] %v10394_v24   ;;  %v10389_v38 = vpack.c.bf16 %v9024_v37, %v9023_v28  ;;  %v8965_v3 = vmul.f32 0.01, %v8837_v41  ;;  %v8692_v48 = vpop.f32.mrf.mxu1  ;;  %vm8901_vm9 = vcmp.gt.f32.partialorder %v8837_v41, 0.0 }
 0x59f   :  { %v8838_v35 = vadd.f32 %v11801_v52, %v8767_v45  ;;  %v8765_v7 = vadd.f32 %v8692_v48, %v8304_v14  ;;  %v8963_v46 = vmul.f32 0.01, %v8835_v31  ;;  %vm8899_vm11 = vcmp.gt.f32.partialorder %v8835_v31, 0.0 }
 0x5a0   :  { %10433 = vst [vmem:[#allocation7 + $0xe0] sm:$0xff] %v10389_v38   ;;  %v9029_v11 = vsel %vm8901_vm9, %v8837_v41, %v8965_v3 }
 0x5a1   :  { %vm8902_vm10 = vcmp.gt.f32.partialorder %v8838_v35, 0.0  ;;  %v8966_v49 = vmul.f32 0.01, %v8838_v35  ;;  %v8836_v23 = vadd.f32 %v11801_v52, %v8765_v7  ;;  %v9027_v47 = vsel %vm8899_vm11, %v8835_v31, %v8963_v46 }
 0x5a3   :  { %v9030_v32 = vsel %vm8902_vm10, %v8838_v35, %v8966_v49  ;;  %vm8900_vm12 = vcmp.gt.f32.partialorder %v8836_v23, 0.0  ;;  %v8964_v26 = vmul.f32 0.01, %v8836_v23 }
 0x5a4   :  { %v10404_v53 = vpack.c.bf16 %v9030_v32, %v9029_v11 }
 0x5a5   :  { %v9028_v43 = vsel %vm8900_vm12, %v8836_v23, %v8964_v26 }
 0x5a6   :  { %10436 = vst [vmem:[#allocation7 + $0xf8] sm:$0xff] %v10404_v53   ;;  %v10399_v6 = vpack.c.bf16 %v9028_v43, %v9027_v47 }
 0x5a8   :  { %10435 = vst [vmem:[#allocation7 + $0xf0] sm:$0xff] %v10399_v6  }
 0x5a9   :  { %11853 = shalt.err (!%p11850_p0)
}
 0x5aa   :  { %s11874_s15 = smov 64   ;;  %s11875_s16 = smov 4  }
 0x5ab   :  { %9362 = dma.vmem_to_hbm [thread:$0]  %s9357_s29, 4096, %s15203_s14, [#allocation4], %s11874_s15, %s11874_s15, %s11875_s16  }
 0x5ac   :  { %11866 = dma.done.wait [#allocation4], 4096  }
 0x5ad   :  { %11867 = vsyncadd [#allocation4], 4294963200 }
 0x5ae   :  { %9366 = vsyncpa [#allocation3], 1 }
 0x5af   :  { %9367 = vsyncpa [#allocation6], 1 }
 0x5b0   :  { %9368 = vsyncpa [#allocation4], 1 }

</bundles_post_ra>
